<compile_context>
chip_gen: v7x
topology: tpu7x:2x2x1
jax: 0.10.0
libtpu: 0.0.40
codegen_flags: <defaults>
</compile_context>

<pallas_src>
import numpy as np
import jax
import jax.numpy as jnp
from jax import lax
from jax.experimental import pallas as pl
from jax.experimental.pallas import tpu as pltpu

# ----------------------------- problem sizes -------------------------------
F = 16                      # num_node_features
H = 4                       # num_heads
D = 8                       # output_dim (per head)
HD = H * D                  # 32, concat output dim
LEAKY_SLOPE = 0.2

NODES_PER_GRAPH = 8
EDGES_PER_GRAPH = 16
G_B = 16                    # graphs per block
N_B = G_B * NODES_PER_GRAPH     # 128 nodes per block
E_B = G_B * EDGES_PER_GRAPH     # 256 edges per block
NB = 4                      # graph-blocks per pallas_call (grid size)
N_TOTAL = NB * N_B          # 512
E_TOTAL = NB * E_B          # 1024
G_TOTAL = NB * G_B          # 64

# const-slab layout (f32, [CONST_ROWS, CONST_COLS]):
#   rows  0:F        cols 0:3HD -> w_all = [W_src | W_dst | W_res]   [F, 3HD]
#   rows 16:16+HD    cols 0:HD  -> ablk_wide (pre @ ablk_wide = head-bcast logits)
#   row  48          cols 0:HD  -> bias
#                    cols HD:2HD-> w_read row (readout weighting)
#                    cols 2HD:3HD -> PReLU slope (broadcast)
CONST_ROWS = 56
CONST_COLS = 128


# ------------------------------- kernel ------------------------------------
def gatv2_kernel(idx_col_ref, idx_row_ref, x_ref, const_ref, out_ref, readout_ref):
    x = x_ref[...]                                         # [N_B, F]
    idx_col = idx_col_ref[...]                             # [E_B, 8] int32

    src_col = idx_col[:, 0:1]                              # [E_B, 1]
    dst_col = idx_col[:, 1:2]                              # [E_B, 1]
    nbatch_col = idx_col[0:N_B, 2:3]                       # [N_B, 1]
    dst_row = idx_row_ref[0:1, :]                          # [1, E_B]
    nbatch_row = idx_row_ref[1:2, 0:N_B]                   # [1, N_B]

    # in-kernel one-hot incidence / batch matrices (no HBM one-hot inputs)
    e_iota = lax.broadcasted_iota(jnp.int32, (E_B, N_B), 1)
    S = (src_col == e_iota).astype(jnp.float32)            # [E_B, N_B]
    Dm = (dst_col == e_iota).astype(jnp.float32)           # [E_B, N_B]
    n_iota = lax.broadcasted_iota(jnp.int32, (N_B, E_B), 0)
    DmT = (n_iota == dst_row).astype(jnp.float32)          # [N_B, E_B]
    g_iota = lax.broadcasted_iota(jnp.int32, (G_B, N_B), 0)
    B = (g_iota == nbatch_row).astype(jnp.float32)         # [G_B, N_B]

    # packed constants (single VMEM slab, one DMA)
    w_all = const_ref[0:F, 0:3 * HD]                       # [F, 3HD]
    ablk_wide = const_ref[16:16 + HD, 0:HD]                # [HD, HD]
    bias = const_ref[48:49, 0:HD]                          # [1, HD]
    w_read = const_ref[48:49, HD:2 * HD]                   # [1, HD]
    prelu = const_ref[48:49, 2 * HD:3 * HD]                # [1, HD]

    # fused node projections: [src | dst | res] in one MXU pass
    proj = jnp.dot(x, w_all, preferred_element_type=jnp.float32)      # [N_B, 3HD]
    src_p = proj[:, 0:HD]
    dst_p = proj[:, HD:2 * HD]
    res_p = proj[:, 2 * HD:3 * HD]

    # gather to edges (one-hot matmul == index_select)
    e_src = jnp.dot(S, src_p, preferred_element_type=jnp.float32)     # [E_B, HD]
    e_dst = jnp.dot(Dm, dst_p, preferred_element_type=jnp.float32)    # [E_B, HD]
    pre = e_src + e_dst
    pre = jnp.where(pre >= 0, pre, LEAKY_SLOPE * pre)                 # LeakyReLU(0.2)

    # head-broadcast attention logits directly (ablk_wide = ablk @ expand);
    # softmax normalization is deferred past the aggregation (it factors out).
    attn_wide = jnp.dot(pre, ablk_wide, preferred_element_type=jnp.float32)  # [E_B, HD]
    m = jnp.max(attn_wide, axis=1, keepdims=True)                     # [E_B, 1]
    m = jnp.max(m, axis=0, keepdims=True)                             # [1, 1] block max
    exp_wide = jnp.exp(attn_wide - m)                                 # [E_B, HD]  (EUP)

    # single scatter-add producing messages AND head-broadcast denominators
    packed = jnp.concatenate([e_src * exp_wide, exp_wide], axis=-1)   # [E_B, 2HD]
    agg = jnp.dot(DmT, packed, preferred_element_type=jnp.float32)    # [N_B, 2HD]
    inv = 1.0 / (agg[:, HD:2 * HD] + 1e-16)                           # exact (see header)

    # normalize + residual + bias + PReLU
    node_out = agg[:, 0:HD] * inv + res_p + bias
    node_out = jnp.where(node_out >= 0, node_out, prelu * node_out)
    out_ref[...] = node_out

    # ---------------- ReadoutPhase ----------------
    gate = jnp.sum(node_out * w_read, axis=-1, keepdims=True)         # [N_B, 1] (VPU+XLU)
    score = jax.nn.sigmoid(gate)
    pool_add = jnp.dot(B, score * node_out,
                       preferred_element_type=jnp.float32)            # [G_B, HD]

    # per-graph masked max, unrolled over G_B, kept in [N_B, HD] layout
    maxes = []
    for g in range(G_B):
        mask_g = nbatch_col == g                                      # [N_B, 1]
        masked = jnp.where(mask_g, node_out, -jnp.inf)
        maxes.append(jnp.max(masked, axis=0, keepdims=True))          # [1, HD]
    pool_max = jnp.concatenate(maxes, axis=0)                         # [G_B, HD]

    readout_ref[...] = jnp.concatenate([pool_add, pool_max], axis=-1)  # [G_B, 2HD]


# --------------------- one-time setup (hoisted glue) ------------------------
def build_const_slab(params):
    const = np.zeros((CONST_ROWS, CONST_COLS), np.float32)
    const[0:F, 0:HD] = np.asarray(params["W_src"])
    const[0:F, HD:2 * HD] = np.asarray(params["W_dst"])
    const[0:F, 2 * HD:3 * HD] = np.asarray(params["W_res"])

    expand = np.zeros((H, HD), np.float32)                 # head -> HD broadcast
    for h in range(H):
        expand[h, h * D:(h + 1) * D] = 1.0
    ablk = expand.T * np.asarray(params["double_attn"]).reshape(HD, 1)  # [HD, H]
    const[16:16 + HD, 0:HD] = ablk @ expand                # ablk_wide [HD, HD]

    const[48, 0:HD] = np.asarray(params["bias"])
    const[48, HD:2 * HD] = np.asarray(params["w_read"]).reshape(HD)
    const[48, 2 * HD:3 * HD] = float(np.asarray(params["prelu_a"])[0])
    return jnp.asarray(const)


def build_index_slabs(edge_src, edge_dst, batch):
    es = np.asarray(edge_src)
    ed = np.asarray(edge_dst)
    bt = np.asarray(batch)
    idx_col = np.zeros((E_TOTAL, 8), np.int32)             # per-edge column layout
    idx_row = np.full((NB * 8, E_B), N_B, np.int32)        # per-edge row layout (pad = OOR)
    for b in range(NB):
        e0, e1 = b * E_B, (b + 1) * E_B
        n0, n1 = b * N_B, (b + 1) * N_B
        g0 = b * G_B
        idx_col[e0:e1, 0] = es[e0:e1] - n0                 # local src
        idx_col[e0:e1, 1] = ed[e0:e1] - n0                 # local dst
        idx_col[e0:e0 + N_B, 2] = bt[n0:n1] - g0           # local graph id per node
        idx_row[b * 8 + 0, :] = ed[e0:e1] - n0             # local dst as a row
        idx_row[b * 8 + 1, 0:N_B] = bt[n0:n1] - g0         # local graph id as a row
    return jnp.asarray(idx_col), jnp.asarray(idx_row)


def make_gatv2_fn():
    fn = pl.pallas_call(
        gatv2_kernel,
        grid=(NB,),
        in_specs=[
            pl.BlockSpec((E_B, 8), lambda b: (b, 0)),                   # idx_col
            pl.BlockSpec((8, E_B), lambda b: (b, 0)),                   # idx_row
            pl.BlockSpec((N_B, F), lambda b: (b, 0)),                   # x
            pl.BlockSpec((CONST_ROWS, CONST_COLS), lambda b: (0, 0)),   # const slab
        ],
        out_specs=(
            pl.BlockSpec((N_B, HD), lambda b: (b, 0)),                  # node output
            pl.BlockSpec((G_B, 2 * HD), lambda b: (b, 0)),              # readout
        ),
        out_shape=(
            jax.ShapeDtypeStruct((N_TOTAL, HD), jnp.float32),
            jax.ShapeDtypeStruct((G_TOTAL, 2 * HD), jnp.float32),
        ),
        compiler_params=pltpu.CompilerParams(
            dimension_semantics=("parallel",)),             # v7x: 2 TCs split the grid
    )
    return jax.jit(fn)


# ---------------------- pure-JAX reference (for checking) ------------------
def reference_forward(x, edge_src, edge_dst, batch, params):
    n = x.shape[0]
    src_p = (x @ params["W_src"]).reshape(n, H, D)
    dst_p = (x @ params["W_dst"]).reshape(n, H, D)
    e = src_p[edge_src] + dst_p[edge_dst]
    e = jnp.where(e >= 0, e, LEAKY_SLOPE * e)
    attn = (params["double_attn"][None] * e).sum(-1)                   # [E, H]
    attn = jnp.exp(attn - attn.max())
    node_sum = jnp.zeros((n, H)).at[edge_dst].add(attn)
    attn = attn / (node_sum[edge_dst] + 1e-16)
    edge_x = src_p[edge_src] * attn[..., None]
    node_out = jnp.zeros((n, H, D)).at[edge_dst].add(edge_x)
    node_out = node_out + (x @ params["W_res"]).reshape(n, H, D)
    out = node_out.reshape(n, HD) + params["bias"]
    a = params["prelu_a"][0]
    out = jnp.where(out >= 0, out, a * out)
    score = jax.nn.sigmoid(out @ params["w_read"])
    pool_add = jnp.zeros((G_TOTAL, HD)).at[batch].add(score * out)
    pool_max = jnp.full((G_TOTAL, HD), -jnp.inf).at[batch].max(out)
    return out, jnp.concatenate([pool_add, pool_max], axis=1)


# ----------------------------- init & driver -------------------------------
def xavier(key, shape, fan_in, fan_out):
    bound = float(np.sqrt(6.0 / (fan_in + fan_out)))
    return jax.random.uniform(key, shape, jnp.float32, -bound, bound)


if __name__ == "__main__":
    key = jax.random.PRNGKey(0)
    ks = jax.random.split(key, 8)

    params = {
        # torch Linear weight is [out, in]; stored transposed for x @ W
        "W_src": xavier(ks[0], (F, HD), F, HD),
        "W_dst": xavier(ks[1], (F, HD), F, HD),
        "W_res": xavier(ks[2], (F, HD), F, HD),      # F != HD -> real linear
        "double_attn": xavier(ks[3], (H, D), H * D, D),
        "bias": jnp.zeros((HD,), jnp.float32),       # nn.init.constant_(0)
        "prelu_a": jnp.full((1,), 0.25, jnp.float32),
        "w_read": xavier(ks[4], (HD, 1), HD, 1),     # ReadoutPhase.weighting (bias=0)
    }

    # node features for NB graph-blocks (each block: 16 graphs x 8 nodes)
    x = jax.random.normal(ks[5], (N_TOTAL, F), jnp.float32)
    batch = (jnp.arange(N_TOTAL) // NODES_PER_GRAPH).astype(jnp.int32)

    # edges kept within each graph (16 per graph)
    src_local = jax.random.randint(ks[6], (G_TOTAL, EDGES_PER_GRAPH), 0, NODES_PER_GRAPH)
    dst_local = jax.random.randint(ks[7], (G_TOTAL, EDGES_PER_GRAPH), 0, NODES_PER_GRAPH)
    offs = (jnp.arange(G_TOTAL) * NODES_PER_GRAPH)[:, None]
    edge_src = (src_local + offs).reshape(-1).astype(jnp.int32)
    edge_dst = (dst_local + offs).reshape(-1).astype(jnp.int32)

    # one-time setup (hoisted out of the per-call path)
    const = build_const_slab(params)
    idx_col, idx_row = build_index_slabs(edge_src, edge_dst, batch)
    gatv2 = make_gatv2_fn()

    out, readout = gatv2(idx_col, idx_row, x, const)
    out = jax.block_until_ready(out)
    readout = jax.block_until_ready(readout)

    ref_out, ref_readout = reference_forward(x, edge_src, edge_dst, batch, params)
    assert np.allclose(np.asarray(out), np.asarray(ref_out), atol=1e-4, rtol=1e-4)
    assert np.allclose(np.asarray(readout), np.asarray(ref_readout), atol=1e-4, rtol=1e-4)

    print("KERNEL_OK")
</pallas_src>

<mosaic_0001>
module attributes {stable_mosaic.version = 11 : i64} {
  func.func @gatv2_kernel(%arg0: i32, %arg1: memref<256x8xi32, #tpu.memory_space<vmem>>, %arg2: memref<8x256xi32, #tpu.memory_space<vmem>>, %arg3: memref<128x16xf32, #tpu.memory_space<vmem>>, %arg4: memref<56x128xf32, #tpu.memory_space<vmem>>, %arg5: memref<128x32xf32, #tpu.memory_space<vmem>>, %arg6: memref<16x64xf32, #tpu.memory_space<vmem>>) attributes {dimension_semantics = [#tpu.dimension_semantics<parallel>], iteration_bounds = array<i64: 4>, scalar_prefetch = 0 : i64, scratch_operands = 0 : i64, tpu.core_type = #tpu.core_type<tc>, window_params = [{transform_indices = @transform_0, window_bounds = array<i64: 256, 8>}, {transform_indices = @transform_1, window_bounds = array<i64: 8, 256>}, {transform_indices = @transform_2, window_bounds = array<i64: 128, 16>}, {pipeline_mode = #tpu.pipeline_mode<synchronous>, transform_indices = @transform_3, window_bounds = array<i64: 56, 128>}, {transform_indices = @transform_4, window_bounds = array<i64: 128, 32>}, {transform_indices = @transform_5, window_bounds = array<i64: 16, 64>}]} {
    %c0 = arith.constant 0 : index
    %c0_0 = arith.constant 0 : index
    %0 = vector.load %arg3[%c0, %c0_0] : memref<128x16xf32, #tpu.memory_space<vmem>>, vector<128x16xf32>
    %c0_1 = arith.constant 0 : index
    %c0_2 = arith.constant 0 : index
    %1 = vector.load %arg1[%c0_1, %c0_2] : memref<256x8xi32, #tpu.memory_space<vmem>>, vector<256x8xi32>
    %2 = vector.extract_strided_slice %1 {offsets = [0, 0], sizes = [256, 1], strides = [1, 1]} : vector<256x8xi32> to vector<256x1xi32>
    %3 = vector.extract_strided_slice %1 {offsets = [0, 1], sizes = [256, 1], strides = [1, 1]} : vector<256x8xi32> to vector<256x1xi32>
    %4 = vector.extract_strided_slice %1 {offsets = [0, 2], sizes = [128, 1], strides = [1, 1]} : vector<256x8xi32> to vector<128x1xi32>
    %c0_3 = arith.constant 0 : index
    %c0_4 = arith.constant 0 : index
    %5 = vector.load %arg2[%c0_3, %c0_4] : memref<8x256xi32, #tpu.memory_space<vmem>>, vector<1x256xi32>
    %c1 = arith.constant 1 : index
    %c0_5 = arith.constant 0 : index
    %6 = vector.load %arg2[%c1, %c0_5] : memref<8x256xi32, #tpu.memory_space<vmem>>, vector<1x128xi32>
    %7 = tpu.iota {dimensions = array<i32: 1>} : vector<256x128xi32>
    %8 = vector.broadcast %2 : vector<256x1xi32> to vector<256x128xi32>
    %9 = arith.cmpi eq, %8, %7 : vector<256x128xi32>
    %10 = arith.extui %9 : vector<256x128xi1> to vector<256x128xi32>
    %11 = arith.sitofp %10 : vector<256x128xi32> to vector<256x128xf32>
    %12 = vector.broadcast %3 : vector<256x1xi32> to vector<256x128xi32>
    %13 = arith.cmpi eq, %12, %7 : vector<256x128xi32>
    %14 = arith.extui %13 : vector<256x128xi1> to vector<256x128xi32>
    %15 = arith.sitofp %14 : vector<256x128xi32> to vector<256x128xf32>
    %16 = tpu.iota {dimensions = array<i32: 0>} : vector<128x256xi32>
    %17 = vector.broadcast %5 : vector<1x256xi32> to vector<128x256xi32>
    %18 = arith.cmpi eq, %16, %17 : vector<128x256xi32>
    %19 = arith.extui %18 : vector<128x256xi1> to vector<128x256xi32>
    %20 = arith.sitofp %19 : vector<128x256xi32> to vector<128x256xf32>
    %21 = tpu.iota {dimensions = array<i32: 0>} : vector<16x128xi32>
    %22 = vector.broadcast %6 : vector<1x128xi32> to vector<16x128xi32>
    %23 = arith.cmpi eq, %21, %22 : vector<16x128xi32>
    %24 = arith.extui %23 : vector<16x128xi1> to vector<16x128xi32>
    %25 = arith.sitofp %24 : vector<16x128xi32> to vector<16x128xf32>
    %c0_6 = arith.constant 0 : index
    %c0_7 = arith.constant 0 : index
    %26 = vector.load %arg4[%c0_6, %c0_7] : memref<56x128xf32, #tpu.memory_space<vmem>>, vector<16x96xf32>
    %c16 = arith.constant 16 : index
    %c0_8 = arith.constant 0 : index
    %27 = vector.load %arg4[%c16, %c0_8] : memref<56x128xf32, #tpu.memory_space<vmem>>, vector<32x32xf32>
    %c48 = arith.constant 48 : index
    %c0_9 = arith.constant 0 : index
    %28 = vector.load %arg4[%c48, %c0_9] : memref<56x128xf32, #tpu.memory_space<vmem>>, vector<1x32xf32>
    %c48_10 = arith.constant 48 : index
    %c32 = arith.constant 32 : index
    %29 = vector.load %arg4[%c48_10, %c32] : memref<56x128xf32, #tpu.memory_space<vmem>>, vector<1x32xf32>
    %c48_11 = arith.constant 48 : index
    %c64 = arith.constant 64 : index
    %30 = vector.load %arg4[%c48_11, %c64] : memref<56x128xf32, #tpu.memory_space<vmem>>, vector<1x32xf32>
    %cst = arith.constant dense<0.000000e+00> : vector<128x96xf32>
    %31 = tpu.matmul %0, %26, %cst {dimension_numbers = #tpu.dot_dimension_numbers<[1], [0], [0], [1], [0, 0, 1, 1], [], []>} : vector<128x16xf32>, vector<16x96xf32>, vector<128x96xf32> -> vector<128x96xf32>
    %32 = vector.extract_strided_slice %31 {offsets = [0, 0], sizes = [128, 32], strides = [1, 1]} : vector<128x96xf32> to vector<128x32xf32>
    %33 = vector.extract_strided_slice %31 {offsets = [0, 32], sizes = [128, 32], strides = [1, 1]} : vector<128x96xf32> to vector<128x32xf32>
    %34 = vector.extract_strided_slice %31 {offsets = [0, 64], sizes = [128, 32], strides = [1, 1]} : vector<128x96xf32> to vector<128x32xf32>
    %cst_12 = arith.constant dense<0.000000e+00> : vector<256x32xf32>
    %35 = tpu.matmul %11, %32, %cst_12 {dimension_numbers = #tpu.dot_dimension_numbers<[1], [0], [0], [1], [0, 0, 1, 1], [], []>} : vector<256x128xf32>, vector<128x32xf32>, vector<256x32xf32> -> vector<256x32xf32>
    %cst_13 = arith.constant dense<0.000000e+00> : vector<256x32xf32>
    %36 = tpu.matmul %15, %33, %cst_13 {dimension_numbers = #tpu.dot_dimension_numbers<[1], [0], [0], [1], [0, 0, 1, 1], [], []>} : vector<256x128xf32>, vector<128x32xf32>, vector<256x32xf32> -> vector<256x32xf32>
    %37 = arith.addf %35, %36 : vector<256x32xf32>
    %cst_14 = arith.constant 0.000000e+00 : f32
    %38 = vector.broadcast %cst_14 : f32 to vector<256x32xf32>
    %39 = arith.cmpf oge, %37, %38 : vector<256x32xf32>
    %cst_15 = arith.constant 2.000000e-01 : f32
    %40 = vector.broadcast %cst_15 : f32 to vector<256x32xf32>
    %41 = arith.mulf %40, %37 : vector<256x32xf32>
    %42 = arith.select %39, %37, %41 : vector<256x32xi1>, vector<256x32xf32>
    %cst_16 = arith.constant dense<0.000000e+00> : vector<256x32xf32>
    %43 = tpu.matmul %42, %27, %cst_16 {dimension_numbers = #tpu.dot_dimension_numbers<[1], [0], [0], [1], [0, 0, 1, 1], [], []>} : vector<256x32xf32>, vector<32x32xf32>, vector<256x32xf32> -> vector<256x32xf32>
    %cst_17 = arith.constant dense<0xFF800000> : vector<256xf32>
    %44 = vector.multi_reduction <maximumf>, %43, %cst_17 [1] : vector<256x32xf32> to vector<256xf32>
    %45 = vector.shape_cast %44 : vector<256xf32> to vector<256x1xf32>
    %cst_18 = arith.constant dense<0xFF800000> : vector<1xf32>
    %46 = vector.multi_reduction <maximumf>, %45, %cst_18 [0] : vector<256x1xf32> to vector<1xf32>
    %47 = vector.shape_cast %46 : vector<1xf32> to vector<1x1xf32>
    %48 = vector.broadcast %47 : vector<1x1xf32> to vector<256x32xf32>
    %49 = arith.subf %43, %48 : vector<256x32xf32>
    %50 = math.exp %49 : vector<256x32xf32>
    %51 = arith.mulf %35, %50 : vector<256x32xf32>
    %52 = tpu.concatenate %51, %50 in 1 : vector<256x32xf32>, vector<256x32xf32> -> vector<256x64xf32>
    %cst_19 = arith.constant dense<0.000000e+00> : vector<128x64xf32>
    %53 = tpu.matmul %20, %52, %cst_19 {dimension_numbers = #tpu.dot_dimension_numbers<[1], [0], [0], [1], [0, 0, 1, 1], [], []>} : vector<128x256xf32>, vector<256x64xf32>, vector<128x64xf32> -> vector<128x64xf32>
    %54 = vector.extract_strided_slice %53 {offsets = [0, 32], sizes = [128, 32], strides = [1, 1]} : vector<128x64xf32> to vector<128x32xf32>
    %cst_20 = arith.constant 1.000000e-16 : f32
    %55 = vector.broadcast %cst_20 : f32 to vector<128x32xf32>
    %56 = arith.addf %54, %55 : vector<128x32xf32>
    %cst_21 = arith.constant 1.000000e+00 : f32
    %57 = vector.broadcast %cst_21 : f32 to vector<128x32xf32>
    %58 = arith.divf %57, %56 : vector<128x32xf32>
    %59 = vector.extract_strided_slice %53 {offsets = [0, 0], sizes = [128, 32], strides = [1, 1]} : vector<128x64xf32> to vector<128x32xf32>
    %60 = arith.mulf %59, %58 : vector<128x32xf32>
    %61 = arith.addf %60, %34 : vector<128x32xf32>
    %62 = vector.broadcast %28 : vector<1x32xf32> to vector<128x32xf32>
    %63 = arith.addf %61, %62 : vector<128x32xf32>
    %cst_22 = arith.constant 0.000000e+00 : f32
    %64 = vector.broadcast %cst_22 : f32 to vector<128x32xf32>
    %65 = arith.cmpf oge, %63, %64 : vector<128x32xf32>
    %66 = vector.broadcast %30 : vector<1x32xf32> to vector<128x32xf32>
    %67 = arith.mulf %66, %63 : vector<128x32xf32>
    %68 = arith.select %65, %63, %67 : vector<128x32xi1>, vector<128x32xf32>
    %c0_23 = arith.constant 0 : index
    %c0_24 = arith.constant 0 : index
    %69 = vector.load %arg5[%c0_23, %c0_24] : memref<128x32xf32, #tpu.memory_space<vmem>>, vector<128x32xf32>
    tpu.vector_store %arg5[%c0_23, %c0_24], %68 {strides = array<i32>} : memref<128x32xf32, #tpu.memory_space<vmem>>, vector<128x32xf32>,
    %70 = vector.broadcast %29 : vector<1x32xf32> to vector<128x32xf32>
    %71 = arith.mulf %68, %70 : vector<128x32xf32>
    %cst_25 = arith.constant dense<0.000000e+00> : vector<128xf32>
    %72 = vector.multi_reduction <add>, %71, %cst_25 [1] : vector<128x32xf32> to vector<128xf32>
    %73 = vector.shape_cast %72 : vector<128xf32> to vector<128x1xf32>
    %74 = arith.negf %73 : vector<128x1xf32>
    %75 = math.exp %74 : vector<128x1xf32>
    %cst_26 = arith.constant 1.000000e+00 : f32
    %76 = vector.broadcast %cst_26 : f32 to vector<128x1xf32>
    %77 = arith.addf %76, %75 : vector<128x1xf32>
    %78 = arith.divf %76, %77 : vector<128x1xf32>
    %79 = vector.broadcast %78 : vector<128x1xf32> to vector<128x32xf32>
    %80 = arith.mulf %79, %68 : vector<128x32xf32>
    %cst_27 = arith.constant dense<0.000000e+00> : vector<16x32xf32>
    %81 = tpu.matmul %25, %80, %cst_27 {dimension_numbers = #tpu.dot_dimension_numbers<[1], [0], [0], [1], [0, 0, 1, 1], [], []>} : vector<16x128xf32>, vector<128x32xf32>, vector<16x32xf32> -> vector<16x32xf32>
    %c0_i32 = arith.constant 0 : i32
    %82 = vector.broadcast %c0_i32 : i32 to vector<128x1xi32>
    %83 = arith.cmpi eq, %4, %82 : vector<128x1xi32>
    %cst_28 = arith.constant 0xFF800000 : f32
    %84 = vector.shape_cast %83 : vector<128x1xi1> to vector<128x1xi1>
    %85 = vector.broadcast %84 : vector<128x1xi1> to vector<128x32xi1>
    %86 = vector.broadcast %cst_28 : f32 to vector<128x32xf32>
    %87 = arith.select %85, %68, %86 : vector<128x32xi1>, vector<128x32xf32>
    %cst_29 = arith.constant dense<0xFF800000> : vector<32xf32>
    %88 = vector.multi_reduction <maximumf>, %87, %cst_29 [0] : vector<128x32xf32> to vector<32xf32>
    %89 = vector.shape_cast %88 : vector<32xf32> to vector<1x32xf32>
    %c1_i32 = arith.constant 1 : i32
    %90 = vector.broadcast %c1_i32 : i32 to vector<128x1xi32>
    %91 = arith.cmpi eq, %4, %90 : vector<128x1xi32>
    %cst_30 = arith.constant 0xFF800000 : f32
    %92 = vector.shape_cast %91 : vector<128x1xi1> to vector<128x1xi1>
    %93 = vector.broadcast %92 : vector<128x1xi1> to vector<128x32xi1>
    %94 = vector.broadcast %cst_30 : f32 to vector<128x32xf32>
    %95 = arith.select %93, %68, %94 : vector<128x32xi1>, vector<128x32xf32>
    %cst_31 = arith.constant dense<0xFF800000> : vector<32xf32>
    %96 = vector.multi_reduction <maximumf>, %95, %cst_31 [0] : vector<128x32xf32> to vector<32xf32>
    %97 = vector.shape_cast %96 : vector<32xf32> to vector<1x32xf32>
    %c2_i32 = arith.constant 2 : i32
    %98 = vector.broadcast %c2_i32 : i32 to vector<128x1xi32>
    %99 = arith.cmpi eq, %4, %98 : vector<128x1xi32>
    %cst_32 = arith.constant 0xFF800000 : f32
    %100 = vector.shape_cast %99 : vector<128x1xi1> to vector<128x1xi1>
    %101 = vector.broadcast %100 : vector<128x1xi1> to vector<128x32xi1>
    %102 = vector.broadcast %cst_32 : f32 to vector<128x32xf32>
    %103 = arith.select %101, %68, %102 : vector<128x32xi1>, vector<128x32xf32>
    %cst_33 = arith.constant dense<0xFF800000> : vector<32xf32>
    %104 = vector.multi_reduction <maximumf>, %103, %cst_33 [0] : vector<128x32xf32> to vector<32xf32>
    %105 = vector.shape_cast %104 : vector<32xf32> to vector<1x32xf32>
    %c3_i32 = arith.constant 3 : i32
    %106 = vector.broadcast %c3_i32 : i32 to vector<128x1xi32>
    %107 = arith.cmpi eq, %4, %106 : vector<128x1xi32>
    %cst_34 = arith.constant 0xFF800000 : f32
    %108 = vector.shape_cast %107 : vector<128x1xi1> to vector<128x1xi1>
    %109 = vector.broadcast %108 : vector<128x1xi1> to vector<128x32xi1>
    %110 = vector.broadcast %cst_34 : f32 to vector<128x32xf32>
    %111 = arith.select %109, %68, %110 : vector<128x32xi1>, vector<128x32xf32>
    %cst_35 = arith.constant dense<0xFF800000> : vector<32xf32>
    %112 = vector.multi_reduction <maximumf>, %111, %cst_35 [0] : vector<128x32xf32> to vector<32xf32>
    %113 = vector.shape_cast %112 : vector<32xf32> to vector<1x32xf32>
    %c4_i32 = arith.constant 4 : i32
    %114 = vector.broadcast %c4_i32 : i32 to vector<128x1xi32>
    %115 = arith.cmpi eq, %4, %114 : vector<128x1xi32>
    %cst_36 = arith.constant 0xFF800000 : f32
    %116 = vector.shape_cast %115 : vector<128x1xi1> to vector<128x1xi1>
    %117 = vector.broadcast %116 : vector<128x1xi1> to vector<128x32xi1>
    %118 = vector.broadcast %cst_36 : f32 to vector<128x32xf32>
    %119 = arith.select %117, %68, %118 : vector<128x32xi1>, vector<128x32xf32>
    %cst_37 = arith.constant dense<0xFF800000> : vector<32xf32>
    %120 = vector.multi_reduction <maximumf>, %119, %cst_37 [0] : vector<128x32xf32> to vector<32xf32>
    %121 = vector.shape_cast %120 : vector<32xf32> to vector<1x32xf32>
    %c5_i32 = arith.constant 5 : i32
    %122 = vector.broadcast %c5_i32 : i32 to vector<128x1xi32>
    %123 = arith.cmpi eq, %4, %122 : vector<128x1xi32>
    %cst_38 = arith.constant 0xFF800000 : f32
    %124 = vector.shape_cast %123 : vector<128x1xi1> to vector<128x1xi1>
    %125 = vector.broadcast %124 : vector<128x1xi1> to vector<128x32xi1>
    %126 = vector.broadcast %cst_38 : f32 to vector<128x32xf32>
    %127 = arith.select %125, %68, %126 : vector<128x32xi1>, vector<128x32xf32>
    %cst_39 = arith.constant dense<0xFF800000> : vector<32xf32>
    %128 = vector.multi_reduction <maximumf>, %127, %cst_39 [0] : vector<128x32xf32> to vector<32xf32>
    %129 = vector.shape_cast %128 : vector<32xf32> to vector<1x32xf32>
    %c6_i32 = arith.constant 6 : i32
    %130 = vector.broadcast %c6_i32 : i32 to vector<128x1xi32>
    %131 = arith.cmpi eq, %4, %130 : vector<128x1xi32>
    %cst_40 = arith.constant 0xFF800000 : f32
    %132 = vector.shape_cast %131 : vector<128x1xi1> to vector<128x1xi1>
    %133 = vector.broadcast %132 : vector<128x1xi1> to vector<128x32xi1>
    %134 = vector.broadcast %cst_40 : f32 to vector<128x32xf32>
    %135 = arith.select %133, %68, %134 : vector<128x32xi1>, vector<128x32xf32>
    %cst_41 = arith.constant dense<0xFF800000> : vector<32xf32>
    %136 = vector.multi_reduction <maximumf>, %135, %cst_41 [0] : vector<128x32xf32> to vector<32xf32>
    %137 = vector.shape_cast %136 : vector<32xf32> to vector<1x32xf32>
    %c7_i32 = arith.constant 7 : i32
    %138 = vector.broadcast %c7_i32 : i32 to vector<128x1xi32>
    %139 = arith.cmpi eq, %4, %138 : vector<128x1xi32>
    %cst_42 = arith.constant 0xFF800000 : f32
    %140 = vector.shape_cast %139 : vector<128x1xi1> to vector<128x1xi1>
    %141 = vector.broadcast %140 : vector<128x1xi1> to vector<128x32xi1>
    %142 = vector.broadcast %cst_42 : f32 to vector<128x32xf32>
    %143 = arith.select %141, %68, %142 : vector<128x32xi1>, vector<128x32xf32>
    %cst_43 = arith.constant dense<0xFF800000> : vector<32xf32>
    %144 = vector.multi_reduction <maximumf>, %143, %cst_43 [0] : vector<128x32xf32> to vector<32xf32>
    %145 = vector.shape_cast %144 : vector<32xf32> to vector<1x32xf32>
    %c8_i32 = arith.constant 8 : i32
    %146 = vector.broadcast %c8_i32 : i32 to vector<128x1xi32>
    %147 = arith.cmpi eq, %4, %146 : vector<128x1xi32>
    %cst_44 = arith.constant 0xFF800000 : f32
    %148 = vector.shape_cast %147 : vector<128x1xi1> to vector<128x1xi1>
    %149 = vector.broadcast %148 : vector<128x1xi1> to vector<128x32xi1>
    %150 = vector.broadcast %cst_44 : f32 to vector<128x32xf32>
    %151 = arith.select %149, %68, %150 : vector<128x32xi1>, vector<128x32xf32>
    %cst_45 = arith.constant dense<0xFF800000> : vector<32xf32>
    %152 = vector.multi_reduction <maximumf>, %151, %cst_45 [0] : vector<128x32xf32> to vector<32xf32>
    %153 = vector.shape_cast %152 : vector<32xf32> to vector<1x32xf32>
    %c9_i32 = arith.constant 9 : i32
    %154 = vector.broadcast %c9_i32 : i32 to vector<128x1xi32>
    %155 = arith.cmpi eq, %4, %154 : vector<128x1xi32>
    %cst_46 = arith.constant 0xFF800000 : f32
    %156 = vector.shape_cast %155 : vector<128x1xi1> to vector<128x1xi1>
    %157 = vector.broadcast %156 : vector<128x1xi1> to vector<128x32xi1>
    %158 = vector.broadcast %cst_46 : f32 to vector<128x32xf32>
    %159 = arith.select %157, %68, %158 : vector<128x32xi1>, vector<128x32xf32>
    %cst_47 = arith.constant dense<0xFF800000> : vector<32xf32>
    %160 = vector.multi_reduction <maximumf>, %159, %cst_47 [0] : vector<128x32xf32> to vector<32xf32>
    %161 = vector.shape_cast %160 : vector<32xf32> to vector<1x32xf32>
    %c10_i32 = arith.constant 10 : i32
    %162 = vector.broadcast %c10_i32 : i32 to vector<128x1xi32>
    %163 = arith.cmpi eq, %4, %162 : vector<128x1xi32>
    %cst_48 = arith.constant 0xFF800000 : f32
    %164 = vector.shape_cast %163 : vector<128x1xi1> to vector<128x1xi1>
    %165 = vector.broadcast %164 : vector<128x1xi1> to vector<128x32xi1>
    %166 = vector.broadcast %cst_48 : f32 to vector<128x32xf32>
    %167 = arith.select %165, %68, %166 : vector<128x32xi1>, vector<128x32xf32>
    %cst_49 = arith.constant dense<0xFF800000> : vector<32xf32>
    %168 = vector.multi_reduction <maximumf>, %167, %cst_49 [0] : vector<128x32xf32> to vector<32xf32>
    %169 = vector.shape_cast %168 : vector<32xf32> to vector<1x32xf32>
    %c11_i32 = arith.constant 11 : i32
    %170 = vector.broadcast %c11_i32 : i32 to vector<128x1xi32>
    %171 = arith.cmpi eq, %4, %170 : vector<128x1xi32>
    %cst_50 = arith.constant 0xFF800000 : f32
    %172 = vector.shape_cast %171 : vector<128x1xi1> to vector<128x1xi1>
    %173 = vector.broadcast %172 : vector<128x1xi1> to vector<128x32xi1>
    %174 = vector.broadcast %cst_50 : f32 to vector<128x32xf32>
    %175 = arith.select %173, %68, %174 : vector<128x32xi1>, vector<128x32xf32>
    %cst_51 = arith.constant dense<0xFF800000> : vector<32xf32>
    %176 = vector.multi_reduction <maximumf>, %175, %cst_51 [0] : vector<128x32xf32> to vector<32xf32>
    %177 = vector.shape_cast %176 : vector<32xf32> to vector<1x32xf32>
    %c12_i32 = arith.constant 12 : i32
    %178 = vector.broadcast %c12_i32 : i32 to vector<128x1xi32>
    %179 = arith.cmpi eq, %4, %178 : vector<128x1xi32>
    %cst_52 = arith.constant 0xFF800000 : f32
    %180 = vector.shape_cast %179 : vector<128x1xi1> to vector<128x1xi1>
    %181 = vector.broadcast %180 : vector<128x1xi1> to vector<128x32xi1>
    %182 = vector.broadcast %cst_52 : f32 to vector<128x32xf32>
    %183 = arith.select %181, %68, %182 : vector<128x32xi1>, vector<128x32xf32>
    %cst_53 = arith.constant dense<0xFF800000> : vector<32xf32>
    %184 = vector.multi_reduction <maximumf>, %183, %cst_53 [0] : vector<128x32xf32> to vector<32xf32>
    %185 = vector.shape_cast %184 : vector<32xf32> to vector<1x32xf32>
    %c13_i32 = arith.constant 13 : i32
    %186 = vector.broadcast %c13_i32 : i32 to vector<128x1xi32>
    %187 = arith.cmpi eq, %4, %186 : vector<128x1xi32>
    %cst_54 = arith.constant 0xFF800000 : f32
    %188 = vector.shape_cast %187 : vector<128x1xi1> to vector<128x1xi1>
    %189 = vector.broadcast %188 : vector<128x1xi1> to vector<128x32xi1>
    %190 = vector.broadcast %cst_54 : f32 to vector<128x32xf32>
    %191 = arith.select %189, %68, %190 : vector<128x32xi1>, vector<128x32xf32>
    %cst_55 = arith.constant dense<0xFF800000> : vector<32xf32>
    %192 = vector.multi_reduction <maximumf>, %191, %cst_55 [0] : vector<128x32xf32> to vector<32xf32>
    %193 = vector.shape_cast %192 : vector<32xf32> to vector<1x32xf32>
    %c14_i32 = arith.constant 14 : i32
    %194 = vector.broadcast %c14_i32 : i32 to vector<128x1xi32>
    %195 = arith.cmpi eq, %4, %194 : vector<128x1xi32>
    %cst_56 = arith.constant 0xFF800000 : f32
    %196 = vector.shape_cast %195 : vector<128x1xi1> to vector<128x1xi1>
    %197 = vector.broadcast %196 : vector<128x1xi1> to vector<128x32xi1>
    %198 = vector.broadcast %cst_56 : f32 to vector<128x32xf32>
    %199 = arith.select %197, %68, %198 : vector<128x32xi1>, vector<128x32xf32>
    %cst_57 = arith.constant dense<0xFF800000> : vector<32xf32>
    %200 = vector.multi_reduction <maximumf>, %199, %cst_57 [0] : vector<128x32xf32> to vector<32xf32>
    %201 = vector.shape_cast %200 : vector<32xf32> to vector<1x32xf32>
    %c15_i32 = arith.constant 15 : i32
    %202 = vector.broadcast %c15_i32 : i32 to vector<128x1xi32>
    %203 = arith.cmpi eq, %4, %202 : vector<128x1xi32>
    %cst_58 = arith.constant 0xFF800000 : f32
    %204 = vector.shape_cast %203 : vector<128x1xi1> to vector<128x1xi1>
    %205 = vector.broadcast %204 : vector<128x1xi1> to vector<128x32xi1>
    %206 = vector.broadcast %cst_58 : f32 to vector<128x32xf32>
    %207 = arith.select %205, %68, %206 : vector<128x32xi1>, vector<128x32xf32>
    %cst_59 = arith.constant dense<0xFF800000> : vector<32xf32>
    %208 = vector.multi_reduction <maximumf>, %207, %cst_59 [0] : vector<128x32xf32> to vector<32xf32>
    %209 = vector.shape_cast %208 : vector<32xf32> to vector<1x32xf32>
    %210 = tpu.concatenate %89, %97, %105, %113, %121, %129, %137, %145, %153, %161, %169, %177, %185, %193, %201, %209 in 0 : vector<1x32xf32>, vector<1x32xf32>, vector<1x32xf32>, vector<1x32xf32>, vector<1x32xf32>, vector<1x32xf32>, vector<1x32xf32>, vector<1x32xf32>, vector<1x32xf32>, vector<1x32xf32>, vector<1x32xf32>, vector<1x32xf32>, vector<1x32xf32>, vector<1x32xf32>, vector<1x32xf32>, vector<1x32xf32> -> vector<16x32xf32>
    %211 = tpu.concatenate %81, %210 in 1 : vector<16x32xf32>, vector<16x32xf32> -> vector<16x64xf32>
    %c0_60 = arith.constant 0 : index
    %c0_61 = arith.constant 0 : index
    %212 = vector.load %arg6[%c0_60, %c0_61] : memref<16x64xf32, #tpu.memory_space<vmem>>, vector<16x64xf32>
    tpu.vector_store %arg6[%c0_60, %c0_61], %211 {strides = array<i32>} : memref<16x64xf32, #tpu.memory_space<vmem>>, vector<16x64xf32>,
    return
  }
  func.func @transform_0(%arg0: i32) -> (i32, i32) {
    %c0_i32 = arith.constant 0 : i32
    %c0_i32_0 = arith.constant 0 : i32
    return %arg0, %c0_i32 : i32, i32
  }
  func.func @transform_1(%arg0: i32) -> (i32, i32) {
    %c0_i32 = arith.constant 0 : i32
    %c0_i32_0 = arith.constant 0 : i32
    return %arg0, %c0_i32 : i32, i32
  }
  func.func @transform_2(%arg0: i32) -> (i32, i32) {
    %c0_i32 = arith.constant 0 : i32
    %c0_i32_0 = arith.constant 0 : i32
    return %arg0, %c0_i32 : i32, i32
  }
  func.func @transform_3(%arg0: i32) -> (i32, i32) {
    %c0_i32 = arith.constant 0 : i32
    %c0_i32_0 = arith.constant 0 : i32
    %c0_i32_1 = arith.constant 0 : i32
    return %c0_i32, %c0_i32_0 : i32, i32
  }
  func.func @transform_4(%arg0: i32) -> (i32, i32) {
    %c0_i32 = arith.constant 0 : i32
    %c0_i32_0 = arith.constant 0 : i32
    return %arg0, %c0_i32 : i32, i32
  }
  func.func @transform_5(%arg0: i32) -> (i32, i32) {
    %c0_i32 = arith.constant 0 : i32
    %c0_i32_0 = arith.constant 0 : i32
    return %arg0, %c0_i32 : i32, i32
  }
}

</mosaic_0001>

<bundles_post_ra>
// kernel: tpu_custom_call.1
= control target key start
LH: loop header
LB: loop body
LE: loop exit
PB: predicated region body
PF: predicated region fallthrough
CT: control target
= control target key end

     0   :  { %11 = vsyncpa [#allocation3], 0  ;;  %s11978_s0 = inlined_call_operand.vmem [shape: s32[1024,8], index: 0, kind: input, shape index: {}]   ;;  %s11979_s1 = inlined_call_operand.vmem [shape: s32[32,256], index: 1, kind: input, shape index: {}]   ;;  %s11980_s2 = inlined_call_operand.vmem [shape: f32[512,16], index: 2, kind: input, shape index: {}]   ;;  %s11981_s3 = inlined_call_operand.vmem [shape: f32[56,128], index: 3, kind: input, shape index: {}]   ;;  %s11982_s4 = inlined_call_operand.vmem [shape: f32[512,32], index: 4, kind: output, shape index: {0}]   ;;  %s11983_s5 = inlined_call_operand.hbm [shape: f32[64,64], index: 5, kind: output, shape index: {1}]  }
   0x1   :  { %13 = vsyncpa [#allocation3 + $0x1], 0  ;;  %s7238_s18 = smov 0   ;;  %s7240_s19 = smov 0  }
   0x2   :  { %s7242_s20 = smov 0   ;;  %s7244_s21 = smov 0  }
   0x3 LB: > { %s7259_s22 = sadd.s32 4294967295, %s7196_s21   ;;  %s5787_s23 = sadd.s32 4294967294, %s7196_s21   ;;  %s7196_s21 = sphi %s7244_s21, %s13076_s21   ;;  %s7192_s20 = sphi %s7242_s20, %s13075_s20   ;;  %s7188_s19 = sphi %s7240_s19, %s13074_s19   ;;  %s7184_s18 = sphi %s7238_s18, %s13073_s18  }
   0x4   : > { %s7263_s24 = sadd.s32 1, %s7196_s21   ;;  %s151_s25 = sadd.s32 1, %s7192_s20 }
   0x5   : > { %s148_s26 = ssub.s32 %s7196_s21, %s7263_s24  ;;  %p161_p0 = scmp.ne.s32.totalorder %s7192_s20, %s7188_s19 }
   0x6   : > { %p149_p1 = scmp.eq.s32.totalorder %s148_s26, 0  ;;  %p162_p2 = scmp.eq.s32.totalorder %s7259_s22, 3 }
   0x7   : > { %p167_p3 = scmp.ne.s32.totalorder %s7188_s19, %s7184_s18  ;;  %p168_p4 = scmp.eq.s32.totalorder %s5787_s23, 3 }
   0x8   : > { %s7274_s27 = scalar_select %p149_p1, %s7192_s20, %s151_s25  }
   0x9   : > { %p7276_p5 = por %p162_p2, %p161_p0  ;;  %p7280_p6 = por %p168_p4, %p167_p3 }
   0xa   : > { %p5790_p7 = scmp.ge.s32.totalorder %s7196_s21, 1  ;;  %p215_p8 = scmp.lt.s32.totalorder %s7196_s21, 5 }
   0xc   : > { %p216_p9 = pnand %p5790_p7, %p215_p8 }
   0xe   : > { %219 = sbr.rel (%p216_p9) target bundleno = 2395 (0x95b), region = 36 }
  0x15   : > { %v845_v0 = vld [vmem:[%s11981_s3] sm:$0xff]  ;;  %v846_v1 = vld [vmem:[%s11981_s3 + $0x8] sm:$0xff]  ;;  %s5796_s9 = sshll.u32 %s7259_s22, 4  ;;  %s5792_s10 = sshll.u32 %s7259_s22, 5  ;;  %v11984_v3 = vmov 0   ;;  %vm852_vm0 = vcmask 130048   ;;  %v11988_v42 = vlaneseq }
  0x16   : > { %v6595_v2 = vpack.c.bf16 %v846_v1, %v845_v0  ;;  %p270_p10 = scmp.lt.s32.totalorder %s5796_s9, 63  ;;  %6783 = vset.pattern.permute.xlu0 %v11984_v3  ;;  %p259_p11 = scmp.lt.s32.totalorder %s5792_s10, 127  ;;  %6784 = vset.pattern.permute.xlu1 %v11984_v3  ;;  %v7199_v41 = vmov 1   ;;  %v11986_v45 = vmov 1.0  }
  0x17   : > { %v7418_v43 = vand.u32 127, %v11988_v42  ;;  %s7201_s25 = smov 96   ;;  %p264_p12 = scmp.lt.s32.totalorder %s7259_s22, 3 }
  0x18   : > { %6596 = vmatprep.subr.bf16.mxu0 %v6595_v2  ;;  %s13078_s9 = smov (!%p270_p10, %s5796_s9), 63  ;;  %s13080_s10 = smov (!%p259_p11, %s5792_s10), 127 }
  0x19   : > { %6598 = vmatpush3.bf16.msra.mxu0 %v6595_v2  ;;  %s5797_s11 = sshll.u32 %s13078_s9, 3  ;;  %s5793_s15 = sshll.u32 %s13080_s10, 3 }
  0x1a   : > { %s7304_s14 = scalar_lea.vmem %s11980_s2, %s5797_s11  ;;  %s7314_s23 = scalar_lea.vmem %s11978_s0, %s5793_s15 }
  0x1b   : > { %v282_v4 = vld [vmem:[%s7304_s14] sm:$0xff]  ;;  %v283_v5 = vld [vmem:[%s7304_s14 + $0x8] sm:$0xff]  ;;  %v284_v6 = vld [vmem:[%s7304_s14 + $0x10] sm:$0xff]  ;;  %s7204_s15 = smov 64   ;;  %s255_s9 = sand.u32 1, %s7188_s19  }
  0x1c   : > { %6320 = vmatprep.mubr.msk.f32.mxu0 %vm852_vm0, %v282_v4  ;;  %v285_v7 = vld [vmem:[%s7304_s14 + $0x18] sm:$0xff]  ;;  %v286_v8 = vld [vmem:[%s7304_s14 + $0x20] sm:$0xff]  ;;  %v7323_v10 = vld [vmem:[%s7314_s23 + $0x10] sm:$0xff]  ;;  %s265_s16 = scalar_select %p264_p12, %s7259_s22, 3 }
  0x1d   : > { %6321 = vmatmul.mubr.msk.f32.vlgmr.msra.gmra.mrb[0].mxu0 %vm852_vm0, %v283_v5  ;;  %v7320_v9 = vld [vmem:[%s7314_s23] sm:$0xff]  ;;  %v287_v11 = vld [vmem:[%s7304_s14 + $0x28] sm:$0xff]  ;;  %341 = vperm.xlu1 %6784, %v7323_v10   ;;  %v288_v13 = vld [vmem:[%s7304_s14 + $0x30] sm:$0xff] }
  0x1e   : > { %6323 = vmatprep.mubr.msk.f32.mxu0 %vm852_vm0, %v284_v6  ;;  %335 = vperm.xlu0 %6783, %v7320_v9   ;;  %v299_v12 = vld [vmem:[%s7314_s23 + $0x8] sm:$0xff]  ;;  %v301_v14 = vld [vmem:[%s7314_s23 + $0x18] sm:$0xff]  ;;  %v302_v16 = vld [vmem:[%s7314_s23 + $0x20] sm:$0xff]  ;;  %s6066_s17 = sshll.u32 %s265_s16, 4 }
  0x1f   : > { %v289_v15 = vld [vmem:[%s7304_s14 + $0x38] sm:$0xff]  ;;  %v290_v17 = vld [vmem:[%s7304_s14 + $0x40] sm:$0xff]  ;;  %v303_v18 = vld [vmem:[%s7314_s23 + $0x28] sm:$0xff]  ;;  %s8173_s6 = scalar_lea.vmem %s11979_s1, %s6066_s17  ;;  %s6067_s17 = sshll.u32 %s7259_s22, 8 }
  0x20   : > { %v291_v19 = vld [vmem:[%s7304_s14 + $0x48] sm:$0xff]  ;;  %v7343_v20 = vld [vmem:[%s7314_s23 + $0x30] sm:$0xff]  ;;  %v7347_v22 = vld [vmem:[%s7314_s23 + $0x38] sm:$0xff]  ;;  %s11934_s30 = scalar_lea.hbm %s11983_s5, %s6067_s17  ;;  %s7205_s22 = smov [#allocation2]  }
  0x21   : > { %6324 = vmatmul.mubr.msk.f32.gmra.mrb[2].mxu0 %vm852_vm0, %v285_v7  ;;  %344 = vperm.xlu1 %6784, %v301_v14   ;;  %v292_v21 = vld [vmem:[%s7304_s14 + $0x50] sm:$0xff]  ;;  %v293_v23 = vld [vmem:[%s7304_s14 + $0x58] sm:$0xff]  ;;  %v7355_v24 = vld [vmem:[%s7314_s23 + $0x40] sm:$0xff]  ;;  %s7138_s8 = sshll.u32 %s7205_s22, 4  ;;  %s7139_s8 = int_to_ptr.vmem [resolvable:$false] %s7138_s8 }
  0x22   : > { %6326 = vmatprep.mubr.msk.f32.mxu0 %vm852_vm0, %v286_v8  ;;  %338 = vperm.xlu0 %6783, %v299_v12   ;;  %v294_v25 = vld [vmem:[%s7304_s14 + $0x60] sm:$0xff]  ;;  %v7359_v26 = vld [vmem:[%s7314_s23 + $0x48] sm:$0xff]  ;;  %v7367_v28 = vld [vmem:[%s7314_s23 + $0x50] sm:$0xff] }
  0x23   : > { %v295_v27 = vld [vmem:[%s7304_s14 + $0x68] sm:$0xff]  ;;  %v296_v29 = vld [vmem:[%s7304_s14 + $0x70] sm:$0xff]  ;;  %v7371_v30 = vld [vmem:[%s7314_s23 + $0x58] sm:$0xff] }
  0x24   : > { %v297_v31 = vld [vmem:[%s7304_s14 + $0x78] sm:$0xff]  ;;  %v7379_v32 = vld [vmem:[%s7314_s23 + $0x60] sm:$0xff]  ;;  %v7382_v33 = vld [vmem:[%s7314_s23 + $0x68] sm:$0xff]  ;;  %s7203_s14 = smov 32  }
  0x25   : > { %6327 = vmatmul.mubr.msk.f32.gmra.mrb[4].mxu0 %vm852_vm0, %v287_v11  ;;  %350 = vperm.xlu1 %6784, %v303_v18   ;;  %v7388_v34 = vld [vmem:[%s7314_s23 + $0x70] sm:$0xff]  ;;  %v7391_v35 = vld [vmem:[%s7314_s23 + $0x78] sm:$0xff]  ;;  %v7396_v36 = vld [vmem:[%s7314_s23 + $0x80] sm:$0xff] }
  0x26   : > { %6329 = vmatprep.mubr.msk.f32.mxu0 %vm852_vm0, %v288_v13  ;;  %347 = vperm.xlu0 %6783, %v302_v16   ;;  %v7399_v37 = vld [vmem:[%s7314_s23 + $0x88] sm:$0xff]  ;;  %v7404_v38 = vld [vmem:[%s7314_s23 + $0x90] sm:$0xff]  ;;  %v7407_v39 = vld [vmem:[%s7314_s23 + $0x98] sm:$0xff] }
  0x27   : > { %v7412_v40 = vld [vmem:[%s7314_s23 + $0xa0] sm:$0xff] }
  0x29   : > { %6330 = vmatmul.mubr.msk.f32.gmra.mrb[6].mxu0 %vm852_vm0, %v289_v15  ;;  %356 = vperm.xlu1 %6784, %v7347_v22  }
  0x2a   : > { %6332 = vmatprep.mubr.msk.f32.mxu0 %vm852_vm0, %v290_v17  ;;  %353 = vperm.xlu0 %6783, %v7343_v20  }
  0x2d   : > { %6333 = vmatmul.mubr.msk.f32.gmra.mrb[8].mxu0 %vm852_vm0, %v291_v19  ;;  %362 = vperm.xlu1 %6784, %v7359_v26  }
  0x2e   : > { %6335 = vmatprep.mubr.msk.f32.mxu0 %vm852_vm0, %v292_v21  ;;  %359 = vperm.xlu0 %6783, %v7355_v24  }
  0x31   : > { %6336 = vmatmul.mubr.msk.f32.gmra.mrb[10].mxu0 %vm852_vm0, %v293_v23  ;;  %368 = vperm.xlu1 %6784, %v7371_v30  }
  0x32   : > { %6338 = vmatprep.mubr.msk.f32.mxu0 %vm852_vm0, %v294_v25  ;;  %365 = vperm.xlu0 %6783, %v7367_v28  }
  0x35   : > { %6339 = vmatmul.mubr.msk.f32.gmra.mrb[12].mxu0 %vm852_vm0, %v295_v27  ;;  %374 = vperm.xlu1 %6784, %v7382_v33  }
  0x36   : > { %6341 = vmatprep.mubr.msk.f32.mxu0 %vm852_vm0, %v296_v29  ;;  %371 = vperm.xlu0 %6783, %v7379_v32  }
  0x39   : > { %6342 = vmatmul.mubr.msk.f32.gmra.mrb[14].mxu0 %vm852_vm0, %v297_v31  ;;  %380 = vperm.xlu1 %6784, %v7391_v35  }
  0x3a   : > { %377 = vperm.xlu0 %6783, %v7388_v34  }
  0x3d   : > { %386 = vperm.xlu1 %6784, %v7399_v37  }
  0x3e   : > { %383 = vperm.xlu0 %6783, %v7396_v36  }
  0x41   : > { %392 = vperm.xlu1 %6784, %v7407_v39  }
  0x42   : > { %389 = vperm.xlu0 %6783, %v7404_v38  }
  0x45   : > { %6786 = vset.pattern.permute.xlu1 %v7199_v41 }
  0x46   : > { %395 = vperm.xlu0 %6783, %v7412_v40   ;;  %530 = vperm.xlu1 %6786, %v299_v12  }
  0x4a   : > { %6785 = vset.pattern.permute.xlu0 %v7199_v41  ;;  %536 = vperm.xlu1 %6786, %v301_v14   ;;  %v324_v41 = vld [vmem:[%s7314_s23 + $0xd0] sm:$0xff] }
  0x4b   : > { %527 = vperm.xlu0 %6785, %v7320_v9  }
  0x4e   : > { %542 = vperm.xlu1 %6786, %v303_v18  }
  0x4f   : > { %533 = vperm.xlu0 %6785, %v7323_v10  }
  0x53   : > { %539 = vperm.xlu0 %6785, %v302_v16  }
  0x9c   : > { %v342_v7 = vpop.permute.xlu1 %341 }
  0x9d   : > { %v336_v44 = vpop.permute.xlu0 %335  ;;  %vm432_vm4 = vcmp.eq.s32.totalorder %v342_v7, %v7418_v43 }
  0x9e   : > { %vm430_vm1 = vcmp.eq.s32.totalorder %v336_v44, %v7418_v43  ;;  %v325_v44 = vld [vmem:[%s7314_s23 + $0xd8] sm:$0xff] }
  0x9f   : > { %6376 = vmatprep.mubr.msk.f32.mxu1 %vm430_vm1, %v11986_v45 }
  0xa0   : > { %v345_v15 = vpop.permute.xlu1 %344 }
  0xa1   : > { %v7422_v46 = vpop.permute.xlu0 %338  ;;  %vm433_vm5 = vcmp.eq.s32.totalorder %v345_v15, %v7418_v43 }
  0xa2   : > { %vm431_vm3 = vcmp.eq.s32.totalorder %v7422_v46, %v7418_v43  ;;  %v326_v46 = vld [vmem:[%s7314_s23 + $0xe0] sm:$0xff] }
  0xa4   : > { %v351_v21 = vpop.permute.xlu1 %350 }
  0xa5   : > { %v7424_v47 = vpop.permute.xlu0 %347  ;;  %vm435_vm7 = vcmp.eq.s32.totalorder %v351_v21, %v7418_v43 }
  0xa6   : > { %vm434_vm6 = vcmp.eq.s32.totalorder %v7424_v47, %v7418_v43  ;;  %v327_v47 = vld [vmem:[%s7314_s23 + $0xe8] sm:$0xff] }
  0xa9   : > { %v7426_v48 = vpop.permute.xlu0 %353 }
  0xaa   : > { %vm436_vm8 = vcmp.eq.s32.totalorder %v7426_v48, %v7418_v43  ;;  %v328_v48 = vld [vmem:[%s7314_s23 + $0xf0] sm:$0xff] }
  0xad   : > { %v7428_v49 = vpop.permute.xlu0 %359 }
  0xae   : > { %vm438_vm10 = vcmp.eq.s32.totalorder %v7428_v49, %v7418_v43  ;;  %v329_v49 = vld [vmem:[%s7314_s23 + $0xf8] sm:$0xff] }
  0xb1   : > { %v7430_v50 = vpop.permute.xlu0 %365 }
  0xb2   : > { %vm440_vm12 = vcmp.eq.s32.totalorder %v7430_v50, %v7418_v43 }
  0xb5   : > { %v7432_v51 = vpop.permute.xlu0 %371 }
  0xb6   : > { %vm442_vm14 = vcmp.eq.s32.totalorder %v7432_v51, %v7418_v43 }
  0xb9   : > { %v7434_v52 = vpop.permute.xlu0 %377 }
  0xba   : > { %vm444_vm0 = vcmp.eq.s32.totalorder %v7434_v52, %v7418_v43 }
  0xbd   : > { %v7436_v53 = vpop.permute.xlu0 %383 }
  0xc1   : > { %v7438_v54 = vpop.permute.xlu0 %389 }
  0xc5   : > { %v7440_v55 = vpop.permute.xlu0 %395 }
  0xca   : > { %v528_v56 = vpop.permute.xlu0 %527 }
  0xcb   : > { %vm622_vm2 = vcmp.eq.s32.totalorder %v528_v56, %v7418_v43 }
  0xcc   : > { %6456 = vmatprep.mubr.msk.f32.mxu0 %vm622_vm2, %v11986_v45  ;;  %vm446_vm2 = vcmp.eq.s32.totalorder %v7436_v53, %v7418_v43 }
  0xce   : > { %v7597_v52 = vpop.permute.xlu0 %533 }
  0xf0   : > { %v7444_v57 = vpop.f32.mrb[0].mxu0 }
  0xf1   : > { %12282 = vst [vmem:[#allocation5_spill] sm:$0xff] %v7444_v57  ;;  %v7446_v58 = vpop.f32.mrb[1].mxu0 }
  0xf2   : > { %12283 = vst [vmem:[#allocation6_spill] sm:$0xff] %v7446_v58  ;;  %v6787_v59 = vpack.i.bf16 %v7444_v57, %v7446_v58  ;;  %v6599_v60 = vpack.c.bf16 %v7444_v57, %v7446_v58 }
  0xf4   : > { %v7452_v61 = vpop.f32.mrb[2].mxu0  ;;  %6600 = vmatprep.subr.bf16.mxu1 %v6599_v60  ;;  %6788 = vrot.lane.b32.xlu1 %v6787_v59, %s7201_s25 }
  0xf5   : > { %12284 = vst [vmem:[#allocation7_spill] sm:$0xff] %v7452_v61  ;;  %v7455_v62 = vpop.f32.mrb[3].mxu0  ;;  %6602 = vmatpush3.bf16.msra.mxu1 %v6599_v60 }
  0xf6   : > { %12285 = vst [vmem:[#allocation8_spill] sm:$0xff] %v7455_v62  ;;  %v6792_v63 = vpack.i.bf16 %v7452_v61, %v7455_v62  ;;  %v6603_v0 = vpack.c.bf16 %v7452_v61, %v7455_v62 }
  0xf8   : > { %v7461_v1 = vpop.f32.mrb[4].mxu0  ;;  %6604 = vmatprep.subr.bf16.mxu1 %v6603_v0  ;;  %548 = vperm.xlu1 %6786, %v7347_v22  }
  0xf9   : > { %12286 = vst [vmem:[#allocation9_spill] sm:$0xff] %v7461_v1  ;;  %6793 = vrot.lane.b32.xlu0 %v6792_v63, %s7201_s25  ;;  %v7465_v2 = vpop.f32.mrb[5].mxu0  ;;  %6606 = vmatpush3.bf16.msra.mxu1 %v6603_v0 }
  0xfa   : > { %12287 = vst [vmem:[#allocation10_spill] sm:$0xff] %v7465_v2  ;;  %v6797_v4 = vpack.i.bf16 %v7461_v1, %v7465_v2  ;;  %v6607_v5 = vpack.c.bf16 %v7461_v1, %v7465_v2 }
  0xfc   : > { %v7471_v6 = vpop.f32.mrb[6].mxu0  ;;  %6608 = vmatprep.subr.bf16.mxu1 %v6607_v5  ;;  %6798 = vrot.lane.b32.xlu1 %v6797_v4, %s7201_s25 }
  0xfd   : > { %12288 = vst [vmem:[#allocation11_spill] sm:$0xff] %v7471_v6  ;;  %545 = vperm.xlu0 %6785, %v7343_v20   ;;  %v7475_v8 = vpop.f32.mrb[7].mxu0  ;;  %6610 = vmatpush3.bf16.msra.mxu1 %v6607_v5 }
  0xfe   : > { %12289 = vst [vmem:[#allocation12_spill] sm:$0xff] %v7475_v8  ;;  %v6802_v9 = vpack.i.bf16 %v7471_v6, %v7475_v8  ;;  %v6611_v10 = vpack.c.bf16 %v7471_v6, %v7475_v8 }
 0x100   : > { %v7481_v11 = vpop.f32.mrb[8].mxu0  ;;  %6612 = vmatprep.subr.bf16.mxu1 %v6611_v10  ;;  %554 = vperm.xlu1 %6786, %v7359_v26  }
 0x101   : > { %12290 = vst [vmem:[#allocation13_spill] sm:$0xff] %v7481_v11  ;;  %6803 = vrot.lane.b32.xlu0 %v6802_v9, %s7201_s25  ;;  %v7485_v12 = vpop.f32.mrb[9].mxu0  ;;  %6614 = vmatpush3.bf16.msra.mxu1 %v6611_v10 }
 0x102   : > { %12291 = vst [vmem:[#allocation14_spill] sm:$0xff] %v7485_v12  ;;  %v6807_v13 = vpack.i.bf16 %v7481_v11, %v7485_v12  ;;  %v6615_v14 = vpack.c.bf16 %v7481_v11, %v7485_v12 }
 0x104   : > { %v7491_v16 = vpop.f32.mrb[10].mxu0  ;;  %6616 = vmatprep.subr.bf16.mxu1 %v6615_v14  ;;  %6808 = vrot.lane.b32.xlu1 %v6807_v13, %s7201_s25 }
 0x105   : > { %12292 = vst [vmem:[#allocation15_spill] sm:$0xff] %v7491_v16  ;;  %551 = vperm.xlu0 %6785, %v7355_v24   ;;  %v7495_v17 = vpop.f32.mrb[11].mxu0  ;;  %6618 = vmatpush3.bf16.msra.mxu1 %v6615_v14 }
 0x106   : > { %12293 = vst [vmem:[#allocation16_spill] sm:$0xff] %v7495_v17  ;;  %v6812_v18 = vpack.i.bf16 %v7491_v16, %v7495_v17  ;;  %v6619_v19 = vpack.c.bf16 %v7491_v16, %v7495_v17 }
 0x108   : > { %v7501_v20 = vpop.f32.mrb[12].mxu0  ;;  %560 = vperm.xlu1 %6786, %v7371_v30   ;;  %6620 = vmatprep.subr.bf16.mxu1 %v6619_v19  ;;  %v357_v30 = vpop.permute.xlu1 %356 }
 0x109   : > { %12294 = vst [vmem:[#allocation17_spill] sm:$0xff] %v7501_v20  ;;  %6813 = vrot.lane.b32.xlu0 %v6812_v18, %s7201_s25  ;;  %v7505_v22 = vpop.f32.mrb[13].mxu0  ;;  %6622 = vmatpush3.bf16.msra.mxu1 %v6619_v19  ;;  %vm437_vm9 = vcmp.eq.s32.totalorder %v357_v30, %v7418_v43 }
 0x10a   : > { %12295 = vst [vmem:[#allocation18_spill] sm:$0xff] %v7505_v22  ;;  %v6817_v23 = vpack.i.bf16 %v7501_v20, %v7505_v22  ;;  %v6623_v24 = vpack.c.bf16 %v7501_v20, %v7505_v22 }
 0x10c   : > { %v7511_v25 = vpop.f32.mrb[14].mxu0  ;;  %6818 = vrot.lane.b32.xlu1 %v6817_v23, %s7201_s25  ;;  %6624 = vmatprep.subr.bf16.mxu1 %v6623_v24 }
 0x10d   : > { %12296 = vst [vmem:[#allocation19_spill] sm:$0xff] %v7511_v25  ;;  %557 = vperm.xlu0 %6785, %v7367_v28   ;;  %v7515_v26 = vpop.f32.mrb[15].mxu0  ;;  %6626 = vmatpush3.bf16.msra.mxu1 %v6623_v24  ;;  %v363_v28 = vpop.permute.xlu1 %362 }
 0x10e   : > { %12297 = vst [vmem:[#allocation20_spill] sm:$0xff] %v7515_v26  ;;  %v6822_v27 = vpack.i.bf16 %v7511_v25, %v7515_v26  ;;  %v6627_v29 = vpack.c.bf16 %v7511_v25, %v7515_v26  ;;  %vm439_vm11 = vcmp.eq.s32.totalorder %v363_v28, %v7418_v43 }
 0x110   : > { %6823 = vrot.lane.b32.xlu1 %v6822_v27, %s7201_s25  ;;  %6628 = vmatprep.subr.bf16.mxu1 %v6627_v29 }
 0x111   : > { %563 = vperm.xlu0 %6785, %v7379_v32   ;;  %6630 = vmatpush3.bf16.msra.mxu1 %v6627_v29  ;;  %v369_v31 = vpop.permute.xlu1 %368 }
 0x112   : > { %vm441_vm13 = vcmp.eq.s32.totalorder %v369_v31, %v7418_v43 }
 0x114   : > { %566 = vperm.xlu1 %6786, %v7382_v33   ;;  %6377 = vmatmul.mubr.msk.f32.vlgmr.msra.gmra.mrb[0].mxu1 %vm431_vm3, %v11986_v45  ;;  %v319_v33 = vld [vmem:[%s7314_s23 + $0xa8] sm:$0xff] }
 0x115   : > { %569 = vperm.xlu0 %6785, %v7388_v34   ;;  %6379 = vmatprep.mubr.msk.f32.mxu1 %vm432_vm4, %v11986_v45  ;;  %v375_v32 = vpop.permute.xlu1 %374  ;;  %v320_v34 = vld [vmem:[%s7314_s23 + $0xb0] sm:$0xff]  ;;  %vm448_vm4 = vcmp.eq.s32.totalorder %v7438_v54, %v7418_v43  ;;  %v7601_v54 = vpop.permute.xlu0 %539 }
 0x116   : > { %vm443_vm15 = vcmp.eq.s32.totalorder %v375_v32, %v7418_v43 }
 0x118   : > { %572 = vperm.xlu1 %6786, %v7391_v35   ;;  %6380 = vmatmul.mubr.msk.f32.gmra.mrb[2].mxu1 %vm433_vm5, %v11986_v45 }
 0x119   : > { %575 = vperm.xlu0 %6785, %v7396_v36   ;;  %6382 = vmatprep.mubr.msk.f32.mxu1 %vm434_vm6, %v11986_v45  ;;  %v381_v35 = vpop.permute.xlu1 %380  ;;  %v321_v36 = vld [vmem:[%s7314_s23 + $0xb8] sm:$0xff]  ;;  %vm450_vm6 = vcmp.eq.s32.totalorder %v7440_v55, %v7418_v43 }
 0x11a   : > { %vm445_vm1 = vcmp.eq.s32.totalorder %v381_v35, %v7418_v43 }
 0x11c   : > { %578 = vperm.xlu1 %6786, %v7399_v37   ;;  %6383 = vmatmul.mubr.msk.f32.gmra.mrb[4].mxu1 %vm435_vm7, %v11986_v45 }
 0x11d   : > { %581 = vperm.xlu0 %6785, %v7404_v38   ;;  %6385 = vmatprep.mubr.msk.f32.mxu1 %vm436_vm8, %v11986_v45  ;;  %v387_v37 = vpop.permute.xlu1 %386  ;;  %v322_v38 = vld [vmem:[%s7314_s23 + $0xc0] sm:$0xff]  ;;  %vm624_vm8 = vcmp.eq.s32.totalorder %v7597_v52, %v7418_v43 }
 0x11e   : > { %vm447_vm3 = vcmp.eq.s32.totalorder %v387_v37, %v7418_v43 }
 0x120   : > { %584 = vperm.xlu1 %6786, %v7407_v39   ;;  %6386 = vmatmul.mubr.msk.f32.gmra.mrb[6].mxu1 %vm437_vm9, %v11986_v45  ;;  %v323_v39 = vld [vmem:[%s7314_s23 + $0xc8] sm:$0xff] }
 0x121   : > { %587 = vperm.xlu0 %6785, %v7412_v40   ;;  %6388 = vmatprep.mubr.msk.f32.mxu1 %vm438_vm10, %v11986_v45  ;;  %v393_v40 = vpop.permute.xlu1 %392  ;;  %vm626_vm10 = vcmp.eq.s32.totalorder %v7601_v54, %v7418_v43 }
 0x122   : > { %vm449_vm5 = vcmp.eq.s32.totalorder %v393_v40, %v7418_v43 }
 0x124   : > { %6827 = vset.pattern.permute.xlu1 %v11984_v3  ;;  %6389 = vmatmul.mubr.msk.f32.gmra.mrb[8].mxu1 %vm439_vm11, %v11986_v45 }
 0x125   : > { %590 = vperm.xlu0 %6785, %v319_v33   ;;  %398 = vperm.xlu1 %6827, %v319_v33   ;;  %v7593_v50 = vpop.permute.xlu1 %530 }
 0x126   : > { %6391 = vmatprep.mubr.msk.f32.mxu1 %vm440_vm12, %v11986_v45  ;;  %vm623_vm7 = vcmp.eq.s32.totalorder %v7593_v50, %v7418_v43 }
 0x128   : > { %6392 = vmatmul.mubr.msk.f32.gmra.mrb[10].mxu1 %vm441_vm13, %v11986_v45 }
 0x129   : > { %593 = vperm.xlu0 %6785, %v320_v34   ;;  %401 = vperm.xlu1 %6827, %v320_v34   ;;  %v7595_v51 = vpop.permute.xlu1 %536 }
 0x12a   : > { %6394 = vmatprep.mubr.msk.f32.mxu1 %vm442_vm14, %v11986_v45  ;;  %vm625_vm9 = vcmp.eq.s32.totalorder %v7595_v51, %v7418_v43 }
 0x12c   : > { %6395 = vmatmul.mubr.msk.f32.gmra.mrb[12].mxu1 %vm443_vm15, %v11986_v45 }
 0x12d   : > { %596 = vperm.xlu0 %6785, %v321_v36   ;;  %404 = vperm.xlu1 %6827, %v321_v36   ;;  %v7599_v53 = vpop.permute.xlu1 %542 }
 0x12e   : > { %6397 = vmatprep.mubr.msk.f32.mxu1 %vm444_vm0, %v11986_v45  ;;  %vm627_vm11 = vcmp.eq.s32.totalorder %v7599_v53, %v7418_v43 }
 0x130   : > { %6398 = vmatmul.mubr.msk.f32.gmra.mrb[14].mxu1 %vm445_vm1, %v11986_v45 }
 0x131   : > { %599 = vperm.xlu0 %6785, %v322_v38   ;;  %407 = vperm.xlu1 %6827, %v322_v38  }
 0x132   : > { %6400 = vmatprep.mubr.msk.f32.mxu1 %vm446_vm2, %v11986_v45 }
 0x134   : > { %6401 = vmatmul.mubr.msk.f32.gmra.mrb[16].mxu1 %vm447_vm3, %v11986_v45 }
 0x135   : > { %602 = vperm.xlu0 %6785, %v323_v39   ;;  %410 = vperm.xlu1 %6827, %v323_v39  }
 0x136   : > { %6403 = vmatprep.mubr.msk.f32.mxu1 %vm448_vm4, %v11986_v45 }
 0x138   : > { %6404 = vmatmul.mubr.msk.f32.gmra.mrb[18].mxu1 %vm449_vm5, %v11986_v45 }
 0x139   : > { %605 = vperm.xlu0 %6785, %v324_v41   ;;  %413 = vperm.xlu1 %6827, %v324_v41   ;;  %v847_v41 = vld [vmem:[%s11981_s3 + $0x10] sm:$0xff] }
 0x13a   : > { %6406 = vmatprep.mubr.msk.f32.mxu1 %vm450_vm6, %v11986_v45 }
 0x13d   : > { %608 = vperm.xlu0 %6785, %v325_v44   ;;  %416 = vperm.xlu1 %6827, %v325_v44   ;;  %v848_v44 = vld [vmem:[%s11981_s3 + $0x18] sm:$0xff] }
 0x141   : > { %611 = vperm.xlu0 %6785, %v326_v46   ;;  %419 = vperm.xlu1 %6827, %v326_v46   ;;  %v6663_v46 = vpack.c.bf16 %v848_v44, %v847_v41  ;;  %v850_v41 = vld [vmem:[%s11981_s3 + $0x28] sm:$0xff] }
 0x143   : > { %6664 = vmatprep.subr.bf16.mxu1 %v6663_v46 }
 0x144   : > { %6666 = vmatpush3.bf16.msra.mxu1 %v6663_v46 }
 0x145   : > { %614 = vperm.xlu0 %6785, %v327_v47   ;;  %422 = vperm.xlu1 %6827, %v327_v47  }
 0x149   : > { %617 = vperm.xlu0 %6785, %v328_v48   ;;  %425 = vperm.xlu1 %6827, %v328_v48  }
 0x14d   : > { %620 = vperm.xlu0 %6785, %v329_v49   ;;  %428 = vperm.xlu1 %6827, %v329_v49  }
 0x166   : > { %v6789_v55 = vpop.permute.xlu1 %6788 }
 0x167   : > { %v6791_v56 = vunpack.i.h.bf16 %v6789_v55  ;;  %v6790_v59 = vunpack.i.l.bf16 %v6789_v55 }
 0x169   : > { %v6631_v60 = vpack.c.bf16 %v6791_v56, %v6790_v59 }
 0x16b   : > { %v6794_v63 = vpop.permute.xlu0 %6793  ;;  %6632 = vmatprep.subr.bf16.mxu0 %v6631_v60 }
 0x16c   : > { %v6796_v0 = vunpack.i.h.bf16 %v6794_v63  ;;  %v6795_v4 = vunpack.i.l.bf16 %v6794_v63  ;;  %6634 = vmatpush3.bf16.msra.mxu0 %v6631_v60 }
 0x16e   : > { %v6635_v5 = vpack.c.bf16 %v6796_v0, %v6795_v4 }
 0x170   : > { %6636 = vmatprep.subr.bf16.mxu0 %v6635_v5 }
 0x171   : > { %6638 = vmatpush3.bf16.msra.mxu0 %v6635_v5 }
 0x177   : > { %v7603_v7 = vpop.permute.xlu1 %548 }
 0x178   : > { %vm629_vm13 = vcmp.eq.s32.totalorder %v7603_v7, %v7418_v43 }
 0x17b   : > { %v6799_v9 = vpop.permute.xlu1 %6798 }
 0x17c   : > { %v6801_v10 = vunpack.i.h.bf16 %v6799_v9  ;;  %v6800_v13 = vunpack.i.l.bf16 %v6799_v9  ;;  %v7605_v14 = vpop.permute.xlu0 %545 }
 0x17d   : > { %vm628_vm12 = vcmp.eq.s32.totalorder %v7605_v14, %v7418_v43 }
 0x17e   : > { %v6639_v15 = vpack.c.bf16 %v6801_v10, %v6800_v13 }
 0x17f   : > { %v7607_v18 = vpop.permute.xlu1 %554 }
 0x180   : > { %v6804_v19 = vpop.permute.xlu0 %6803  ;;  %6640 = vmatprep.subr.bf16.mxu0 %v6639_v15  ;;  %vm631_vm0 = vcmp.eq.s32.totalorder %v7607_v18, %v7418_v43 }
 0x181   : > { %v6806_v21 = vunpack.i.h.bf16 %v6804_v19  ;;  %v6805_v23 = vunpack.i.l.bf16 %v6804_v19  ;;  %6642 = vmatpush3.bf16.msra.mxu0 %v6639_v15 }
 0x183   : > { %v6809_v24 = vpop.permute.xlu1 %6808  ;;  %v6643_v27 = vpack.c.bf16 %v6806_v21, %v6805_v23 }
 0x184   : > { %v6811_v29 = vunpack.i.h.bf16 %v6809_v24  ;;  %v6810_v30 = vunpack.i.l.bf16 %v6809_v24  ;;  %v552_v28 = vpop.permute.xlu0 %551 }
 0x185   : > { %6644 = vmatprep.subr.bf16.mxu0 %v6643_v27  ;;  %vm630_vm14 = vcmp.eq.s32.totalorder %v552_v28, %v7418_v43 }
 0x186   : > { %6646 = vmatpush3.bf16.msra.mxu0 %v6643_v27  ;;  %v6647_v31 = vpack.c.bf16 %v6811_v29, %v6810_v30 }
 0x187   : > { %v7609_v32 = vpop.permute.xlu1 %560 }
 0x188   : > { %v6814_v33 = vpop.permute.xlu0 %6813  ;;  %6648 = vmatprep.subr.bf16.mxu0 %v6647_v31  ;;  %vm633_vm3 = vcmp.eq.s32.totalorder %v7609_v32, %v7418_v43 }
 0x189   : > { %v6816_v34 = vunpack.i.h.bf16 %v6814_v33  ;;  %v6815_v35 = vunpack.i.l.bf16 %v6814_v33 }
 0x18a   : > { %6650 = vmatpush3.bf16.msra.mxu0 %v6647_v31 }
 0x18b   : > { %v6819_v36 = vpop.permute.xlu1 %6818  ;;  %v6651_v37 = vpack.c.bf16 %v6816_v34, %v6815_v35 }
 0x18c   : > { %v6821_v38 = vunpack.i.h.bf16 %v6819_v36  ;;  %v6820_v39 = vunpack.i.l.bf16 %v6819_v36  ;;  %v558_v40 = vpop.permute.xlu0 %557 }
 0x18d   : > { %6652 = vmatprep.subr.bf16.mxu0 %v6651_v37  ;;  %vm632_vm1 = vcmp.eq.s32.totalorder %v558_v40, %v7418_v43  ;;  %v849_v40 = vld [vmem:[%s11981_s3 + $0x20] sm:$0xff] }
 0x18e   : > { %6654 = vmatpush3.bf16.msra.mxu0 %v6651_v37  ;;  %v6655_v47 = vpack.c.bf16 %v6821_v38, %v6820_v39  ;;  %v6667_v44 = vpack.c.bf16 %v850_v41, %v849_v40 }
 0x18f   : > { %v6824_v48 = vpop.permute.xlu1 %6823 }
 0x190   : > { %v6826_v49 = vunpack.i.h.bf16 %v6824_v48  ;;  %v6825_v55 = vunpack.i.l.bf16 %v6824_v48  ;;  %v564_v56 = vpop.permute.xlu0 %563  ;;  %6656 = vmatprep.subr.bf16.mxu0 %v6655_v47  ;;  %6668 = vmatprep.subr.bf16.mxu1 %v6667_v44 }
 0x191   : > { %vm634_vm4 = vcmp.eq.s32.totalorder %v564_v56, %v7418_v43  ;;  %6670 = vmatpush3.bf16.msra.mxu1 %v6667_v44 }
 0x192   : > { %6658 = vmatpush3.bf16.msra.mxu0 %v6655_v47  ;;  %v6659_v59 = vpack.c.bf16 %v6826_v49, %v6825_v55 }
 0x193   : > { %v567_v60 = vpop.permute.xlu1 %566 }
 0x194   : > { %v570_v63 = vpop.permute.xlu0 %569  ;;  %6660 = vmatprep.subr.bf16.mxu0 %v6659_v59  ;;  %vm635_vm6 = vcmp.eq.s32.totalorder %v567_v60, %v7418_v43 }
 0x196   : > { %6662 = vmatpush3.bf16.msra.mxu0 %v6659_v59 }
 0x197   : > { %v573_v0 = vpop.permute.xlu1 %572 }
 0x198   : > { %v576_v4 = vpop.permute.xlu0 %575 }
 0x199   : > { %6457 = vmatmul.mubr.msk.f32.vlgmr.msra.gmra.mrb[16].mxu0 %vm623_vm7, %v11986_v45  ;;  %vm636_vm7 = vcmp.eq.s32.totalorder %v570_v63, %v7418_v43 }
 0x19a   : > { %6459 = vmatprep.mubr.msk.f32.mxu0 %vm624_vm8, %v11986_v45 }
 0x19b   : > { %v579_v5 = vpop.permute.xlu1 %578 }
 0x19c   : > { %v582_v9 = vpop.permute.xlu0 %581 }
 0x19d   : > { %6460 = vmatmul.mubr.msk.f32.gmra.mrb[18].mxu0 %vm625_vm9, %v11986_v45  ;;  %vm637_vm9 = vcmp.eq.s32.totalorder %v573_v0, %v7418_v43 }
 0x19e   : > { %6462 = vmatprep.mubr.msk.f32.mxu0 %vm626_vm10, %v11986_v45  ;;  %vm638_vm10 = vcmp.eq.s32.totalorder %v576_v4, %v7418_v43 }
 0x19f   : > { %v585_v50 = vpop.permute.xlu1 %584 }
 0x1a0   : > { %v588_v52 = vpop.permute.xlu0 %587 }
 0x1a1   : > { %6463 = vmatmul.mubr.msk.f32.gmra.mrb[20].mxu0 %vm627_vm11, %v11986_v45 }
 0x1a2   : > { %6465 = vmatprep.mubr.msk.f32.mxu0 %vm628_vm12, %v11986_v45  ;;  %vm639_vm12 = vcmp.eq.s32.totalorder %v579_v5, %v7418_v43 }
 0x1a4   : > { %v591_v51 = vpop.permute.xlu0 %590  ;;  %v399_v54 = vpop.permute.xlu1 %398 }
 0x1a5   : > { %vm451_vm15 = vcmp.eq.s32.totalorder %v399_v54, %v7418_v43  ;;  %6466 = vmatmul.mubr.msk.f32.gmra.mrb[22].mxu0 %vm629_vm13, %v11986_v45  ;;  %vm640_vm13 = vcmp.eq.s32.totalorder %v582_v9, %v7418_v43 }
 0x1a6   : > { %6468 = vmatprep.mubr.msk.f32.mxu0 %vm630_vm14, %v11986_v45  ;;  %6407 = vmatmul.mubr.msk.f32.gmra.mrb[20].mxu1 %vm451_vm15, %v11986_v45  ;;  %vm641_vm15 = vcmp.eq.s32.totalorder %v585_v50, %v7418_v43 }
 0x1a8   : > { %v594_v53 = vpop.permute.xlu0 %593  ;;  %v402_v10 = vpop.permute.xlu1 %401 }
 0x1a9   : > { %vm452_vm2 = vcmp.eq.s32.totalorder %v402_v10, %v7418_v43  ;;  %6469 = vmatmul.mubr.msk.f32.gmra.mrb[24].mxu0 %vm631_vm0, %v11986_v45  ;;  %vm642_vm0 = vcmp.eq.s32.totalorder %v588_v52, %v7418_v43 }
 0x1aa   : > { %6471 = vmatprep.mubr.msk.f32.mxu0 %vm632_vm1, %v11986_v45  ;;  %6409 = vmatprep.mubr.msk.f32.mxu1 %vm452_vm2, %v11986_v45  ;;  %vm643_vm2 = vcmp.eq.s32.totalorder %v591_v51, %v7418_v43 }
 0x1ac   : > { %v597_v7 = vpop.permute.xlu0 %596  ;;  %v405_v13 = vpop.permute.xlu1 %404 }
 0x1ad   : > { %vm453_vm5 = vcmp.eq.s32.totalorder %v405_v13, %v7418_v43  ;;  %6472 = vmatmul.mubr.msk.f32.gmra.mrb[26].mxu0 %vm633_vm3, %v11986_v45  ;;  %vm644_vm3 = vcmp.eq.s32.totalorder %v594_v53, %v7418_v43 }
 0x1ae   : > { %6474 = vmatprep.mubr.msk.f32.mxu0 %vm634_vm4, %v11986_v45  ;;  %6410 = vmatmul.mubr.msk.f32.gmra.mrb[22].mxu1 %vm453_vm5, %v11986_v45  ;;  %vm645_vm5 = vcmp.eq.s32.totalorder %v597_v7, %v7418_v43 }
 0x1b0   : > { %v600_v14 = vpop.permute.xlu0 %599  ;;  %v408_v15 = vpop.permute.xlu1 %407 }
 0x1b1   : > { %vm454_vm8 = vcmp.eq.s32.totalorder %v408_v15, %v7418_v43  ;;  %6475 = vmatmul.mubr.msk.f32.gmra.mrb[28].mxu0 %vm635_vm6, %v11986_v45  ;;  %vm646_vm6 = vcmp.eq.s32.totalorder %v600_v14, %v7418_v43 }
 0x1b2   : > { %6477 = vmatprep.mubr.msk.f32.mxu0 %vm636_vm7, %v11986_v45  ;;  %6412 = vmatprep.mubr.msk.f32.mxu1 %vm454_vm8, %v11986_v45 }
 0x1b4   : > { %v603_v18 = vpop.permute.xlu0 %602  ;;  %v411_v19 = vpop.permute.xlu1 %410 }
 0x1b5   : > { %vm455_vm11 = vcmp.eq.s32.totalorder %v411_v19, %v7418_v43  ;;  %6478 = vmatmul.mubr.msk.f32.gmra.mrb[30].mxu0 %vm637_vm9, %v11986_v45  ;;  %vm647_vm8 = vcmp.eq.s32.totalorder %v603_v18, %v7418_v43 }
 0x1b6   : > { %6480 = vmatprep.mubr.msk.f32.mxu0 %vm638_vm10, %v11986_v45  ;;  %6413 = vmatmul.mubr.msk.f32.gmra.mrb[24].mxu1 %vm455_vm11, %v11986_v45 }
 0x1b8   : > { %v606_v21 = vpop.permute.xlu0 %605  ;;  %v414_v23 = vpop.permute.xlu1 %413 }
 0x1b9   : > { %vm456_vm14 = vcmp.eq.s32.totalorder %v414_v23, %v7418_v43  ;;  %6481 = vmatmul.mubr.msk.f32.gmra.mrb[32].mxu0 %vm639_vm12, %v11986_v45  ;;  %vm648_vm9 = vcmp.eq.s32.totalorder %v606_v21, %v7418_v43 }
 0x1ba   : > { %6483 = vmatprep.mubr.msk.f32.mxu0 %vm640_vm13, %v11986_v45  ;;  %6415 = vmatprep.mubr.msk.f32.mxu1 %vm456_vm14, %v11986_v45 }
 0x1bc   : > { %v609_v24 = vpop.permute.xlu0 %608  ;;  %v417_v27 = vpop.permute.xlu1 %416 }
 0x1bd   : > { %vm457_vm1 = vcmp.eq.s32.totalorder %v417_v27, %v7418_v43  ;;  %6484 = vmatmul.mubr.msk.f32.gmra.mrb[34].mxu0 %vm641_vm15, %v11986_v45  ;;  %vm649_vm11 = vcmp.eq.s32.totalorder %v609_v24, %v7418_v43 }
 0x1be   : > { %6486 = vmatprep.mubr.msk.f32.mxu0 %vm642_vm0, %v11986_v45  ;;  %6416 = vmatmul.mubr.msk.f32.gmra.mrb[26].mxu1 %vm457_vm1, %v11986_v45 }
 0x1c0   : > { %v612_v29 = vpop.permute.xlu0 %611  ;;  %v420_v30 = vpop.permute.xlu1 %419 }
 0x1c1   : > { %vm458_vm4 = vcmp.eq.s32.totalorder %v420_v30, %v7418_v43  ;;  %6487 = vmatmul.mubr.msk.f32.gmra.mrb[36].mxu0 %vm643_vm2, %v11986_v45  ;;  %vm650_vm12 = vcmp.eq.s32.totalorder %v612_v29, %v7418_v43 }
 0x1c2   : > { %6489 = vmatprep.mubr.msk.f32.mxu0 %vm644_vm3, %v11986_v45  ;;  %6418 = vmatprep.mubr.msk.f32.mxu1 %vm458_vm4, %v11986_v45  ;;  %vm1688_vm3 = vcmask 261120  }
 0x1c4   : > { %v423_v28 = vpop.permute.xlu1 %422  ;;  %v615_v31 = vpop.permute.xlu0 %614 }
 0x1c5   : > { %vm459_vm7 = vcmp.eq.s32.totalorder %v423_v28, %v7418_v43  ;;  %6490 = vmatmul.mubr.msk.f32.gmra.mrb[38].mxu0 %vm645_vm5, %v11986_v45  ;;  %vm651_vm14 = vcmp.eq.s32.totalorder %v615_v31, %v7418_v43 }
 0x1c6   : > { %6492 = vmatprep.mubr.msk.f32.mxu0 %vm646_vm6, %v11986_v45  ;;  %6419 = vmatmul.mubr.msk.f32.gmra.mrb[28].mxu1 %vm459_vm7, %v11986_v45 }
 0x1c8   : > { %v426_v32 = vpop.permute.xlu1 %425  ;;  %v618_v33 = vpop.permute.xlu0 %617 }
 0x1c9   : > { %vm460_vm10 = vcmp.eq.s32.totalorder %v426_v32, %v7418_v43  ;;  %6493 = vmatmul.mubr.msk.f32.gmra.mrb[40].mxu0 %vm647_vm8, %v11986_v45  ;;  %vm652_vm15 = vcmp.eq.s32.totalorder %v618_v33, %v7418_v43 }
 0x1ca   : > { %6495 = vmatprep.mubr.msk.f32.mxu0 %vm648_vm9, %v11986_v45  ;;  %6421 = vmatprep.mubr.msk.f32.mxu1 %vm460_vm10, %v11986_v45 }
 0x1cc   : > { %v429_v34 = vpop.permute.xlu1 %428  ;;  %v621_v35 = vpop.permute.xlu0 %620 }
 0x1cd   : > { %vm461_vm13 = vcmp.eq.s32.totalorder %v429_v34, %v7418_v43  ;;  %6496 = vmatmul.mubr.msk.f32.gmra.mrb[42].mxu0 %vm649_vm11, %v11986_v45  ;;  %vm653_vm0 = vcmp.eq.s32.totalorder %v621_v35, %v7418_v43 }
 0x1ce   : > { %6498 = vmatprep.mubr.msk.f32.mxu0 %vm650_vm12, %v11986_v45  ;;  %6422 = vmatmul.mubr.msk.f32.gmra.mrb[30].mxu1 %vm461_vm13, %v11986_v45 }
 0x1d1   : > { %6499 = vmatmul.mubr.msk.f32.gmra.mrb[44].mxu0 %vm651_vm14, %v11986_v45 }
 0x1d2   : > { %6501 = vmatprep.mubr.msk.f32.mxu0 %vm652_vm15, %v11986_v45 }
 0x1d5   : > { %6502 = vmatmul.mubr.msk.f32.gmra.mrb[46].mxu0 %vm653_vm0, %v11986_v45 }
 0x1e7   : > { %v7710_v36 = vpop.f32.mrb[0].mxu1 }
 0x1e8   : > { %12298 = vst [vmem:[#allocation21_spill] sm:$0xff] %v7710_v36  ;;  %v7712_v37 = vpop.f32.mrb[1].mxu1 }
 0x1e9   : > { %12299 = vst [vmem:[#allocation22_spill] sm:$0xff] %v7712_v37 }
 0x1eb   : > { %v7714_v38 = vpop.f32.mrb[2].mxu1 }
 0x1ec   : > { %12300 = vst [vmem:[#allocation23_spill] sm:$0xff] %v7714_v38  ;;  %v7716_v39 = vpop.f32.mrb[3].mxu1 }
 0x1ed   : > { %12301 = vst [vmem:[#allocation24_spill] sm:$0xff] %v7716_v39 }
 0x1ef   : > { %v7724_v43 = vpop.f32.mrb[4].mxu1 }
 0x1f0   : > { %12302 = vst [vmem:[#allocation25_spill] sm:$0xff] %v7724_v43  ;;  %v7726_v46 = vpop.f32.mrb[5].mxu1 }
 0x1f1   : > { %12303 = vst [vmem:[#allocation26_spill] sm:$0xff] %v7726_v46 }
 0x1f3   : > { %v7728_v47 = vpop.f32.mrb[6].mxu1 }
 0x1f4   : > { %12304 = vst [vmem:[#allocation27_spill] sm:$0xff] %v7728_v47  ;;  %v7730_v48 = vpop.f32.mrb[7].mxu1 }
 0x1f5   : > { %12305 = vst [vmem:[#allocation28_spill] sm:$0xff] %v7730_v48 }
 0x1f7   : > { %v7732_v49 = vpop.f32.mrb[8].mxu1 }
 0x1f8   : > { %12306 = vst [vmem:[#allocation29_spill] sm:$0xff] %v7732_v49  ;;  %v7734_v55 = vpop.f32.mrb[9].mxu1 }
 0x1f9   : > { %12307 = vst [vmem:[#allocation30_spill] sm:$0xff] %v7734_v55 }
 0x1fb   : > { %v7736_v56 = vpop.f32.mrb[10].mxu1 }
 0x1fc   : > { %12308 = vst [vmem:[#allocation31_spill] sm:$0xff] %v7736_v56  ;;  %v7738_v59 = vpop.f32.mrb[11].mxu1 }
 0x1fd   : > { %12309 = vst [vmem:[#allocation32_spill] sm:$0xff] %v7738_v59 }
 0x1ff   : > { %v7740_v60 = vpop.f32.mrb[12].mxu1 }
 0x200   : > { %12310 = vst [vmem:[#allocation33_spill] sm:$0xff] %v7740_v60  ;;  %v7742_v63 = vpop.f32.mrb[13].mxu1 }
 0x201   : > { %12311 = vst [vmem:[#allocation34_spill] sm:$0xff] %v7742_v63 }
 0x203   : > { %v7744_v0 = vpop.f32.mrb[14].mxu1 }
 0x204   : > { %12312 = vst [vmem:[#allocation35_spill] sm:$0xff] %v7744_v0  ;;  %v7746_v4 = vpop.f32.mrb[15].mxu1 }
 0x205   : > { %12313 = vst [vmem:[#allocation36_spill] sm:$0xff] %v7746_v4 }
 0x207   : > { %v7748_v5 = vpop.f32.mrb[16].mxu1 }
 0x208   : > { %12314 = vst [vmem:[#allocation37_spill] sm:$0xff] %v7748_v5  ;;  %v7750_v9 = vpop.f32.mrb[17].mxu1 }
 0x209   : > { %12315 = vst [vmem:[#allocation38_spill] sm:$0xff] %v7750_v9 }
 0x20b   : > { %v7752_v50 = vpop.f32.mrb[18].mxu1 }
 0x20c   : > { %12316 = vst [vmem:[#allocation39_spill] sm:$0xff] %v7752_v50  ;;  %v7754_v52 = vpop.f32.mrb[19].mxu1 }
 0x20d   : > { %12317 = vst [vmem:[#allocation40_spill] sm:$0xff] %v7754_v52 }
 0x26c   : > { %v6458_v51 = vpop.f32.mrb[16].mxu0 }
 0x26d   : > { %v1561_v54 = vadd.f32 %v6458_v51, %v7710_v36  ;;  %v1401_v53 = vpop.f32.mrb[17].mxu0 }
 0x26e   : > { %v1560_v10 = vadd.f32 %v1401_v53, %v7712_v37 }
 0x26f   : > { %v1625_v7 = vmul.f32 0.2, %v1561_v54  ;;  %vm1593_vm1 = vcmp.ge.f32.partialorder %v1561_v54, 0.0 }
 0x270   : > { %vm1592_vm2 = vcmp.ge.f32.partialorder %v1560_v10, 0.0  ;;  %v1624_v13 = vmul.f32 0.2, %v1560_v10  ;;  %v6461_v14 = vpop.f32.mrb[18].mxu0 }
 0x271   : > { %v1563_v15 = vadd.f32 %v6461_v14, %v7714_v38  ;;  %v1411_v18 = vpop.f32.mrb[19].mxu0  ;;  %v1657_v23 = vsel %vm1593_vm1, %v1561_v54, %v1625_v7 }
 0x272   : > { %v1562_v19 = vadd.f32 %v1411_v18, %v7716_v39  ;;  %v1656_v21 = vsel %vm1592_vm2, %v1560_v10, %v1624_v13 }
 0x273   : > { %v1627_v24 = vmul.f32 0.2, %v1563_v15  ;;  %6512 = vmatprep.mubr.msk.f32.mxu1 %vm1688_vm3, %v1656_v21  ;;  %vm1595_vm4 = vcmp.ge.f32.partialorder %v1563_v15, 0.0 }
 0x274   : > { %vm1594_vm5 = vcmp.ge.f32.partialorder %v1562_v19, 0.0  ;;  %v1626_v27 = vmul.f32 0.2, %v1562_v19  ;;  %v6464_v29 = vpop.f32.mrb[20].mxu0  ;;  %6513 = vmatmul.mubr.msk.f32.vlgmr.msra.gmra.mrb[32].mxu1 %vm1688_vm3, %v1657_v23 }
 0x275   : > { %v1565_v30 = vadd.f32 %v6464_v29, %v7724_v43  ;;  %v1421_v28 = vpop.f32.mrb[21].mxu0  ;;  %v1659_v34 = vsel %vm1595_vm4, %v1563_v15, %v1627_v24 }
 0x276   : > { %v1564_v31 = vadd.f32 %v1421_v28, %v7726_v46  ;;  %v1658_v32 = vsel %vm1594_vm5, %v1562_v19, %v1626_v27 }
 0x277   : > { %v1629_v33 = vmul.f32 0.2, %v1565_v30  ;;  %6515 = vmatprep.mubr.msk.f32.mxu1 %vm1688_vm3, %v1658_v32  ;;  %vm1597_vm6 = vcmp.ge.f32.partialorder %v1565_v30, 0.0 }
 0x278   : > { %vm1596_vm7 = vcmp.ge.f32.partialorder %v1564_v31, 0.0  ;;  %v1628_v35 = vmul.f32 0.2, %v1564_v31  ;;  %v6467_v40 = vpop.f32.mrb[22].mxu0  ;;  %6516 = vmatmul.mubr.msk.f32.gmra.mrb[34].mxu1 %vm1688_vm3, %v1659_v34 }
 0x279   : > { %v1567_v41 = vadd.f32 %v6467_v40, %v7728_v47  ;;  %v1431_v44 = vpop.f32.mrb[23].mxu0  ;;  %v7767_v51 = vpop.f32.mrb[20].mxu1  ;;  %v1661_v13 = vsel %vm1597_vm6, %v1565_v30, %v1629_v33 }
 0x27a   : > { %12318 = vst [vmem:[#allocation41_spill] sm:$0xff] %v7767_v51  ;;  %v1566_v54 = vadd.f32 %v1431_v44, %v7730_v48  ;;  %v1660_v53 = vsel %vm1596_vm7, %v1564_v31, %v1628_v35  ;;  %v7770_v10 = vpop.f32.mrb[21].mxu1 }
 0x27b   : > { %12319 = vst [vmem:[#allocation42_spill] sm:$0xff] %v7770_v10  ;;  %v1631_v7 = vmul.f32 0.2, %v1567_v41  ;;  %6518 = vmatprep.mubr.msk.f32.mxu1 %vm1688_vm3, %v1660_v53  ;;  %vm1599_vm8 = vcmp.ge.f32.partialorder %v1567_v41, 0.0 }
 0x27c   : > { %vm1598_vm9 = vcmp.ge.f32.partialorder %v1566_v54, 0.0  ;;  %v1630_v14 = vmul.f32 0.2, %v1566_v54  ;;  %v6470_v15 = vpop.f32.mrb[24].mxu0  ;;  %6519 = vmatmul.mubr.msk.f32.gmra.mrb[36].mxu1 %vm1688_vm3, %v1661_v13 }
 0x27d   : > { %v1569_v18 = vadd.f32 %v6470_v15, %v7732_v49  ;;  %v1441_v19 = vpop.f32.mrb[25].mxu0  ;;  %v1663_v27 = vsel %vm1599_vm8, %v1567_v41, %v1631_v7 }
 0x27e   : > { %v1568_v21 = vadd.f32 %v1441_v19, %v7734_v55  ;;  %v1662_v23 = vsel %vm1598_vm9, %v1566_v54, %v1630_v14 }
 0x27f   : > { %v1633_v24 = vmul.f32 0.2, %v1569_v18  ;;  %6521 = vmatprep.mubr.msk.f32.mxu1 %vm1688_vm3, %v1662_v23  ;;  %vm1601_vm10 = vcmp.ge.f32.partialorder %v1569_v18, 0.0 }
 0x280   : > { %vm1600_vm11 = vcmp.ge.f32.partialorder %v1568_v21, 0.0  ;;  %v1632_v29 = vmul.f32 0.2, %v1568_v21  ;;  %v6473_v30 = vpop.f32.mrb[26].mxu0  ;;  %6522 = vmatmul.mubr.msk.f32.gmra.mrb[38].mxu1 %vm1688_vm3, %v1663_v27 }
 0x281   : > { %v1571_v28 = vadd.f32 %v6473_v30, %v7736_v56  ;;  %v1451_v31 = vpop.f32.mrb[27].mxu0  ;;  %v7779_v32 = vpop.f32.mrb[22].mxu1  ;;  %v1665_v41 = vsel %vm1601_vm10, %v1569_v18, %v1633_v24 }
 0x282   : > { %12320 = vst [vmem:[#allocation43_spill] sm:$0xff] %v7779_v32  ;;  %v1570_v33 = vadd.f32 %v1451_v31, %v7738_v59  ;;  %v7782_v34 = vpop.f32.mrb[23].mxu1  ;;  %v1664_v35 = vsel %vm1600_vm11, %v1568_v21, %v1632_v29 }
 0x283   : > { %12321 = vst [vmem:[#allocation44_spill] sm:$0xff] %v7782_v34  ;;  %v1635_v40 = vmul.f32 0.2, %v1571_v28  ;;  %6524 = vmatprep.mubr.msk.f32.mxu1 %vm1688_vm3, %v1664_v35  ;;  %vm1603_vm12 = vcmp.ge.f32.partialorder %v1571_v28, 0.0 }
 0x284   : > { %vm1602_vm13 = vcmp.ge.f32.partialorder %v1570_v33, 0.0  ;;  %v1634_v44 = vmul.f32 0.2, %v1570_v33  ;;  %v6476_v54 = vpop.f32.mrb[28].mxu0  ;;  %6525 = vmatmul.mubr.msk.f32.gmra.mrb[40].mxu1 %vm1688_vm3, %v1665_v41 }
 0x285   : > { %v1573_v53 = vadd.f32 %v6476_v54, %v7740_v60  ;;  %v1461_v7 = vpop.f32.mrb[29].mxu0  ;;  %v1667_v19 = vsel %vm1603_vm12, %v1571_v28, %v1635_v40 }
 0x286   : > { %v1572_v13 = vadd.f32 %v1461_v7, %v7742_v63  ;;  %v1666_v14 = vsel %vm1602_vm13, %v1570_v33, %v1634_v44 }
 0x287   : > { %v1637_v15 = vmul.f32 0.2, %v1573_v53  ;;  %6527 = vmatprep.mubr.msk.f32.mxu1 %vm1688_vm3, %v1666_v14  ;;  %vm1605_vm14 = vcmp.ge.f32.partialorder %v1573_v53, 0.0 }
 0x288   : > { %vm1604_vm15 = vcmp.ge.f32.partialorder %v1572_v13, 0.0  ;;  %v1636_v21 = vmul.f32 0.2, %v1572_v13  ;;  %v6479_v18 = vpop.f32.mrb[30].mxu0  ;;  %6528 = vmatmul.mubr.msk.f32.gmra.mrb[42].mxu1 %vm1688_vm3, %v1667_v19 }
 0x289   : > { %v1575_v23 = vadd.f32 %v6479_v18, %v7744_v0  ;;  %v1471_v24 = vpop.f32.mrb[31].mxu0  ;;  %v7791_v27 = vpop.f32.mrb[24].mxu1  ;;  %v1669_v28 = vsel %vm1605_vm14, %v1573_v53, %v1637_v15 }
 0x28a   : > { %12322 = vst [vmem:[#allocation45_spill] sm:$0xff] %v7791_v27  ;;  %v1574_v29 = vadd.f32 %v1471_v24, %v7746_v4  ;;  %v7794_v30 = vpop.f32.mrb[25].mxu1  ;;  %v1668_v31 = vsel %vm1604_vm15, %v1572_v13, %v1636_v21 }
 0x28b   : > { %12323 = vst [vmem:[#allocation46_spill] sm:$0xff] %v7794_v30  ;;  %v1639_v33 = vmul.f32 0.2, %v1575_v23  ;;  %6530 = vmatprep.mubr.msk.f32.mxu1 %vm1688_vm3, %v1668_v31  ;;  %vm1607_vm0 = vcmp.ge.f32.partialorder %v1575_v23, 0.0 }
 0x28c   : > { %vm1606_vm1 = vcmp.ge.f32.partialorder %v1574_v29, 0.0  ;;  %v1638_v35 = vmul.f32 0.2, %v1574_v29  ;;  %v6482_v40 = vpop.f32.mrb[32].mxu0  ;;  %6531 = vmatmul.mubr.msk.f32.gmra.mrb[44].mxu1 %vm1688_vm3, %v1669_v28 }
 0x28d   : > { %v1577_v41 = vadd.f32 %v6482_v40, %v7748_v5  ;;  %v1481_v44 = vpop.f32.mrb[33].mxu0  ;;  %v1671_v13 = vsel %vm1607_vm0, %v1575_v23, %v1639_v33 }
 0x28e   : > { %v1576_v54 = vadd.f32 %v1481_v44, %v7750_v9  ;;  %v1670_v7 = vsel %vm1606_vm1, %v1574_v29, %v1638_v35 }
 0x28f   : > { %v1641_v14 = vmul.f32 0.2, %v1577_v41  ;;  %6533 = vmatprep.mubr.msk.f32.mxu1 %vm1688_vm3, %v1670_v7  ;;  %vm1609_vm2 = vcmp.ge.f32.partialorder %v1577_v41, 0.0 }
 0x290   : > { %vm1608_vm4 = vcmp.ge.f32.partialorder %v1576_v54, 0.0  ;;  %v1640_v19 = vmul.f32 0.2, %v1576_v54  ;;  %v6485_v53 = vpop.f32.mrb[34].mxu0  ;;  %6534 = vmatmul.mubr.msk.f32.gmra.mrb[46].mxu1 %vm1688_vm3, %v1671_v13 }
 0x291   : > { %v1579_v15 = vadd.f32 %v6485_v53, %v7752_v50  ;;  %v1491_v21 = vpop.f32.mrb[35].mxu0  ;;  %v7803_v18 = vpop.f32.mrb[26].mxu1  ;;  %v1673_v23 = vsel %vm1609_vm2, %v1577_v41, %v1641_v14 }
 0x292   : > { %12324 = vst [vmem:[#allocation47_spill] sm:$0xff] %v7803_v18  ;;  %v1578_v24 = vadd.f32 %v1491_v21, %v7754_v52  ;;  %v7806_v31 = vpop.f32.mrb[27].mxu1  ;;  %v1672_v29 = vsel %vm1608_vm4, %v1576_v54, %v1640_v19 }
 0x293   : > { %12325 = vst [vmem:[#allocation48_spill] sm:$0xff] %v7806_v31  ;;  %v1643_v28 = vmul.f32 0.2, %v1579_v15  ;;  %6536 = vmatprep.mubr.msk.f32.mxu1 %vm1688_vm3, %v1672_v29  ;;  %vm1611_vm5 = vcmp.ge.f32.partialorder %v1579_v15, 0.0 }
 0x294   : > { %vm1610_vm6 = vcmp.ge.f32.partialorder %v1578_v24, 0.0  ;;  %v1642_v33 = vmul.f32 0.2, %v1578_v24  ;;  %v6488_v35 = vpop.f32.mrb[36].mxu0  ;;  %6537 = vmatmul.mubr.msk.f32.gmra.mrb[48].mxu1 %vm1688_vm3, %v1673_v23 }
 0x295   : > { %v1581_v40 = vadd.f32 %v6488_v35, %v7767_v51  ;;  %v1501_v44 = vpop.f32.mrb[37].mxu0  ;;  %v1675_v54 = vsel %vm1611_vm5, %v1579_v15, %v1643_v28 }
 0x296   : > { %v1580_v7 = vadd.f32 %v1501_v44, %v7770_v10  ;;  %v1674_v13 = vsel %vm1610_vm6, %v1578_v24, %v1642_v33 }
 0x297   : > { %v1645_v53 = vmul.f32 0.2, %v1581_v40  ;;  %6539 = vmatprep.mubr.msk.f32.mxu1 %vm1688_vm3, %v1674_v13  ;;  %vm1613_vm7 = vcmp.ge.f32.partialorder %v1581_v40, 0.0 }
 0x298   : > { %vm1612_vm8 = vcmp.ge.f32.partialorder %v1580_v7, 0.0  ;;  %v1644_v19 = vmul.f32 0.2, %v1580_v7  ;;  %v6491_v41 = vpop.f32.mrb[38].mxu0  ;;  %6540 = vmatmul.mubr.msk.f32.gmra.mrb[50].mxu1 %vm1688_vm3, %v1675_v54 }
 0x299   : > { %v1583_v14 = vadd.f32 %v6491_v41, %v7779_v32  ;;  %v1511_v21 = vpop.f32.mrb[39].mxu0  ;;  %v7815_v29 = vpop.f32.mrb[28].mxu1  ;;  %v1677_v15 = vsel %vm1613_vm7, %v1581_v40, %v1645_v53 }
 0x29a   : > { %12326 = vst [vmem:[#allocation49_spill] sm:$0xff] %v7815_v29  ;;  %v1582_v23 = vadd.f32 %v1511_v21, %v7782_v34  ;;  %v7818_v35 = vpop.f32.mrb[29].mxu1  ;;  %v1676_v24 = vsel %vm1612_vm8, %v1580_v7, %v1644_v19 }
 0x29b   : > { %12327 = vst [vmem:[#allocation50_spill] sm:$0xff] %v7818_v35  ;;  %v1647_v33 = vmul.f32 0.2, %v1583_v14  ;;  %6542 = vmatprep.mubr.msk.f32.mxu1 %vm1688_vm3, %v1676_v24  ;;  %vm1615_vm9 = vcmp.ge.f32.partialorder %v1583_v14, 0.0 }
 0x29c   : > { %vm1614_vm10 = vcmp.ge.f32.partialorder %v1582_v23, 0.0  ;;  %v1646_v28 = vmul.f32 0.2, %v1582_v23  ;;  %v6494_v44 = vpop.f32.mrb[40].mxu0  ;;  %6543 = vmatmul.mubr.msk.f32.gmra.mrb[52].mxu1 %vm1688_vm3, %v1677_v15 }
 0x29d   : > { %v1585_v13 = vadd.f32 %v6494_v44, %v7791_v27  ;;  %v1521_v54 = vpop.f32.mrb[41].mxu0  ;;  %v1679_v7 = vsel %vm1615_vm9, %v1583_v14, %v1647_v33 }
 0x29e   : > { %v1584_v41 = vadd.f32 %v1521_v54, %v7794_v30  ;;  %v1678_v3 = vsel %vm1614_vm10, %v1582_v23, %v1646_v28 }
 0x29f   : > { %v1649_v21 = vmul.f32 0.2, %v1585_v13  ;;  %6545 = vmatprep.mubr.msk.f32.mxu1 %vm1688_vm3, %v1678_v3  ;;  %vm1617_vm11 = vcmp.ge.f32.partialorder %v1585_v13, 0.0 }
 0x2a0   : > { %vm1616_vm12 = vcmp.ge.f32.partialorder %v1584_v41, 0.0  ;;  %v1648_v19 = vmul.f32 0.2, %v1584_v41  ;;  %v6497_v40 = vpop.f32.mrb[42].mxu0  ;;  %6546 = vmatmul.mubr.msk.f32.gmra.mrb[54].mxu1 %vm1688_vm3, %v1679_v7 }
 0x2a1   : > { %v1587_v53 = vadd.f32 %v6497_v40, %v7803_v18  ;;  %v1531_v24 = vpop.f32.mrb[43].mxu0  ;;  %v7827_v15 = vpop.f32.mrb[30].mxu1  ;;  %v1681_v3 = vsel %vm1617_vm11, %v1585_v13, %v1649_v21 }
 0x2a2   : > { %12328 = vst [vmem:[#allocation51_spill] sm:$0xff] %v7827_v15  ;;  %v1586_v44 = vadd.f32 %v1531_v24, %v7806_v31  ;;  %v7830_v45 = vpop.f32.mrb[31].mxu1  ;;  %v1680_v23 = vsel %vm1616_vm12, %v1584_v41, %v1648_v19 }
 0x2a3   : > { %12329 = vst [vmem:[#allocation52_spill] sm:$0xff] %v7830_v45  ;;  %v1651_v28 = vmul.f32 0.2, %v1587_v53  ;;  %6548 = vmatprep.mubr.msk.f32.mxu1 %vm1688_vm3, %v1680_v23  ;;  %vm1619_vm13 = vcmp.ge.f32.partialorder %v1587_v53, 0.0 }
 0x2a4   : > { %vm1618_vm14 = vcmp.ge.f32.partialorder %v1586_v44, 0.0  ;;  %v1650_v14 = vmul.f32 0.2, %v1586_v44  ;;  %v6500_v33 = vpop.f32.mrb[44].mxu0  ;;  %6549 = vmatmul.mubr.msk.f32.gmra.mrb[56].mxu1 %vm1688_vm3, %v1681_v3 }
 0x2a5   : > { %v1589_v54 = vadd.f32 %v6500_v33, %v7815_v29  ;;  %v1541_v7 = vpop.f32.mrb[45].mxu0  ;;  %v1683_v41 = vsel %vm1619_vm13, %v1587_v53, %v1651_v28 }
 0x2a6   : > { %v1588_v40 = vadd.f32 %v1541_v7, %v7818_v35  ;;  %v1682_v42 = vsel %vm1618_vm14, %v1586_v44, %v1650_v14 }
 0x2a7   : > { %v1653_v24 = vmul.f32 0.2, %v1589_v54  ;;  %6551 = vmatprep.mubr.msk.f32.mxu1 %vm1688_vm3, %v1682_v42  ;;  %vm1621_vm15 = vcmp.ge.f32.partialorder %v1589_v54, 0.0 }
 0x2a8   : > { %vm1620_vm0 = vcmp.ge.f32.partialorder %v1588_v40, 0.0  ;;  %v1652_v19 = vmul.f32 0.2, %v1588_v40  ;;  %v6503_v13 = vpop.f32.mrb[46].mxu0  ;;  %6552 = vmatmul.mubr.msk.f32.gmra.mrb[58].mxu1 %vm1688_vm3, %v1683_v41 }
 0x2a9   : > { %v1591_v21 = vadd.f32 %v6503_v13, %v7827_v15  ;;  %v1551_v23 = vpop.f32.mrb[47].mxu0  ;;  %v1685_v44 = vsel %vm1621_vm15, %v1589_v54, %v1653_v24 }
 0x2aa   : > { %v1590_v3 = vadd.f32 %v1551_v23, %v7830_v45  ;;  %v1684_v33 = vsel %vm1620_vm0, %v1588_v40, %v1652_v19 }
 0x2ab   : > { %v1655_v25 = vmul.f32 0.2, %v1591_v21  ;;  %6554 = vmatprep.mubr.msk.f32.mxu1 %vm1688_vm3, %v1684_v33  ;;  %vm1623_vm1 = vcmp.ge.f32.partialorder %v1591_v21, 0.0 }
 0x2ac   : > { %vm1622_vm2 = vcmp.ge.f32.partialorder %v1590_v3, 0.0  ;;  %v1654_v42 = vmul.f32 0.2, %v1590_v3  ;;  %6555 = vmatmul.mubr.msk.f32.gmra.mrb[60].mxu1 %vm1688_vm3, %v1685_v44 }
 0x2ad   : > { %v1687_v28 = vsel %vm1623_vm1, %v1591_v21, %v1655_v25 }
 0x2ae   : > { %v1686_v53 = vsel %vm1622_vm2, %v1590_v3, %v1654_v42 }
 0x2af   : > { %6557 = vmatprep.mubr.msk.f32.mxu1 %vm1688_vm3, %v1686_v53 }
 0x2b0   : > { %6558 = vmatmul.mubr.msk.f32.gmra.mrb[62].mxu1 %vm1688_vm3, %v1687_v28 }
 0x347   : > { %v7844_v14 = vpop.f32.mrb[32].mxu1 }
 0x348   : > { %v7846_v7 = vpop.f32.mrb[33].mxu1  ;;  %v2013_v40 = vsel %vm1688_vm3, %v7844_v14, -inf }
 0x349   : > { %2014 = vmax.xlane.f32.xlu0 %v2013_v40  ;;  %v2010_v54 = vsel %vm1688_vm3, %v7846_v7, -inf }
 0x34a   : > { %2011 = vmax.xlane.f32.xlu1 %v2010_v54 }
 0x34b   : > { %v7852_v24 = vpop.f32.mrb[34].mxu1 }
 0x34c   : > { %v7854_v41 = vpop.f32.mrb[35].mxu1  ;;  %v2019_v25 = vsel %vm1688_vm3, %v7852_v24, -inf }
 0x34d   : > { %v2016_v19 = vsel %vm1688_vm3, %v7854_v41, -inf }
 0x34e   : > { %2020 = vmax.xlane.f32.xlu1 %v2019_v25  ;;  %2017 = vmax.xlane.f32.xlu0 %v2016_v19 }
 0x34f   : > { %v7860_v13 = vpop.f32.mrb[36].mxu1 }
 0x350   : > { %v7862_v21 = vpop.f32.mrb[37].mxu1  ;;  %v2025_v23 = vsel %vm1688_vm3, %v7860_v13, -inf }
 0x351   : > { %v2022_v3 = vsel %vm1688_vm3, %v7862_v21, -inf }
 0x352   : > { %2026 = vmax.xlane.f32.xlu1 %v2025_v23  ;;  %2023 = vmax.xlane.f32.xlu0 %v2022_v3 }
 0x353   : > { %v7868_v33 = vpop.f32.mrb[38].mxu1 }
 0x354   : > { %v7870_v44 = vpop.f32.mrb[39].mxu1  ;;  %v2031_v42 = vsel %vm1688_vm3, %v7868_v33, -inf }
 0x355   : > { %v2028_v53 = vsel %vm1688_vm3, %v7870_v44, -inf }
 0x356   : > { %2032 = vmax.xlane.f32.xlu1 %v2031_v42  ;;  %2029 = vmax.xlane.f32.xlu0 %v2028_v53 }
 0x357   : > { %v7876_v28 = vpop.f32.mrb[40].mxu1 }
 0x358   : > { %v7878_v40 = vpop.f32.mrb[41].mxu1  ;;  %v2037_v54 = vsel %vm1688_vm3, %v7876_v28, -inf }
 0x359   : > { %v2034_v25 = vsel %vm1688_vm3, %v7878_v40, -inf }
 0x35a   : > { %2038 = vmax.xlane.f32.xlu1 %v2037_v54  ;;  %2035 = vmax.xlane.f32.xlu0 %v2034_v25 }
 0x35b   : > { %v7884_v19 = vpop.f32.mrb[42].mxu1 }
 0x35c   : > { %v7886_v23 = vpop.f32.mrb[43].mxu1  ;;  %v2043_v3 = vsel %vm1688_vm3, %v7884_v19, -inf }
 0x35d   : > { %v2040_v42 = vsel %vm1688_vm3, %v7886_v23, -inf }
 0x35e   : > { %2044 = vmax.xlane.f32.xlu1 %v2043_v3  ;;  %2041 = vmax.xlane.f32.xlu0 %v2040_v42 }
 0x35f   : > { %v7892_v53 = vpop.f32.mrb[44].mxu1 }
 0x360   : > { %v7894_v26 = vpop.f32.mrb[45].mxu1  ;;  %v2049_v54 = vsel %vm1688_vm3, %v7892_v53, -inf }
 0x361   : > { %v2046_v25 = vsel %vm1688_vm3, %v7894_v26, -inf }
 0x362   : > { %2050 = vmax.xlane.f32.xlu1 %v2049_v54  ;;  %2047 = vmax.xlane.f32.xlu0 %v2046_v25 }
 0x363   : > { %v7900_v20 = vpop.f32.mrb[46].mxu1 }
 0x364   : > { %v7902_v22 = vpop.f32.mrb[47].mxu1  ;;  %v2055_v3 = vsel %vm1688_vm3, %v7900_v20, -inf }
 0x365   : > { %v2052_v42 = vsel %vm1688_vm3, %v7902_v22, -inf }
 0x366   : > { %2056 = vmax.xlane.f32.xlu1 %v2055_v3  ;;  %2053 = vmax.xlane.f32.xlu0 %v2052_v42 }
 0x367   : > { %v7908_v16 = vpop.f32.mrb[48].mxu1 }
 0x368   : > { %v7910_v17 = vpop.f32.mrb[49].mxu1  ;;  %v2061_v54 = vsel %vm1688_vm3, %v7908_v16, -inf }
 0x369   : > { %v2058_v25 = vsel %vm1688_vm3, %v7910_v17, -inf }
 0x36a   : > { %2062 = vmax.xlane.f32.xlu1 %v2061_v54  ;;  %2059 = vmax.xlane.f32.xlu0 %v2058_v25 }
 0x36b   : > { %v7916_v11 = vpop.f32.mrb[50].mxu1 }
 0x36c   : > { %v7918_v12 = vpop.f32.mrb[51].mxu1  ;;  %v2067_v3 = vsel %vm1688_vm3, %v7916_v11, -inf }
 0x36d   : > { %v2064_v42 = vsel %vm1688_vm3, %v7918_v12, -inf }
 0x36e   : > { %2068 = vmax.xlane.f32.xlu1 %v2067_v3  ;;  %2065 = vmax.xlane.f32.xlu0 %v2064_v42 }
 0x36f   : > { %v7924_v6 = vpop.f32.mrb[52].mxu1 }
 0x370   : > { %12330 = vst [vmem:[#allocation53_spill] sm:$0xff] %v7924_v6  ;;  %v7926_v8 = vpop.f32.mrb[53].mxu1  ;;  %v2073_v54 = vsel %vm1688_vm3, %v7924_v6, -inf }
 0x371   : > { %12331 = vst [vmem:[#allocation54_spill] sm:$0xff] %v7926_v8  ;;  %v2070_v25 = vsel %vm1688_vm3, %v7926_v8, -inf }
 0x372   : > { %2074 = vmax.xlane.f32.xlu1 %v2073_v54  ;;  %2071 = vmax.xlane.f32.xlu0 %v2070_v25 }
 0x373   : > { %v7932_v1 = vpop.f32.mrb[54].mxu1 }
 0x374   : > { %12332 = vst [vmem:[#allocation55_spill] sm:$0xff] %v7932_v1  ;;  %v7934_v2 = vpop.f32.mrb[55].mxu1  ;;  %v2079_v3 = vsel %vm1688_vm3, %v7932_v1, -inf }
 0x375   : > { %12333 = vst [vmem:[#allocation56_spill] sm:$0xff] %v7934_v2  ;;  %v2076_v42 = vsel %vm1688_vm3, %v7934_v2, -inf }
 0x376   : > { %2080 = vmax.xlane.f32.xlu1 %v2079_v3  ;;  %2077 = vmax.xlane.f32.xlu0 %v2076_v42 }
 0x377   : > { %v7940_v61 = vpop.f32.mrb[56].mxu1 }
 0x378   : > { %12334 = vst [vmem:[#allocation57_spill] sm:$0xff] %v7940_v61  ;;  %v7942_v62 = vpop.f32.mrb[57].mxu1  ;;  %v2085_v54 = vsel %vm1688_vm3, %v7940_v61, -inf }
 0x379   : > { %12335 = vst [vmem:[#allocation58_spill] sm:$0xff] %v7942_v62  ;;  %v2082_v25 = vsel %vm1688_vm3, %v7942_v62, -inf }
 0x37a   : > { %2086 = vmax.xlane.f32.xlu1 %v2085_v54  ;;  %2083 = vmax.xlane.f32.xlu0 %v2082_v25 }
 0x37b   : > { %v7948_v57 = vpop.f32.mrb[58].mxu1 }
 0x37c   : > { %12336 = vst [vmem:[#allocation59_spill] sm:$0xff] %v7948_v57  ;;  %v7950_v58 = vpop.f32.mrb[59].mxu1  ;;  %v2091_v3 = vsel %vm1688_vm3, %v7948_v57, -inf }
 0x37d   : > { %12337 = vst [vmem:[#allocation60_spill] sm:$0xff] %v7950_v58  ;;  %v2088_v42 = vsel %vm1688_vm3, %v7950_v58, -inf }
 0x37e   : > { %2092 = vmax.xlane.f32.xlu1 %v2091_v3  ;;  %2089 = vmax.xlane.f32.xlu0 %v2088_v42 }
 0x37f   : > { %v7956_v15 = vpop.f32.mrb[60].mxu1 }
 0x380   : > { %12338 = vst [vmem:[#allocation61_spill] sm:$0xff] %v7956_v15  ;;  %v7958_v45 = vpop.f32.mrb[61].mxu1  ;;  %v2097_v54 = vsel %vm1688_vm3, %v7956_v15, -inf }
 0x381   : > { %12339 = vst [vmem:[#allocation62_spill] sm:$0xff] %v7958_v45  ;;  %v2094_v25 = vsel %vm1688_vm3, %v7958_v45, -inf }
 0x382   : > { %2098 = vmax.xlane.f32.xlu1 %v2097_v54  ;;  %2095 = vmax.xlane.f32.xlu0 %v2094_v25 }
 0x383   : > { %v7964_v29 = vpop.f32.mrb[62].mxu1 }
 0x384   : > { %12340 = vst [vmem:[#allocation63_spill] sm:$0xff] %v7964_v29  ;;  %v7966_v35 = vpop.f32.mrb[63].mxu1  ;;  %v2103_v3 = vsel %vm1688_vm3, %v7964_v29, -inf  ;;  %v7202_v29 = vmov 2  }
 0x385   : > { %12341 = vst [vmem:[#allocation64_spill] sm:$0xff] %v7966_v35  ;;  %v2100_v42 = vsel %vm1688_vm3, %v7966_v35, -inf  ;;  %6909 = vset.pattern.permute.xlu0 %v7202_v29  ;;  %6908 = vset.pattern.permute.xlu1 %v7202_v29 }
 0x386   : > { %2104 = vmax.xlane.f32.xlu1 %v2103_v3  ;;  %2101 = vmax.xlane.f32.xlu0 %v2100_v42 }
 0x3d6   : > { %v2015_v18 = vpop.xlane.xlu0 %2014 }
 0x3d7   : > { %v2012_v31 = vpop.xlane.xlu1 %2011 }
 0x3db   : > { %v2021_v27 = vpop.xlane.xlu1 %2020  ;;  %v2018_v30 = vpop.xlane.xlu0 %2017 }
 0x3df   : > { %v2027_v32 = vpop.xlane.xlu1 %2026  ;;  %v2024_v34 = vpop.xlane.xlu0 %2023 }
 0x3e0   : > { %v2107_v55 = vmax.f32 %v2015_v18, %v2027_v32  ;;  %v2106_v15 = vmax.f32 %v2012_v31, %v2024_v34 }
 0x3e3   : > { %v2033_v54 = vpop.xlane.xlu1 %2032  ;;  %v2030_v25 = vpop.xlane.xlu0 %2029 }
 0x3e4   : > { %v2109_v45 = vmax.f32 %v2021_v27, %v2033_v54  ;;  %v2108_v43 = vmax.f32 %v2018_v30, %v2030_v25 }
 0x3e7   : > { %v2039_v51 = vpop.xlane.xlu1 %2038  ;;  %v2036_v10 = vpop.xlane.xlu0 %2035 }
 0x3e8   : > { %v2111_v46 = vmax.f32 %v2107_v55, %v2039_v51  ;;  %v2110_v57 = vmax.f32 %v2106_v15, %v2036_v10 }
 0x3eb   : > { %v2045_v50 = vpop.xlane.xlu1 %2044  ;;  %v2042_v52 = vpop.xlane.xlu0 %2041 }
 0x3ec   : > { %v2113_v36 = vmax.f32 %v2109_v45, %v2045_v50  ;;  %v2112_v37 = vmax.f32 %v2108_v43, %v2042_v52 }
 0x3ef   : > { %v2051_v5 = vpop.xlane.xlu1 %2050  ;;  %v2048_v9 = vpop.xlane.xlu0 %2047 }
 0x3f0   : > { %v2115_v58 = vmax.f32 %v2111_v46, %v2051_v5  ;;  %v2114_v38 = vmax.f32 %v2110_v57, %v2048_v9 }
 0x3f3   : > { %v2057_v0 = vpop.xlane.xlu1 %2056  ;;  %v2054_v4 = vpop.xlane.xlu0 %2053 }
 0x3f4   : > { %v2117_v62 = vmax.f32 %v2113_v36, %v2057_v0  ;;  %v2116_v29 = vmax.f32 %v2112_v37, %v2054_v4 }
 0x3f7   : > { %v2063_v60 = vpop.xlane.xlu1 %2062  ;;  %v2060_v63 = vpop.xlane.xlu0 %2059 }
 0x3f8   : > { %v2119_v1 = vmax.f32 %v2115_v58, %v2063_v60  ;;  %v2118_v2 = vmax.f32 %v2114_v38, %v2060_v63 }
 0x3fb   : > { %v2069_v3 = vpop.xlane.xlu1 %2068  ;;  %v2066_v42 = vpop.xlane.xlu0 %2065 }
 0x3fc   : > { %v2121_v6 = vmax.f32 %v2117_v62, %v2069_v3  ;;  %v2120_v8 = vmax.f32 %v2116_v29, %v2066_v42  ;;  %v12342_v42 = vld [vmem:[#allocation54_spill] sm:$0xff] }
 0x3ff   : > { %v2075_v56 = vpop.xlane.xlu1 %2074  ;;  %v2072_v59 = vpop.xlane.xlu0 %2071 }
 0x400   : > { %v2123_v32 = vmax.f32 %v2119_v1, %v2075_v56  ;;  %v2122_v34 = vmax.f32 %v2118_v2, %v2072_v59 }
 0x403   : > { %v2081_v35 = vpop.xlane.xlu1 %2080  ;;  %v2078_v49 = vpop.xlane.xlu0 %2077 }
 0x404   : > { %v2125_v27 = vmax.f32 %v2121_v6, %v2081_v35  ;;  %v2124_v30 = vmax.f32 %v2120_v8, %v2078_v49 }
 0x407   : > { %v2087_v47 = vpop.xlane.xlu1 %2086  ;;  %v2084_v48 = vpop.xlane.xlu0 %2083 }
 0x408   : > { %v2127_v55 = vmax.f32 %v2123_v32, %v2087_v47  ;;  %v2126_v51 = vmax.f32 %v2122_v34, %v2084_v48  ;;  %v12344_v34 = vld [vmem:[#allocation56_spill] sm:$0xff] }
 0x40b   : > { %v2093_v39 = vpop.xlane.xlu1 %2092  ;;  %v2090_v61 = vpop.xlane.xlu0 %2089 }
 0x40c   : > { %v2129_v45 = vmax.f32 %v2125_v27, %v2093_v39  ;;  %v2128_v43 = vmax.f32 %v2124_v30, %v2090_v61  ;;  %v12346_v30 = vld [vmem:[#allocation58_spill] sm:$0xff] }
 0x40f   : > { %v2099_v18 = vpop.xlane.xlu1 %2098  ;;  %v2096_v31 = vpop.xlane.xlu0 %2095 }
 0x410   : > { %v2131_v46 = vmax.f32 %v2127_v55, %v2099_v18  ;;  %v2130_v57 = vmax.f32 %v2126_v51, %v2096_v31 }
 0x412   : > { %v2134_v58 = vmax.f32 %v2130_v57, %v2131_v46  ;;  %v12348_v57 = vld [vmem:[#allocation24_spill] sm:$0xff] }
 0x413   : > { %v2105_v5 = vpop.xlane.xlu1 %2104  ;;  %v2102_v9 = vpop.xlane.xlu0 %2101 }
 0x414   : > { %v2133_v36 = vmax.f32 %v2129_v45, %v2105_v5  ;;  %v2132_v37 = vmax.f32 %v2128_v43, %v2102_v9  ;;  %v12347_v45 = vld [vmem:[#allocation57_spill] sm:$0xff] }
 0x416   : > { %v2135_v38 = vmax.f32 %v2132_v37, %v2133_v36 }
 0x418   : > { %v2136_v62 = vmax.f32 %v2134_v58, %v2135_v38  ;;  %v12349_v58 = vld [vmem:[#allocation23_spill] sm:$0xff] }
 0x41a   : > { %v2137_v60 = vrot.slane %v2136_v62, 4 }
 0x41c   : > { %v2138_v1 = vmax.f32 %v2136_v62, %v2137_v60  ;;  %v12350_v60 = vld [vmem:[#allocation60_spill] sm:$0xff] }
 0x41e   : > { %v2139_v2 = vrot.slane %v2138_v1, 2 }
 0x420   : > { %v2140_v56 = vmax.f32 %v2138_v1, %v2139_v2 }
 0x422   : > { %v2141_v59 = vrot.slane %v2140_v56, 1 }
 0x424   : > { %v7972_v6 = vmax.f32 %v2140_v56, %v2141_v59  ;;  %v12351_v56 = vld [vmem:[#allocation22_spill] sm:$0xff] }
 0x426   : > { %v2143_v8 = vsub.f32 %v7846_v7, %v7972_v6  ;;  %v2145_v61 = vsub.f32 %v7854_v41, %v7972_v6  ;;  %v2146_v39 = vsub.f32 %v7852_v24, %v7972_v6  ;;  %v2144_v47 = vsub.f32 %v7844_v14, %v7972_v6 }
 0x427   : > { %v2147_v48 = vsub.f32 %v7862_v21, %v7972_v6  ;;  %v2148_v49 = vsub.f32 %v7860_v13, %v7972_v6  ;;  %v2149_v63 = vsub.f32 %v7870_v44, %v7972_v6  ;;  %v2150_v52 = vsub.f32 %v7868_v33, %v7972_v6 }
 0x428   : > { %v2179_v0 = vmul.f32 1.442695, %v2145_v61  ;;  %v2181_v4 = vmul.f32 1.442695, %v2146_v39  ;;  %v2175_v50 = vmul.f32 1.442695, %v2143_v8  ;;  %v2151_v35 = vsub.f32 %v7878_v40, %v7972_v6 }
 0x429   : > { %v2177_v10 = vmul.f32 1.442695, %v2144_v47  ;;  %v2183_v15 = vmul.f32 1.442695, %v2147_v48  ;;  %v2152_v14 = vsub.f32 %v7876_v28, %v7972_v6  ;;  %v2185_v7 = vmul.f32 1.442695, %v2148_v49 }
 0x42a   : > { %6910 = vpow2.f32 %v2179_v0  ;;  %v2153_v24 = vsub.f32 %v7886_v23, %v7972_v6  ;;  %v2187_v41 = vmul.f32 1.442695, %v2149_v63  ;;  %v2154_v13 = vsub.f32 %v7884_v19, %v7972_v6  ;;  %v12352_v47 = vld [vmem:[#allocation21_spill] sm:$0xff]  ;;  %v12353_v63 = vld [vmem:[#allocation59_spill] sm:$0xff] }
 0x42b   : > { %6912 = vpow2.f32 %v2181_v4  ;;  %v2189_v21 = vmul.f32 1.442695, %v2150_v52  ;;  %v2155_v33 = vsub.f32 %v7894_v26, %v7972_v6  ;;  %v2191_v44 = vmul.f32 1.442695, %v2151_v35 }
 0x42c   : > { %6914 = vpow2.f32 %v2175_v50  ;;  %v2156_v28 = vsub.f32 %v7892_v53, %v7972_v6  ;;  %v2157_v40 = vsub.f32 %v7902_v22, %v7972_v6  ;;  %v2193_v54 = vmul.f32 1.442695, %v2152_v14  ;;  %v12354_v50 = vld [vmem:[#allocation26_spill] sm:$0xff]  ;;  %v12355_v14 = vld [vmem:[#allocation25_spill] sm:$0xff] }
 0x42d   : > { %6916 = vpow2.f32 %v2177_v10  ;;  %v2158_v23 = vsub.f32 %v7900_v20, %v7972_v6  ;;  %v2159_v19 = vsub.f32 %v7910_v17, %v7972_v6  ;;  %v2195_v25 = vmul.f32 1.442695, %v2153_v24  ;;  %v12343_v17 = vld [vmem:[#allocation53_spill] sm:$0xff] }
 0x42e   : > { %6918 = vpow2.f32 %v2183_v15  ;;  %v2160_v26 = vsub.f32 %v7908_v16, %v7972_v6  ;;  %v2161_v3 = vsub.f32 %v7918_v12, %v7972_v6  ;;  %v2197_v53 = vmul.f32 1.442695, %v2154_v13  ;;  %v12345_v12 = vld [vmem:[#allocation55_spill] sm:$0xff] }
 0x42f   : > { %6920 = vpow2.f32 %v2185_v7  ;;  %v2162_v22 = vsub.f32 %v7916_v11, %v7972_v6  ;;  %v2163_v29 = vsub.f32 %v12342_v42, %v7972_v6  ;;  %v2199_v20 = vmul.f32 1.442695, %v2155_v33  ;;  %v12357_v33 = vld [vmem:[#allocation28_spill] sm:$0xff] }
 0x430   : > { %6922 = vpow2.f32 %v2187_v41  ;;  %v2164_v32 = vsub.f32 %v12343_v17, %v7972_v6  ;;  %v2165_v18 = vsub.f32 %v12344_v34, %v7972_v6  ;;  %v2201_v16 = vmul.f32 1.442695, %v2156_v28  ;;  %v12356_v41 = vld [vmem:[#allocation62_spill] sm:$0xff] }
 0x431   : > { %6924 = vpow2.f32 %v2189_v21  ;;  %v2166_v27 = vsub.f32 %v12345_v12, %v7972_v6  ;;  %v2167_v11 = vsub.f32 %v12346_v30, %v7972_v6  ;;  %v2203_v55 = vmul.f32 1.442695, %v2157_v40 }
 0x432   : > { %6926 = vpow2.f32 %v2191_v44  ;;  %v2168_v43 = vsub.f32 %v12347_v45, %v7972_v6  ;;  %v2205_v46 = vmul.f32 1.442695, %v2158_v23  ;;  %v2207_v37 = vmul.f32 1.442695, %v2159_v19  ;;  %v12358_v23 = vld [vmem:[#allocation27_spill] sm:$0xff] }
 0x433   : > { %6928 = vpow2.f32 %v2193_v54  ;;  %v2169_v1 = vsub.f32 %v12350_v60, %v7972_v6  ;;  %v2209_v2 = vmul.f32 1.442695, %v2160_v26  ;;  %v2211_v61 = vmul.f32 1.442695, %v2161_v3  ;;  %v12359_v26 = vld [vmem:[#allocation61_spill] sm:$0xff]  ;;  %v12364_v45 = vld [vmem:[#allocation31_spill] sm:$0xff] }
 0x434   : > { %v6911_v31 = vpop.eup %6910  ;;  %6930 = vpow2.f32 %v2195_v25  ;;  %v2170_v0 = vsub.f32 %v12353_v63, %v7972_v6  ;;  %v2213_v4 = vmul.f32 1.442695, %v2162_v22  ;;  %v2215_v35 = vmul.f32 1.442695, %v2163_v29  ;;  %v12360_v22 = vld [vmem:[#allocation30_spill] sm:$0xff] }
 0x435   : > { %v6913_v51 = vpop.eup %6912  ;;  %6932 = vpow2.f32 %v2197_v53  ;;  %v8027_v5 = vmul.f32 %v6911_v31, %v12348_v57  ;;  %v2171_v13 = vsub.f32 %v12356_v41, %v7972_v6  ;;  %v2217_v21 = vmul.f32 1.442695, %v2164_v32  ;;  %v12361_v32 = vld [vmem:[#allocation29_spill] sm:$0xff] }
 0x436   : > { %v6915_v9 = vpop.eup %6914  ;;  %v6833_v36 = vpack.i.bf16 %v6913_v51, %v6911_v31  ;;  %6934 = vpow2.f32 %v2199_v20  ;;  %v8030_v38 = vmul.f32 %v6913_v51, %v12349_v58  ;;  %v2219_v40 = vmul.f32 1.442695, %v2165_v18  ;;  %v12371_v41 = vld [vmem:[#allocation37_spill] sm:$0xff] }
 0x437   : > { %v6917_v62 = vpop.eup %6916  ;;  %6936 = vpow2.f32 %v2201_v16  ;;  %v8035_v59 = vmul.f32 %v6915_v9, %v12351_v56  ;;  %v2172_v3 = vsub.f32 %v12359_v26, %v7972_v6  ;;  %v2221_v53 = vmul.f32 1.442695, %v2166_v27  ;;  %v12362_v16 = vld [vmem:[#allocation64_spill] sm:$0xff] }
 0x438   : > { %v6919_v8 = vpop.eup %6918  ;;  %6834 = vrot.lane.b32.xlu1 %v6833_v36, %s7203_s14  ;;  %v6828_v39 = vpack.i.bf16 %v6917_v62, %v6915_v9  ;;  %6938 = vpow2.f32 %v2203_v55  ;;  %v8039_v48 = vmul.f32 %v6917_v62, %v12352_v47  ;;  %v2223_v20 = vmul.f32 1.442695, %v2167_v11  ;;  %v12363_v27 = vld [vmem:[#allocation32_spill] sm:$0xff]  ;;  %v12365_v9 = vld [vmem:[#allocation63_spill] sm:$0xff] }
 0x439   : > { %v6921_v49 = vpop.eup %6920  ;;  %6940 = vpow2.f32 %v2205_v46  ;;  %v8044_v52 = vmul.f32 %v6919_v8, %v12354_v50  ;;  %v2173_v31 = vsub.f32 %v12362_v16, %v7972_v6  ;;  %v2225_v12 = vmul.f32 1.442695, %v2168_v43  ;;  %v12366_v43 = vld [vmem:[#allocation34_spill] sm:$0xff] }
 0x43a   : > { %v6923_v10 = vpop.eup %6922  ;;  %6829 = vrot.lane.b32.xlu0 %v6828_v39, %s7203_s14  ;;  %6942 = vpow2.f32 %v2207_v37  ;;  %v6838_v15 = vpack.i.bf16 %v6921_v49, %v6919_v8  ;;  %v8048_v7 = vmul.f32 %v6921_v49, %v12355_v14  ;;  %v2227_v51 = vmul.f32 1.442695, %v2169_v1  ;;  %v12368_v39 = vld [vmem:[#allocation36_spill] sm:$0xff] }
 0x43b   : > { %v6925_v24 = vpop.eup %6924  ;;  %6944 = vpow2.f32 %v2209_v2  ;;  %v8053_v44 = vmul.f32 %v6923_v10, %v12357_v33  ;;  %v2174_v36 = vsub.f32 %v12365_v9, %v7972_v6  ;;  %v2229_v37 = vmul.f32 1.442695, %v2170_v0  ;;  %v12367_v2 = vld [vmem:[#allocation33_spill] sm:$0xff]  ;;  %v12369_v0 = vld [vmem:[#allocation35_spill] sm:$0xff]  ;;  %v12372_v33 = vld [vmem:[#allocation40_spill] sm:$0xff] }
 0x43c   : > { %v6927_v28 = vpop.eup %6926  ;;  %6946 = vpow2.f32 %v2211_v61  ;;  %6839 = vrot.lane.b32.xlu1 %v6838_v15, %s7203_s14  ;;  %v6843_v54 = vpack.i.bf16 %v6925_v24, %v6923_v10  ;;  %v8057_v19 = vmul.f32 %v6925_v24, %v12358_v23  ;;  %v2231_v60 = vmul.f32 1.442695, %v2171_v13  ;;  %v12373_v23 = vld [vmem:[#allocation39_spill] sm:$0xff] }
 0x43d   : > { %v6929_v25 = vpop.eup %6928  ;;  %6948 = vpow2.f32 %v2213_v4  ;;  %v8062_v42 = vmul.f32 %v6927_v28, %v12360_v22  ;;  %v2233_v61 = vmul.f32 1.442695, %v2172_v3  ;;  %v2235_v49 = vmul.f32 1.442695, %v2173_v31  ;;  %v12374_v3 = vld [vmem:[#allocation42_spill] sm:$0xff] }
 0x43e   : > { %v6931_v29 = vpop.eup %6930  ;;  %6950 = vpow2.f32 %v2215_v35  ;;  %6844 = vrot.lane.b32.xlu0 %v6843_v54, %s7203_s14  ;;  %v6848_v17 = vpack.i.bf16 %v6929_v25, %v6927_v28  ;;  %v8066_v34 = vmul.f32 %v6929_v25, %v12361_v32  ;;  %v2237_v10 = vmul.f32 1.442695, %v2174_v36  ;;  %v12370_v35 = vld [vmem:[#allocation38_spill] sm:$0xff]  ;;  %v12379_v36 = vld [vmem:[#allocation45_spill] sm:$0xff] }
 0x43f   : > { %v6933_v18 = vpop.eup %6932  ;;  %6952 = vpow2.f32 %v2217_v21  ;;  %v8071_v30 = vmul.f32 %v6931_v29, %v12363_v27  ;;  %v12377_v27 = vld [vmem:[#allocation43_spill] sm:$0xff] }
 0x440   : > { %v6935_v55 = vpop.eup %6934  ;;  %6954 = vpow2.f32 %v2219_v40  ;;  %6849 = vrot.lane.b32.xlu1 %v6848_v17, %s7203_s14  ;;  %v6853_v11 = vpack.i.bf16 %v6933_v18, %v6931_v29  ;;  %v8075_v46 = vmul.f32 %v6933_v18, %v12364_v45  ;;  %v12376_v18 = vld [vmem:[#allocation44_spill] sm:$0xff] }
 0x441   : > { %v6937_v57 = vpop.eup %6936  ;;  %6956 = vpow2.f32 %v2221_v53  ;;  %v8080_v58 = vmul.f32 %v6935_v55, %v12366_v43 }
 0x442   : > { %v6939_v62 = vpop.eup %6938  ;;  %6958 = vpow2.f32 %v2223_v20  ;;  %6854 = vrot.lane.b32.xlu0 %v6853_v11, %s7203_s14  ;;  %v6858_v1 = vpack.i.bf16 %v6937_v57, %v6935_v55  ;;  %v8084_v56 = vmul.f32 %v6937_v57, %v12367_v2  ;;  %v12375_v20 = vld [vmem:[#allocation41_spill] sm:$0xff]  ;;  %v12378_v11 = vld [vmem:[#allocation46_spill] sm:$0xff] }
 0x443   : > { %v6941_v8 = vpop.eup %6940  ;;  %6960 = vpow2.f32 %v2225_v12  ;;  %v8087_v47 = vmul.f32 %v6939_v62, %v12368_v39 }
 0x444   : > { %v6943_v6 = vpop.eup %6942  ;;  %6962 = vpow2.f32 %v2227_v51  ;;  %6859 = vrot.lane.b32.xlu1 %v6858_v1, %s7203_s14  ;;  %v6863_v63 = vpack.i.bf16 %v6941_v8, %v6939_v62  ;;  %v8091_v4 = vmul.f32 %v6941_v8, %v12369_v0  ;;  %v12380_v62 = vld [vmem:[#allocation48_spill] sm:$0xff]  ;;  %v12381_v8 = vld [vmem:[#allocation47_spill] sm:$0xff] }
 0x445   : > { %v6945_v50 = vpop.eup %6944  ;;  %6964 = vpow2.f32 %v2229_v37  ;;  %v8094_v15 = vmul.f32 %v6943_v6, %v12370_v35 }
 0x446   : > { %v6947_v14 = vpop.eup %6946  ;;  %6966 = vpow2.f32 %v2231_v60  ;;  %6864 = vrot.lane.b32.xlu0 %v6863_v63, %s7203_s14  ;;  %v6868_v24 = vpack.i.bf16 %v6945_v50, %v6943_v6  ;;  %v8098_v13 = vmul.f32 %v6945_v50, %v12371_v41  ;;  %v12382_v6 = vld [vmem:[#allocation50_spill] sm:$0xff]  ;;  %v12383_v50 = vld [vmem:[#allocation49_spill] sm:$0xff] }
 0x447   : > { %v6949_v21 = vpop.eup %6948  ;;  %6968 = vpow2.f32 %v2233_v61  ;;  %v8101_v28 = vmul.f32 %v6947_v14, %v12372_v33 }
 0x448   : > { %v6951_v40 = vpop.eup %6950  ;;  %6970 = vpow2.f32 %v2235_v49  ;;  %6869 = vrot.lane.b32.xlu1 %v6868_v24, %s7203_s14  ;;  %v6873_v54 = vpack.i.bf16 %v6949_v21, %v6947_v14  ;;  %v8105_v25 = vmul.f32 %v6949_v21, %v12373_v23  ;;  %v12384_v14 = vld [vmem:[#allocation52_spill] sm:$0xff]  ;;  %v12385_v21 = vld [vmem:[#allocation51_spill] sm:$0xff] }
 0x449   : > { %v6953_v26 = vpop.eup %6952  ;;  %6972 = vpow2.f32 %v2237_v10  ;;  %v8108_v53 = vmul.f32 %v6951_v40, %v12374_v3  ;;  %v12388_v23 = vld [vmem:[#allocation8_spill] sm:$0xff]  ;;  %v12390_v3 = vld [vmem:[#allocation10_spill] sm:$0xff] }
 0x44a   : > { %v6955_v22 = vpop.eup %6954  ;;  %6874 = vrot.lane.b32.xlu0 %v6873_v54, %s7203_s14  ;;  %v6878_v29 = vpack.i.bf16 %v6953_v26, %v6951_v40  ;;  %v8112_v17 = vmul.f32 %v6953_v26, %v12375_v20  ;;  %v12386_v40 = vld [vmem:[#allocation6_spill] sm:$0xff]  ;;  %v12387_v54 = vld [vmem:[#allocation5_spill] sm:$0xff]  ;;  %v12389_v26 = vld [vmem:[#allocation7_spill] sm:$0xff] }
 0x44b   : > { %v6957_v32 = vpop.eup %6956  ;;  %v8115_v16 = vmul.f32 %v6955_v22, %v12376_v18  ;;  %v12393_v20 = vld [vmem:[#allocation9_spill] sm:$0xff]  ;;  %v12394_v18 = vld [vmem:[#allocation12_spill] sm:$0xff] }
 0x44c   : > { %v6959_v31 = vpop.eup %6958  ;;  %6879 = vrot.lane.b32.xlu1 %v6878_v29, %s7203_s14  ;;  %v6883_v12 = vpack.i.bf16 %v6957_v32, %v6955_v22  ;;  %v8119_v55 = vmul.f32 %v6957_v32, %v12377_v27  ;;  %v12391_v22 = vlaneseq }
 0x44d   : > { %v6961_v51 = vpop.eup %6960  ;;  %v8122_v45 = vmul.f32 %v6959_v31, %v12378_v11  ;;  %v12399_v11 = vld [vmem:[#allocation13_spill] sm:$0xff] }
 0x44e   : > { %v6963_v57 = vpop.eup %6962  ;;  %6884 = vrot.lane.b32.xlu0 %v6883_v12, %s7203_s14  ;;  %v6888_v9 = vpack.i.bf16 %v6961_v51, %v6959_v31  ;;  %v8126_v37 = vmul.f32 %v6961_v51, %v12379_v36  ;;  %v8162_v29 = vshrl.u32 %v12391_v22, 7  ;;  %v12395_v31 = vld [vmem:[#allocation11_spill] sm:$0xff]  ;;  %v8178_v12 = vld [vmem:[%s8173_s6] ss:$8 sm:$0x3] }
 0x44f   : > { %v6965_v43 = vpop.eup %6964  ;;  %v8129_v60 = vmul.f32 %v6963_v57, %v12380_v62  ;;  %12396 = vst [vmem:[#allocation53_spill] sm:$0xff] %v8178_v12  ;;  %v12398_v51 = vld [vmem:[#allocation14_spill] sm:$0xff]  ;;  %v12402_v36 = vld [vmem:[#allocation15_spill] sm:$0xff]  ;;  %v12404_v62 = vld [vmem:[#allocation17_spill] sm:$0xff] }
 0x450   : > { %v6967_v1 = vpop.eup %6966  ;;  %6889 = vrot.lane.b32.xlu1 %v6888_v9, %s7203_s14  ;;  %v6893_v2 = vpack.i.bf16 %v6965_v43, %v6963_v57  ;;  %v8133_v61 = vmul.f32 %v6965_v43, %v12381_v8  ;;  %12392 = vst [vmem:[#allocation54_spill] sm:$0xff] %v8162_v29  ;;  %v741_v32 = vsub.s32 1, %v8162_v29  ;;  %v12400_v57 = vmov 1.0   ;;  %v12401_v9 = vld [vmem:[#allocation16_spill] sm:$0xff]  ;;  %v12403_v43 = vld [vmem:[#allocation18_spill] sm:$0xff]  ;;  %v8241_v22 = vld [vmem:[%s7314_s23 + $0x20] sm:$0xff] }
 0x451   : > { %v6969_v39 = vpop.eup %6968  ;;  %v8136_v49 = vmul.f32 %v6967_v1, %v12382_v6  ;;  %v6042_v8 = vld [vmem:[%s11981_s3 + $0x30] ss:$0 sm:$0xff]  ;;  %v8210_v6 = vld [vmem:[%s7314_s23] sm:$0xff]  ;;  %vm3239_vm12 = vcmp.eq.s32.totalorder %v8241_v22, 0  ;;  %vm3388_vm1 = vcmp.eq.s32.totalorder %v8241_v22, 1 }
 0x452   : > { %v6971_v63 = vpop.eup %6970  ;;  %6894 = vrot.lane.b32.xlu0 %v6893_v2, %s7203_s14  ;;  %v6898_v0 = vpack.i.bf16 %v6969_v39, %v6967_v1  ;;  %v8140_v10 = vmul.f32 %v6969_v39, %v12383_v50  ;;  %v8181_v27 = vrot.slane %v8178_v12, %v741_v32  ;;  %v12405_v1 = vld [vmem:[#allocation20_spill] sm:$0xff]  ;;  %v8201_v2 = vld [vmem:[%s7314_s23 + $0x8] sm:$0xff]  ;;  %v12406_v39 = vld [vmem:[#allocation19_spill] sm:$0xff]  ;;  %vm3235_vm6 = vcmp.eq.s32.totalorder %v8210_v6, 0 }
 0x453   : > { %v6973_v35 = vpop.eup %6972  ;;  %v8143_v24 = vmul.f32 %v6971_v63, %v12384_v14  ;;  %vm3236_vm5 = vcmp.eq.s32.totalorder %v8201_v2, 0  ;;  %v8216_v50 = vld [vmem:[%s7314_s23 + $0x50] sm:$0xff]  ;;  %vm3384_vm13 = vcmp.eq.s32.totalorder %v8210_v6, 1 }
 0x454   : > { %6899 = vrot.lane.b32.xlu1 %v6898_v0, %s7203_s14  ;;  %v6903_v41 = vpack.i.bf16 %v6973_v35, %v6971_v63  ;;  %v8147_v33 = vmul.f32 %v6973_v35, %v12385_v21  ;;  %12397 = vst [vmem:[#allocation56_spill] sm:$0xff] %v8181_v27  ;;  %vm744_vm4 = vcmp.eq.s32.totalorder %v8162_v29, %v8181_v27  ;;  %v12407_v63 = vmov 0   ;;  %v8221_v14 = vld [vmem:[%s7314_s23 + $0x10] sm:$0xff]  ;;  %v8226_v21 = vld [vmem:[%s7314_s23 + $0x60] sm:$0xff] }
 0x455   : > { %6010 = vmatprep.mubr.msk.f32.mxu0 %vm744_vm4, %v12400_v57  ;;  %v3252_v0 = vsel %vm3236_vm5, 1, %v12407_v63  ;;  %vm3245_vm7 = vcmp.eq.s32.totalorder %v8216_v50, 0  ;;  %v3251_v35 = vsel %vm3235_vm6, 1, %v12407_v63  ;;  %vm3237_vm8 = vcmp.eq.s32.totalorder %v8221_v14, 0 }
 0x456   : > { %6904 = vrot.lane.b32.xlu0 %v6903_v41, %s7203_s14  ;;  %v3261_v41 = vsel %vm3245_vm7, 1, %v12407_v63  ;;  %vm3247_vm9 = vcmp.eq.s32.totalorder %v8226_v21, 0  ;;  %v3255_v32 = vsel %vm3239_vm12, 1, %v12407_v63  ;;  %vm3386_vm15 = vcmp.eq.s32.totalorder %v8221_v14, 1 }
 0x458   : > { %2704 = vrot.lane.b32.xlu1 %v12386_v40, %s7204_s15  ;;  %v3253_v40 = vsel %vm3237_vm8, 1, %v12407_v63  ;;  %vm3394_vm8 = vcmp.eq.s32.totalorder %v8216_v50, 1 }
 0x45a   : > { %2706 = vrot.lane.b32.xlu0 %v12387_v54, %s7204_s15  ;;  %v8231_v54 = vld [vmem:[%s7314_s23 + $0x18] sm:$0xff] }
 0x45b   : > { %vm3238_vm10 = vcmp.eq.s32.totalorder %v8231_v54, 0 }
 0x45c   : > { %2708 = vrot.lane.b32.xlu1 %v12388_v23, %s7204_s15  ;;  %v3263_v23 = vsel %vm3247_vm9, 1, %v12407_v63 }
 0x45e   : > { %2710 = vrot.lane.b32.xlu0 %v12389_v26, %s7204_s15  ;;  %v8236_v26 = vld [vmem:[%s7314_s23 + $0x70] sm:$0xff] }
 0x45f   : > { %vm3249_vm11 = vcmp.eq.s32.totalorder %v8236_v26, 0  ;;  %vm3398_vm12 = vcmp.eq.s32.totalorder %v8236_v26, 1 }
 0x460   : > { %2712 = vrot.lane.b32.xlu1 %v12390_v3, %s7204_s15  ;;  %v3254_v3 = vsel %vm3238_vm10, 1, %v12407_v63  ;;  %vm3396_vm10 = vcmp.eq.s32.totalorder %v8226_v21, 1 }
 0x462   : > { %2714 = vrot.lane.b32.xlu0 %v12393_v20, %s7204_s15  ;;  %v3265_v20 = vsel %vm3249_vm11, 1, %v12407_v63 }
 0x464   : > { %2716 = vrot.lane.b32.xlu1 %v12394_v18, %s7204_s15  ;;  %v8248_v18 = vld [vmem:[%s7314_s23 + $0x28] sm:$0xff] }
 0x465   : > { %vm3240_vm14 = vcmp.eq.s32.totalorder %v8248_v18, 0 }
 0x466   : > { %2718 = vrot.lane.b32.xlu0 %v12395_v31, %s7204_s15  ;;  %v3400_v31 = vsel %vm3384_vm13, 1, %v12407_v63 }
 0x468   : > { %2720 = vrot.lane.b32.xlu1 %v12398_v51, %s7204_s15  ;;  %v3256_v51 = vsel %vm3240_vm14, 1, %v12407_v63  ;;  %vm3533_vm14 = vcmp.eq.s32.totalorder %v8210_v6, 2 }
 0x46a   : > { %2722 = vrot.lane.b32.xlu0 %v12399_v11, %s7204_s15  ;;  %v8255_v11 = vld [vmem:[%s7314_s23 + $0x30] sm:$0xff] }
 0x46b   : > { %vm3241_vm0 = vcmp.eq.s32.totalorder %v8255_v11, 0  ;;  %vm3390_vm4 = vcmp.eq.s32.totalorder %v8255_v11, 1 }
 0x46c   : > { %2724 = vrot.lane.b32.xlu1 %v12401_v9, %s7204_s15  ;;  %v3402_v9 = vsel %vm3386_vm15, 1, %v12407_v63  ;;  %vm3385_vm15 = vcmp.eq.s32.totalorder %v8201_v2, 1 }
 0x46e   : > { %2726 = vrot.lane.b32.xlu0 %v12402_v36, %s7204_s15  ;;  %v3257_v36 = vsel %vm3241_vm0, 1, %v12407_v63  ;;  %vm3535_vm0 = vcmp.eq.s32.totalorder %v8221_v14, 2 }
 0x470   : > { %2728 = vrot.lane.b32.xlu1 %v12403_v43, %s7204_s15  ;;  %v8262_v43 = vld [vmem:[%s7314_s23 + $0x38] sm:$0xff] }
 0x471   : > { %vm3242_vm2 = vcmp.eq.s32.totalorder %v8262_v43, 0 }
 0x472   : > { %2730 = vrot.lane.b32.xlu0 %v12404_v62, %s7204_s15  ;;  %v3404_v62 = vsel %vm3388_vm1, 1, %v12407_v63  ;;  %vm3387_vm1 = vcmp.eq.s32.totalorder %v8231_v54, 1 }
 0x474   : > { %2732 = vrot.lane.b32.xlu1 %v12405_v1, %s7204_s15  ;;  %v3258_v1 = vsel %vm3242_vm2, 1, %v12407_v63  ;;  %vm3537_vm2 = vcmp.eq.s32.totalorder %v8241_v22, 2 }
 0x475   : > { %v3553_v57 = vsel %vm3537_vm2, 1, %v12407_v63  ;;  %vm3536_vm2 = vcmp.eq.s32.totalorder %v8231_v54, 2 }
 0x476   : > { %2734 = vrot.lane.b32.xlu0 %v12406_v39, %s7204_s15  ;;  %v3406_v39 = vsel %vm3390_vm4, 1, %v12407_v63  ;;  %vm3389_vm4 = vcmp.eq.s32.totalorder %v8248_v18, 1 }
 0x478   : > { %2981 = vrot.lane.b32.xlu1 %v6042_v8, %s7201_s25  ;;  %v8269_v8 = vld [vmem:[%s7314_s23 + $0x40] sm:$0xff] }
 0x479   : > { %vm3243_vm5 = vcmp.eq.s32.totalorder %v8269_v8, 0  ;;  %vm3392_vm6 = vcmp.eq.s32.totalorder %v8269_v8, 1 }
 0x47a   : > { %3271 = vperm.xlu0 %6909, %v3252_v0   ;;  %v3259_v0 = vsel %vm3243_vm5, 1, %v12407_v63  ;;  %vm3539_vm5 = vcmp.eq.s32.totalorder %v8255_v11, 2 }
 0x47c   : > { %3268 = vperm.xlu1 %6908, %v3251_v35   ;;  %v8276_v35 = vld [vmem:[%s7314_s23 + $0x48] sm:$0xff] }
 0x47d   : > { %vm3244_vm7 = vcmp.eq.s32.totalorder %v8276_v35, 0 }
 0x47e   : > { %3298 = vperm.xlu0 %6909, %v3261_v41   ;;  %v3408_v41 = vsel %vm3392_vm6, 1, %v12407_v63  ;;  %vm3391_vm6 = vcmp.eq.s32.totalorder %v8262_v43, 1 }
 0x480   : > { %3274 = vperm.xlu1 %6908, %v3253_v40   ;;  %v3260_v40 = vsel %vm3244_vm7, 1, %v12407_v63  ;;  %vm3541_vm7 = vcmp.eq.s32.totalorder %v8269_v8, 2 }
 0x482   : > { %3304 = vperm.xlu0 %6909, %v3263_v23   ;;  %v8283_v23 = vld [vmem:[%s7314_s23 + $0x58] sm:$0xff] }
 0x483   : > { %12408 = vst [vmem:[#allocation55_spill] sm:$0xff] %v8283_v23  ;;  %vm3246_vm9 = vcmp.eq.s32.totalorder %v8283_v23, 0 }
 0x484   : > { %3277 = vperm.xlu1 %6908, %v3254_v3   ;;  %v3410_v3 = vsel %vm3394_vm8, 1, %v12407_v63  ;;  %vm3393_vm8 = vcmp.eq.s32.totalorder %v8276_v35, 1 }
 0x486   : > { %3310 = vperm.xlu0 %6909, %v3265_v20   ;;  %v3262_v20 = vsel %vm3246_vm9, 1, %v12407_v63  ;;  %vm3543_vm9 = vcmp.eq.s32.totalorder %v8216_v50, 2 }
 0x488   : > { %3280 = vperm.xlu1 %6908, %v3255_v32   ;;  %v8290_v32 = vld [vmem:[%s7314_s23 + $0x68] sm:$0xff] }
 0x489   : > { %vm3248_vm11 = vcmp.eq.s32.totalorder %v8290_v32, 0 }
 0x48a   : > { %3417 = vperm.xlu0 %6909, %v3400_v31   ;;  %v3412_v31 = vsel %vm3396_vm10, 1, %v12407_v63  ;;  %vm3395_vm10 = vcmp.eq.s32.totalorder %v8283_v23, 1 }
 0x48c   : > { %3283 = vperm.xlu1 %6908, %v3256_v51   ;;  %v3264_v51 = vsel %vm3248_vm11, 1, %v12407_v63  ;;  %vm3545_vm11 = vcmp.eq.s32.totalorder %v8226_v21, 2 }
 0x48e   : > { %3423 = vperm.xlu0 %6909, %v3402_v9   ;;  %v8297_v9 = vld [vmem:[%s7314_s23 + $0x78] sm:$0xff] }
 0x48f   : > { %vm3250_vm13 = vcmp.eq.s32.totalorder %v8297_v9, 0 }
 0x490   : > { %3286 = vperm.xlu1 %6908, %v3257_v36   ;;  %v3414_v36 = vsel %vm3398_vm12, 1, %v12407_v63  ;;  %vm3397_vm12 = vcmp.eq.s32.totalorder %v8290_v32, 1 }
 0x492   : > { %3429 = vperm.xlu0 %6909, %v3404_v62   ;;  %v3266_v62 = vsel %vm3250_vm13, 1, %v12407_v63  ;;  %vm3547_vm13 = vcmp.eq.s32.totalorder %v8236_v26, 2 }
 0x494   : > { %3289 = vperm.xlu1 %6908, %v3258_v1   ;;  %v3549_v1 = vsel %vm3533_vm14, 1, %v12407_v63  ;;  %vm3399_vm14 = vcmp.eq.s32.totalorder %v8297_v9, 1 }
 0x496   : > { %3435 = vperm.xlu0 %6909, %v3406_v39   ;;  %v3401_v39 = vsel %vm3385_vm15, 1, %v12407_v63  ;;  %vm3682_vm15 = vcmp.eq.s32.totalorder %v8210_v6, 3 }
 0x498   : > { %3292 = vperm.xlu1 %6908, %v3259_v0  }
 0x49a   : > { %3441 = vperm.xlu0 %6909, %v3408_v41  }
 0x49c   : > { %3295 = vperm.xlu1 %6908, %v3260_v40  }
 0x49e   : > { %3447 = vperm.xlu0 %6909, %v3410_v3   ;;  %v3551_v3 = vsel %vm3535_vm0, 1, %v12407_v63  ;;  %vm3534_vm0 = vcmp.eq.s32.totalorder %v8201_v2, 2 }
 0x4a0   : > { %3301 = vperm.xlu1 %6908, %v3262_v20  }
 0x4a2   : > { %3453 = vperm.xlu0 %6909, %v3412_v31   ;;  %v3403_v31 = vsel %vm3387_vm1, 1, %v12407_v63  ;;  %vm3684_vm1 = vcmp.eq.s32.totalorder %v8221_v14, 3 }
 0x4a4   : > { %3307 = vperm.xlu1 %6908, %v3264_v51  }
 0x4a6   : > { %3459 = vperm.xlu0 %6909, %v3414_v36  }
 0x4a8   : > { %3313 = vperm.xlu1 %6908, %v3266_v62  }
 0x4aa   : > { %3566 = vperm.xlu0 %6909, %v3549_v1   ;;  %v6835_v0 = vpop.permute.xlu1 %6834 }
 0x4ab   : > { %v6837_v41 = vunpack.i.h.bf16 %v6835_v0  ;;  %v6836_v40 = vunpack.i.l.bf16 %v6835_v0 }
 0x4ac   : > { %v6830_v20 = vpop.permute.xlu0 %6829  ;;  %3420 = vperm.xlu1 %6908, %v3401_v39  }
 0x4ad   : > { %v8314_v51 = vsel %vm1688_vm3, %v8030_v38, %v6837_v41  ;;  %v8318_v36 = vsel %vm1688_vm3, %v8027_v5, %v6836_v40  ;;  %v6832_v62 = vunpack.i.h.bf16 %v6830_v20  ;;  %v6831_v1 = vunpack.i.l.bf16 %v6830_v20 }
 0x4ae   : > { %3572 = vperm.xlu0 %6909, %v3551_v3   ;;  %v6840_v0 = vpop.permute.xlu1 %6839  ;;  %v3405_v3 = vsel %vm3389_vm4, 1, %v12407_v63  ;;  %vm3686_vm4 = vcmp.eq.s32.totalorder %v8241_v22, 3 }
 0x4af   : > { %v8326_v27 = vsel %vm1688_vm3, %v8039_v48, %v6832_v62  ;;  %v8330_v38 = vsel %vm1688_vm3, %v8035_v59, %v6831_v1  ;;  %v6842_v5 = vunpack.i.h.bf16 %v6840_v0  ;;  %v6841_v41 = vunpack.i.l.bf16 %v6840_v0 }
 0x4b0   : > { %v6845_v40 = vpop.permute.xlu0 %6844  ;;  %3426 = vperm.xlu1 %6908, %v3403_v31   ;;  %v3555_v0 = vsel %vm3539_vm5, 1, %v12407_v63  ;;  %vm3538_vm5 = vcmp.eq.s32.totalorder %v8248_v18, 2 }
 0x4b1   : > { %v8340_v48 = vsel %vm1688_vm3, %v8048_v7, %v6842_v5  ;;  %v8344_v59 = vsel %vm1688_vm3, %v8044_v52, %v6841_v41  ;;  %v6847_v62 = vunpack.i.h.bf16 %v6845_v40  ;;  %v6846_v1 = vunpack.i.l.bf16 %v6845_v40 }
 0x4b2   : > { %3578 = vperm.xlu0 %6909, %v3553_v57   ;;  %v6850_v31 = vpop.permute.xlu1 %6849  ;;  %v3407_v40 = vsel %vm3391_vm6, 1, %v12407_v63  ;;  %vm3688_vm6 = vcmp.eq.s32.totalorder %v8255_v11, 3 }
 0x4b3   : > { %v8354_v7 = vsel %vm1688_vm3, %v8057_v19, %v6847_v62  ;;  %v8358_v52 = vsel %vm1688_vm3, %v8053_v44, %v6846_v1  ;;  %v6852_v5 = vunpack.i.h.bf16 %v6850_v31  ;;  %v6851_v57 = vunpack.i.l.bf16 %v6850_v31 }
 0x4b4   : > { %v6855_v41 = vpop.permute.xlu0 %6854  ;;  %3432 = vperm.xlu1 %6908, %v3405_v3   ;;  %v3557_v31 = vsel %vm3541_vm7, 1, %v12407_v63  ;;  %vm3540_vm7 = vcmp.eq.s32.totalorder %v8262_v43, 2 }
 0x4b5   : > { %v8368_v19 = vsel %vm1688_vm3, %v8066_v34, %v6852_v5  ;;  %v8372_v44 = vsel %vm1688_vm3, %v8062_v42, %v6851_v57  ;;  %v6857_v62 = vunpack.i.h.bf16 %v6855_v41  ;;  %v6856_v1 = vunpack.i.l.bf16 %v6855_v41 }
 0x4b6   : > { %3584 = vperm.xlu0 %6909, %v3555_v0   ;;  %v6860_v3 = vpop.permute.xlu1 %6859  ;;  %v3409_v41 = vsel %vm3393_vm8, 1, %v12407_v63  ;;  %vm3690_vm8 = vcmp.eq.s32.totalorder %v8269_v8, 3 }
 0x4b7   : > { %v8382_v34 = vsel %vm1688_vm3, %v8075_v46, %v6857_v62  ;;  %v8386_v42 = vsel %vm1688_vm3, %v8071_v30, %v6856_v1  ;;  %v6862_v5 = vunpack.i.h.bf16 %v6860_v3  ;;  %v6861_v0 = vunpack.i.l.bf16 %v6860_v3 }
 0x4b8   : > { %v6865_v57 = vpop.permute.xlu0 %6864  ;;  %3438 = vperm.xlu1 %6908, %v3407_v40   ;;  %v3559_v3 = vsel %vm3543_vm9, 1, %v12407_v63  ;;  %vm3542_vm9 = vcmp.eq.s32.totalorder %v8276_v35, 2 }
 0x4b9   : > { %v8396_v46 = vsel %vm1688_vm3, %v8084_v56, %v6862_v5  ;;  %v8400_v30 = vsel %vm1688_vm3, %v8080_v58, %v6861_v0  ;;  %v6867_v62 = vunpack.i.h.bf16 %v6865_v57  ;;  %v6866_v1 = vunpack.i.l.bf16 %v6865_v57 }
 0x4ba   : > { %3590 = vperm.xlu0 %6909, %v3557_v31   ;;  %v6870_v40 = vpop.permute.xlu1 %6869  ;;  %v3411_v57 = vsel %vm3395_vm10, 1, %v12407_v63  ;;  %vm3692_vm10 = vcmp.eq.s32.totalorder %v8216_v50, 3 }
 0x4bb   : > { %v8410_v56 = vsel %vm1688_vm3, %v8091_v4, %v6867_v62  ;;  %v8414_v58 = vsel %vm1688_vm3, %v8087_v47, %v6866_v1  ;;  %v6872_v5 = vunpack.i.h.bf16 %v6870_v40  ;;  %v6871_v31 = vunpack.i.l.bf16 %v6870_v40 }
 0x4bc   : > { %v6875_v0 = vpop.permute.xlu0 %6874  ;;  %3444 = vperm.xlu1 %6908, %v3409_v41   ;;  %v6701_v39 = vpack.c.bf16 %v8410_v56, %v8414_v58  ;;  %v3561_v40 = vsel %vm3545_vm11, 1, %v12407_v63  ;;  %v722_v56 = vadd.s32 24, %v8162_v29 }
 0x4bd   : > { %v6877_v20 = vunpack.i.h.bf16 %v6875_v0  ;;  %v6876_v4 = vunpack.i.l.bf16 %v6875_v0  ;;  %v2415_v62 = vsel %vm1688_vm3, %v8094_v15, %v6871_v31  ;;  %v2416_v47 = vsel %vm1688_vm3, %v8098_v13, %v6872_v5 }
 0x4be   : > { %3596 = vperm.xlu0 %6909, %v3559_v3   ;;  %v6880_v1 = vpop.permute.xlu1 %6879  ;;  %v6671_v41 = vpack.c.bf16 %v2416_v47, %v2415_v62  ;;  %v3413_v3 = vsel %vm3397_vm12, 1, %v12407_v63  ;;  %v12409_v47 = vpack.c.bf16 %v8326_v27, %v8330_v38  ;;  %vm3694_vm12 = vcmp.eq.s32.totalorder %v8226_v21, 3 }
 0x4bf   : > { %v6882_v23 = vunpack.i.h.bf16 %v6880_v1  ;;  %v6881_v12 = vunpack.i.l.bf16 %v6880_v1  ;;  %v2417_v0 = vsel %vm1688_vm3, %v8101_v28, %v6876_v4  ;;  %v2418_v15 = vsel %vm1688_vm3, %v8105_v25, %v6877_v20 }
 0x4c0   : > { %v6885_v31 = vpop.permute.xlu0 %6884  ;;  %6672 = vmatprep.subr.bf16.mxu0 %v6671_v41  ;;  %3450 = vperm.xlu1 %6908, %v3411_v57   ;;  %v6675_v13 = vpack.c.bf16 %v2418_v15, %v2417_v0  ;;  %v3563_v57 = vsel %vm3547_vm13, 1, %v12407_v63  ;;  %v12410_v0 = vpack.c.bf16 %v8314_v51, %v8318_v36 }
 0x4c1   : > { %v6887_v5 = vunpack.i.h.bf16 %v6885_v31  ;;  %v6886_v62 = vunpack.i.l.bf16 %v6885_v31  ;;  %6674 = vmatpush3.bf16.msra.mxu0 %v12409_v47  ;;  %v2419_v28 = vsel %vm1688_vm3, %v8108_v53, %v6881_v12  ;;  %v2420_v25 = vsel %vm1688_vm3, %v8112_v17, %v6882_v23 }
 0x4c2   : > { %3602 = vperm.xlu0 %6909, %v3561_v40   ;;  %v6890_v20 = vpop.permute.xlu1 %6889  ;;  %6676 = vmatprep.subr.bf16.mxu0 %v6675_v13  ;;  %v6679_v4 = vpack.c.bf16 %v2420_v25, %v2419_v28  ;;  %v3415_v17 = vsel %vm3399_vm14, 1, %v12407_v63  ;;  %v3698_v31 = vsel %vm3682_vm15, 1, %v12407_v63  ;;  %v12411_v25 = vpack.c.bf16 %v8340_v48, %v8344_v59 }
 0x4c3   : > { %v6892_v1 = vunpack.i.h.bf16 %v6890_v20  ;;  %v6891_v41 = vunpack.i.l.bf16 %v6890_v20  ;;  %v2421_v27 = vsel %vm1688_vm3, %v8115_v16, %v6886_v62  ;;  %v2422_v53 = vsel %vm1688_vm3, %v8119_v55, %v6887_v5 }
 0x4c4   : > { %v6895_v12 = vpop.permute.xlu0 %6894  ;;  %3456 = vperm.xlu1 %6908, %v3413_v3   ;;  %v6683_v23 = vpack.c.bf16 %v2422_v53, %v2421_v27  ;;  %v12413_v53 = vpack.c.bf16 %v8368_v19, %v8372_v44  ;;  %v3556_v19 = vsel %vm3540_vm7, 1, %v12407_v63  ;;  %v737_v44 = vsub.s32 0, %v8162_v29 }
 0x4c5   : > { %v6897_v38 = vunpack.i.h.bf16 %v6895_v12  ;;  %v6896_v40 = vunpack.i.l.bf16 %v6895_v12  ;;  %6678 = vmatpush3.bf16.msra.mxu0 %v12410_v0  ;;  %v2423_v16 = vsel %vm1688_vm3, %v8122_v45, %v6891_v41  ;;  %v2424_v55 = vsel %vm1688_vm3, %v8126_v37, %v6892_v1  ;;  %v12416_v0 = vld [vmem:[#allocation53_spill] sm:$0xff] }
 0x4c6   : > { %3608 = vperm.xlu0 %6909, %v3563_v57   ;;  %v6900_v15 = vpop.permute.xlu1 %6899  ;;  %6680 = vmatprep.subr.bf16.mxu0 %v6679_v4  ;;  %v6687_v13 = vpack.c.bf16 %v2424_v55, %v2423_v16  ;;  %v3550_v37 = vsel %vm3534_vm0, 1, %v12407_v63  ;;  %v3700_v4 = vsel %vm3684_vm1, 1, %v12407_v63  ;;  %v3552_v41 = vsel %vm3536_vm2, 1, %v12407_v63  ;;  %v12417_v55 = vld [vmem:[#allocation55_spill] sm:$0xff] }
 0x4c7   : > { %v6902_v3 = vunpack.i.h.bf16 %v6900_v15  ;;  %v6901_v5 = vunpack.i.l.bf16 %v6900_v15  ;;  %v2425_v51 = vsel %vm1688_vm3, %v8129_v60, %v6896_v40  ;;  %v2426_v36 = vsel %vm1688_vm3, %v8133_v61, %v6897_v38 }
 0x4c8   : > { %v6905_v45 = vpop.permute.xlu0 %6904  ;;  %3462 = vperm.xlu1 %6908, %v3415_v17   ;;  %v6691_v62 = vpack.c.bf16 %v2426_v36, %v2425_v51  ;;  %v3704_v12 = vsel %vm3688_vm6, 1, %v12407_v63  ;;  %v12414_v17 = vpack.c.bf16 %v8382_v34, %v8386_v42  ;;  %v3706_v38 = vsel %vm3690_vm8, 1, %v12407_v63 }
 0x4c9   : > { %v6907_v47 = vunpack.i.h.bf16 %v6905_v45  ;;  %v6906_v28 = vunpack.i.l.bf16 %v6905_v45  ;;  %6682 = vmatpush3.bf16.msra.mxu0 %v12411_v25  ;;  %v2427_v60 = vsel %vm1688_vm3, %v8136_v49, %v6901_v5  ;;  %v2428_v61 = vsel %vm1688_vm3, %v8140_v10, %v6902_v3 }
 0x4ca   : > { %3715 = vperm.xlu0 %6909, %v3698_v31   ;;  %v8482_v20 = vpop.permute.xlu1 %2704  ;;  %6684 = vmatprep.subr.bf16.mxu0 %v6683_v23  ;;  %v6695_v57 = vpack.c.bf16 %v2428_v61, %v2427_v60  ;;  %v12412_v10 = vpack.c.bf16 %v8354_v7, %v8358_v52  ;;  %v3554_v7 = vsel %vm3538_vm5, 1, %v12407_v63  ;;  %v12415_v34 = vpack.c.bf16 %v8396_v46, %v8400_v30  ;;  %v12419_v30 = vld [vmem:[#allocation56_spill] sm:$0xff] }
 0x4cb   : > { %v2429_v1 = vsel %vm1688_vm3, %v8143_v24, %v6906_v28  ;;  %v2430_v48 = vsel %vm1688_vm3, %v8147_v33, %v6907_v47  ;;  %v3702_v24 = vsel %vm3686_vm4, 1, %v12407_v63  ;;  %v3558_v42 = vsel %vm3542_vm9, 1, %v12407_v63 }
 0x4cc   : > { %v8490_v59 = vpop.permute.xlu0 %2706  ;;  %3569 = vperm.xlu1 %6908, %v3550_v37   ;;  %v6699_v49 = vpack.c.bf16 %v2430_v48, %v2429_v1  ;;  %v8530_v16 = vrot.slane %v12416_v0, %v737_v44  ;;  %vm3544_vm11 = vcmp.eq.s32.totalorder %v12417_v55, 2  ;;  %v8534_v15 = vadd.s32 8, %v8162_v29 }
 0x4cd   : > { %6686 = vmatpush3.bf16.msra.mxu0 %v12412_v10  ;;  %v3708_v31 = vsel %vm3692_vm10, 1, %v12407_v63  ;;  %v3560_v46 = vsel %vm3544_vm11, 1, %v12407_v63  ;;  %vm3546_vm15 = vcmp.eq.s32.totalorder %v8290_v32, 2  ;;  %v721_v3 = vadd.s32 16, %v8162_v29 }
 0x4ce   : > { %3721 = vperm.xlu0 %6909, %v3700_v4   ;;  %v8497_v27 = vpop.permute.xlu1 %2708  ;;  %6688 = vmatprep.subr.bf16.mxu0 %v6687_v13  ;;  %12418 = vst [vmem:[#allocation58_spill] sm:$0xff] %v8534_v15  ;;  %vm743_vm13 = vcmp.eq.s32.totalorder %v8162_v29, %v8530_v16  ;;  %vm746_vm14 = vcmp.eq.s32.totalorder %v8534_v15, %v12419_v30  ;;  %v3710_v51 = vsel %vm3694_vm12, 1, %v12407_v63  ;;  %v12420_v36 = vmov 1.0  }
 0x4cf   : > { %vm3696_vm0 = vcmp.eq.s32.totalorder %v8236_v26, 3  ;;  %vm745_vm1 = vcmp.eq.s32.totalorder %v8534_v15, %v8530_v16  ;;  %vm748_vm2 = vcmp.eq.s32.totalorder %v721_v3, %v12419_v30  ;;  %vm3548_vm4 = vcmp.eq.s32.totalorder %v8297_v9, 2 }
 0x4d0   : > { %3575 = vperm.xlu1 %6908, %v3552_v41   ;;  %v8502_v33 = vpop.permute.xlu0 %2710  ;;  %v3712_v45 = vsel %vm3696_vm0, 1, %v12407_v63  ;;  %vm3831_vm5 = vcmp.eq.s32.totalorder %v8210_v6, 4  ;;  %vm747_vm6 = vcmp.eq.s32.totalorder %v721_v3, %v8530_v16  ;;  %vm750_vm7 = vcmp.eq.s32.totalorder %v722_v56, %v12419_v30 }
 0x4d1   : > { %6690 = vmatpush3.bf16.msra.mxu0 %v12413_v53  ;;  %vm3683_vm8 = vcmp.eq.s32.totalorder %v8201_v2, 3  ;;  %v723_v47 = vadd.s32 32, %v8162_v29  ;;  %v3847_v28 = vsel %vm3831_vm5, 1, %v12407_v63  ;;  %vm3833_vm9 = vcmp.eq.s32.totalorder %v8221_v14, 4 }
 0x4d2   : > { %3727 = vperm.xlu0 %6909, %v3702_v24   ;;  %6692 = vmatprep.subr.bf16.mxu0 %v6691_v62  ;;  %v8509_v52 = vpop.permute.xlu1 %2712  ;;  %v3564_v62 = vsel %vm3548_vm4, 1, %v12407_v63  ;;  %vm749_vm10 = vcmp.eq.s32.totalorder %v722_v56, %v8530_v16  ;;  %v3699_v60 = vsel %vm3683_vm8, 1, %v12407_v63  ;;  %vm3685_vm12 = vcmp.eq.s32.totalorder %v8231_v54, 3 }
 0x4d3   : > { %vm752_vm11 = vcmp.eq.s32.totalorder %v723_v47, %v12419_v30  ;;  %v724_v61 = vadd.s32 40, %v8162_v29  ;;  %v3849_v4 = vsel %vm3833_vm9, 1, %v12407_v63  ;;  %v3701_v1 = vsel %vm3685_vm12, 1, %v12407_v63 }
 0x4d4   : > { %3581 = vperm.xlu1 %6908, %v3554_v7   ;;  %v8519_v23 = vpop.permute.xlu0 %2714  ;;  %vm3687_vm0 = vcmp.eq.s32.totalorder %v8248_v18, 3  ;;  %v725_v48 = vadd.s32 48, %v8162_v29  ;;  %vm3689_vm5 = vcmp.eq.s32.totalorder %v8262_v43, 3  ;;  %v726_v53 = vadd.s32 56, %v8162_v29 }
 0x4d5   : > { %6694 = vmatpush3.bf16.msra.mxu0 %v12414_v17  ;;  %v3703_v24 = vsel %vm3687_vm0, 1, %v12407_v63  ;;  %vm3691_vm9 = vcmp.eq.s32.totalorder %v8276_v35, 3  ;;  %v727_v44 = vadd.s32 64, %v8162_v29  ;;  %v728_v0 = vadd.s32 72, %v8162_v29 }
 0x4d6   : > { %3733 = vperm.xlu0 %6909, %v3704_v12   ;;  %6696 = vmatprep.subr.bf16.mxu0 %v6695_v57  ;;  %v8523_v40 = vpop.permute.xlu1 %2716  ;;  %vm756_vm4 = vcmp.eq.s32.totalorder %v725_v48, %v12419_v30  ;;  %vm758_vm8 = vcmp.eq.s32.totalorder %v726_v53, %v12419_v30 }
 0x4d7   : > { %vm760_vm12 = vcmp.eq.s32.totalorder %v727_v44, %v12419_v30  ;;  %vm762_vm0 = vcmp.eq.s32.totalorder %v728_v0, %v12419_v30 }
 0x4d8   : > { %3587 = vperm.xlu1 %6908, %v3556_v19   ;;  %v8538_v13 = vpop.permute.xlu0 %2718  ;;  %v3705_v19 = vsel %vm3689_vm5, 1, %v12407_v63 }
 0x4d9   : > { %6698 = vmatpush3.bf16.msra.mxu0 %v12415_v34 }
 0x4da   : > { %3739 = vperm.xlu0 %6909, %v3706_v38   ;;  %6700 = vmatprep.subr.bf16.mxu0 %v6699_v49  ;;  %v8550_v5 = vpop.permute.xlu1 %2720 }
 0x4dc   : > { %3593 = vperm.xlu1 %6908, %v3558_v42   ;;  %v8562_v58 = vpop.permute.xlu0 %2722  ;;  %v3707_v42 = vsel %vm3691_vm9, 1, %v12407_v63 }
 0x4dd   : > { %6702 = vmatpush3.bf16.msra.mxu0 %v6701_v39  ;;  %v3562_v39 = vsel %vm3546_vm15, 1, %v12407_v63  ;;  %vm754_vm15 = vcmp.eq.s32.totalorder %v724_v61, %v12419_v30 }
 0x4de   : > { %3745 = vperm.xlu0 %6909, %v3708_v31   ;;  %v8567_v37 = vpop.permute.xlu1 %2724 }
 0x4e0   : > { %6011 = vmatmul.mubr.msk.f32.vlgmr.msra.gmra.mrb[48].mxu0 %vm743_vm13, %v12420_v36  ;;  %3599 = vperm.xlu1 %6908, %v3560_v46   ;;  %v8578_v25 = vpop.permute.xlu0 %2726  ;;  %vm3835_vm13 = vcmp.eq.s32.totalorder %v8241_v22, 4 }
 0x4e1   : > { %6012 = vmatprep.mubr.msk.f32.mxu0 %vm746_vm14, %v12420_v36  ;;  %vm751_vm14 = vcmp.eq.s32.totalorder %v723_v47, %v8530_v16  ;;  %v3851_v10 = vsel %vm3835_vm13, 1, %v12407_v63  ;;  %vm3693_vm13 = vcmp.eq.s32.totalorder %v12417_v55, 3 }
 0x4e2   : > { %3751 = vperm.xlu0 %6909, %v3710_v51   ;;  %v8586_v57 = vpop.permute.xlu1 %2728  ;;  %v3709_v51 = vsel %vm3693_vm13, 1, %v12407_v63 }
 0x4e4   : > { %6013 = vmatmul.mubr.msk.f32.gmra.mrb[50].mxu0 %vm745_vm1, %v12420_v36  ;;  %3605 = vperm.xlu1 %6908, %v3562_v39   ;;  %v8597_v49 = vpop.permute.xlu0 %2730  ;;  %vm3837_vm1 = vcmp.eq.s32.totalorder %v8255_v11, 4  ;;  %v729_v39 = vadd.s32 80, %v8162_v29 }
 0x4e5   : > { %6014 = vmatprep.mubr.msk.f32.mxu0 %vm748_vm2, %v12420_v36  ;;  %vm753_vm2 = vcmp.eq.s32.totalorder %v724_v61, %v8530_v16  ;;  %v3853_v7 = vsel %vm3837_vm1, 1, %v12407_v63  ;;  %vm3695_vm1 = vcmp.eq.s32.totalorder %v8290_v32, 3 }
 0x4e6   : > { %3757 = vperm.xlu0 %6909, %v3712_v45   ;;  %v8602_v41 = vpop.permute.xlu1 %2732  ;;  %v3711_v47 = vsel %vm3695_vm1, 1, %v12407_v63  ;;  %vm764_vm5 = vcmp.eq.s32.totalorder %v729_v39, %v12419_v30 }
 0x4e8   : > { %6015 = vmatmul.mubr.msk.f32.gmra.mrb[52].mxu0 %vm747_vm6, %v12420_v36  ;;  %3611 = vperm.xlu1 %6908, %v3564_v62   ;;  %vm3839_vm6 = vcmp.eq.s32.totalorder %v8269_v8, 4  ;;  %v8613_v12 = vpop.permute.xlu0 %2734 }
 0x4e9   : > { %6016 = vmatprep.mubr.msk.f32.mxu0 %vm750_vm7, %v12420_v36  ;;  %vm755_vm7 = vcmp.eq.s32.totalorder %v725_v48, %v8530_v16  ;;  %v3855_v38 = vsel %vm3839_vm6, 1, %v12407_v63  ;;  %vm3697_vm6 = vcmp.eq.s32.totalorder %v8297_v9, 3  ;;  %v731_v48 = vadd.s32 96, %v8162_v29 }
 0x4ea   : > { %3864 = vperm.xlu0 %6909, %v3847_v28   ;;  %v8615_v17 = vpop.permute.xlu1 %2981  ;;  %v730_v28 = vadd.s32 88, %v8162_v29 }
 0x4eb   : > { %vm768_vm13 = vcmp.eq.s32.totalorder %v731_v48, %v12419_v30 }
 0x4ec   : > { %6017 = vmatmul.mubr.msk.f32.gmra.mrb[54].mxu0 %vm749_vm10, %v12420_v36  ;;  %3718 = vperm.xlu1 %6908, %v3699_v60   ;;  %vm3841_vm10 = vcmp.eq.s32.totalorder %v8216_v50, 4  ;;  %vm766_vm9 = vcmp.eq.s32.totalorder %v730_v28, %v12419_v30 }
 0x4ed   : > { %6018 = vmatprep.mubr.msk.f32.mxu0 %vm752_vm11, %v12420_v36  ;;  %vm757_vm11 = vcmp.eq.s32.totalorder %v726_v53, %v8530_v16  ;;  %v3857_v46 = vsel %vm3841_vm10, 1, %v12407_v63  ;;  %vm3832_vm10 = vcmp.eq.s32.totalorder %v8201_v2, 4 }
 0x4ee   : > { %3870 = vperm.xlu0 %6909, %v3849_v4  }
 0x4f0   : > { %6019 = vmatmul.mubr.msk.f32.gmra.mrb[56].mxu0 %vm751_vm14, %v12420_v36  ;;  %3724 = vperm.xlu1 %6908, %v3701_v1   ;;  %vm3843_vm14 = vcmp.eq.s32.totalorder %v8226_v21, 4  ;;  %v3713_v1 = vsel %vm3697_vm6, 1, %v12407_v63 }
 0x4f1   : > { %6020 = vmatprep.mubr.msk.f32.mxu0 %vm754_vm15, %v12420_v36  ;;  %vm759_vm15 = vcmp.eq.s32.totalorder %v727_v44, %v8530_v16  ;;  %v3859_v45 = vsel %vm3843_vm14, 1, %v12407_v63  ;;  %vm3834_vm14 = vcmp.eq.s32.totalorder %v8231_v54, 4 }
 0x4f2   : > { %3876 = vperm.xlu0 %6909, %v3851_v10  }
 0x4f4   : > { %6021 = vmatmul.mubr.msk.f32.gmra.mrb[58].mxu0 %vm753_vm2, %v12420_v36  ;;  %3730 = vperm.xlu1 %6908, %v3703_v24   ;;  %vm3845_vm2 = vcmp.eq.s32.totalorder %v8236_v26, 4 }
 0x4f5   : > { %6022 = vmatprep.mubr.msk.f32.mxu0 %vm756_vm4, %v12420_v36  ;;  %vm761_vm4 = vcmp.eq.s32.totalorder %v728_v0, %v8530_v16  ;;  %v3861_v61 = vsel %vm3845_vm2, 1, %v12407_v63  ;;  %v3850_v0 = vsel %vm3834_vm14, 1, %v12407_v63  ;;  %vm3836_vm2 = vcmp.eq.s32.totalorder %v8248_v18, 4 }
 0x4f6   : > { %3882 = vperm.xlu0 %6909, %v3853_v7   ;;  %v3848_v7 = vsel %vm3832_vm10, 1, %v12407_v63  ;;  %vm3842_vm14 = vcmp.eq.s32.totalorder %v12417_v55, 4 }
 0x4f8   : > { %6023 = vmatmul.mubr.msk.f32.gmra.mrb[60].mxu0 %vm755_vm7, %v12420_v36  ;;  %3736 = vperm.xlu1 %6908, %v3705_v19   ;;  %vm3980_vm7 = vcmp.eq.s32.totalorder %v8210_v6, 5  ;;  %v732_v19 = vadd.s32 104, %v8162_v29 }
 0x4f9   : > { %v8626_v34 = vpop.permute.xlu0 %3271  ;;  %6024 = vmatprep.mubr.msk.f32.mxu0 %vm758_vm8, %v12420_v36  ;;  %vm763_vm8 = vcmp.eq.s32.totalorder %v729_v39, %v8530_v16  ;;  %v3996_v24 = vsel %vm3980_vm7, 1, %v12407_v63  ;;  %vm3838_vm7 = vcmp.eq.s32.totalorder %v8262_v43, 4 }
 0x4fa   : > { %12421 = vst [vmem:[#allocation57_spill] sm:$0xff] %v8626_v34  ;;  %3888 = vperm.xlu0 %6909, %v3855_v38   ;;  %vm770_vm1 = vcmp.eq.s32.totalorder %v732_v19, %v12419_v30 }
 0x4fb   : > { %v8634_v31 = vpop.permute.xlu1 %3268 }
 0x4fc   : > { %6025 = vmatmul.mubr.msk.f32.gmra.mrb[62].mxu0 %vm757_vm11, %v12420_v36  ;;  %3742 = vperm.xlu1 %6908, %v3707_v42   ;;  %vm3982_vm11 = vcmp.eq.s32.totalorder %v8221_v14, 5 }
 0x4fd   : > { %v8639_v3 = vpop.permute.xlu0 %3298  ;;  %6026 = vmatprep.mubr.msk.f32.mxu0 %vm760_vm12, %v12420_v36  ;;  %vm765_vm12 = vcmp.eq.s32.totalorder %v730_v28, %v8530_v16  ;;  %v3998_v38 = vsel %vm3982_vm11, 1, %v12407_v63  ;;  %v734_v28 = vadd.s32 120, %v8162_v29  ;;  %vm3840_vm11 = vcmp.eq.s32.totalorder %v8276_v35, 4 }
 0x4fe   : > { %12422 = vst [vmem:[#allocation24_spill] sm:$0xff] %v8639_v3  ;;  %3894 = vperm.xlu0 %6909, %v3857_v46   ;;  %v733_v46 = vadd.s32 112, %v8162_v29 }
 0x4ff   : > { %v8647_v56 = vpop.permute.xlu1 %3274  ;;  %vm774_vm10 = vcmp.eq.s32.totalorder %v734_v28, %v12419_v30 }
 0x500   : > { %12423 = vst [vmem:[#allocation23_spill] sm:$0xff] %v8647_v56  ;;  %6027 = vmatmul.mubr.msk.f32.gmra.mrb[64].mxu0 %vm759_vm15, %v12420_v36  ;;  %3748 = vperm.xlu1 %6908, %v3709_v51   ;;  %vm3984_vm15 = vcmp.eq.s32.totalorder %v8241_v22, 5  ;;  %vm772_vm6 = vcmp.eq.s32.totalorder %v733_v46, %v12419_v30 }
 0x501   : > { %v8652_v62 = vpop.permute.xlu0 %3304  ;;  %6028 = vmatprep.mubr.msk.f32.mxu0 %vm762_vm0, %v12420_v36  ;;  %vm767_vm0 = vcmp.eq.s32.totalorder %v731_v48, %v8530_v16  ;;  %v4000_v39 = vsel %vm3984_vm15, 1, %v12407_v63  ;;  %vm3992_vm15 = vcmp.eq.s32.totalorder %v8226_v21, 5 }
 0x502   : > { %12424 = vst [vmem:[#allocation60_spill] sm:$0xff] %v8652_v62  ;;  %3900 = vperm.xlu0 %6909, %v3859_v45  }
 0x503   : > { %v8660_v60 = vpop.permute.xlu1 %3277 }
 0x504   : > { %12425 = vst [vmem:[#allocation22_spill] sm:$0xff] %v8660_v60  ;;  %6029 = vmatmul.mubr.msk.f32.gmra.mrb[66].mxu0 %vm761_vm4, %v12420_v36  ;;  %3754 = vperm.xlu1 %6908, %v3711_v47   ;;  %vm3986_vm4 = vcmp.eq.s32.totalorder %v8255_v11, 5  ;;  %v3852_v47 = vsel %vm3836_vm2, 1, %v12407_v63  ;;  %vm3846_vm2 = vcmp.eq.s32.totalorder %v8297_v9, 4 }
 0x505   : > { %v8665_v4 = vpop.permute.xlu0 %3310  ;;  %6030 = vmatprep.mubr.msk.f32.mxu0 %vm764_vm5, %v12420_v36  ;;  %vm769_vm5 = vcmp.eq.s32.totalorder %v732_v19, %v8530_v16 }
 0x506   : > { %12426 = vst [vmem:[#allocation21_spill] sm:$0xff] %v8665_v4  ;;  %3906 = vperm.xlu0 %6909, %v3861_v61  }
 0x507   : > { %v8673_v10 = vpop.permute.xlu1 %3280 }
 0x508   : > { %12427 = vst [vmem:[#allocation59_spill] sm:$0xff] %v8673_v10  ;;  %6031 = vmatmul.mubr.msk.f32.gmra.mrb[68].mxu0 %vm763_vm8, %v12420_v36  ;;  %3760 = vperm.xlu1 %6908, %v3713_v1   ;;  %v4002_v1 = vsel %vm3986_vm4, 1, %v12407_v63  ;;  %vm3988_vm8 = vcmp.eq.s32.totalorder %v8269_v8, 5  ;;  %vm4129_vm4 = vcmp.eq.s32.totalorder %v8210_v6, 6 }
 0x509   : > { %v8678_v53 = vpop.permute.xlu0 %3417  ;;  %6032 = vmatprep.mubr.msk.f32.mxu0 %vm766_vm9, %v12420_v36  ;;  %vm771_vm9 = vcmp.eq.s32.totalorder %v733_v46, %v8530_v16  ;;  %v4004_v19 = vsel %vm3988_vm8, 1, %v12407_v63  ;;  %vm4133_vm8 = vcmp.eq.s32.totalorder %v8241_v22, 6 }
 0x50a   : > { %4013 = vperm.xlu0 %6909, %v3996_v24   ;;  %v3854_v24 = vsel %vm3838_vm7, 1, %v12407_v63  ;;  %vm3983_vm7 = vcmp.eq.s32.totalorder %v8231_v54, 5 }
 0x50b   : > { %v8686_v44 = vpop.permute.xlu1 %3283 }
 0x50c   : > { %12428 = vst [vmem:[#allocation26_spill] sm:$0xff] %v8686_v44  ;;  %6033 = vmatmul.mubr.msk.f32.gmra.mrb[70].mxu0 %vm765_vm12, %v12420_v36  ;;  %3867 = vperm.xlu1 %6908, %v3848_v7   ;;  %vm3990_vm12 = vcmp.eq.s32.totalorder %v8216_v50, 5 }
 0x50d   : > { %v8691_v42 = vpop.permute.xlu0 %3423  ;;  %6034 = vmatprep.mubr.msk.f32.mxu0 %vm768_vm13, %v12420_v36  ;;  %vm773_vm13 = vcmp.eq.s32.totalorder %v734_v28, %v8530_v16  ;;  %v4006_v46 = vsel %vm3990_vm12, 1, %v12407_v63  ;;  %vm4137_vm12 = vcmp.eq.s32.totalorder %v8269_v8, 6 }
 0x50e   : > { %12429 = vst [vmem:[#allocation25_spill] sm:$0xff] %v8691_v42  ;;  %4019 = vperm.xlu0 %6909, %v3998_v38  }
 0x50f   : > { %v8699_v51 = vpop.permute.xlu1 %3286 }
 0x510   : > { %12430 = vst [vmem:[#allocation62_spill] sm:$0xff] %v8699_v51  ;;  %6035 = vmatmul.mubr.msk.f32.gmra.mrb[72].mxu0 %vm767_vm0, %v12420_v36  ;;  %3873 = vperm.xlu1 %6908, %v3850_v0   ;;  %v3856_v0 = vsel %vm3840_vm11, 1, %v12407_v63  ;;  %vm3844_vm0 = vcmp.eq.s32.totalorder %v8290_v32, 4  ;;  %vm3987_vm11 = vcmp.eq.s32.totalorder %v8262_v43, 5  ;;  %v8796_v43 = vld [vmem:[%s7314_s23 + $0x50] sm:$0xff] }
 0x511   : > { %v8704_v45 = vpop.permute.xlu0 %3429  ;;  %6036 = vmatprep.mubr.msk.f32.mxu0 %vm770_vm1, %v12420_v36  ;;  %vm3994_vm1 = vcmp.eq.s32.totalorder %v8236_v26, 5 }
 0x512   : > { %12431 = vst [vmem:[#allocation28_spill] sm:$0xff] %v8704_v45  ;;  %4025 = vperm.xlu0 %6909, %v4000_v39   ;;  %v3858_v39 = vsel %vm3842_vm14, 1, %v12407_v63  ;;  %vm4139_vm14 = vcmp.eq.s32.totalorder %v8796_v43, 6 }
 0x513   : > { %v8712_v61 = vpop.permute.xlu1 %3289 }
 0x514   : > { %12432 = vst [vmem:[#allocation27_spill] sm:$0xff] %v8712_v61  ;;  %6037 = vmatmul.mubr.msk.f32.gmra.mrb[74].mxu0 %vm769_vm5, %v12420_v36  ;;  %3879 = vperm.xlu1 %6908, %v3852_v47   ;;  %v4008_v47 = vsel %vm3992_vm15, 1, %v12407_v63  ;;  %vm3981_vm5 = vcmp.eq.s32.totalorder %v8201_v2, 5  ;;  %vm3991_vm15 = vcmp.eq.s32.totalorder %v12417_v55, 5 }
 0x515   : > { %v8717_v48 = vpop.permute.xlu0 %3435  ;;  %6038 = vmatprep.mubr.msk.f32.mxu0 %vm772_vm6, %v12420_v36  ;;  %vm4131_vm6 = vcmp.eq.s32.totalorder %v8221_v14, 6  ;;  %v4007_v15 = vsel %vm3991_vm15, 1, %v12407_v63  ;;  %vm4288_vm15 = vcmp.eq.s32.totalorder %v8796_v43, 7 }
 0x516   : > { %12433 = vst [vmem:[#allocation61_spill] sm:$0xff] %v8717_v48  ;;  %4031 = vperm.xlu0 %6909, %v4002_v1   ;;  %v3860_v1 = vsel %vm3844_vm0, 1, %v12407_v63 }
 0x517   : > { %v8724_v7 = vpop.permute.xlu1 %3292 }
 0x518   : > { %12434 = vst [vmem:[#allocation30_spill] sm:$0xff] %v8724_v7  ;;  %6039 = vmatmul.mubr.msk.f32.gmra.mrb[76].mxu0 %vm771_vm9, %v12420_v36  ;;  %3885 = vperm.xlu1 %6908, %v3854_v24   ;;  %v4010_v24 = vsel %vm3994_vm1, 1, %v12407_v63  ;;  %vm3985_vm9 = vcmp.eq.s32.totalorder %v8248_v18, 5  ;;  %vm3993_vm1 = vcmp.eq.s32.totalorder %v8290_v32, 5 }
 0x519   : > { %v8729_v38 = vpop.permute.xlu0 %3441  ;;  %6040 = vmatprep.mubr.msk.f32.mxu0 %vm774_vm10, %v12420_v36  ;;  %vm4135_vm10 = vcmp.eq.s32.totalorder %v8255_v11, 6  ;;  %v4003_v11 = vsel %vm3987_vm11, 1, %v12407_v63  ;;  %v4009_v29 = vsel %vm3993_vm1, 1, %v12407_v63 }
 0x51a   : > { %12435 = vst [vmem:[#allocation29_spill] sm:$0xff] %v8729_v38  ;;  %4037 = vperm.xlu0 %6909, %v4004_v19  }
 0x51b   : > { %v8735_v30 = vpop.permute.xlu1 %3295 }
 0x51c   : > { %12436 = vst [vmem:[#allocation64_spill] sm:$0xff] %v8735_v30  ;;  %6041 = vmatmul.mubr.msk.f32.gmra.mrb[78].mxu0 %vm773_vm13, %v12420_v36  ;;  %3891 = vperm.xlu1 %6908, %v3856_v0   ;;  %v3862_v0 = vsel %vm3846_vm2, 1, %v12407_v63  ;;  %vm3989_vm13 = vcmp.eq.s32.totalorder %v8276_v35, 5  ;;  %v4155_v35 = vsel %vm4139_vm14, 1, %v12407_v63  ;;  %v8818_v36 = vld [vmem:[%s7314_s23 + $0x70] sm:$0xff] }
 0x51d   : > { %v8740_v50 = vpop.permute.xlu0 %3447  ;;  %v4005_v8 = vsel %vm3989_vm13, 1, %v12407_v63  ;;  %vm4143_vm2 = vcmp.eq.s32.totalorder %v8818_v36, 6 }
 0x51e   : > { %12437 = vst [vmem:[#allocation32_spill] sm:$0xff] %v8740_v50  ;;  %4043 = vperm.xlu0 %6909, %v4006_v46   ;;  %v4145_v46 = vsel %vm4129_vm4, 1, %v12407_v63  ;;  %vm3995_vm4 = vcmp.eq.s32.totalorder %v8297_v9, 5  ;;  %v4159_v32 = vsel %vm4143_vm2, 1, %v12407_v63 }
 0x51f   : > { %v8744_v16 = vpop.permute.xlu1 %3301 }
 0x520   : > { %12438 = vst [vmem:[#allocation31_spill] sm:$0xff] %v8744_v16  ;;  %3897 = vperm.xlu1 %6908, %v3858_v39  }
 0x521   : > { %v8748_v28 = vpop.permute.xlu0 %3453 }
 0x522   : > { %12439 = vst [vmem:[#allocation63_spill] sm:$0xff] %v8748_v28  ;;  %4049 = vperm.xlu0 %6909, %v4008_v47   ;;  %v3997_v47 = vsel %vm3981_vm5, 1, %v12407_v63 }
 0x523   : > { %v8752_v21 = vpop.permute.xlu1 %3307 }
 0x524   : > { %12440 = vst [vmem:[#allocation34_spill] sm:$0xff] %v8752_v21  ;;  %3903 = vperm.xlu1 %6908, %v3860_v1   ;;  %v4147_v1 = vsel %vm4131_vm6, 1, %v12407_v63 }
 0x525   : > { %v8756_v19 = vpop.permute.xlu0 %3459 }
 0x526   : > { %12441 = vst [vmem:[#allocation33_spill] sm:$0xff] %v8756_v19  ;;  %4055 = vperm.xlu0 %6909, %v4010_v24   ;;  %v3999_v24 = vsel %vm3983_vm7, 1, %v12407_v63 }
 0x527   : > { %v8760_v26 = vpop.permute.xlu1 %3313 }
 0x528   : > { %12442 = vst [vmem:[#allocation36_spill] sm:$0xff] %v8760_v26  ;;  %3909 = vperm.xlu1 %6908, %v3862_v0   ;;  %v4149_v0 = vsel %vm4133_vm8, 1, %v12407_v63  ;;  %v8836_v26 = vld [vmem:[%s7314_s23 + $0x8] sm:$0xff] }
 0x529   : > { %v8764_v39 = vpop.permute.xlu0 %3566  ;;  %vm4130_vm6 = vcmp.eq.s32.totalorder %v8836_v26, 6 }
 0x52a   : > { %4162 = vperm.xlu0 %6909, %v4145_v46   ;;  %v4001_v46 = vsel %vm3985_vm9, 1, %v12407_v63 }
 0x52b   : > { %v8768_v6 = vpop.permute.xlu1 %3420 }
 0x52c   : > { %12443 = vst [vmem:[#allocation35_spill] sm:$0xff] %v8768_v6  ;;  %4016 = vperm.xlu1 %6908, %v3997_v47   ;;  %v4151_v47 = vsel %vm4135_vm10, 1, %v12407_v63 }
 0x52d   : > { %v8772_v2 = vpop.permute.xlu0 %3572 }
 0x52e   : > { %12444 = vst [vmem:[#allocation38_spill] sm:$0xff] %v8772_v2  ;;  %4168 = vperm.xlu0 %6909, %v4147_v1  }
 0x52f   : > { %v8776_v14 = vpop.permute.xlu1 %3426 }
 0x530   : > { %12445 = vst [vmem:[#allocation37_spill] sm:$0xff] %v8776_v14  ;;  %4022 = vperm.xlu1 %6908, %v3999_v24   ;;  %v4153_v24 = vsel %vm4137_vm12, 1, %v12407_v63 }
 0x531   : > { %v8780_v54 = vpop.permute.xlu0 %3578 }
 0x532   : > { %12446 = vst [vmem:[#allocation40_spill] sm:$0xff] %v8780_v54  ;;  %4174 = vperm.xlu0 %6909, %v4149_v0  }
 0x533   : > { %v8784_v22 = vpop.permute.xlu1 %3432 }
 0x534   : > { %12447 = vst [vmem:[#allocation39_spill] sm:$0xff] %v8784_v22  ;;  %4028 = vperm.xlu1 %6908, %v4001_v46  }
 0x535   : > { %v8788_v18 = vpop.permute.xlu0 %3584 }
 0x536   : > { %12448 = vst [vmem:[#allocation42_spill] sm:$0xff] %v8788_v18  ;;  %4180 = vperm.xlu0 %6909, %v4151_v47   ;;  %v8807_v47 = vld [vmem:[%s7314_s23 + $0x60] sm:$0xff] }
 0x537   : > { %v8792_v1 = vpop.permute.xlu1 %3438  ;;  %vm4141_vm0 = vcmp.eq.s32.totalorder %v8807_v47, 6  ;;  %vm4290_vm1 = vcmp.eq.s32.totalorder %v8807_v47, 7 }
 0x538   : > { %12449 = vst [vmem:[#allocation41_spill] sm:$0xff] %v8792_v1  ;;  %4034 = vperm.xlu1 %6908, %v4003_v11   ;;  %v4157_v55 = vsel %vm4141_vm0, 1, %v12407_v63  ;;  %v4306_v18 = vsel %vm4290_vm1, 1, %v12407_v63 }
 0x539   : > { %v8799_v0 = vpop.permute.xlu0 %3590 }
 0x53a   : > { %12450 = vst [vmem:[#allocation44_spill] sm:$0xff] %v8799_v0  ;;  %4186 = vperm.xlu0 %6909, %v4153_v24  }
 0x53b   : > { %v8803_v46 = vpop.permute.xlu1 %3444 }
 0x53c   : > { %12451 = vst [vmem:[#allocation43_spill] sm:$0xff] %v8803_v46  ;;  %4040 = vperm.xlu1 %6908, %v4005_v8  }
 0x53d   : > { %v8810_v11 = vpop.permute.xlu0 %3596 }
 0x53e   : > { %12452 = vst [vmem:[#allocation46_spill] sm:$0xff] %v8810_v11  ;;  %4192 = vperm.xlu0 %6909, %v4155_v35   ;;  %v8829_v11 = vld [vmem:[%s7314_s23] sm:$0xff] }
 0x53f   : > { %v8814_v24 = vpop.permute.xlu1 %3450  ;;  %vm4278_vm5 = vcmp.eq.s32.totalorder %v8829_v11, 7 }
 0x540   : > { %12453 = vst [vmem:[#allocation45_spill] sm:$0xff] %v8814_v24  ;;  %4046 = vperm.xlu1 %6908, %v4007_v15  }
 0x541   : > { %v8821_v8 = vpop.permute.xlu0 %3602 }
 0x542   : > { %12454 = vst [vmem:[#allocation48_spill] sm:$0xff] %v8821_v8  ;;  %4198 = vperm.xlu0 %6909, %v4157_v55   ;;  %v4011_v8 = vsel %vm3995_vm4, 1, %v12407_v63  ;;  %v4294_v55 = vsel %vm4278_vm5, 1, %v12407_v63  ;;  %vm4292_vm4 = vcmp.eq.s32.totalorder %v8818_v36, 7 }
 0x543   : > { %v8825_v35 = vpop.permute.xlu1 %3456  ;;  %v4308_v61 = vsel %vm4292_vm4, 1, %v12407_v63 }
 0x544   : > { %12455 = vst [vmem:[#allocation47_spill] sm:$0xff] %v8825_v35  ;;  %4052 = vperm.xlu1 %6908, %v4009_v29   ;;  %v8843_v29 = vld [vmem:[%s7314_s23 + $0x10] sm:$0xff] }
 0x545   : > { %v8832_v15 = vpop.permute.xlu0 %3608  ;;  %vm4280_vm7 = vcmp.eq.s32.totalorder %v8843_v29, 7 }
 0x546   : > { %12456 = vst [vmem:[#allocation50_spill] sm:$0xff] %v8832_v15  ;;  %4204 = vperm.xlu0 %6909, %v4159_v32   ;;  %v4146_v15 = vsel %vm4130_vm6, 1, %v12407_v63  ;;  %v8850_v32 = vld [vmem:[%s7314_s23 + $0x18] sm:$0xff]  ;;  %vm4427_vm6 = vcmp.eq.s32.totalorder %v8829_v11, 8 }
 0x547   : > { %v8839_v9 = vpop.permute.xlu1 %3462  ;;  %vm4132_vm8 = vcmp.eq.s32.totalorder %v8850_v32, 6 }
 0x548   : > { %12457 = vst [vmem:[#allocation49_spill] sm:$0xff] %v8839_v9  ;;  %4058 = vperm.xlu1 %6908, %v4011_v8   ;;  %v4296_v9 = vsel %vm4280_vm7, 1, %v12407_v63  ;;  %v8857_v8 = vld [vmem:[%s7314_s23 + $0x20] sm:$0xff]  ;;  %v4148_v21 = vsel %vm4132_vm8, 1, %v12407_v63  ;;  %vm4279_vm7 = vcmp.eq.s32.totalorder %v8836_v26, 7  ;;  %vm4429_vm8 = vcmp.eq.s32.totalorder %v8843_v29, 8 }
 0x549   : > { %v8846_v19 = vpop.permute.xlu0 %3715  ;;  %vm4282_vm9 = vcmp.eq.s32.totalorder %v8857_v8, 7 }
 0x54a   : > { %12458 = vst [vmem:[#allocation52_spill] sm:$0xff] %v8846_v19  ;;  %4311 = vperm.xlu0 %6909, %v4294_v55   ;;  %v8864_v55 = vld [vmem:[%s7314_s23 + $0x28] sm:$0xff]  ;;  %v4298_v24 = vsel %vm4282_vm9, 1, %v12407_v63  ;;  %vm4281_vm9 = vcmp.eq.s32.totalorder %v8850_v32, 7 }
 0x54b   : > { %v8853_v4 = vpop.permute.xlu1 %3569  ;;  %vm4134_vm10 = vcmp.eq.s32.totalorder %v8864_v55, 6 }
 0x54c   : > { %12459 = vst [vmem:[#allocation51_spill] sm:$0xff] %v8853_v4  ;;  %4165 = vperm.xlu1 %6908, %v4146_v15   ;;  %v8871_v15 = vld [vmem:[%s7314_s23 + $0x30] sm:$0xff]  ;;  %v4150_v62 = vsel %vm4134_vm10, 1, %v12407_v63  ;;  %vm4431_vm10 = vcmp.eq.s32.totalorder %v8857_v8, 8 }
 0x54d   : > { %v8860_v35 = vpop.permute.xlu0 %3721  ;;  %vm4284_vm11 = vcmp.eq.s32.totalorder %v8871_v15, 7 }
 0x54e   : > { %12460 = vst [vmem:[#allocation6_spill] sm:$0xff] %v8860_v35  ;;  %4317 = vperm.xlu0 %6909, %v4296_v9   ;;  %v8878_v9 = vld [vmem:[%s7314_s23 + $0x38] sm:$0xff]  ;;  %v4300_v46 = vsel %vm4284_vm11, 1, %v12407_v63  ;;  %vm4283_vm11 = vcmp.eq.s32.totalorder %v8864_v55, 7 }
 0x54f   : > { %v8867_v28 = vpop.permute.xlu1 %3575  ;;  %vm4136_vm12 = vcmp.eq.s32.totalorder %v8878_v9, 6 }
 0x550   : > { %12461 = vst [vmem:[#allocation5_spill] sm:$0xff] %v8867_v28  ;;  %4171 = vperm.xlu1 %6908, %v4148_v21   ;;  %v8885_v21 = vld [vmem:[%s7314_s23 + $0x40] sm:$0xff]  ;;  %v4152_v3 = vsel %vm4136_vm12, 1, %v12407_v63  ;;  %vm4433_vm12 = vcmp.eq.s32.totalorder %v8871_v15, 8 }
 0x551   : > { %v8874_v50 = vpop.permute.xlu0 %3727  ;;  %vm4286_vm13 = vcmp.eq.s32.totalorder %v8885_v21, 7 }
 0x552   : > { %12462 = vst [vmem:[#allocation8_spill] sm:$0xff] %v8874_v50  ;;  %4323 = vperm.xlu0 %6909, %v4298_v24   ;;  %v8892_v24 = vld [vmem:[%s7314_s23 + $0x48] sm:$0xff]  ;;  %v4302_v30 = vsel %vm4286_vm13, 1, %v12407_v63  ;;  %vm4285_vm13 = vcmp.eq.s32.totalorder %v8878_v9, 7 }
 0x553   : > { %v8881_v16 = vpop.permute.xlu1 %3581  ;;  %vm4138_vm14 = vcmp.eq.s32.totalorder %v8892_v24, 6 }
 0x554   : > { %12463 = vst [vmem:[#allocation7_spill] sm:$0xff] %v8881_v16  ;;  %4177 = vperm.xlu1 %6908, %v4150_v62   ;;  %v4154_v7 = vsel %vm4138_vm14, 1, %v12407_v63  ;;  %vm4435_vm14 = vcmp.eq.s32.totalorder %v8885_v21, 8 }
 0x555   : > { %v8888_v0 = vpop.permute.xlu0 %3733 }
 0x556   : > { %12464 = vst [vmem:[#allocation10_spill] sm:$0xff] %v8888_v0  ;;  %4329 = vperm.xlu0 %6909, %v4300_v46   ;;  %v8903_v0 = vld [vmem:[%s7314_s23 + $0x58] sm:$0xff] }
 0x557   : > { %v8895_v38 = vpop.permute.xlu1 %3587  ;;  %vm4140_vm0 = vcmp.eq.s32.totalorder %v8903_v0, 6  ;;  %vm4289_vm1 = vcmp.eq.s32.totalorder %v8903_v0, 7 }
 0x558   : > { %12465 = vst [vmem:[#allocation9_spill] sm:$0xff] %v8895_v38  ;;  %4183 = vperm.xlu1 %6908, %v4152_v3   ;;  %v4304_v38 = vsel %vm4288_vm15, 1, %v12407_v63  ;;  %v4156_v1 = vsel %vm4140_vm0, 1, %v12407_v63  ;;  %vm4287_vm15 = vcmp.eq.s32.totalorder %v8892_v24, 7  ;;  %vm4437_vm0 = vcmp.eq.s32.totalorder %v8796_v43, 8 }
 0x559   : > { %v8899_v62 = vpop.permute.xlu0 %3739 }
 0x55a   : > { %12466 = vst [vmem:[#allocation12_spill] sm:$0xff] %v8899_v62  ;;  %4335 = vperm.xlu0 %6909, %v4302_v30   ;;  %v8914_v62 = vld [vmem:[%s7314_s23 + $0x68] sm:$0xff] }
 0x55b   : > { %v8906_v46 = vpop.permute.xlu1 %3593  ;;  %vm4142_vm2 = vcmp.eq.s32.totalorder %v8914_v62, 6  ;;  %vm4291_vm4 = vcmp.eq.s32.totalorder %v8914_v62, 7 }
 0x55c   : > { %12467 = vst [vmem:[#allocation11_spill] sm:$0xff] %v8906_v46  ;;  %4189 = vperm.xlu1 %6908, %v4154_v7   ;;  %v4158_v7 = vsel %vm4142_vm2, 1, %v12407_v63  ;;  %vm4439_vm2 = vcmp.eq.s32.totalorder %v8807_v47, 8 }
 0x55d   : > { %v8910_v3 = vpop.permute.xlu0 %3745 }
 0x55e   : > { %12468 = vst [vmem:[#allocation14_spill] sm:$0xff] %v8910_v3  ;;  %4341 = vperm.xlu0 %6909, %v4304_v38   ;;  %v8925_v3 = vld [vmem:[%s7314_s23 + $0x78] sm:$0xff] }
 0x55f   : > { %v8917_v30 = vpop.permute.xlu1 %3599  ;;  %vm4144_vm5 = vcmp.eq.s32.totalorder %v8925_v3, 6 }
 0x560   : > { %12469 = vst [vmem:[#allocation13_spill] sm:$0xff] %v8917_v30  ;;  %4195 = vperm.xlu1 %6908, %v4156_v1   ;;  %v4160_v1 = vsel %vm4144_vm5, 1, %v12407_v63  ;;  %vm4441_vm5 = vcmp.eq.s32.totalorder %v8818_v36, 8 }
 0x561   : > { %v8921_v46 = vpop.permute.xlu0 %3751 }
 0x562   : > { %12470 = vst [vmem:[#allocation16_spill] sm:$0xff] %v8921_v46  ;;  %4347 = vperm.xlu0 %6909, %v4306_v18   ;;  %v4443_v18 = vsel %vm4427_vm6, 1, %v12407_v63  ;;  %vm4293_vm6 = vcmp.eq.s32.totalorder %v8925_v3, 7 }
 0x563   : > { %v8928_v38 = vpop.permute.xlu1 %3605 }
 0x564   : > { %12471 = vst [vmem:[#allocation15_spill] sm:$0xff] %v8928_v38  ;;  %4201 = vperm.xlu1 %6908, %v4158_v7   ;;  %v4295_v7 = vsel %vm4279_vm7, 1, %v12407_v63  ;;  %vm4576_vm7 = vcmp.eq.s32.totalorder %v8829_v11, 9 }
 0x565   : > { %v8932_v30 = vpop.permute.xlu0 %3757 }
 0x566   : > { %12472 = vst [vmem:[#allocation18_spill] sm:$0xff] %v8932_v30  ;;  %4353 = vperm.xlu0 %6909, %v4308_v61   ;;  %v4445_v61 = vsel %vm4429_vm8, 1, %v12407_v63  ;;  %vm4428_vm8 = vcmp.eq.s32.totalorder %v8836_v26, 8 }
 0x567   : > { %v8936_v46 = vpop.permute.xlu1 %3611 }
 0x568   : > { %12473 = vst [vmem:[#allocation17_spill] sm:$0xff] %v8936_v46  ;;  %4207 = vperm.xlu1 %6908, %v4160_v1   ;;  %v4297_v1 = vsel %vm4281_vm9, 1, %v12407_v63  ;;  %vm4430_vm9 = vcmp.eq.s32.totalorder %v8850_v32, 8 }
 0x569   : > { %v8940_v38 = vpop.permute.xlu0 %3864 }
 0x56a   : > { %12474 = vst [vmem:[#allocation20_spill] sm:$0xff] %v8940_v38  ;;  %4460 = vperm.xlu0 %6909, %v4443_v18   ;;  %v4447_v18 = vsel %vm4431_vm10, 1, %v12407_v63  ;;  %vm4432_vm10 = vcmp.eq.s32.totalorder %v8864_v55, 8 }
 0x56b   : > { %v8944_v30 = vpop.permute.xlu1 %3718 }
 0x56c   : > { %12475 = vst [vmem:[#allocation19_spill] sm:$0xff] %v8944_v30  ;;  %4314 = vperm.xlu1 %6908, %v4295_v7   ;;  %v4299_v7 = vsel %vm4283_vm11, 1, %v12407_v63  ;;  %vm4434_vm11 = vcmp.eq.s32.totalorder %v8878_v9, 8 }
 0x56d   : > { %v8948_v46 = vpop.permute.xlu0 %3870 }
 0x56e   : > { %12476 = vst [vmem:[#allocation53_spill] sm:$0xff] %v8948_v46  ;;  %4466 = vperm.xlu0 %6909, %v4445_v61   ;;  %v4449_v61 = vsel %vm4433_vm12, 1, %v12407_v63  ;;  %vm4436_vm12 = vcmp.eq.s32.totalorder %v8892_v24, 8 }
 0x56f   : > { %v8952_v38 = vpop.permute.xlu1 %3724 }
 0x570   : > { %12477 = vst [vmem:[#allocation55_spill] sm:$0xff] %v8952_v38  ;;  %4320 = vperm.xlu1 %6908, %v4297_v1   ;;  %v4301_v1 = vsel %vm4285_vm13, 1, %v12407_v63  ;;  %vm4438_vm13 = vcmp.eq.s32.totalorder %v8903_v0, 8 }
 0x571   : > { %v8956_v16 = vpop.permute.xlu0 %3876 }
 0x572   : > { %12478 = vst [vmem:[#allocation56_spill] sm:$0xff] %v8956_v16  ;;  %4472 = vperm.xlu0 %6909, %v4447_v18   ;;  %v4451_v18 = vsel %vm4435_vm14, 1, %v12407_v63  ;;  %vm4440_vm14 = vcmp.eq.s32.totalorder %v8914_v62, 8 }
 0x573   : > { %v8960_v46 = vpop.permute.xlu1 %3730 }
 0x574   : > { %12479 = vst [vmem:[#allocation65_spill] sm:$0xff] %v8960_v46  ;;  %4326 = vperm.xlu1 %6908, %v4299_v7   ;;  %v4303_v7 = vsel %vm4287_vm15, 1, %v12407_v63  ;;  %vm4442_vm15 = vcmp.eq.s32.totalorder %v8925_v3, 8 }
 0x575   : > { %v8964_v50 = vpop.permute.xlu0 %3882 }
 0x576   : > { %12480 = vst [vmem:[#allocation66_spill] sm:$0xff] %v8964_v50  ;;  %4478 = vperm.xlu0 %6909, %v4449_v61   ;;  %v4453_v61 = vsel %vm4437_vm0, 1, %v12407_v63  ;;  %vm4578_vm0 = vcmp.eq.s32.totalorder %v8843_v29, 9 }
 0x577   : > { %v8968_v16 = vpop.permute.xlu1 %3736 }
 0x578   : > { %12481 = vst [vmem:[#allocation67_spill] sm:$0xff] %v8968_v16  ;;  %4332 = vperm.xlu1 %6908, %v4301_v1   ;;  %v4305_v1 = vsel %vm4289_vm1, 1, %v12407_v63  ;;  %vm4577_vm1 = vcmp.eq.s32.totalorder %v8836_v26, 9 }
 0x579   : > { %v8972_v46 = vpop.permute.xlu0 %3888 }
 0x57a   : > { %12482 = vst [vmem:[#allocation68_spill] sm:$0xff] %v8972_v46  ;;  %4484 = vperm.xlu0 %6909, %v4451_v18   ;;  %v4455_v18 = vsel %vm4439_vm2, 1, %v12407_v63  ;;  %vm4580_vm2 = vcmp.eq.s32.totalorder %v8857_v8, 9 }
 0x57b   : > { %v8976_v50 = vpop.permute.xlu1 %3742 }
 0x57c   : > { %12483 = vst [vmem:[#allocation69_spill] sm:$0xff] %v8976_v50  ;;  %4338 = vperm.xlu1 %6908, %v4303_v7   ;;  %v4307_v7 = vsel %vm4291_vm4, 1, %v12407_v63  ;;  %vm4579_vm4 = vcmp.eq.s32.totalorder %v8850_v32, 9 }
 0x57d   : > { %v8980_v16 = vpop.permute.xlu0 %3894 }
 0x57e   : > { %12484 = vst [vmem:[#allocation70_spill] sm:$0xff] %v8980_v16  ;;  %4490 = vperm.xlu0 %6909, %v4453_v61   ;;  %v4457_v61 = vsel %vm4441_vm5, 1, %v12407_v63  ;;  %vm4582_vm5 = vcmp.eq.s32.totalorder %v8871_v15, 9 }
 0x57f   : > { %v8984_v46 = vpop.permute.xlu1 %3748 }
 0x580   : > { %12485 = vst [vmem:[#allocation71_spill] sm:$0xff] %v8984_v46  ;;  %4344 = vperm.xlu1 %6908, %v4305_v1   ;;  %v4309_v1 = vsel %vm4293_vm6, 1, %v12407_v63  ;;  %vm4581_vm6 = vcmp.eq.s32.totalorder %v8864_v55, 9 }
 0x581   : > { %v8988_v50 = vpop.permute.xlu0 %3900 }
 0x582   : > { %12486 = vst [vmem:[#allocation72_spill] sm:$0xff] %v8988_v50  ;;  %4496 = vperm.xlu0 %6909, %v4455_v18   ;;  %v4592_v18 = vsel %vm4576_vm7, 1, %v12407_v63  ;;  %vm4584_vm7 = vcmp.eq.s32.totalorder %v8885_v21, 9 }
 0x583   : > { %v8992_v16 = vpop.permute.xlu1 %3754 }
 0x584   : > { %12487 = vst [vmem:[#allocation73_spill] sm:$0xff] %v8992_v16  ;;  %4350 = vperm.xlu1 %6908, %v4307_v7   ;;  %v4444_v16 = vsel %vm4428_vm8, 1, %v12407_v63  ;;  %vm4583_vm8 = vcmp.eq.s32.totalorder %v8878_v9, 9 }
 0x585   : > { %v8996_v46 = vpop.permute.xlu0 %3906 }
 0x586   : > { %12488 = vst [vmem:[#allocation74_spill] sm:$0xff] %v8996_v46  ;;  %4502 = vperm.xlu0 %6909, %v4457_v61   ;;  %v4446_v61 = vsel %vm4430_vm9, 1, %v12407_v63  ;;  %vm4586_vm9 = vcmp.eq.s32.totalorder %v8796_v43, 9 }
 0x587   : > { %v9000_v50 = vpop.permute.xlu1 %3760 }
 0x588   : > { %12489 = vst [vmem:[#allocation75_spill] sm:$0xff] %v9000_v50  ;;  %4356 = vperm.xlu1 %6908, %v4309_v1  }
 0x589   : > { %v9003_v48 = vpop.permute.xlu0 %4013 }
 0x58a   : > { %12490 = vst [vmem:[#allocation76_spill] sm:$0xff] %v9003_v48  ;;  %4609 = vperm.xlu0 %6909, %v4592_v18   ;;  %v4448_v48 = vsel %vm4432_vm10, 1, %v12407_v63  ;;  %vm4585_vm10 = vcmp.eq.s32.totalorder %v8892_v24, 9 }
 0x58b   : > { %v9007_v7 = vpop.permute.xlu1 %3867 }
 0x58c   : > { %12491 = vst [vmem:[#allocation77_spill] sm:$0xff] %v9007_v7  ;;  %4463 = vperm.xlu1 %6908, %v4444_v16   ;;  %v4450_v16 = vsel %vm4434_vm11, 1, %v12407_v63  ;;  %vm4588_vm11 = vcmp.eq.s32.totalorder %v8807_v47, 9 }
 0x58d   : > { %v9009_v46 = vpop.permute.xlu0 %4019  ;;  %v4604_v43 = vsel %vm4588_vm11, 1, %v12407_v63  ;;  %vm4738_vm11 = vcmp.eq.s32.totalorder %v8914_v62, 10 }
 0x58e   : > { %12492 = vst [vmem:[#allocation78_spill] sm:$0xff] %v9009_v46 }
 0x58f   : > { %v9013_v50 = vpop.permute.xlu1 %3873 }
 0x590   : > { %12493 = vst [vmem:[#allocation79_spill] sm:$0xff] %v9013_v50  ;;  %4469 = vperm.xlu1 %6908, %v4446_v61   ;;  %v4452_v61 = vsel %vm4436_vm12, 1, %v12407_v63  ;;  %vm4587_vm12 = vcmp.eq.s32.totalorder %v8903_v0, 9 }
 0x591   : > { %v9015_v1 = vpop.permute.xlu0 %4025 }
 0x592   : > { %12494 = vst [vmem:[#allocation80_spill] sm:$0xff] %v9015_v1 }
 0x593   : > { %v9019_v18 = vpop.permute.xlu1 %3879 }
 0x594   : > { %12495 = vst [vmem:[#allocation81_spill] sm:$0xff] %v9019_v18  ;;  %4475 = vperm.xlu1 %6908, %v4448_v48   ;;  %v4454_v48 = vsel %vm4438_vm13, 1, %v12407_v63  ;;  %vm4590_vm13 = vcmp.eq.s32.totalorder %v8818_v36, 9 }
 0x595   : > { %v9021_v7 = vpop.permute.xlu0 %4031  ;;  %v4606_v47 = vsel %vm4590_vm13, 1, %v12407_v63 }
 0x596   : > { %12496 = vst [vmem:[#allocation82_spill] sm:$0xff] %v9021_v7 }
 0x597   : > { %v9025_v46 = vpop.permute.xlu1 %3885 }
 0x598   : > { %12497 = vst [vmem:[#allocation83_spill] sm:$0xff] %v9025_v46  ;;  %4481 = vperm.xlu1 %6908, %v4450_v16   ;;  %v4456_v16 = vsel %vm4440_vm14, 1, %v12407_v63  ;;  %vm4589_vm14 = vcmp.eq.s32.totalorder %v8914_v62, 9 }
 0x599   : > { %v9027_v50 = vpop.permute.xlu0 %4037 }
 0x59a   : > { %12498 = vst [vmem:[#allocation84_spill] sm:$0xff] %v9027_v50 }
 0x59b   : > { %v9031_v1 = vpop.permute.xlu1 %3891 }
 0x59c   : > { %12499 = vst [vmem:[#allocation85_spill] sm:$0xff] %v9031_v1  ;;  %4487 = vperm.xlu1 %6908, %v4452_v61   ;;  %v4458_v61 = vsel %vm4442_vm15, 1, %v12407_v63  ;;  %vm4725_vm15 = vcmp.eq.s32.totalorder %v8829_v11, 10 }
 0x59d   : > { %v9033_v18 = vpop.permute.xlu0 %4043  ;;  %v4741_v36 = vsel %vm4725_vm15, 1, %v12407_v63 }
 0x59e   : > { %12500 = vst [vmem:[#allocation86_spill] sm:$0xff] %v9033_v18 }
 0x59f   : > { %v9037_v7 = vpop.permute.xlu1 %3897 }
 0x5a0   : > { %12501 = vst [vmem:[#allocation87_spill] sm:$0xff] %v9037_v7  ;;  %4493 = vperm.xlu1 %6908, %v4454_v48  }
 0x5a1   : > { %v9039_v46 = vpop.permute.xlu0 %4049 }
 0x5a2   : > { %12502 = vst [vmem:[#allocation88_spill] sm:$0xff] %v9039_v46 }
 0x5a3   : > { %v9043_v50 = vpop.permute.xlu1 %3903 }
 0x5a4   : > { %12503 = vst [vmem:[#allocation89_spill] sm:$0xff] %v9043_v50  ;;  %4499 = vperm.xlu1 %6908, %v4456_v16  }
 0x5a5   : > { %v9045_v1 = vpop.permute.xlu0 %4055 }
 0x5a6   : > { %12504 = vst [vmem:[#allocation90_spill] sm:$0xff] %v9045_v1 }
 0x5a7   : > { %v9048_v18 = vpop.permute.xlu1 %3909 }
 0x5a8   : > { %12505 = vst [vmem:[#allocation91_spill] sm:$0xff] %v9048_v18  ;;  %4505 = vperm.xlu1 %6908, %v4458_v61  }
 0x5a9   : > { %v9050_v51 = vpop.permute.xlu0 %4162 }
 0x5aa   : > { %12506 = vst [vmem:[#allocation92_spill] sm:$0xff] %v9050_v51 }
 0x5ab   : > { %v9052_v7 = vpop.permute.xlu1 %4016 }
 0x5ac   : > { %12507 = vst [vmem:[#allocation93_spill] sm:$0xff] %v9052_v7 }
 0x5ad   : > { %v9054_v48 = vpop.permute.xlu0 %4168 }
 0x5ae   : > { %12508 = vst [vmem:[#allocation94_spill] sm:$0xff] %v9054_v48 }
 0x5af   : > { %v9056_v46 = vpop.permute.xlu1 %4022 }
 0x5b0   : > { %12509 = vst [vmem:[#allocation95_spill] sm:$0xff] %v9056_v46 }
 0x5b1   : > { %v9058_v54 = vpop.permute.xlu0 %4174 }
 0x5b2   : > { %12510 = vst [vmem:[#allocation96_spill] sm:$0xff] %v9058_v54 }
 0x5b3   : > { %v6250_v22 = vpop.f32.mrb[48].mxu0  ;;  %v9060_v50 = vpop.permute.xlu1 %4028 }
 0x5b4   : > { %12511 = vst [vmem:[#allocation97_spill] sm:$0xff] %v9060_v50  ;;  %v6251_v16 = vpop.f32.mrb[49].mxu0 }
 0x5b5   : > { %v9062_v1 = vadd.f32 %v6251_v16, %v6250_v22  ;;  %v9067_v51 = vpop.permute.xlu0 %4180 }
 0x5b6   : > { %12513 = vst [vmem:[#allocation99_spill] sm:$0xff] %v9067_v51 }
 0x5b7   : > { %v2576_v44 = vadd.f32 1e-16, %v9062_v1  ;;  %v6253_v18 = vpop.f32.mrb[50].mxu0  ;;  %v9065_v61 = vpop.permute.xlu1 %4034 }
 0x5b8   : > { %12512 = vst [vmem:[#allocation98_spill] sm:$0xff] %v9065_v61  ;;  %v6254_v7 = vpop.f32.mrb[51].mxu0 }
 0x5b9   : > { %6974 = vrcp.f32 %v2576_v44  ;;  %v9069_v48 = vadd.f32 %v6254_v7, %v6253_v18  ;;  %v9076_v16 = vpop.permute.xlu0 %4186 }
 0x5ba   : > { %12515 = vst [vmem:[#allocation101_spill] sm:$0xff] %v9076_v16 }
 0x5bb   : > { %v2577_v46 = vadd.f32 1e-16, %v9069_v48  ;;  %v6256_v54 = vpop.f32.mrb[52].mxu0  ;;  %v9072_v38 = vpop.permute.xlu1 %4040 }
 0x5bc   : > { %12514 = vst [vmem:[#allocation100_spill] sm:$0xff] %v9072_v38  ;;  %v6257_v50 = vpop.f32.mrb[53].mxu0 }
 0x5bd   : > { %6976 = vrcp.f32 %v2577_v46  ;;  %v9074_v22 = vadd.f32 %v6257_v50, %v6256_v54  ;;  %v9086_v46 = vpop.permute.xlu0 %4192 }
 0x5be   : > { %12518 = vst [vmem:[#allocation104_spill] sm:$0xff] %v9086_v46 }
 0x5bf   : > { %v2578_v28 = vadd.f32 1e-16, %v9074_v22  ;;  %v6259_v61 = vpop.f32.mrb[54].mxu0  ;;  %v9079_v35 = vpop.permute.xlu1 %4046 }
 0x5c0   : > { %12516 = vst [vmem:[#allocation102_spill] sm:$0xff] %v9079_v35  ;;  %v6260_v51 = vpop.f32.mrb[55].mxu0 }
 0x5c1   : > { %6978 = vrcp.f32 %v2578_v28  ;;  %v9081_v44 = vadd.f32 %v6260_v51, %v6259_v61 }
 0x5c3   : > { %v6975_v7 = vpop.eup %6974  ;;  %v2579_v18 = vadd.f32 1e-16, %v9081_v44  ;;  %v6262_v45 = vpop.f32.mrb[56].mxu0 }
 0x5c4   : > { %v9084_v38 = vpop.permute.xlu1 %4052  ;;  %v6263_v50 = vpop.f32.mrb[57].mxu0  ;;  %2640 = vrot.lane.b32.xlu1 %v6975_v7, %s7201_s25 }
 0x5c5   : > { %12517 = vst [vmem:[#allocation103_spill] sm:$0xff] %v9084_v38  ;;  %6980 = vrcp.f32 %v2579_v18  ;;  %v9089_v54 = vadd.f32 %v6263_v50, %v6262_v45  ;;  %v9097_v38 = vpop.permute.xlu0 %4198 }
 0x5c6   : > { %12520 = vst [vmem:[#allocation106_spill] sm:$0xff] %v9097_v38 }
 0x5c7   : > { %v6977_v16 = vpop.eup %6976  ;;  %v2580_v35 = vadd.f32 1e-16, %v9089_v54  ;;  %v6265_v28 = vpop.f32.mrb[58].mxu0 }
 0x5c8   : > { %v9092_v51 = vpop.permute.xlu1 %4058  ;;  %v6266_v61 = vpop.f32.mrb[59].mxu0  ;;  %2642 = vrot.lane.b32.xlu0 %v6977_v16, %s7201_s25 }
 0x5c9   : > { %12519 = vst [vmem:[#allocation105_spill] sm:$0xff] %v9092_v51  ;;  %6982 = vrcp.f32 %v2580_v35  ;;  %v9095_v14 = vadd.f32 %v6266_v61, %v6265_v28  ;;  %v9108_v61 = vpop.permute.xlu0 %4204 }
 0x5ca   : > { %12523 = vst [vmem:[#allocation109_spill] sm:$0xff] %v9108_v61 }
 0x5cb   : > { %v6979_v46 = vpop.eup %6978  ;;  %v2581_v7 = vadd.f32 1e-16, %v9095_v14  ;;  %v6268_v18 = vpop.f32.mrb[60].mxu0 }
 0x5cc   : > { %v9100_v45 = vpop.permute.xlu1 %4165  ;;  %v6269_v50 = vpop.f32.mrb[61].mxu0  ;;  %2644 = vrot.lane.b32.xlu1 %v6979_v46, %s7201_s25 }
 0x5cd   : > { %12521 = vst [vmem:[#allocation107_spill] sm:$0xff] %v9100_v45  ;;  %6984 = vrcp.f32 %v2581_v7  ;;  %v9103_v10 = vadd.f32 %v6269_v50, %v6268_v18 }
 0x5cf   : > { %v6981_v51 = vpop.eup %6980  ;;  %v2582_v16 = vadd.f32 1e-16, %v9103_v10  ;;  %v6271_v35 = vpop.f32.mrb[62].mxu0 }
 0x5d0   : > { %v9106_v28 = vpop.permute.xlu1 %4171  ;;  %v6272_v38 = vpop.f32.mrb[63].mxu0  ;;  %2646 = vrot.lane.b32.xlu0 %v6981_v51, %s7201_s25 }
 0x5d1   : > { %12522 = vst [vmem:[#allocation108_spill] sm:$0xff] %v9106_v28  ;;  %6986 = vrcp.f32 %v2582_v16  ;;  %v9111_v60 = vadd.f32 %v6272_v38, %v6271_v35  ;;  %v9119_v28 = vpop.permute.xlu0 %4311 }
 0x5d2   : > { %12525 = vst [vmem:[#allocation111_spill] sm:$0xff] %v9119_v28 }
 0x5d3   : > { %v6983_v45 = vpop.eup %6982  ;;  %v2583_v46 = vadd.f32 1e-16, %v9111_v60  ;;  %v6274_v7 = vpop.f32.mrb[64].mxu0 }
 0x5d4   : > { %v9114_v18 = vpop.permute.xlu1 %4177  ;;  %v6275_v50 = vpop.f32.mrb[65].mxu0  ;;  %2648 = vrot.lane.b32.xlu1 %v6983_v45, %s7201_s25 }
 0x5d5   : > { %12524 = vst [vmem:[#allocation110_spill] sm:$0xff] %v9114_v18  ;;  %6988 = vrcp.f32 %v2583_v46  ;;  %v9117_v30 = vadd.f32 %v6275_v50, %v6274_v7  ;;  %v9130_v50 = vpop.permute.xlu0 %4317 }
 0x5d6   : > { %12528 = vst [vmem:[#allocation114_spill] sm:$0xff] %v9130_v50 }
 0x5d7   : > { %v6985_v61 = vpop.eup %6984  ;;  %v2584_v51 = vadd.f32 1e-16, %v9117_v30  ;;  %v6277_v16 = vpop.f32.mrb[66].mxu0 }
 0x5d8   : > { %v9122_v38 = vpop.permute.xlu1 %4183  ;;  %v6278_v35 = vpop.f32.mrb[67].mxu0  ;;  %2650 = vrot.lane.b32.xlu0 %v6985_v61, %s7201_s25 }
 0x5d9   : > { %12526 = vst [vmem:[#allocation112_spill] sm:$0xff] %v9122_v38  ;;  %6990 = vrcp.f32 %v2584_v51  ;;  %v9125_v2 = vadd.f32 %v6278_v35, %v6277_v16 }
 0x5db   : > { %v6987_v18 = vpop.eup %6986  ;;  %v2585_v45 = vadd.f32 1e-16, %v9125_v2  ;;  %v6280_v46 = vpop.f32.mrb[68].mxu0 }
 0x5dc   : > { %v9128_v7 = vpop.permute.xlu1 %4189  ;;  %v6281_v28 = vpop.f32.mrb[69].mxu0  ;;  %2652 = vrot.lane.b32.xlu1 %v6987_v18, %s7201_s25 }
 0x5dd   : > { %12527 = vst [vmem:[#allocation113_spill] sm:$0xff] %v9128_v7  ;;  %6992 = vrcp.f32 %v2585_v45  ;;  %v9133_v42 = vadd.f32 %v6281_v28, %v6280_v46  ;;  %v9141_v7 = vpop.permute.xlu0 %4323 }
 0x5de   : > { %12530 = vst [vmem:[#allocation116_spill] sm:$0xff] %v9141_v7 }
 0x5df   : > { %v6989_v38 = vpop.eup %6988  ;;  %v2586_v61 = vadd.f32 1e-16, %v9133_v42  ;;  %v6283_v51 = vpop.f32.mrb[70].mxu0 }
 0x5e0   : > { %v9136_v16 = vpop.permute.xlu1 %4195  ;;  %v6284_v35 = vpop.f32.mrb[71].mxu0  ;;  %2654 = vrot.lane.b32.xlu0 %v6989_v38, %s7201_s25 }
 0x5e1   : > { %12529 = vst [vmem:[#allocation115_spill] sm:$0xff] %v9136_v16  ;;  %6994 = vrcp.f32 %v2586_v61  ;;  %v9139_v56 = vadd.f32 %v6284_v35, %v6283_v51  ;;  %v9152_v35 = vpop.permute.xlu0 %4329 }
 0x5e2   : > { %12533 = vst [vmem:[#allocation119_spill] sm:$0xff] %v9152_v35 }
 0x5e3   : > { %v6991_v50 = vpop.eup %6990  ;;  %v2587_v18 = vadd.f32 1e-16, %v9139_v56  ;;  %v6286_v45 = vpop.f32.mrb[72].mxu0 }
 0x5e4   : > { %v9144_v28 = vpop.permute.xlu1 %4201  ;;  %v6287_v46 = vpop.f32.mrb[73].mxu0  ;;  %2656 = vrot.lane.b32.xlu1 %v6991_v50, %s7201_s25 }
 0x5e5   : > { %12531 = vst [vmem:[#allocation117_spill] sm:$0xff] %v9144_v28  ;;  %6996 = vrcp.f32 %v2587_v18  ;;  %v9147_v4 = vadd.f32 %v6287_v46, %v6286_v45 }
 0x5e7   : > { %v6993_v16 = vpop.eup %6992  ;;  %v2588_v38 = vadd.f32 1e-16, %v9147_v4  ;;  %v6289_v61 = vpop.f32.mrb[74].mxu0 }
 0x5e8   : > { %v9150_v51 = vpop.permute.xlu1 %4207  ;;  %v6290_v7 = vpop.f32.mrb[75].mxu0  ;;  %2658 = vrot.lane.b32.xlu0 %v6993_v16, %s7201_s25 }
 0x5e9   : > { %12532 = vst [vmem:[#allocation118_spill] sm:$0xff] %v9150_v51  ;;  %6998 = vrcp.f32 %v2588_v38  ;;  %v9155_v19 = vadd.f32 %v6290_v7, %v6289_v61  ;;  %v9163_v51 = vpop.permute.xlu0 %4335 }
 0x5ea   : > { %12535 = vst [vmem:[#allocation121_spill] sm:$0xff] %v9163_v51 }
 0x5eb   : > { %v6995_v28 = vpop.eup %6994  ;;  %v2589_v50 = vadd.f32 1e-16, %v9155_v19  ;;  %v6292_v18 = vpop.f32.mrb[76].mxu0 }
 0x5ec   : > { %v9158_v45 = vpop.permute.xlu1 %4314  ;;  %v6293_v46 = vpop.f32.mrb[77].mxu0  ;;  %2660 = vrot.lane.b32.xlu1 %v6995_v28, %s7201_s25 }
 0x5ed   : > { %12534 = vst [vmem:[#allocation120_spill] sm:$0xff] %v9158_v45  ;;  %7000 = vrcp.f32 %v2589_v50  ;;  %v9161_v6 = vadd.f32 %v6293_v46, %v6292_v18  ;;  %v9174_v18 = vpop.permute.xlu0 %4341 }
 0x5ee   : > { %12538 = vst [vmem:[#allocation124_spill] sm:$0xff] %v9174_v18 }
 0x5ef   : > { %v6997_v35 = vpop.eup %6996  ;;  %v2590_v16 = vadd.f32 1e-16, %v9161_v6  ;;  %v6295_v38 = vpop.f32.mrb[78].mxu0 }
 0x5f0   : > { %v9166_v7 = vpop.permute.xlu1 %4320  ;;  %v6296_v61 = vpop.f32.mrb[79].mxu0  ;;  %2662 = vrot.lane.b32.xlu0 %v6997_v35, %s7201_s25  ;;  %v4594_v35 = vsel %vm4578_vm0, 1, %v12407_v63  ;;  %vm4591_vm0 = vcmp.eq.s32.totalorder %v8925_v3, 9 }
 0x5f1   : > { %12536 = vst [vmem:[#allocation122_spill] sm:$0xff] %v9166_v7  ;;  %7002 = vrcp.f32 %v2590_v16  ;;  %v9169_v34 = vadd.f32 %v6296_v61, %v6295_v38  ;;  %v9182_v16 = vpop.permute.xlu0 %4347 }
 0x5f2   : > { %12540 = vst [vmem:[#allocation126_spill] sm:$0xff] %v9182_v16  ;;  %v4596_v16 = vsel %vm4580_vm2, 1, %v12407_v63  ;;  %vm4726_vm2 = vcmp.eq.s32.totalorder %v8836_v26, 10 }
 0x5f3   : > { %v6999_v45 = vpop.eup %6998  ;;  %v2591_v28 = vadd.f32 1e-16, %v9169_v34 }
 0x5f4   : > { %v9172_v50 = vpop.permute.xlu1 %4326  ;;  %2664 = vrot.lane.b32.xlu1 %v6999_v45, %s7201_s25  ;;  %v4593_v45 = vsel %vm4577_vm1, 1, %v12407_v63  ;;  %vm4727_vm1 = vcmp.eq.s32.totalorder %v8843_v29, 10 }
 0x5f5   : > { %12537 = vst [vmem:[#allocation123_spill] sm:$0xff] %v9172_v50  ;;  %7004 = vrcp.f32 %v2591_v28  ;;  %v9193_v18 = vpop.permute.xlu0 %4353 }
 0x5f6   : > { %12543 = vst [vmem:[#allocation129_spill] sm:$0xff] %v9193_v18 }
 0x5f7   : > { %v7001_v46 = vpop.eup %7000 }
 0x5f8   : > { %v9178_v51 = vpop.permute.xlu1 %4332  ;;  %2666 = vrot.lane.b32.xlu0 %v7001_v46, %s7201_s25 }
 0x5f9   : > { %12539 = vst [vmem:[#allocation125_spill] sm:$0xff] %v9178_v51  ;;  %v9204_v18 = vpop.permute.xlu0 %4460 }
 0x5fa   : > { %12545 = vst [vmem:[#allocation131_spill] sm:$0xff] %v9204_v18  ;;  %v4602_v18 = vsel %vm4586_vm9, 1, %v12407_v63  ;;  %vm4736_vm9 = vcmp.eq.s32.totalorder %v8903_v0, 10  ;;  %v4754_v0 = vsel %vm4738_vm11, 1, %v12407_v63 }
 0x5fb   : > { %v7003_v38 = vpop.eup %7002 }
 0x5fc   : > { %v9185_v61 = vpop.permute.xlu1 %4338  ;;  %4615 = vperm.xlu0 %6909, %v4594_v35   ;;  %2668 = vrot.lane.b32.xlu1 %v7003_v38, %s7201_s25  ;;  %v4595_v35 = vsel %vm4579_vm4, 1, %v12407_v63  ;;  %vm4728_vm4 = vcmp.eq.s32.totalorder %v8850_v32, 10 }
 0x5fd   : > { %12541 = vst [vmem:[#allocation127_spill] sm:$0xff] %v9185_v61  ;;  %v4598_v61 = vsel %vm4582_vm5, 1, %v12407_v63  ;;  %vm4730_vm5 = vcmp.eq.s32.totalorder %v8864_v55, 10 }
 0x5ff   : > { %v7005_v28 = vpop.eup %7004 }
 0x600   : > { %v9191_v46 = vpop.permute.xlu1 %4344  ;;  %2670 = vrot.lane.b32.xlu0 %v7005_v28, %s7201_s25  ;;  %4612 = vperm.xlu1 %6908, %v4593_v45   ;;  %v4600_v28 = vsel %vm4584_vm7, 1, %v12407_v63  ;;  %vm4734_vm7 = vcmp.eq.s32.totalorder %v8892_v24, 10  ;;  %s7140_s25 = scalar_lea.vmem %s7139_s8, 512 }
 0x601   : > { %12542 = vst [vmem:[#allocation128_spill] sm:$0xff] %v9191_v46  ;;  %v4597_v46 = vsel %vm4581_vm6, 1, %v12407_v63  ;;  %vm4732_vm6 = vcmp.eq.s32.totalorder %v8878_v9, 10  ;;  %v4752_v9 = vsel %vm4736_vm9, 1, %v12407_v63 }
 0x604   : > { %v9200_v38 = vpop.permute.xlu1 %4350  ;;  %4621 = vperm.xlu0 %6909, %v4596_v16   ;;  %4618 = vperm.xlu1 %6908, %v4595_v35   ;;  %v9216_v35 = vpop.permute.xlu0 %4466 }
 0x605   : > { %12544 = vst [vmem:[#allocation130_spill] sm:$0xff] %v9200_v38  ;;  %v4599_v38 = vsel %vm4583_vm8, 1, %v12407_v63  ;;  %12548 = vst [vmem:[#allocation134_spill] sm:$0xff] %v9216_v35  ;;  %vm4729_vm8 = vcmp.eq.s32.totalorder %v8857_v8, 10 }
 0x608   : > { %v9208_v45 = vpop.permute.xlu1 %4356  ;;  %4627 = vperm.xlu0 %6909, %v4598_v61   ;;  %4624 = vperm.xlu1 %6908, %v4597_v46   ;;  %v4603_v46 = vsel %vm4587_vm12, 1, %v12407_v63  ;;  %vm4733_vm12 = vcmp.eq.s32.totalorder %v8885_v21, 10 }
 0x609   : > { %12546 = vst [vmem:[#allocation132_spill] sm:$0xff] %v9208_v45  ;;  %v4601_v45 = vsel %vm4585_vm10, 1, %v12407_v63  ;;  %vm4731_vm10 = vcmp.eq.s32.totalorder %v8871_v15, 10  ;;  %v4749_v15 = vsel %vm4733_vm12, 1, %v12407_v63 }
 0x60a   : > { %v4747_v24 = vsel %vm4731_vm10, 1, %v12407_v63 }
 0x60c   : > { %v9214_v16 = vpop.permute.xlu1 %4463  ;;  %4633 = vperm.xlu0 %6909, %v4600_v28   ;;  %4630 = vperm.xlu1 %6908, %v4599_v38   ;;  %v4605_v28 = vsel %vm4589_vm14, 1, %v12407_v63 }
 0x60d   : > { %12547 = vst [vmem:[#allocation133_spill] sm:$0xff] %v9214_v16  ;;  %v9226_v16 = vpop.permute.xlu0 %4472 }
 0x60e   : > { %12550 = vst [vmem:[#allocation136_spill] sm:$0xff] %v9226_v16 }
 0x610   : > { %v9222_v61 = vpop.permute.xlu1 %4469  ;;  %4639 = vperm.xlu0 %6909, %v4602_v18   ;;  %4636 = vperm.xlu1 %6908, %v4601_v45   ;;  %v4607_v45 = vsel %vm4591_vm0, 1, %v12407_v63 }
 0x611   : > { %12549 = vst [vmem:[#allocation135_spill] sm:$0xff] %v9222_v61  ;;  %v9236_v18 = vpop.permute.xlu0 %4478 }
 0x612   : > { %12552 = vst [vmem:[#allocation138_spill] sm:$0xff] %v9236_v18 }
 0x614   : > { %v9230_v38 = vpop.permute.xlu1 %4475  ;;  %4645 = vperm.xlu0 %6909, %v4604_v43   ;;  %4642 = vperm.xlu1 %6908, %v4603_v46  }
 0x615   : > { %12551 = vst [vmem:[#allocation137_spill] sm:$0xff] %v9230_v38  ;;  %v9242_v43 = vpop.permute.xlu0 %4484 }
 0x616   : > { %12554 = vst [vmem:[#allocation140_spill] sm:$0xff] %v9242_v43 }
 0x618   : > { %4651 = vperm.xlu0 %6909, %v4606_v47   ;;  %4648 = vperm.xlu1 %6908, %v4605_v28   ;;  %v9240_v16 = vpop.permute.xlu1 %4481 }
 0x619   : > { %12553 = vst [vmem:[#allocation139_spill] sm:$0xff] %v9240_v16  ;;  %v9246_v38 = vpop.permute.xlu0 %4490 }
 0x61a   : > { %12556 = vst [vmem:[#allocation142_spill] sm:$0xff] %v9246_v38 }
 0x61c   : > { %4758 = vperm.xlu0 %6909, %v4741_v36   ;;  %4654 = vperm.xlu1 %6908, %v4607_v45   ;;  %v9244_v46 = vpop.permute.xlu1 %4487 }
 0x61d   : > { %12555 = vst [vmem:[#allocation141_spill] sm:$0xff] %v9244_v46  ;;  %v9250_v3 = vpop.permute.xlu0 %4496 }
 0x61e   : > { %12558 = vst [vmem:[#allocation144_spill] sm:$0xff] %v9250_v3 }
 0x620   : > { %v9248_v11 = vpop.permute.xlu1 %4493 }
 0x621   : > { %12557 = vst [vmem:[#allocation143_spill] sm:$0xff] %v9248_v11  ;;  %v9254_v28 = vpop.permute.xlu0 %4502  ;;  %v9265_v11 = vld [vmem:[%s11981_s3 + $0x30] ss:$0 sm:$0xff] }
 0x622   : > { %12560 = vst [vmem:[#allocation146_spill] sm:$0xff] %v9254_v28 }
 0x624   : > { %v9252_v47 = vpop.permute.xlu1 %4499 }
 0x625   : > { %12559 = vst [vmem:[#allocation145_spill] sm:$0xff] %v9252_v47  ;;  %v9258_v61 = vpop.permute.xlu0 %4609 }
 0x626   : > { %12562 = vst [vmem:[#allocation148_spill] sm:$0xff] %v9258_v61 }
 0x628   : > { %v9256_v18 = vpop.permute.xlu1 %4505 }
 0x629   : > { %12561 = vst [vmem:[#allocation147_spill] sm:$0xff] %v9256_v18 }
 0x636   : > { %v2641_v36 = vpop.permute.xlu1 %2640 }
 0x637   : > { %v2688_v45 = vmul.f32 %v9062_v1, %v2641_v36 }
 0x639   : > { %v2752_v16 = vadd.f32 %v8482_v20, %v2688_v45 }
 0x63a   : > { %v2643_v46 = vpop.permute.xlu0 %2642 }
 0x63b   : > { %v9268_v3 = vadd.f32 %v9265_v11, %v2752_v16  ;;  %v2689_v47 = vmul.f32 %v9069_v48, %v2643_v46 }
 0x63d   : > { %v2753_v18 = vadd.f32 %v8490_v59, %v2689_v47  ;;  %2820 = vrot.lane.b32.xlu1 %v9268_v3, %s7204_s15 }
 0x63e   : > { %v2645_v61 = vpop.permute.xlu1 %2644 }
 0x63f   : > { %v9275_v1 = vadd.f32 %v9265_v11, %v2753_v18  ;;  %v2690_v20 = vmul.f32 %v9074_v22, %v2645_v61 }
 0x641   : > { %v2754_v36 = vadd.f32 %v8497_v27, %v2690_v20  ;;  %2822 = vrot.lane.b32.xlu0 %v9275_v1, %s7204_s15  ;;  %vm2789_vm9 = vcmp.ge.f32.partialorder %v9275_v1, 0.0 }
 0x642   : > { %v2647_v16 = vpop.permute.xlu0 %2646 }
 0x643   : > { %v9282_v45 = vadd.f32 %v9265_v11, %v2754_v36  ;;  %v2691_v59 = vmul.f32 %v9081_v44, %v2647_v16 }
 0x645   : > { %v2755_v48 = vadd.f32 %v8502_v33, %v2691_v59  ;;  %2824 = vrot.lane.b32.xlu1 %v9282_v45, %s7204_s15  ;;  %vm2790_vm10 = vcmp.ge.f32.partialorder %v9282_v45, 0.0 }
 0x646   : > { %v2649_v18 = vpop.permute.xlu1 %2648 }
 0x647   : > { %v9289_v46 = vadd.f32 %v9265_v11, %v2755_v48  ;;  %v2692_v27 = vmul.f32 %v9089_v54, %v2649_v18 }
 0x649   : > { %v2756_v22 = vadd.f32 %v8509_v52, %v2692_v27  ;;  %2826 = vrot.lane.b32.xlu0 %v9289_v46, %s7204_s15 }
 0x64a   : > { %v2651_v61 = vpop.permute.xlu0 %2650 }
 0x64b   : > { %v9296_v47 = vadd.f32 %v9265_v11, %v2756_v22  ;;  %v2693_v33 = vmul.f32 %v9095_v14, %v2651_v61 }
 0x64d   : > { %v2757_v44 = vadd.f32 %v8519_v23, %v2693_v33  ;;  %2828 = vrot.lane.b32.xlu1 %v9296_v47, %s7204_s15 }
 0x64e   : > { %v2653_v20 = vpop.permute.xlu1 %2652 }
 0x64f   : > { %v9303_v36 = vadd.f32 %v9265_v11, %v2757_v44  ;;  %v2694_v52 = vmul.f32 %v9103_v10, %v2653_v20 }
 0x651   : > { %v2758_v54 = vadd.f32 %v8523_v40, %v2694_v52  ;;  %2830 = vrot.lane.b32.xlu0 %v9303_v36, %s7204_s15 }
 0x652   : > { %v2655_v16 = vpop.permute.xlu0 %2654 }
 0x653   : > { %v9310_v59 = vadd.f32 %v9265_v11, %v2758_v54  ;;  %v2695_v23 = vmul.f32 %v9111_v60, %v2655_v16 }
 0x655   : > { %v2759_v14 = vadd.f32 %v8538_v13, %v2695_v23  ;;  %2832 = vrot.lane.b32.xlu1 %v9310_v59, %s7204_s15 }
 0x656   : > { %v2657_v48 = vpop.permute.xlu1 %2656 }
 0x657   : > { %v9317_v18 = vadd.f32 %v9265_v11, %v2759_v14  ;;  %v2696_v40 = vmul.f32 %v9117_v30, %v2657_v48 }
 0x659   : > { %v2760_v10 = vadd.f32 %v8550_v5, %v2696_v40  ;;  %2834 = vrot.lane.b32.xlu0 %v9317_v18, %s7204_s15  ;;  %v4746_v40 = vsel %vm4730_vm5, 1, %v12407_v63 }
 0x65a   : > { %v2659_v27 = vpop.permute.xlu0 %2658 }
 0x65b   : > { %v9324_v22 = vadd.f32 %v9265_v11, %v2760_v10  ;;  %v2697_v13 = vmul.f32 %v9125_v2, %v2659_v27 }
 0x65d   : > { %v2761_v60 = vadd.f32 %v8562_v58, %v2697_v13  ;;  %2836 = vrot.lane.b32.xlu1 %v9324_v22, %s7204_s15  ;;  %v4748_v13 = vsel %vm4732_vm6, 1, %v12407_v63 }
 0x65e   : > { %v2661_v61 = vpop.permute.xlu1 %2660 }
 0x65f   : > { %v9331_v33 = vadd.f32 %v9265_v11, %v2761_v60  ;;  %v2698_v5 = vmul.f32 %v9133_v42, %v2661_v61 }
 0x661   : > { %v2762_v30 = vadd.f32 %v8567_v37, %v2698_v5  ;;  %2838 = vrot.lane.b32.xlu0 %v9331_v33, %s7204_s15  ;;  %v9410_v5 = vld [vmem:[%s7314_s23 + $0x50] sm:$0xff] }
 0x662   : > { %v2663_v44 = vpop.permute.xlu0 %2662  ;;  %vm4735_vm13 = vcmp.eq.s32.totalorder %v9410_v5, 10 }
 0x663   : > { %v9338_v20 = vadd.f32 %v9265_v11, %v2762_v30  ;;  %v2699_v58 = vmul.f32 %v9139_v56, %v2663_v44  ;;  %v4751_v21 = vsel %vm4735_vm13, 1, %v12407_v63  ;;  %v9419_v44 = vld [vmem:[%s7314_s23 + $0x60] sm:$0xff] }
 0x664   : > { %vm4737_vm14 = vcmp.eq.s32.totalorder %v9419_v44, 10 }
 0x665   : > { %v2763_v2 = vadd.f32 %v8578_v25, %v2699_v58  ;;  %2840 = vrot.lane.b32.xlu1 %v9338_v20, %s7204_s15 }
 0x666   : > { %v2665_v52 = vpop.permute.xlu1 %2664 }
 0x667   : > { %v9345_v54 = vadd.f32 %v9265_v11, %v2763_v2  ;;  %v2700_v37 = vmul.f32 %v9147_v4, %v2665_v52  ;;  %v4753_v2 = vsel %vm4737_vm14, 1, %v12407_v63  ;;  %v9426_v52 = vld [vmem:[%s7314_s23 + $0x70] sm:$0xff] }
 0x668   : > { %vm4739_vm15 = vcmp.eq.s32.totalorder %v9426_v52, 10 }
 0x669   : > { %v2764_v42 = vadd.f32 %v8586_v57, %v2700_v37  ;;  %2842 = vrot.lane.b32.xlu0 %v9345_v54, %s7204_s15 }
 0x66a   : > { %v2667_v16 = vpop.permute.xlu0 %2666 }
 0x66b   : > { %v9352_v23 = vadd.f32 %v9265_v11, %v2764_v42  ;;  %v2701_v25 = vmul.f32 %v9155_v19, %v2667_v16  ;;  %v4743_v19 = vsel %vm4727_vm1, 1, %v12407_v63  ;;  %v4755_v42 = vsel %vm4739_vm15, 1, %v12407_v63 }
 0x66d   : > { %v2765_v56 = vadd.f32 %v8597_v49, %v2701_v25  ;;  %2844 = vrot.lane.b32.xlu1 %v9352_v23, %s7204_s15 }
 0x66e   : > { %v2669_v14 = vpop.permute.xlu1 %2668 }
 0x66f   : > { %v9359_v48 = vadd.f32 %v9265_v11, %v2765_v56  ;;  %v2702_v57 = vmul.f32 %v9161_v6, %v2669_v14  ;;  %v4742_v6 = vsel %vm4726_vm2, 1, %v12407_v63 }
 0x671   : > { %v2766_v4 = vadd.f32 %v8602_v41, %v2702_v57  ;;  %2846 = vrot.lane.b32.xlu0 %v9359_v48, %s7204_s15  ;;  %v4744_v41 = vsel %vm4728_vm4, 1, %v12407_v63 }
 0x673   : > { %v9368_v49 = vadd.f32 %v9265_v11, %v2766_v4 }
 0x675   : > { %4764 = vperm.xlu0 %6909, %v4743_v19   ;;  %2848 = vrot.lane.b32.xlu1 %v9368_v49, %s7204_s15 }
 0x679   : > { %4761 = vperm.xlu1 %6908, %v4742_v6  }
 0x67b   : > { %v9376_v29 = vpop.permute.xlu0 %4615 }
 0x67c   : > { %12563 = vst [vmem:[#allocation149_spill] sm:$0xff] %v9376_v29  ;;  %v9606_v29 = vld [vmem:[%s7314_s23 + $0x30] sm:$0xff] }
 0x67d   : > { %4767 = vperm.xlu1 %6908, %v4744_v41   ;;  %12594 = vst [vmem:[#allocation180_spill] sm:$0xff] %v9606_v29 }
 0x67f   : > { %v2671_v10 = vpop.permute.xlu0 %2670  ;;  %v9382_v27 = vpop.permute.xlu1 %4612 }
 0x680   : > { %v2703_v26 = vmul.f32 %v9169_v34, %v2671_v10  ;;  %12564 = vst [vmem:[#allocation150_spill] sm:$0xff] %v9382_v27  ;;  %v4750_v34 = vsel %vm4734_vm7, 1, %v12407_v63 }
 0x681   : > { %4773 = vperm.xlu1 %6908, %v4746_v40  }
 0x682   : > { %v2767_v32 = vadd.f32 %v8613_v12, %v2703_v26  ;;  %v4745_v12 = vsel %vm4729_vm8, 1, %v12407_v63  ;;  %vm2788_vm8 = vcmp.ge.f32.partialorder %v9268_v3, 0.0 }
 0x683   : > { %v9394_v55 = vpop.permute.xlu1 %4618  ;;  %v9400_v8 = vpop.permute.xlu0 %4621 }
 0x684   : > { %v9388_v60 = vadd.f32 %v9265_v11, %v2767_v32  ;;  %12566 = vst [vmem:[#allocation152_spill] sm:$0xff] %v9394_v55  ;;  %12567 = vst [vmem:[#allocation153_spill] sm:$0xff] %v9400_v8  ;;  %v9570_v8 = vld [vmem:[%s7314_s23 + $0x38] sm:$0xff] }
 0x685   : > { %4779 = vperm.xlu1 %6908, %v4748_v13   ;;  %12588 = vst [vmem:[#allocation174_spill] sm:$0xff] %v9570_v8  ;;  %vm4881_vm11 = vcmp.eq.s32.totalorder %v9570_v8, 11 }
 0x686   : > { %12565 = vst [vmem:[#allocation151_spill] sm:$0xff] %v9388_v60  ;;  %2850 = vrot.lane.b32.xlu0 %v9388_v60, %s7204_s15 }
 0x687   : > { %v9405_v61 = vpop.permute.xlu1 %4624  ;;  %v9413_v30 = vpop.permute.xlu0 %4627 }
 0x688   : > { %12568 = vst [vmem:[#allocation154_spill] sm:$0xff] %v9405_v61  ;;  %12569 = vst [vmem:[#allocation155_spill] sm:$0xff] %v9413_v30 }
 0x689   : > { %4785 = vperm.xlu1 %6908, %v4750_v34  }
 0x68a   : > { %4770 = vperm.xlu0 %6909, %v4745_v12  }
 0x68b   : > { %v9415_v62 = vpop.permute.xlu1 %4630  ;;  %v9422_v58 = vpop.permute.xlu0 %4633 }
 0x68c   : > { %12570 = vst [vmem:[#allocation156_spill] sm:$0xff] %v9415_v62  ;;  %12571 = vst [vmem:[#allocation157_spill] sm:$0xff] %v9422_v58 }
 0x68d   : > { %4791 = vperm.xlu1 %6908, %v4752_v9  }
 0x68e   : > { %4776 = vperm.xlu0 %6909, %v4747_v24  }
 0x68f   : > { %v9429_v37 = vpop.permute.xlu1 %4636  ;;  %v9432_v16 = vpop.permute.xlu0 %4639 }
 0x690   : > { %12572 = vst [vmem:[#allocation158_spill] sm:$0xff] %v9429_v37  ;;  %12573 = vst [vmem:[#allocation159_spill] sm:$0xff] %v9432_v16 }
 0x691   : > { %4797 = vperm.xlu1 %6908, %v4754_v0  }
 0x692   : > { %4782 = vperm.xlu0 %6909, %v4749_v15  }
 0x693   : > { %v9434_v25 = vpop.permute.xlu1 %4642  ;;  %v9436_v56 = vpop.permute.xlu0 %4645 }
 0x694   : > { %12574 = vst [vmem:[#allocation160_spill] sm:$0xff] %v9434_v25  ;;  %12575 = vst [vmem:[#allocation161_spill] sm:$0xff] %v9436_v56 }
 0x696   : > { %4788 = vperm.xlu0 %6909, %v4751_v21  }
 0x697   : > { %v9438_v14 = vpop.permute.xlu1 %4648  ;;  %v9440_v57 = vpop.permute.xlu0 %4651 }
 0x698   : > { %12576 = vst [vmem:[#allocation162_spill] sm:$0xff] %v9438_v14  ;;  %12577 = vst [vmem:[#allocation163_spill] sm:$0xff] %v9440_v57 }
 0x69a   : > { %4794 = vperm.xlu0 %6909, %v4753_v2  }
 0x69b   : > { %v9442_v4 = vpop.permute.xlu1 %4654  ;;  %v9444_v19 = vpop.permute.xlu0 %4758 }
 0x69c   : > { %12578 = vst [vmem:[#allocation164_spill] sm:$0xff] %v9442_v4 }
 0x69e   : > { %4800 = vperm.xlu0 %6909, %v4755_v42  }
 0x6af   : > { %v2821_v6 = vpop.permute.xlu1 %2820 }
 0x6b0   : > { %v2868_v41 = vmul.f32 %v9265_v11, %v2821_v6 }
 0x6b2   : > { %2900 = vrot.lane.b32.xlu1 %v2868_v41, %s7204_s15 }
 0x6b3   : > { %v2823_v40 = vpop.permute.xlu0 %2822 }
 0x6b4   : > { %v2869_v10 = vmul.f32 %v9265_v11, %v2823_v40 }
 0x6b6   : > { %2902 = vrot.lane.b32.xlu0 %v2869_v10, %s7204_s15 }
 0x6b7   : > { %v2825_v26 = vpop.permute.xlu1 %2824 }
 0x6b8   : > { %v2870_v32 = vmul.f32 %v9265_v11, %v2825_v26 }
 0x6ba   : > { %2904 = vrot.lane.b32.xlu1 %v2870_v32, %s7204_s15 }
 0x6bb   : > { %v2827_v13 = vpop.permute.xlu0 %2826 }
 0x6bc   : > { %v2871_v34 = vmul.f32 %v9265_v11, %v2827_v13 }
 0x6be   : > { %2906 = vrot.lane.b32.xlu0 %v2871_v34, %s7204_s15 }
 0x6bf   : > { %v2829_v12 = vpop.permute.xlu1 %2828 }
 0x6c0   : > { %v2872_v9 = vmul.f32 %v9265_v11, %v2829_v12 }
 0x6c2   : > { %2908 = vrot.lane.b32.xlu1 %v2872_v9, %s7204_s15 }
 0x6c3   : > { %v2831_v24 = vpop.permute.xlu0 %2830 }
 0x6c4   : > { %v2873_v0 = vmul.f32 %v9265_v11, %v2831_v24 }
 0x6c6   : > { %2910 = vrot.lane.b32.xlu0 %v2873_v0, %s7204_s15 }
 0x6c7   : > { %v2833_v15 = vpop.permute.xlu1 %2832 }
 0x6c8   : > { %v2874_v21 = vmul.f32 %v9265_v11, %v2833_v15  ;;  %v9474_v15 = vld [vmem:[%s7314_s23] sm:$0xff] }
 0x6c9   : > { %vm4874_vm0 = vcmp.eq.s32.totalorder %v9474_v15, 11 }
 0x6ca   : > { %2912 = vrot.lane.b32.xlu1 %v2874_v21, %s7204_s15 }
 0x6cb   : > { %v2835_v2 = vpop.permute.xlu0 %2834 }
 0x6cc   : > { %v2875_v42 = vmul.f32 %v9265_v11, %v2835_v2  ;;  %v4890_v2 = vsel %vm4874_vm0, 1, %v12407_v63  ;;  %vm2791_vm0 = vcmp.ge.f32.partialorder %v9289_v46, 0.0 }
 0x6ce   : > { %2914 = vrot.lane.b32.xlu0 %v2875_v42, %s7204_s15 }
 0x6cf   : > { %v2837_v6 = vpop.permute.xlu1 %2836 }
 0x6d0   : > { %v2876_v41 = vmul.f32 %v9265_v11, %v2837_v6  ;;  %v9481_v6 = vld [vmem:[%s7314_s23 + $0x78] sm:$0xff] }
 0x6d1   : > { %vm4740_vm1 = vcmp.eq.s32.totalorder %v9481_v6, 10  ;;  %vm4889_vm15 = vcmp.eq.s32.totalorder %v9481_v6, 11 }
 0x6d2   : > { %2916 = vrot.lane.b32.xlu1 %v2876_v41, %s7204_s15  ;;  %v4756_v41 = vsel %vm4740_vm1, 1, %v12407_v63  ;;  %vm2792_vm1 = vcmp.ge.f32.partialorder %v9296_v47, 0.0  ;;  %v9627_v38 = vsel %vm4889_vm15, 1, %v12407_v63  ;;  %vm5038_vm15 = vcmp.eq.s32.totalorder %v9481_v6, 12 }
 0x6d3   : > { %v2839_v40 = vpop.permute.xlu0 %2838  ;;  %12598 = vst [vmem:[#allocation184_spill] sm:$0xff] %v9627_v38 }
 0x6d4   : > { %v2877_v10 = vmul.f32 %v9265_v11, %v2839_v40  ;;  %v9487_v40 = vld [vmem:[%s7314_s23 + $0x8] sm:$0xff] }
 0x6d5   : > { %12579 = vst [vmem:[#allocation165_spill] sm:$0xff] %v9487_v40  ;;  %vm4875_vm2 = vcmp.eq.s32.totalorder %v9487_v40, 11 }
 0x6d6   : > { %2918 = vrot.lane.b32.xlu0 %v2877_v10, %s7204_s15  ;;  %v4891_v10 = vsel %vm4875_vm2, 1, %v12407_v63  ;;  %vm2793_vm2 = vcmp.ge.f32.partialorder %v9303_v36, 0.0 }
 0x6d7   : > { %v2841_v26 = vpop.permute.xlu1 %2840 }
 0x6d8   : > { %v2878_v32 = vmul.f32 %v9265_v11, %v2841_v26  ;;  %v9492_v26 = vld [vmem:[%s7314_s23 + $0x18] sm:$0xff] }
 0x6d9   : > { %12580 = vst [vmem:[#allocation166_spill] sm:$0xff] %v9492_v26  ;;  %vm4877_vm4 = vcmp.eq.s32.totalorder %v9492_v26, 11 }
 0x6da   : > { %2920 = vrot.lane.b32.xlu1 %v2878_v32, %s7204_s15  ;;  %v4893_v32 = vsel %vm4877_vm4, 1, %v12407_v63  ;;  %vm5024_vm4 = vcmp.eq.s32.totalorder %v9487_v40, 12 }
 0x6db   : > { %v2843_v13 = vpop.permute.xlu0 %2842 }
 0x6dc   : > { %v2879_v34 = vmul.f32 %v9265_v11, %v2843_v13 }
 0x6de   : > { %2922 = vrot.lane.b32.xlu0 %v2879_v34, %s7204_s15  ;;  %v9499_v34 = vld [vmem:[%s7314_s23 + $0x28] sm:$0xff] }
 0x6df   : > { %v2845_v12 = vpop.permute.xlu1 %2844  ;;  %12581 = vst [vmem:[#allocation167_spill] sm:$0xff] %v9499_v34  ;;  %vm4879_vm5 = vcmp.eq.s32.totalorder %v9499_v34, 11 }
 0x6e0   : > { %v2880_v9 = vmul.f32 %v9265_v11, %v2845_v12  ;;  %v4895_v12 = vsel %vm4879_vm5, 1, %v12407_v63  ;;  %vm4880_vm5 = vcmp.eq.s32.totalorder %v9606_v29, 11 }
 0x6e1   : > { %v9651_v43 = vsel %vm4880_vm5, 1, %v12407_v63  ;;  %vm4888_vm5 = vcmp.eq.s32.totalorder %v9426_v52, 11 }
 0x6e2   : > { %2924 = vrot.lane.b32.xlu1 %v2880_v9, %s7204_s15  ;;  %12601 = vst [vmem:[#allocation187_spill] sm:$0xff] %v9651_v43  ;;  %v9714_v38 = vsel %vm4888_vm5, 1, %v12407_v63 }
 0x6e3   : > { %v2847_v24 = vpop.permute.xlu0 %2846  ;;  %12613 = vst [vmem:[#allocation193_spill] sm:$0xff] %v9714_v38 }
 0x6e4   : > { %v2881_v0 = vmul.f32 %v9265_v11, %v2847_v24 }
 0x6e6   : > { %2926 = vrot.lane.b32.xlu0 %v2881_v0, %s7204_s15  ;;  %v9505_v0 = vld [vmem:[%s7314_s23 + $0x10] sm:$0xff] }
 0x6e7   : > { %v2849_v21 = vpop.permute.xlu1 %2848  ;;  %12582 = vst [vmem:[#allocation168_spill] sm:$0xff] %v9505_v0  ;;  %vm4876_vm6 = vcmp.eq.s32.totalorder %v9505_v0, 11 }
 0x6e8   : > { %v2882_v42 = vmul.f32 %v9265_v11, %v2849_v21 }
 0x6ea   : > { %4907 = vperm.xlu0 %6909, %v4890_v2   ;;  %2928 = vrot.lane.b32.xlu1 %v2882_v42, %s7204_s15  ;;  %v4892_v2 = vsel %vm4876_vm6, 1, %v12407_v63  ;;  %v9513_v42 = vld [vmem:[%s7314_s23 + $0x20] sm:$0xff]  ;;  %vm5026_vm6 = vcmp.eq.s32.totalorder %v9492_v26, 12 }
 0x6eb   : > { %12583 = vst [vmem:[#allocation169_spill] sm:$0xff] %v9513_v42  ;;  %vm4878_vm7 = vcmp.eq.s32.totalorder %v9513_v42, 11  ;;  %v9656_v35 = vsel %vm5026_vm6, 1, %v12407_v63 }
 0x6ec   : > { %12602 = vst [vmem:[#allocation188_spill] sm:$0xff] %v9656_v35 }
 0x6ee   : > { %4803 = vperm.xlu1 %6908, %v4756_v41   ;;  %v4894_v41 = vsel %vm4878_vm7, 1, %v12407_v63  ;;  %vm4805_vm7 = vcmp.eq.s32.totalorder %v9444_v19, 1 }
 0x6f2   : > { %4910 = vperm.xlu1 %6908, %v4891_v10  }
 0x6f4   : > { %v9496_v13 = vpop.permute.xlu0 %4764 }
 0x6f6   : > { %4916 = vperm.xlu1 %6908, %v4893_v32  }
 0x6f8   : > { %v2851_v9 = vpop.permute.xlu0 %2850  ;;  %v9509_v21 = vpop.permute.xlu1 %4761 }
 0x6f9   : > { %v2883_v24 = vmul.f32 %v9265_v11, %v2851_v9 }
 0x6fa   : > { %4922 = vperm.xlu1 %6908, %v4895_v12  }
 0x6fb   : > { %2930 = vrot.lane.b32.xlu0 %v2883_v24, %s7204_s15  ;;  %s9544_s15 = scalar_lea.vmem %s11982_s4, %s5797_s11  ;;  %s5791_s11 = sshll.u32 %s255_s9, 4 }
 0x6fc   : > { %v9517_v11 = vpop.permute.xlu1 %4767 }
 0x6ff   : > { %4913 = vperm.xlu0 %6909, %v4892_v2  }
 0x700   : > { %v9519_v10 = vpop.permute.xlu1 %4773 }
 0x703   : > { %4919 = vperm.xlu0 %6909, %v4894_v41  }
 0x704   : > { %v9525_v9 = vpop.permute.xlu1 %4779 }
 0x708   : > { %v9529_v4 = vpop.permute.xlu1 %4785 }
 0x709   : > { %v9521_v32 = vpop.permute.xlu0 %4770 }
 0x70c   : > { %v9533_v2 = vpop.permute.xlu1 %4791 }
 0x70d   : > { %v9523_v12 = vpop.permute.xlu0 %4776 }
 0x710   : > { %v9537_v25 = vpop.permute.xlu1 %4797 }
 0x711   : > { %v9527_v24 = vpop.permute.xlu0 %4782  ;;  %12584 = vst [vmem:[#allocation170_spill] sm:$0xff] %v9537_v25 }
 0x715   : > { %v9531_v57 = vpop.permute.xlu0 %4788 }
 0x719   : > { %v9535_v14 = vpop.permute.xlu0 %4794 }
 0x71d   : > { %v9546_v41 = vpop.permute.xlu0 %4800 }
 0x71e   : > { %12585 = vst [vmem:[#allocation171_spill] sm:$0xff] %v9546_v41 }
 0x724   : > { %v2901_v56 = vpop.permute.xlu1 %2900 }
 0x725   : > { %v9550_v37 = vsel %vm2788_vm8, %v9268_v3, %v2901_v56  ;;  %vm3315_vm8 = vcmp.eq.s32.totalorder %v8634_v31, 1 }
 0x726   : > { %12586 = vst [vmem:[#allocation172_spill] sm:$0xff] %v9550_v37  ;;  %2964 = vst.msk [vmem:[%s9544_s15] sm:$0xff] %vm1688_vm3, %v9550_v37  ;;  %v2984_v16 = vmul.f32 %v8615_v17, %v9550_v37 }
 0x728   : > { %v2903_v58 = vpop.permute.xlu0 %2902  ;;  %v3000_v62 = vsel %vm1688_vm3, %v2984_v16, 0.0  ;;  %v9574_v16 = vld [vmem:[%s7314_s23 + $0x48] sm:$0xff] }
 0x729   : > { %v9560_v30 = vsel %vm2789_vm9, %v9275_v1, %v2903_v58  ;;  %3001 = vadd.xlane.f32.xlu0 %v3000_v62  ;;  %vm4883_vm12 = vcmp.eq.s32.totalorder %v9574_v16, 11  ;;  %v9586_v58 = vld [vmem:[%s7314_s23 + $0x58] sm:$0xff] }
 0x72a   : > { %12587 = vst [vmem:[#allocation173_spill] sm:$0xff] %v9560_v30  ;;  %2965 = vst.msk [vmem:[%s9544_s15 + $0x8] sm:$0xff] %vm1688_vm3, %v9560_v30  ;;  %v2985_v3 = vmul.f32 %v8615_v17, %v9560_v30  ;;  %vm4885_vm13 = vcmp.eq.s32.totalorder %v9586_v58, 11 }
 0x72b   : > { %12590 = vst [vmem:[#allocation176_spill] sm:$0xff] %v9586_v58 }
 0x72c   : > { %v2905_v56 = vpop.permute.xlu1 %2904  ;;  %v3003_v61 = vsel %vm1688_vm3, %v2985_v3, 0.0  ;;  %v9590_v3 = vld [vmem:[%s7314_s23 + $0x68] sm:$0xff] }
 0x72d   : > { %v9578_v1 = vsel %vm2790_vm10, %v9282_v45, %v2905_v56  ;;  %3004 = vadd.xlane.f32.xlu1 %v3003_v61  ;;  %12591 = vst [vmem:[#allocation177_spill] sm:$0xff] %v9590_v3  ;;  %vm4887_vm14 = vcmp.eq.s32.totalorder %v9590_v3, 11  ;;  %v9597_v45 = vsel %vm4881_vm11, 1, %v12407_v63  ;;  %v9600_v61 = vsel %vm4883_vm12, 1, %v12407_v63 }
 0x72e   : > { %12589 = vst [vmem:[#allocation175_spill] sm:$0xff] %v9578_v1  ;;  %2966 = vst.msk [vmem:[%s9544_s15 + $0x10] sm:$0xff] %vm1688_vm3, %v9578_v1  ;;  %v2986_v62 = vmul.f32 %v8615_v17, %v9578_v1  ;;  %v9622_v28 = vsel %vm4887_vm14, 1, %v12407_v63  ;;  %vm5028_vm10 = vcmp.eq.s32.totalorder %v9499_v34, 12  ;;  %vm4884_vm11 = vcmp.eq.s32.totalorder %v9410_v5, 11 }
 0x72f   : > { %12592 = vst [vmem:[#allocation178_spill] sm:$0xff] %v9597_v45  ;;  %12593 = vst [vmem:[#allocation179_spill] sm:$0xff] %v9600_v61  ;;  %vm3464_vm12 = vcmp.eq.s32.totalorder %v8678_v53, 1  ;;  %vm5030_vm14 = vcmp.eq.s32.totalorder %v9570_v8, 12  ;;  %v9678_v35 = vsel %vm5028_vm10, 1, %v12407_v63  ;;  %v9683_v43 = vsel %vm4884_vm11, 1, %v12407_v63 }
 0x730   : > { %v2907_v56 = vpop.permute.xlu0 %2906  ;;  %v3006_v55 = vsel %vm1688_vm3, %v2986_v62, 0.0  ;;  %v9617_v62 = vsel %vm4885_vm13, 1, %v12407_v63  ;;  %12597 = vst [vmem:[#allocation183_spill] sm:$0xff] %v9622_v28  ;;  %12605 = vst [vmem:[#allocation191_spill] sm:$0xff] %v9678_v35  ;;  %vm5036_vm10 = vcmp.eq.s32.totalorder %v9590_v3, 12  ;;  %v12614_v28 = vld [vmem:[#allocation51_spill] sm:$0xff] }
 0x731   : > { %v9612_v27 = vsel %vm2791_vm0, %v9289_v46, %v2907_v56  ;;  %3007 = vadd.xlane.f32.xlu0 %v3006_v55  ;;  %12596 = vst [vmem:[#allocation182_spill] sm:$0xff] %v9617_v62  ;;  %v9636_v55 = vld [vmem:[%s7314_s23 + $0x40] sm:$0xff]  ;;  %v9646_v56 = vsel %vm5024_vm4, 1, %v12407_v63  ;;  %vm4886_vm0 = vcmp.eq.s32.totalorder %v9419_v44, 11  ;;  %vm5032_vm4 = vcmp.eq.s32.totalorder %v9574_v16, 12  ;;  %12606 = vst [vmem:[#allocation192_spill] sm:$0xff] %v9683_v43 }
 0x732   : > { %12595 = vst [vmem:[#allocation181_spill] sm:$0xff] %v9612_v27  ;;  %2967 = vst.msk [vmem:[%s9544_s15 + $0x18] sm:$0xff] %vm1688_vm3, %v9612_v27  ;;  %v2987_v46 = vmul.f32 %v8615_v17, %v9612_v27  ;;  %vm4882_vm9 = vcmp.eq.s32.totalorder %v9636_v55, 11  ;;  %v9699_v43 = vsel %vm5030_vm14, 1, %v12407_v63  ;;  %v9704_v35 = vsel %vm4886_vm0, 1, %v12407_v63  ;;  %v12619_v61 = vld [vmem:[#allocation23_spill] sm:$0xff] }
 0x733   : > { %12599 = vst [vmem:[#allocation185_spill] sm:$0xff] %v9636_v55  ;;  %12600 = vst [vmem:[#allocation186_spill] sm:$0xff] %v9646_v56  ;;  %v12607_v56 = vld [vmem:[#allocation57_spill] sm:$0xff]  ;;  %vm3614_vm11 = vcmp.eq.s32.totalorder %v12614_v28, 1  ;;  %vm2795_vm14 = vcmp.ge.f32.partialorder %v9317_v18, 0.0  ;;  %vm5025_vm0 = vcmp.eq.s32.totalorder %v9505_v0, 12 }
 0x734   : > { %v2909_v51 = vpop.permute.xlu1 %2908  ;;  %v3009_v50 = vsel %vm1688_vm3, %v2987_v46, 0.0  ;;  %v9673_v46 = vsel %vm4882_vm9, 1, %v12407_v63  ;;  %vm3316_vm6 = vcmp.eq.s32.totalorder %v12607_v56, 1  ;;  %vm5023_vm9 = vcmp.eq.s32.totalorder %v9474_v15, 12  ;;  %12610 = vst [vmem:[#allocation57_spill] sm:$0xff] %v9699_v43  ;;  %v12625_v45 = vld [vmem:[#allocation19_spill] sm:$0xff] }
 0x735   : > { %v9668_v7 = vsel %vm2792_vm1, %v9296_v47, %v2909_v51  ;;  %3010 = vadd.xlane.f32.xlu0 %v3009_v50  ;;  %12604 = vst [vmem:[#allocation190_spill] sm:$0xff] %v9673_v46  ;;  %vm5034_vm1 = vcmp.eq.s32.totalorder %v9586_v58, 12  ;;  %v12608_v50 = vld [vmem:[#allocation35_spill] sm:$0xff]  ;;  %v12609_v47 = vld [vmem:[#allocation52_spill] sm:$0xff]  ;;  %v9709_v46 = vsel %vm5032_vm4, 1, %v12407_v63  ;;  %vm5027_vm4 = vcmp.eq.s32.totalorder %v9513_v42, 12 }
 0x736   : > { %12603 = vst [vmem:[#allocation189_spill] sm:$0xff] %v9668_v7  ;;  %2968 = vst.msk [vmem:[%s9544_s15 + $0x20] sm:$0xff] %vm1688_vm3, %v9668_v7  ;;  %v2988_v51 = vmul.f32 %v8615_v17, %v9668_v7  ;;  %vm4807_vm13 = vcmp.eq.s32.totalorder %v9496_v13, 1  ;;  %vm3317_vm5 = vcmp.eq.s32.totalorder %v12619_v61, 1  ;;  %v9769_v19 = vsel %vm5027_vm4, 1, %v12407_v63  ;;  %v12638_v42 = vld [vmem:[#allocation6_spill] sm:$0xff] }
 0x737   : > { %12611 = vst [vmem:[#allocation35_spill] sm:$0xff] %v9704_v35  ;;  %12612 = vst [vmem:[#allocation52_spill] sm:$0xff] %v9709_v46  ;;  %v9736_v46 = vsel %vm5023_vm9, 1, %v12407_v63  ;;  %v9741_v35 = vsel %vm5036_vm10, 1, %v12407_v63  ;;  %vm5029_vm9 = vcmp.eq.s32.totalorder %v9606_v29, 12  ;;  %v3331_v3 = vsel %vm3315_vm8, %v9550_v37, -inf }
 0x738   : > { %v2911_v62 = vpop.permute.xlu0 %2910  ;;  %v3012_v43 = vsel %vm1688_vm3, %v2988_v51, 0.0  ;;  %v9731_v51 = vsel %vm5034_vm1, 1, %v12407_v63  ;;  %12617 = vst [vmem:[#allocation195_spill] sm:$0xff] %v9736_v46  ;;  %12618 = vst [vmem:[#allocation196_spill] sm:$0xff] %v9741_v35  ;;  %vm5173_vm1 = vcmp.eq.s32.totalorder %v9487_v40, 13  ;;  %v12621_v46 = vld [vmem:[#allocation38_spill] sm:$0xff] }
 0x739   : > { %v9726_v38 = vsel %vm2793_vm2, %v9303_v36, %v2911_v62  ;;  %3013 = vadd.xlane.f32.xlu1 %v3012_v43  ;;  %12616 = vst [vmem:[#allocation194_spill] sm:$0xff] %v9731_v51  ;;  %v12620_v36 = vld [vmem:[#allocation25_spill] sm:$0xff]  ;;  %v4821_v62 = vsel %vm4805_vm7, %v9550_v37, -inf  ;;  %v9759_v35 = vsel %vm5025_vm0, 1, %v12407_v63  ;;  %v9764_v51 = vsel %vm5038_vm15, 1, %v12407_v63  ;;  %12624 = vst [vmem:[#allocation38_spill] sm:$0xff] %v9769_v19 }
 0x73a   : > { %12615 = vst [vmem:[#allocation51_spill] sm:$0xff] %v9726_v38  ;;  %vm3466_vm2 = vcmp.eq.s32.totalorder %v12620_v36, 1  ;;  %2969 = vst.msk [vmem:[%s9544_s15 + $0x28] sm:$0xff] %vm1688_vm3, %v9726_v38  ;;  %v2989_v43 = vmul.f32 %v8615_v17, %v9726_v38  ;;  %vm3763_vm7 = vcmp.eq.s32.totalorder %v12625_v45, 1  ;;  %vm2796_vm0 = vcmp.ge.f32.partialorder %v9324_v22, 0.0  ;;  %v12637_v29 = vld [vmem:[#allocation28_spill] sm:$0xff] }
 0x73b   : > { %12622 = vst [vmem:[#allocation23_spill] sm:$0xff] %v9759_v35  ;;  %12623 = vst [vmem:[#allocation25_spill] sm:$0xff] %v9764_v51  ;;  %vm5175_vm15 = vcmp.eq.s32.totalorder %v9492_v26, 13  ;;  %v3480_v6 = vsel %vm3464_vm12, %v9550_v37, -inf  ;;  %vm12626_vm4 = vcmp.eq.s32.totalorder %v8764_v39, 1  ;;  %vm4808_vm10 = vcmp.eq.s32.totalorder %v9517_v11, 1 }
 0x73c   : > { %v2913_v58 = vpop.permute.xlu1 %2912  ;;  %v3015_v35 = vsel %vm1688_vm3, %v2989_v43, 0.0  ;;  %v3629_v19 = vsel %vm12626_vm4, %v9550_v37, -inf  ;;  %vm12627_vm8 = vcmp.ge.f32.partialorder %v9310_v59, 0.0  ;;  %v9791_v43 = vsel %vm1688_vm3, %v4821_v62, -inf  ;;  %v12631_v51 = vld [vmem:[#allocation22_spill] sm:$0xff]  ;;  %v12633_v62 = vld [vmem:[#allocation59_spill] sm:$0xff] }
 0x73d   : > { %v9788_v31 = vsel %vm12627_vm8, %v9310_v59, %v2913_v58  ;;  %3016 = vadd.xlane.f32.xlu0 %v3015_v35  ;;  %v9796_v53 = vsel %vm5173_vm1, 1, %v12407_v63  ;;  %v9801_v39 = vsel %vm5029_vm9, 1, %v12407_v63  ;;  %vm12632_vm4 = vcmp.eq.s32.totalorder %v9509_v21, 1 }
 0x73e   : > { %12628 = vst [vmem:[#allocation19_spill] sm:$0xff] %v9788_v31  ;;  %12629 = vst [vmem:[#allocation197_spill] sm:$0xff] %v9796_v53  ;;  %v2990_v35 = vmul.f32 %v8615_v17, %v9788_v31  ;;  %v4822_v59 = vsel %vm12632_vm4, %v9560_v30, -inf  ;;  %vm5031_vm1 = vcmp.eq.s32.totalorder %v9636_v55, 12  ;;  %v9814_v58 = vsel %vm1688_vm3, %v3331_v3, -inf  ;;  %v12647_v55 = vld [vmem:[#allocation39_spill] sm:$0xff] }
 0x73f   : > { %12630 = vst [vmem:[#allocation198_spill] sm:$0xff] %v9801_v39  ;;  %2970 = vst.msk [vmem:[%s9544_s15 + $0x30] sm:$0xff] %vm1688_vm3, %v9788_v31  ;;  %v12634_v39 = vld [vmem:[#allocation37_spill] sm:$0xff]  ;;  %v9822_v53 = vsel %vm5175_vm15, 1, %v12407_v63  ;;  %v3332_v21 = vsel %vm3316_vm6, %v9560_v30, -inf  ;;  %v9828_v40 = vsel %vm1688_vm3, %v3480_v6, -inf }
 0x740   : > { %12635 = vst [vmem:[#allocation22_spill] sm:$0xff] %v9822_v53  ;;  %v9831_v3 = vsel %vm1688_vm3, %v3629_v19, -inf  ;;  %vm3764_vm8 = vcmp.eq.s32.totalorder %v12638_v42, 1  ;;  %v2915_v41 = vpop.permute.xlu0 %2914  ;;  %v3018_v26 = vsel %vm1688_vm3, %v2990_v35, 0.0  ;;  %vm2797_vm15 = vcmp.ge.f32.partialorder %v9331_v33, 0.0  ;;  %v12641_v6 = vld [vmem:[#allocation5_spill] sm:$0xff] }
 0x741   : > { %12636 = vst [vmem:[#allocation59_spill] sm:$0xff] %v9831_v3  ;;  %vm5177_vm9 = vcmp.eq.s32.totalorder %v9499_v34, 13  ;;  %vm12639_vm6 = vcmp.eq.s32.totalorder %v12608_v50, 1  ;;  %vm12640_vm12 = vcmp.eq.s32.totalorder %v12609_v47, 1  ;;  %vm3616_vm4 = vcmp.eq.s32.totalorder %v12641_v6, 1  ;;  %3019 = vadd.xlane.f32.xlu1 %v3018_v26  ;;  %v12665_v6 = vld [vmem:[#allocation42_spill] sm:$0xff] }
 0x742   : > { %v3481_v56 = vsel %vm12639_vm6, %v9560_v30, -inf  ;;  %v9844_v19 = vsel %vm12640_vm12, %v9550_v37, -inf  ;;  %v9850_v53 = vsel %vm2795_vm14, %v9317_v18, %v2915_v41  ;;  %v9853_v35 = vsel %vm1688_vm3, %v4822_v59, -inf  ;;  %v12644_v37 = vld [vmem:[#allocation55_spill] sm:$0xff]  ;;  %v12645_v59 = vld [vmem:[#allocation26_spill] sm:$0xff] }
 0x743   : > { %12642 = vst [vmem:[#allocation37_spill] sm:$0xff] %v9850_v53  ;;  %v9858_v50 = vsel %vm5031_vm1, 1, %v12407_v63  ;;  %v3630_v47 = vsel %vm3614_vm11, %v9560_v30, -inf  ;;  %vm3765_vm12 = vcmp.eq.s32.totalorder %v12644_v37, 1  ;;  %2971 = vst.msk [vmem:[%s9544_s15 + $0x38] sm:$0xff] %vm1688_vm3, %v9850_v53  ;;  %v2991_v18 = vmul.f32 %v8615_v17, %v9850_v53 }
 0x744   : > { %12643 = vst [vmem:[#allocation28_spill] sm:$0xff] %v9858_v50  ;;  %v4823_v26 = vsel %vm4807_vm13, %v9578_v1, -inf  ;;  %vm5033_vm14 = vcmp.eq.s32.totalorder %v9410_v5, 12  ;;  %v9874_v41 = vsel %vm1688_vm3, %v3332_v21, -inf  ;;  %vm3320_vm1 = vcmp.eq.s32.totalorder %v12645_v59, 1  ;;  %v2917_v60 = vpop.permute.xlu1 %2916 }
 0x745   : > { %vm4810_vm11 = vcmp.eq.s32.totalorder %v9519_v10, 1  ;;  %v9881_v28 = vsel %vm5177_vm9, 1, %v12407_v63  ;;  %v3333_v50 = vsel %vm3317_vm5, %v9578_v1, -inf  ;;  %v3482_v13 = vsel %vm3466_vm2, %v9578_v1, -inf }
 0x746   : > { %12646 = vst [vmem:[#allocation6_spill] sm:$0xff] %v9881_v28  ;;  %v9890_v21 = vsel %vm1688_vm3, %v3481_v56, -inf  ;;  %vm3469_vm13 = vcmp.eq.s32.totalorder %v12647_v55, 1  ;;  %v3021_v0 = vsel %vm1688_vm3, %v2991_v18, 0.0  ;;  %vm2798_vm9 = vcmp.ge.f32.partialorder %v9338_v20, 0.0  ;;  %v12649_v28 = vld [vmem:[#allocation40_spill] sm:$0xff] }
 0x747   : > { %vm5179_vm6 = vcmp.eq.s32.totalorder %v9570_v8, 13  ;;  %vm12648_vm5 = vcmp.eq.s32.totalorder %v12621_v46, 1  ;;  %v9900_v36 = vsel %vm1688_vm3, %v3630_v47, -inf  ;;  %v9906_v56 = vsel %vm2796_vm0, %v9324_v22, %v2917_v60  ;;  %3022 = vadd.xlane.f32.xlu0 %v3021_v0  ;;  %v12652_v47 = vld [vmem:[#allocation62_spill] sm:$0xff]  ;;  %v12660_v8 = vld [vmem:[#allocation7_spill] sm:$0xff] }
 0x748   : > { %v3631_v61 = vsel %vm12648_vm5, %v9578_v1, -inf  ;;  %12650 = vst [vmem:[#allocation5_spill] sm:$0xff] %v9906_v56  ;;  %v9909_v18 = vsel %vm1688_vm3, %v4823_v26, -inf  ;;  %v9914_v34 = vsel %vm5033_vm14, 1, %v12407_v63  ;;  %v3779_v46 = vsel %vm3763_vm7, %v9560_v30, -inf  ;;  %2972 = vst.msk [vmem:[%s9544_s15 + $0x40] sm:$0xff] %vm1688_vm3, %v9906_v56 }
 0x749   : > { %12651 = vst [vmem:[#allocation55_spill] sm:$0xff] %v9914_v34  ;;  %v2992_v22 = vmul.f32 %v8615_v17, %v9906_v56  ;;  %v4824_v60 = vsel %vm4808_vm10, %v9612_v27, -inf  ;;  %v9928_v0 = vsel %vm1688_vm3, %v3333_v50, -inf  ;;  %v9931_v5 = vsel %vm1688_vm3, %v3482_v13, -inf  ;;  %v12655_v26 = vld [vmem:[#allocation61_spill] sm:$0xff]  ;;  %v12656_v13 = vld [vmem:[#allocation8_spill] sm:$0xff]  ;;  %v2919_v34 = vpop.permute.xlu0 %2918 }
 0x74a   : > { %v9938_v45 = vsel %vm5179_vm6, 1, %v12407_v63  ;;  %vm5035_vm14 = vcmp.eq.s32.totalorder %v9419_v44, 12  ;;  %vm12654_vm10 = vcmp.eq.s32.totalorder %v12631_v51, 1  ;;  %v9945_v50 = vsel %vm1688_vm3, %v3631_v61, -inf }
 0x74b   : > { %12653 = vst [vmem:[#allocation26_spill] sm:$0xff] %v9938_v45  ;;  %v3334_v11 = vsel %vm12654_vm10, %v9612_v27, -inf  ;;  %vm3766_vm0 = vcmp.eq.s32.totalorder %v12656_v13, 1  ;;  %v3024_v30 = vsel %vm1688_vm3, %v2992_v22, 0.0  ;;  %vm2799_vm6 = vcmp.ge.f32.partialorder %v9345_v54, 0.0  ;;  %v12681_v13 = vld [vmem:[#allocation67_spill] sm:$0xff] }
 0x74c   : > { %vm12657_vm7 = vcmp.eq.s32.totalorder %v9521_v32, 1  ;;  %vm12658_vm10 = vcmp.eq.s32.totalorder %v12633_v62, 1  ;;  %vm12659_vm2 = vcmp.eq.s32.totalorder %v12634_v39, 1  ;;  %vm3618_vm5 = vcmp.eq.s32.totalorder %v12660_v8, 1  ;;  %3025 = vadd.xlane.f32.xlu1 %v3024_v30 }
 0x74d   : > { %v4825_v45 = vsel %vm12657_vm7, %v9668_v7, -inf  ;;  %v3335_v51 = vsel %vm12658_vm10, %v9668_v7, -inf  ;;  %v3483_v61 = vsel %vm12659_vm2, %v9612_v27, -inf  ;;  %v9964_v22 = vsel %vm2797_vm15, %v9331_v33, %v2919_v34  ;;  %v12663_v34 = vld [vmem:[#allocation27_spill] sm:$0xff] }
 0x74e   : > { %v9967_v25 = vsel %vm1688_vm3, %v4824_v60, -inf  ;;  %vm12661_vm7 = vcmp.eq.s32.totalorder %v12637_v29, 1  ;;  %v3780_v39 = vsel %vm3764_vm8, %v9578_v1, -inf  ;;  %2973 = vst.msk [vmem:[%s9544_s15 + $0x48] sm:$0xff] %vm1688_vm3, %v9964_v22  ;;  %v2993_v62 = vmul.f32 %v8615_v17, %v9964_v22  ;;  %v2921_v1 = vpop.permute.xlu1 %2920 }
 0x74f   : > { %v3484_v32 = vsel %vm12661_vm7, %v9668_v7, -inf  ;;  %v9983_v33 = vsel %vm5035_vm14, 1, %v12407_v63  ;;  %v9986_v30 = vsel %vm1688_vm3, %v3334_v11, -inf  ;;  %v3632_v29 = vsel %vm3616_vm4, %v9612_v27, -inf }
 0x750   : > { %12662 = vst [vmem:[#allocation39_spill] sm:$0xff] %v9983_v33  ;;  %vm3322_vm8 = vcmp.eq.s32.totalorder %v12663_v34, 1  ;;  %vm4812_vm15 = vcmp.eq.s32.totalorder %v9525_v9, 1  ;;  %v9994_v42 = vsel %vm1688_vm3, %v4825_v45, -inf  ;;  %v9997_v60 = vsel %vm1688_vm3, %v3335_v51, -inf  ;;  %v12666_v33 = vld [vmem:[#allocation41_spill] sm:$0xff] }
 0x751   : > { %v10000_v44 = vsel %vm1688_vm3, %v3483_v61, -inf  ;;  %v10005_v11 = vsel %vm3765_vm12, %v9612_v27, -inf  ;;  %vm3619_vm4 = vcmp.eq.s32.totalorder %v12665_v6, 1  ;;  %vm3471_vm2 = vcmp.eq.s32.totalorder %v12666_v33, 1  ;;  %v12687_v33 = vld [vmem:[#allocation44_spill] sm:$0xff] }
 0x752   : > { %12664 = vst [vmem:[#allocation40_spill] sm:$0xff] %v10005_v11  ;;  %v3027_v45 = vsel %vm1688_vm3, %v2993_v62, 0.0  ;;  %vm2800_vm14 = vcmp.ge.f32.partialorder %v9352_v23, 0.0  ;;  %v4826_v51 = vsel %vm4810_vm11, %v9726_v38, -inf  ;;  %v3336_v37 = vsel %vm3320_vm1, %v9726_v38, -inf  ;;  %v12667_v11 = vld [vmem:[#allocation65_spill] sm:$0xff] }
 0x753   : > { %v10018_v61 = vsel %vm1688_vm3, %v3484_v32, -inf  ;;  %vm3767_vm12 = vcmp.eq.s32.totalorder %v12667_v11, 1  ;;  %v10024_v27 = vsel %vm2798_vm9, %v9338_v20, %v2921_v1  ;;  %3028 = vadd.xlane.f32.xlu0 %v3027_v45  ;;  %v3485_v10 = vsel %vm3469_vm13, %v9726_v38, -inf  ;;  %v12688_v11 = vld [vmem:[#allocation43_spill] sm:$0xff] }
 0x754   : > { %v10030_v62 = vsel %vm1688_vm3, %v3632_v29, -inf  ;;  %v10034_v59 = vsel %vm1688_vm3, %v9844_v19, -inf  ;;  %2974 = vst.msk [vmem:[%s9544_s15 + $0x50] sm:$0xff] %vm1688_vm3, %v10024_v27  ;;  %v2994_v32 = vmul.f32 %v8615_v17, %v10024_v27  ;;  %vm12670_vm1 = vcmp.eq.s32.totalorder %v12649_v28, 1  ;;  %v12672_v28 = vld [vmem:[#allocation10_spill] sm:$0xff] }
 0x755   : > { %12668 = vst [vmem:[#allocation62_spill] sm:$0xff] %v10030_v62  ;;  %12669 = vst [vmem:[#allocation61_spill] sm:$0xff] %v10034_v59  ;;  %v3633_v1 = vsel %vm12670_vm1, %v9668_v7, -inf  ;;  %v10047_v55 = vsel %vm1688_vm3, %v3779_v46, -inf  ;;  %vm4813_vm11 = vcmp.eq.s32.totalorder %v9527_v24, 1  ;;  %v10051_v19 = vsel %vm1688_vm3, %v4826_v51, -inf  ;;  %v2923_v46 = vpop.permute.xlu0 %2922 }
 0x756   : > { %12671 = vst [vmem:[#allocation8_spill] sm:$0xff] %v10047_v55  ;;  %v10056_v45 = vsel %vm1688_vm3, %v3336_v37, -inf  ;;  %v12673_v59 = vld [vmem:[#allocation9_spill] sm:$0xff]  ;;  %v3030_v55 = vsel %vm1688_vm3, %v2994_v32, 0.0  ;;  %vm2801_vm10 = vcmp.ge.f32.partialorder %v9359_v48, 0.0  ;;  %vm12674_vm7 = vcmp.eq.s32.totalorder %v9523_v12, 1 }
 0x757   : > { %vm3620_vm9 = vcmp.eq.s32.totalorder %v12673_v59, 1  ;;  %v4827_v51 = vsel %vm12674_vm7, %v9788_v31, -inf  ;;  %vm12675_vm1 = vcmp.eq.s32.totalorder %v12652_v47, 1  ;;  %v10071_v29 = vsel %vm1688_vm3, %v3485_v10, -inf  ;;  %3031 = vadd.xlane.f32.xlu1 %v3030_v55  ;;  %v12680_v55 = vld [vmem:[#allocation30_spill] sm:$0xff]  ;;  %v12682_v10 = vld [vmem:[#allocation64_spill] sm:$0xff] }
 0x758   : > { %v3337_v37 = vsel %vm12675_vm1, %v9788_v31, -inf  ;;  %v10076_v20 = vsel %vm2799_vm6, %v9345_v54, %v2923_v46  ;;  %vm12676_vm13 = vcmp.eq.s32.totalorder %v12655_v26, 1  ;;  %v10082_v12 = vsel %vm1688_vm3, %v3633_v1, -inf  ;;  %v12684_v62 = vld [vmem:[#allocation29_spill] sm:$0xff]  ;;  %v12694_v24 = vld [vmem:[#allocation60_spill] sm:$0xff] }
 0x759   : > { %v3486_v32 = vsel %vm12676_vm13, %v9788_v31, -inf  ;;  %12677 = vst [vmem:[#allocation7_spill] sm:$0xff] %v10082_v12  ;;  %v10087_v47 = vsel %vm3766_vm0, %v9668_v7, -inf  ;;  %2975 = vst.msk [vmem:[%s9544_s15 + $0x58] sm:$0xff] %vm1688_vm3, %v10076_v20  ;;  %v2995_v54 = vmul.f32 %v8615_v17, %v10076_v20  ;;  %v3634_v26 = vsel %vm3618_vm5, %v9726_v38, -inf }
 0x75a   : > { %12678 = vst [vmem:[#allocation27_spill] sm:$0xff] %v10087_v47  ;;  %v10100_v1 = vsel %vm1688_vm3, %v3780_v39, -inf  ;;  %vm3323_vm6 = vcmp.eq.s32.totalorder %v12680_v55, 1  ;;  %vm3769_vm0 = vcmp.eq.s32.totalorder %v12681_v13, 1  ;;  %v10105_v46 = vsel %vm1688_vm3, %v4827_v51, -inf  ;;  %v2925_v39 = vpop.permute.xlu1 %2924 }
 0x75b   : > { %12679 = vst [vmem:[#allocation42_spill] sm:$0xff] %v10100_v1  ;;  %v10110_v47 = vsel %vm1688_vm3, %v3337_v37, -inf  ;;  %vm3324_vm5 = vcmp.eq.s32.totalorder %v12682_v10, 1  ;;  %vm4814_vm13 = vcmp.eq.s32.totalorder %v9529_v4, 1  ;;  %v3033_v1 = vsel %vm1688_vm3, %v2995_v54, 0.0 }
 0x75c   : > { %vm2802_vm7 = vcmp.ge.f32.partialorder %v9368_v49, 0.0  ;;  %v4828_v51 = vsel %vm4812_vm15, %v9850_v53, -inf  ;;  %v3338_v37 = vsel %vm3322_vm8, %v9850_v53, -inf  ;;  %v10125_v8 = vsel %vm1688_vm3, %v3486_v32, -inf  ;;  %3034 = vadd.xlane.f32.xlu0 %v3033_v1  ;;  %v12686_v1 = vld [vmem:[#allocation24_spill] sm:$0xff] }
 0x75d   : > { %v10130_v7 = vsel %vm2800_vm14, %v9352_v23, %v2925_v39  ;;  %v3487_v54 = vsel %vm3471_vm2, %v9850_v53, -inf  ;;  %v3635_v9 = vsel %vm3619_vm4, %v9788_v31, -inf  ;;  %vm3472_vm8 = vcmp.eq.s32.totalorder %v12684_v62, 1 }
 0x75e   : > { %12683 = vst [vmem:[#allocation41_spill] sm:$0xff] %v10130_v7  ;;  %vm4815_vm15 = vcmp.eq.s32.totalorder %v9531_v57, 1  ;;  %2976 = vst.msk [vmem:[%s9544_s15 + $0x60] sm:$0xff] %vm1688_vm3, %v10130_v7  ;;  %v2996_v23 = vmul.f32 %v8615_v17, %v10130_v7  ;;  %v10150_v32 = vsel %vm1688_vm3, %v3634_v26, -inf  ;;  %v10155_v6 = vsel %vm3767_vm12, %v9726_v38, -inf  ;;  %v2929_v59 = vpop.permute.xlu1 %2928 }
 0x75f   : > { %12685 = vst [vmem:[#allocation65_spill] sm:$0xff] %v10155_v6  ;;  %vm3325_vm4 = vcmp.eq.s32.totalorder %v12686_v1, 1  ;;  %v10159_v39 = vsel %vm1688_vm3, %v4828_v51, -inf  ;;  %v10164_v12 = vsel %vm1688_vm3, %v3338_v37, -inf  ;;  %vm3473_vm14 = vcmp.eq.s32.totalorder %v12688_v11, 1  ;;  %v2927_v6 = vpop.permute.xlu0 %2926  ;;  %v12708_v11 = vld [vmem:[#allocation34_spill] sm:$0xff] }
 0x760   : > { %v3036_v3 = vsel %vm1688_vm3, %v2996_v23, 0.0  ;;  %v4829_v51 = vsel %vm4813_vm11, %v9906_v56, -inf  ;;  %v10175_v38 = vsel %vm1688_vm3, %v3487_v54, -inf  ;;  %v10178_v37 = vsel %vm1688_vm3, %v3635_v9, -inf  ;;  %v12691_v9 = vld [vmem:[#allocation11_spill] sm:$0xff] }
 0x761   : > { %v10183_v26 = vsel %vm2801_vm10, %v9359_v48, %v2927_v6  ;;  %3037 = vadd.xlane.f32.xlu1 %v3036_v3  ;;  %v3636_v23 = vsel %vm3620_vm9, %v9850_v53, -inf  ;;  %vm12689_vm12 = vcmp.eq.s32.totalorder %v12672_v28, 1  ;;  %vm5181_vm11 = vcmp.eq.s32.totalorder %v9574_v16, 13  ;;  %v12692_v3 = vld [vmem:[#allocation31_spill] sm:$0xff] }
 0x762   : > { %v10193_v54 = vsel %vm12689_vm12, %v9788_v31, -inf  ;;  %2977 = vst.msk [vmem:[%s9544_s15 + $0x68] sm:$0xff] %vm1688_vm3, %v10183_v26  ;;  %v2997_v48 = vmul.f32 %v8615_v17, %v10183_v26  ;;  %vm4816_vm10 = vcmp.eq.s32.totalorder %v9533_v2, 1  ;;  %v4849_v28 = vsel %vm1688_vm3, %v4829_v51, -inf }
 0x763   : > { %12690 = vst [vmem:[#allocation10_spill] sm:$0xff] %v10193_v54  ;;  %vm5037_vm1 = vcmp.eq.s32.totalorder %v9426_v52, 12  ;;  %vm4817_vm2 = vcmp.eq.s32.totalorder %v9535_v14, 1  ;;  %v3339_v51 = vsel %vm3323_vm6, %v9906_v56, -inf  ;;  %v10220_v31 = vsel %vm1688_vm3, %v3636_v23, -inf  ;;  %v12695_v54 = vld [vmem:[#allocation32_spill] sm:$0xff] }
 0x764   : > { %v3039_v34 = vsel %vm1688_vm3, %v2997_v48, 0.0  ;;  %v10225_v6 = vsel %vm3769_vm0, %v9850_v53, -inf  ;;  %vm3327_vm9 = vcmp.eq.s32.totalorder %v12694_v24, 1  ;;  %vm3474_vm12 = vcmp.eq.s32.totalorder %v12695_v54, 1  ;;  %v12702_v53 = vld [vmem:[#allocation170_spill] sm:$0xff] }
 0x765   : > { %12693 = vst [vmem:[#allocation9_spill] sm:$0xff] %v10225_v6  ;;  %v10232_v48 = vsel %vm2802_vm7, %v9368_v49, %v2929_v59  ;;  %3040 = vadd.xlane.f32.xlu0 %v3039_v34  ;;  %v4830_v55 = vsel %vm4814_vm13, %v9964_v22, -inf  ;;  %v10240_v13 = vsel %vm5181_vm11, 1, %v12407_v63  ;;  %v3340_v23 = vsel %vm3324_vm5, %v9964_v22, -inf }
 0x766   : > { %12696 = vst [vmem:[#allocation30_spill] sm:$0xff] %v10232_v48  ;;  %12697 = vst [vmem:[#allocation67_spill] sm:$0xff] %v10240_v13  ;;  %v2998_v49 = vmul.f32 %v8615_v17, %v10232_v48  ;;  %v12698_v34 = vmax.f32 %v9791_v43, %v9994_v42  ;;  %v10258_v59 = vsel %vm5037_vm1, 1, %v12407_v63  ;;  %vm5321_vm6 = vcmp.eq.s32.totalorder %v9474_v15, 14  ;;  %v12700_v42 = vld [vmem:[#allocation45_spill] sm:$0xff] }
 0x767   : > { %2978 = vst.msk [vmem:[%s9544_s15 + $0x70] sm:$0xff] %vm1688_vm3, %v10232_v48  ;;  %12699 = vst [vmem:[#allocation64_spill] sm:$0xff] %v10258_v59  ;;  %v4831_v10 = vsel %vm4815_vm15, %v10024_v27, -inf  ;;  %vm5172_vm0 = vcmp.eq.s32.totalorder %v9474_v15, 13  ;;  %v3359_v13 = vsel %vm1688_vm3, %v3339_v51, -inf  ;;  %v3488_v43 = vsel %vm3472_vm8, %v9906_v56, -inf }
 0x768   : > { %v10253_v4 = vmax.f32 %v12698_v34, %v4849_v28  ;;  %vm3475_vm5 = vcmp.eq.s32.totalorder %v12700_v42, 1  ;;  %v3042_v52 = vsel %vm1688_vm3, %v2998_v49, 0.0  ;;  %v4851_v28 = vsel %vm1688_vm3, %v4830_v55, -inf  ;;  %v12701_v59 = vld [vmem:[#allocation63_spill] sm:$0xff]  ;;  %v12704_v51 = vld [vmem:[#allocation168_spill] sm:$0xff] }
 0x769   : > { %v3341_v34 = vsel %vm3325_vm4, %v10024_v27, -inf  ;;  %v3361_v57 = vsel %vm1688_vm3, %v3340_v23, -inf  ;;  %vm3476_vm13 = vcmp.eq.s32.totalorder %v12701_v59, 1  ;;  %vm4818_vm7 = vcmp.eq.s32.totalorder %v12702_v53, 1  ;;  %3043 = vadd.xlane.f32.xlu1 %v3042_v52 }
 0x76a   : > { %v10279_v62 = vsel %vm5321_vm6, 1, %v12407_v63  ;;  %vm5323_vm8 = vcmp.eq.s32.totalorder %v12704_v51, 14  ;;  %v3489_v55 = vsel %vm3473_vm14, %v9964_v22, -inf  ;;  %vm12705_vm15 = vcmp.eq.s32.totalorder %v12687_v33, 1 }
 0x76b   : > { %12703 = vst [vmem:[#allocation29_spill] sm:$0xff] %v10279_v62  ;;  %v10288_v1 = vsel %vm12705_vm15, %v9906_v56, -inf  ;;  %v4853_v23 = vsel %vm1688_vm3, %v4831_v10, -inf  ;;  %v10294_v49 = vsel %vm5172_vm0, 1, %v12407_v63  ;;  %vm5174_vm4 = vcmp.eq.s32.totalorder %v12704_v51, 13  ;;  %v12711_v56 = vld [vmem:[#allocation47_spill] sm:$0xff] }
 0x76c   : > { %12706 = vst [vmem:[#allocation24_spill] sm:$0xff] %v10294_v49  ;;  %v12707_v52 = vmax.f32 %v9814_v58, %v9997_v60  ;;  %vm3328_vm14 = vcmp.eq.s32.totalorder %v12708_v11, 1  ;;  %v12709_v33 = vmax.f32 %v9853_v35, %v10051_v19  ;;  %v12710_v10 = vmax.f32 %v9874_v41, %v10056_v45  ;;  %v12714_v19 = vld [vmem:[#allocation151_spill] sm:$0xff] }
 0x76d   : > { %v3363_v49 = vsel %vm1688_vm3, %v3341_v34, -inf  ;;  %v3508_v51 = vsel %vm1688_vm3, %v3488_v43, -inf  ;;  %vm3477_vm11 = vcmp.eq.s32.totalorder %v12711_v56, 1  ;;  %v4832_v58 = vsel %vm4816_vm10, %v10076_v20, -inf  ;;  %v12719_v34 = vld [vmem:[#allocation169_spill] sm:$0xff] }
 0x76e   : > { %v10300_v62 = vmax.f32 %v12707_v52, %v3359_v13  ;;  %v10306_v6 = vmax.f32 %v12709_v33, %v4851_v28  ;;  %v10311_v15 = vmax.f32 %v12710_v10, %v3361_v57  ;;  %v10320_v60 = vsel %vm5323_vm8, 1, %v12407_v63  ;;  %v12718_v28 = vld [vmem:[#allocation171_spill] sm:$0xff]  ;;  %v12725_v52 = vld [vmem:[#allocation180_spill] sm:$0xff]  ;;  %v10376_v10 = vpop.permute.xlu0 %4907  ;;  %v12740_v56 = vld [vmem:[#allocation13_spill] sm:$0xff] }
 0x76f   : > { %12712 = vst [vmem:[#allocation44_spill] sm:$0xff] %v10320_v60  ;;  %v3510_v35 = vsel %vm1688_vm3, %v3489_v55, -inf  ;;  %vm12713_vm1 = vcmp.eq.s32.totalorder %v12691_v9, 1  ;;  %vm2803_vm6 = vcmp.ge.f32.partialorder %v12714_v19, 0.0  ;;  %v4833_v45 = vsel %vm4817_vm2, %v10130_v7, -inf  ;;  %v12721_v55 = vld [vmem:[#allocation21_spill] sm:$0xff] }
 0x770   : > { %v10326_v41 = vsel %vm12713_vm1, %v9964_v22, -inf  ;;  %v12715_v2 = vmax.f32 %v9909_v18, %v10105_v46  ;;  %v10338_v43 = vsel %vm5174_vm4, 1, %v12407_v63  ;;  %vm12717_vm10 = vcmp.eq.s32.totalorder %v12692_v3, 1 }
 0x771   : > { %12716 = vst [vmem:[#allocation43_spill] sm:$0xff] %v10338_v43  ;;  %v3342_v9 = vsel %vm12717_vm10, %v10076_v20, -inf  ;;  %vm4819_vm0 = vcmp.eq.s32.totalorder %v12718_v28, 1  ;;  %vm5325_vm8 = vcmp.eq.s32.totalorder %v12719_v34, 14  ;;  %v3343_v14 = vsel %vm3327_vm9, %v10130_v7, -inf  ;;  %v12830_v43 = vld [vmem:[#allocation42_spill] sm:$0xff] }
 0x772   : > { %v10335_v13 = vmax.f32 %v12715_v2, %v4853_v23  ;;  %v12720_v18 = vmax.f32 %v9928_v0, %v10110_v47  ;;  %v3490_v57 = vsel %vm3474_vm12, %v10024_v27, -inf  ;;  %vm3329_vm2 = vcmp.eq.s32.totalorder %v12721_v55, 1 }
 0x773   : > { %v4855_v3 = vsel %vm1688_vm3, %v4832_v58, -inf  ;;  %vm5176_vm15 = vcmp.eq.s32.totalorder %v12719_v34, 13  ;;  %v12722_v23 = vmax.f32 %v9828_v40, %v10018_v61  ;;  %v12723_v0 = vmax.f32 %v9890_v21, %v10071_v29 }
 0x774   : > { %v10351_v46 = vmax.f32 %v12720_v18, %v3363_v49  ;;  %v12724_v49 = vld [vmem:[#allocation33_spill] sm:$0xff]  ;;  %v10371_v54 = vsel %vm1688_vm3, %v4833_v45, -inf  ;;  %vm5327_vm12 = vcmp.eq.s32.totalorder %v12725_v52, 14  ;;  %vm5178_vm4 = vcmp.eq.s32.totalorder %v12725_v52, 13  ;;  %v12739_v52 = vld [vmem:[#allocation48_spill] sm:$0xff] }
 0x775   : > { %v10362_v24 = vmax.f32 %v12722_v23, %v3508_v51  ;;  %v10367_v47 = vmax.f32 %v12723_v0, %v3510_v35  ;;  %vm3478_vm9 = vcmp.eq.s32.totalorder %v12724_v49, 1  ;;  %v3365_v33 = vsel %vm1688_vm3, %v3342_v9, -inf  ;;  %v12736_v23 = vld [vmem:[#allocation165_spill] sm:$0xff]  ;;  %v12737_v0 = vld [vmem:[#allocation36_spill] sm:$0xff] }
 0x776   : > { %v10379_v40 = vsel %vm5325_vm8, 1, %v12407_v63  ;;  %v10382_v21 = vsel %vm1688_vm3, %v3343_v14, -inf  ;;  %v3491_v61 = vsel %vm3475_vm5, %v10076_v20, -inf  ;;  %v3512_v29 = vsel %vm1688_vm3, %v3490_v57, -inf  ;;  %v2931_v57 = vpop.permute.xlu0 %2930 }
 0x777   : > { %12726 = vst [vmem:[#allocation11_spill] sm:$0xff] %v10379_v40  ;;  %v4834_v51 = vsel %vm4818_vm7, %v10183_v26, -inf  ;;  %v12727_v58 = vmax.f32 %v9967_v25, %v10159_v39  ;;  %v10397_v45 = vsel %vm5176_vm15, 1, %v12407_v63  ;;  %v3492_v2 = vsel %vm3476_vm13, %v10130_v7, -inf }
 0x778   : > { %12728 = vst [vmem:[#allocation31_spill] sm:$0xff] %v10397_v45  ;;  %v4858_v42 = vmax.f32 %v10253_v4, %v10371_v54  ;;  %v10405_v9 = vsel %vm5327_vm12, 1, %v12407_v63  ;;  %v10408_v53 = vsel %vm5178_vm4, 1, %v12407_v63  ;;  %v12731_v25 = vmax.f32 %v9986_v30, %v10164_v12  ;;  %v4804_v12 = vpop.permute.xlu1 %4803  ;;  %v12738_v54 = vld [vmem:[#allocation46_spill] sm:$0xff] }
 0x779   : > { %v10394_v35 = vmax.f32 %v12727_v58, %v4855_v3  ;;  %12729 = vst [vmem:[#allocation60_spill] sm:$0xff] %v10405_v9  ;;  %12730 = vst [vmem:[#allocation32_spill] sm:$0xff] %v10408_v53  ;;  %v3344_v34 = vsel %vm3328_vm14, %v10183_v26, -inf  ;;  %v3368_v59 = vmax.f32 %v10300_v62, %v10382_v21  ;;  %v12732_v4 = vmax.f32 %v9931_v5, %v10125_v8  ;;  %v12733_v3 = vld [vmem:[#allocation176_spill] sm:$0xff]  ;;  %v12735_v8 = vld [vmem:[#allocation185_spill] sm:$0xff] }
 0x77a   : > { %v10413_v39 = vmax.f32 %v12731_v25, %v3365_v33  ;;  %v3514_v18 = vsel %vm1688_vm3, %v3491_v61, -inf  ;;  %v4859_v30 = vsel %vm1688_vm3, %v4834_v51, -inf  ;;  %vm5183_vm5 = vcmp.eq.s32.totalorder %v12733_v3, 13  ;;  %v12742_v51 = vld [vmem:[#allocation15_spill] sm:$0xff]  ;;  %v12744_v25 = vld [vmem:[#allocation49_spill] sm:$0xff] }
 0x77b   : > { %v10423_v14 = vmax.f32 %v12732_v4, %v3512_v29  ;;  %v3493_v11 = vsel %vm3477_vm11, %v10183_v26, -inf  ;;  %v3516_v62 = vsel %vm1688_vm3, %v3492_v2, -inf  ;;  %v10435_v5 = vsel %vm2803_vm6, %v12714_v19, %v2931_v57  ;;  %v12741_v29 = vld [vmem:[#allocation50_spill] sm:$0xff] }
 0x77c   : > { %12734 = vst [vmem:[#allocation45_spill] sm:$0xff] %v10435_v5  ;;  %vm4820_vm13 = vcmp.eq.s32.totalorder %v4804_v12, 1  ;;  %vm5180_vm7 = vcmp.eq.s32.totalorder %v12735_v8, 13  ;;  %vm5471_vm14 = vcmp.eq.s32.totalorder %v12736_v23, 15  ;;  %vm3330_vm1 = vcmp.eq.s32.totalorder %v12737_v0, 1  ;;  %2979 = vst.msk [vmem:[%s9544_s15 + $0x78] sm:$0xff] %vm1688_vm3, %v10435_v5 }
 0x77d   : > { %vm3623_vm10 = vcmp.eq.s32.totalorder %v12738_v54, 1  ;;  %vm3625_vm8 = vcmp.eq.s32.totalorder %v12739_v52, 1  ;;  %vm3624_vm11 = vcmp.eq.s32.totalorder %v12740_v56, 1  ;;  %v4835_v19 = vsel %vm4819_vm0, %v10232_v48, -inf  ;;  %v12759_v56 = vld [vmem:[#allocation62_spill] sm:$0xff] }
 0x77e   : > { %v4836_v33 = vsel %vm4820_vm13, %v10435_v5, -inf  ;;  %v2999_v21 = vmul.f32 %v8615_v17, %v10435_v5  ;;  %v3369_v61 = vsel %vm1688_vm3, %v3344_v34, -inf  ;;  %vm3627_vm6 = vcmp.eq.s32.totalorder %v12741_v29, 1  ;;  %v4911_v34 = vpop.permute.xlu1 %4910 }
 0x77f   : > { %vm3626_vm15 = vcmp.eq.s32.totalorder %v12742_v51, 1  ;;  %v4860_v58 = vmax.f32 %v10306_v6, %v4859_v30  ;;  %v10459_v2 = vsel %vm5183_vm5, 1, %v12407_v63  ;;  %v3345_v28 = vsel %vm3329_vm2, %v10232_v48, -inf  ;;  %v12761_v51 = vld [vmem:[#allocation51_spill] sm:$0xff] }
 0x780   : > { %12743 = vst [vmem:[#allocation63_spill] sm:$0xff] %v10459_v2  ;;  %v3518_v17 = vsel %vm1688_vm3, %v3493_v11, -inf  ;;  %vm3479_vm0 = vcmp.eq.s32.totalorder %v12744_v25, 1  ;;  %v3045_v4 = vsel %vm1688_vm3, %v2999_v21, 0.0  ;;  %v10470_v6 = vsel %vm5180_vm7, 1, %v12407_v63  ;;  %v12747_v11 = vld [vmem:[#allocation178_spill] sm:$0xff] }
 0x781   : > { %12745 = vst [vmem:[#allocation170_spill] sm:$0xff] %v10470_v6  ;;  %v10475_v57 = vsel %vm5471_vm14, 1, %v12407_v63  ;;  %v3494_v55 = vsel %vm3478_vm9, %v10232_v48, -inf  ;;  %v4861_v30 = vsel %vm1688_vm3, %v4835_v19, -inf  ;;  %v4863_v12 = vsel %vm1688_vm3, %v4836_v33, -inf  ;;  %3046 = vadd.xlane.f32.xlu0 %v3045_v4  ;;  %4928 = vperm.xlu1 %6908, %v12747_v11   ;;  %v10484_v21 = vld [vmem:[%s7314_s23 + $0x50] sm:$0xff] }
 0x782   : > { %12746 = vst [vmem:[#allocation168_spill] sm:$0xff] %v10475_v57  ;;  %vm5182_vm2 = vcmp.eq.s32.totalorder %v10484_v21, 13  ;;  %v3370_v8 = vmax.f32 %v10311_v15, %v3369_v61  ;;  %v12748_v6 = vld [vmem:[#allocation166_spill] sm:$0xff]  ;;  %v10490_v57 = vsel %vm1688_vm3, %v3345_v28, -inf  ;;  %v12749_v49 = vmax.f32 %v10000_v44, %v10175_v38  ;;  %v12750_v11 = vld [vmem:[#allocation167_spill] sm:$0xff]  ;;  %v10505_v28 = vpop.permute.xlu1 %4916 }
 0x783   : > { %vm5473_vm12 = vcmp.eq.s32.totalorder %v12748_v6, 15  ;;  %v3519_v33 = vmax.f32 %v10367_v47, %v3518_v17  ;;  %v4865_v4 = vmax.f32 %v4858_v42, %v4860_v58  ;;  %vm5322_vm9 = vcmp.eq.s32.totalorder %v12736_v23, 14  ;;  %v12752_v47 = vld [vmem:[#allocation17_spill] sm:$0xff]  ;;  %v12753_v42 = vld [vmem:[#allocation179_spill] sm:$0xff] }
 0x784   : > { %v10495_v19 = vmax.f32 %v12749_v49, %v3514_v18  ;;  %vm5475_vm4 = vcmp.eq.s32.totalorder %v12750_v11, 15  ;;  %v10501_v2 = vsel %vm1688_vm3, %v3494_v55, -inf  ;;  %v4862_v15 = vmax.f32 %v10335_v13, %v4861_v30  ;;  %v12757_v55 = vld [vmem:[#allocation173_spill] sm:$0xff]  ;;  %v12760_v11 = vld [vmem:[#allocation12_spill] sm:$0xff] }
 0x785   : > { %v4864_v61 = vmax.f32 %v10394_v35, %v4863_v12  ;;  %v10508_v38 = vsel %vm5182_vm2, 1, %v12407_v63  ;;  %v3517_v44 = vmax.f32 %v10362_v24, %v3516_v62  ;;  %vm3628_vm5 = vcmp.eq.s32.totalorder %v12752_v47, 1  ;;  %4934 = vperm.xlu1 %6908, %v12753_v42   ;;  %v12767_v62 = vld [vmem:[#allocation16_spill] sm:$0xff] }
 0x786   : > { %12751 = vst [vmem:[#allocation34_spill] sm:$0xff] %v10508_v38  ;;  %vm4955_vm13 = vcmp.eq.s32.totalorder %v4911_v34, 1  ;;  %v10516_v18 = vsel %vm5473_vm12, 1, %v12407_v63  ;;  %v3372_v13 = vmax.f32 %v10351_v46, %v10490_v57  ;;  %v10520_v35 = vmax.f32 %v3368_v59, %v3370_v8  ;;  %v4923_v12 = vpop.permute.xlu1 %4922  ;;  %v12758_v8 = vld [vmem:[#allocation182_spill] sm:$0xff]  ;;  %v12826_v38 = vld [vmem:[#allocation35_spill] sm:$0xff] }
 0x787   : > { %12754 = vst [vmem:[#allocation47_spill] sm:$0xff] %v10516_v18  ;;  %v10523_v23 = vsel %vm5322_vm9, 1, %v12407_v63  ;;  %v10526_v24 = vsel %vm5475_vm4, 1, %v12407_v63  ;;  %v10530_v58 = vmax.f32 %v3517_v44, %v3519_v33  ;;  %v3346_v17 = vsel %vm3330_vm1, %v10435_v5, -inf  ;;  %v12762_v44 = vld [vmem:[#allocation69_spill] sm:$0xff]  ;;  %v12824_v18 = vld [vmem:[#allocation72_spill] sm:$0xff] }
 0x788   : > { %12755 = vst [vmem:[#allocation151_spill] sm:$0xff] %v10523_v23  ;;  %12756 = vst [vmem:[#allocation171_spill] sm:$0xff] %v10526_v24  ;;  %v3639_v46 = vsel %vm3623_vm10, %v10024_v27, -inf  ;;  %v3640_v59 = vsel %vm3624_vm11, %v10076_v20, -inf  ;;  %v3641_v34 = vsel %vm3625_vm8, %v10130_v7, -inf  ;;  %v4866_v57 = vmax.f32 %v4862_v15, %v4864_v61  ;;  %v12821_v24 = vld [vmem:[#allocation68_spill] sm:$0xff] }
 0x789   : > { %v4971_v30 = vsel %vm4955_vm13, %v12757_v55, -inf  ;;  %v3642_v0 = vsel %vm3626_vm15, %v10183_v26, -inf  ;;  %v3643_v54 = vsel %vm3627_vm6, %v10232_v48, -inf  ;;  %vm4959_vm7 = vcmp.eq.s32.totalorder %v4923_v12, 1  ;;  %4940 = vperm.xlu1 %6908, %v12758_v8   ;;  %v12765_v12 = vld [vmem:[#allocation14_spill] sm:$0xff]  ;;  %v12822_v23 = vld [vmem:[#allocation87_spill] sm:$0xff] }
 0x78a   : > { %v3495_v52 = vsel %vm3479_vm0, %v10435_v5, -inf  ;;  %v3656_v49 = vmax.f32 %v12759_v56, %v10220_v31  ;;  %v3659_v33 = vsel %vm1688_vm3, %v10326_v41, -inf  ;;  %vm3770_vm14 = vcmp.eq.s32.totalorder %v12760_v11, 1 }
 0x78b   : > { %v4975_v15 = vsel %vm4959_vm7, %v12761_v51, -inf  ;;  %vm5324_vm1 = vcmp.eq.s32.totalorder %v12748_v6, 14  ;;  %v3373_v29 = vsel %vm1688_vm3, %v3346_v17, -inf  ;;  %v3657_v61 = vsel %vm1688_vm3, %v10288_v1, -inf }
 0x78c   : > { %vm3771_vm10 = vcmp.eq.s32.totalorder %v12762_v44, 1  ;;  %v10567_v25 = vsel %vm1688_vm3, %v4971_v30, -inf  ;;  %v10570_v31 = vsel %vm1688_vm3, %v4975_v15, -inf  ;;  %v3661_v41 = vsel %vm1688_vm3, %v3639_v46, -inf  ;;  %v12768_v15 = vld [vmem:[#allocation71_spill] sm:$0xff] }
 0x78d   : > { %12763 = vst [vmem:[#allocation169_spill] sm:$0xff] %v10567_v25  ;;  %12764 = vst [vmem:[#allocation21_spill] sm:$0xff] %v10570_v31  ;;  %v3667_v42 = vsel %vm1688_vm3, %v3642_v0, -inf  ;;  %vm3772_vm8 = vcmp.eq.s32.totalorder %v12765_v12, 1  ;;  %v4867_v8 = vmax.f32 %v4865_v4, %v4866_v57  ;;  %v3522_v1 = vsel %vm1688_vm3, %v3495_v52, -inf  ;;  %v12769_v46 = vld [vmem:[#allocation183_spill] sm:$0xff] }
 0x78e   : > { %v12766_v56 = vmax.f32 %v9900_v36, %v10150_v32  ;;  %vm3774_vm11 = vcmp.eq.s32.totalorder %v12767_v62, 1  ;;  %vm3773_vm6 = vcmp.eq.s32.totalorder %v12768_v15, 1  ;;  %vm4954_vm15 = vcmp.eq.s32.totalorder %v10376_v10, 1  ;;  %4946 = vperm.xlu1 %6908, %v12769_v46   ;;  %v12770_v57 = vld [vmem:[#allocation59_spill] sm:$0xff]  ;;  %v12773_v25 = vld [vmem:[#allocation18_spill] sm:$0xff]  ;;  %v12774_v36 = vld [vmem:[#allocation73_spill] sm:$0xff] }
 0x78f   : > { %v3374_v4 = vmax.f32 %v10413_v39, %v3373_v29  ;;  %v12771_v0 = vld [vmem:[#allocation7_spill] sm:$0xff]  ;;  %v3663_v52 = vsel %vm1688_vm3, %v3640_v59, -inf  ;;  %vm3776_vm0 = vcmp.eq.s32.totalorder %v12773_v25, 1  ;;  %vm3775_vm2 = vcmp.eq.s32.totalorder %v12774_v36, 1  ;;  %v12775_v39 = vld [vmem:[#allocation174_spill] sm:$0xff]  ;;  %v10684_v36 = vpop.permute.xlu0 %4913 }
 0x790   : > { %v3660_v30 = vmax.f32 %v12766_v56, %v3659_v33  ;;  %v12772_v17 = vmax.f32 %v12770_v57, %v12771_v0  ;;  %v3644_v32 = vsel %vm3628_vm5, %v10435_v5, -inf  ;;  %v3665_v33 = vsel %vm1688_vm3, %v3641_v34, -inf  ;;  %v7120_v29 = vld [vmem:[%s7314_s23 + $0x28] sm:$0xff]  ;;  %v7122_v25 = vld [vmem:[%s7314_s23 + $0x10] sm:$0xff] }
 0x791   : > { %v3669_v46 = vsel %vm1688_vm3, %v3643_v54, -inf  ;;  %vm5477_vm12 = vcmp.eq.s32.totalorder %v12775_v39, 15  ;;  %vm5326_vm9 = vcmp.eq.s32.totalorder %v7120_v29, 14  ;;  %vm5330_vm4 = vcmp.eq.s32.totalorder %v9574_v16, 14 }
 0x792   : > { %v3658_v31 = vmax.f32 %v12772_v17, %v3657_v61  ;;  %v3668_v56 = vmax.f32 %v3660_v30, %v3667_v42  ;;  %v3523_v59 = vmax.f32 %v10495_v19, %v3522_v1  ;;  %v12776_v61 = vld [vmem:[#allocation172_spill] sm:$0xff]  ;;  %v4868_v57 = vrot.slane %v4867_v8, 4  ;;  %v12779_v42 = vld [vmem:[#allocation75_spill] sm:$0xff] }
 0x793   : > { %v4970_v17 = vsel %vm4954_vm15, %v12776_v61, -inf  ;;  %v10607_v47 = vsel %vm5324_vm1, 1, %v12407_v63  ;;  %v12778_v34 = vmax.f32 %v9945_v50, %v10178_v37  ;;  %vm3777_vm5 = vcmp.eq.s32.totalorder %v12779_v42, 1  ;;  %v12780_v30 = vld [vmem:[#allocation184_spill] sm:$0xff] }
 0x794   : > { %12777 = vst [vmem:[#allocation33_spill] sm:$0xff] %v10607_v47  ;;  %4952 = vperm.xlu1 %6908, %v12780_v30   ;;  %v3376_v16 = vmax.f32 %v3372_v13, %v3374_v4  ;;  %v3664_v19 = vmax.f32 %v3656_v49, %v3663_v52  ;;  %v3666_v1 = vmax.f32 %v3658_v31, %v3665_v33  ;;  %v3671_v10 = vsel %vm1688_vm3, %v3644_v32, -inf  ;;  %v12820_v47 = vld [vmem:[#allocation66_spill] sm:$0xff] }
 0x795   : > { %v3662_v54 = vmax.f32 %v12778_v34, %v3661_v41  ;;  %v10616_v0 = vsel %vm5477_vm12, 1, %v12407_v63  ;;  %v10619_v6 = vsel %vm5326_vm9, 1, %v12407_v63  ;;  %v10622_v29 = vsel %vm5330_vm4, 1, %v12407_v63  ;;  %v12786_v41 = vld [vmem:[#allocation5_spill] sm:$0xff]  ;;  %v12794_v34 = vld [vmem:[#allocation188_spill] sm:$0xff] }
 0x796   : > { %12781 = vst [vmem:[#allocation180_spill] sm:$0xff] %v10616_v0  ;;  %12782 = vst [vmem:[#allocation176_spill] sm:$0xff] %v10619_v6  ;;  %v10625_v37 = vsel %vm1688_vm3, %v4970_v17, -inf  ;;  %v12785_v13 = vmax.f32 %v10423_v14, %v10501_v2  ;;  %v3673_v31 = vmax.f32 %v3666_v1, %v3668_v56  ;;  %v10633_v4 = vsel %vm3770_vm14, %v12786_v41, -inf  ;;  %v7121_v14 = vld [vmem:[%s7314_s23] sm:$0xff]  ;;  %v12819_v0 = vld [vmem:[#allocation56_spill] sm:$0xff] }
 0x797   : > { %12783 = vst [vmem:[#allocation185_spill] sm:$0xff] %v10622_v29  ;;  %v3670_v50 = vmax.f32 %v3662_v54, %v3669_v46  ;;  %12784 = vst [vmem:[#allocation165_spill] sm:$0xff] %v10625_v37  ;;  %v4869_v52 = vmax.f32 %v4867_v8, %v4868_v57  ;;  %vm5328_vm13 = vcmp.eq.s32.totalorder %v12775_v39, 14  ;;  %v3672_v32 = vmax.f32 %v3664_v19, %v3671_v10  ;;  %v12787_v46 = vld [vmem:[#allocation186_spill] sm:$0xff]  ;;  %v12788_v8 = vld [vmem:[#allocation177_spill] sm:$0xff] }
 0x798   : > { %v3525_v49 = vmax.f32 %v12785_v13, %v3523_v59  ;;  %v10639_v33 = vsel %vm3771_vm10, %v9964_v22, -inf  ;;  %5059 = vperm.xlu1 %6908, %v12787_v46   ;;  %vm5332_vm7 = vcmp.eq.s32.totalorder %v12733_v3, 14  ;;  %vm5470_vm1 = vcmp.eq.s32.totalorder %v7121_v14, 15  ;;  %v12793_v17 = vld [vmem:[#allocation181_spill] sm:$0xff]  ;;  %v12796_v10 = vld [vmem:[#allocation27_spill] sm:$0xff]  ;;  %v12797_v13 = vld [vmem:[#allocation190_spill] sm:$0xff] }
 0x799   : > { %v3377_v2 = vmax.f32 %v10520_v35, %v3376_v16  ;;  %v10648_v11 = vsel %vm3772_vm8, %v10024_v27, -inf  ;;  %vm4957_vm14 = vcmp.eq.s32.totalorder %v10505_v28, 1  ;;  %vm5185_vm15 = vcmp.eq.s32.totalorder %v12788_v8, 13  ;;  %v12789_v35 = vld [vmem:[#allocation187_spill] sm:$0xff]  ;;  %v10692_v16 = vld [vmem:[%s7314_s23 + $0x78] sm:$0xff]  ;;  %v7124_v19 = vld [vmem:[%s7314_s23 + $0x20] sm:$0xff] }
 0x79a   : > { %v10655_v44 = vsel %vm3773_vm6, %v10076_v20, -inf  ;;  %v10660_v3 = vsel %vm3774_vm11, %v10130_v7, -inf  ;;  %4925 = vperm.xlu0 %6909, %v12789_v35   ;;  %v10664_v12 = vsel %vm5328_vm13, 1, %v12407_v63  ;;  %v3526_v28 = vmax.f32 %v10530_v58, %v3525_v49  ;;  %v7125_v49 = vld [vmem:[%s7314_s23 + $0x48] sm:$0xff]  ;;  %v12798_v46 = vld [vmem:[#allocation40_spill] sm:$0xff]  ;;  %v12799_v8 = vld [vmem:[#allocation65_spill] sm:$0xff] }
 0x79b   : > { %12790 = vst [vmem:[#allocation36_spill] sm:$0xff] %v10664_v12  ;;  %v10670_v15 = vsel %vm3775_vm2, %v10183_v26, -inf  ;;  %v10675_v62 = vsel %vm3776_vm0, %v10232_v48, -inf  ;;  %v4870_v56 = vrot.slane %v4869_v52, 2  ;;  %v10678_v39 = vsel %vm5332_vm7, 1, %v12407_v63  ;;  %v12818_v29 = vld [vmem:[#allocation10_spill] sm:$0xff] }
 0x79c   : > { %12791 = vst [vmem:[#allocation46_spill] sm:$0xff] %v10678_v39  ;;  %v10681_v59 = vsel %vm5470_vm1, 1, %v12407_v63  ;;  %v3674_v58 = vmax.f32 %v3670_v50, %v3672_v32  ;;  %v4973_v57 = vsel %vm4957_vm14, %v12793_v17, -inf  ;;  %5065 = vperm.xlu1 %6908, %v12794_v34   ;;  %v10688_v54 = vsel %vm5185_vm15, 1, %v12407_v63 }
 0x79d   : > { %12792 = vst [vmem:[#allocation48_spill] sm:$0xff] %v10681_v59  ;;  %12795 = vst [vmem:[#allocation13_spill] sm:$0xff] %v10688_v54  ;;  %vm5472_vm10 = vcmp.eq.s32.totalorder %v7122_v25, 15  ;;  %v3378_v30 = vrot.slane %v3377_v2, 4  ;;  %vm5187_vm8 = vcmp.eq.s32.totalorder %v10692_v16, 13  ;;  %vm5474_vm11 = vcmp.eq.s32.totalorder %v7124_v19, 15 }
 0x79e   : > { %v3793_v1 = vsel %vm3777_vm5, %v10435_v5, -inf  ;;  %v10701_v50 = vsel %vm1688_vm3, %v12796_v10, -inf  ;;  %4931 = vperm.xlu0 %6909, %v12797_v13   ;;  %vm5479_vm6 = vcmp.eq.s32.totalorder %v7125_v49, 15  ;;  %v3527_v32 = vrot.slane %v3526_v28, 4  ;;  %v12802_v13 = vld [vmem:[#allocation191_spill] sm:$0xff]  ;;  %v12813_v59 = vld [vmem:[#allocation53_spill] sm:$0xff] }
 0x79f   : > { %v3797_v14 = vsel %vm1688_vm3, %v12798_v46, -inf  ;;  %v3800_v35 = vsel %vm1688_vm3, %v12799_v8, -inf  ;;  %v10709_v34 = vmax.f32 %v4869_v52, %v4870_v56  ;;  %v10712_v42 = vsel %vm1688_vm3, %v4973_v57, -inf  ;;  %v12805_v57 = vld [vmem:[#allocation61_spill] sm:$0xff]  ;;  %v12807_v8 = vld [vmem:[#allocation8_spill] sm:$0xff] }
 0x7a0   : > { %12800 = vst [vmem:[#allocation50_spill] sm:$0xff] %v10712_v42  ;;  %v10716_v19 = vsel %vm5472_vm10, 1, %v12407_v63  ;;  %v3675_v10 = vmax.f32 %v3673_v31, %v3674_v58  ;;  %5071 = vperm.xlu1 %6908, %v12802_v13   ;;  %v10722_v49 = vsel %vm5187_vm8, 1, %v12407_v63  ;;  %v10725_v52 = vsel %vm5474_vm11, 1, %v12407_v63  ;;  %v7126_v31 = vld [vmem:[%s7314_s23 + $0x30] sm:$0xff]  ;;  %v7127_v58 = vld [vmem:[%s7314_s23 + $0x58] sm:$0xff]  ;;  %v4920_v42 = vpop.permute.xlu0 %4919 }
 0x7a1   : > { %12801 = vst [vmem:[#allocation15_spill] sm:$0xff] %v10716_v19  ;;  %12803 = vst [vmem:[#allocation49_spill] sm:$0xff] %v10722_v49  ;;  %v10727_v56 = vmax.f32 %v3377_v2, %v3378_v30  ;;  %v3799_v25 = vmax.f32 %v12805_v57, %v10701_v50  ;;  %v10732_v46 = vsel %vm5479_vm6, 1, %v12407_v63  ;;  %vm5476_vm0 = vcmp.eq.s32.totalorder %v7126_v31, 15  ;;  %v12808_v19 = vld [vmem:[#allocation192_spill] sm:$0xff]  ;;  %v10739_v49 = vld [vmem:[%s7314_s23 + $0x40] sm:$0xff] }
 0x7a2   : > { %12804 = vst [vmem:[#allocation178_spill] sm:$0xff] %v10725_v52  ;;  %12806 = vst [vmem:[#allocation166_spill] sm:$0xff] %v10732_v46  ;;  %vm5481_vm2 = vcmp.eq.s32.totalorder %v7127_v58, 15  ;;  %v3801_v13 = vmax.f32 %v12807_v8, %v3800_v35  ;;  %4937 = vperm.xlu0 %6909, %v12808_v19   ;;  %vm5329_vm12 = vcmp.eq.s32.totalorder %v10739_v49, 14  ;;  %v10743_v2 = vld [vmem:[%s7314_s23 + $0x68] sm:$0xff]  ;;  %v3528_v30 = vmax.f32 %v3526_v28, %v3527_v32  ;;  %v12809_v50 = vld [vmem:[#allocation9_spill] sm:$0xff] }
 0x7a3   : > { %vm5334_vm9 = vcmp.eq.s32.totalorder %v10743_v2, 14  ;;  %v3804_v57 = vsel %vm1688_vm3, %v12809_v50, -inf  ;;  %v12810_v46 = vld [vmem:[#allocation20_spill] sm:$0xff]  ;;  %v12811_v52 = vld [vmem:[#allocation77_spill] sm:$0xff]  ;;  %v12812_v35 = vld [vmem:[#allocation83_spill] sm:$0xff]  ;;  %v4872_v19 = vrot.slane %v10709_v34, 1 }
 0x7a4   : > { %vm3911_vm4 = vcmp.eq.s32.totalorder %v12810_v46, 1  ;;  %vm3912_vm5 = vcmp.eq.s32.totalorder %v12811_v52, 1  ;;  %vm3918_vm13 = vcmp.eq.s32.totalorder %v12812_v35, 1  ;;  %vm4956_vm7 = vcmp.eq.s32.totalorder %v10684_v36, 1  ;;  %v12814_v28 = vld [vmem:[#allocation79_spill] sm:$0xff]  ;;  %v12815_v32 = vld [vmem:[#allocation81_spill] sm:$0xff] }
 0x7a5   : > { %v3676_v8 = vrot.slane %v3675_v10, 4  ;;  %v3808_v54 = vsel %vm1688_vm3, %v10639_v33, -inf  ;;  %vm3913_vm1 = vcmp.eq.s32.totalorder %v12813_v59, 1  ;;  %v12816_v50 = vld [vmem:[#allocation57_spill] sm:$0xff]  ;;  %v10761_v39 = vsel %vm5476_vm0, 1, %v12407_v63 }
 0x7a6   : > { %5077 = vperm.xlu1 %6908, %v12816_v50   ;;  %12817 = vst [vmem:[#allocation167_spill] sm:$0xff] %v10761_v39  ;;  %v3380_v12 = vrot.slane %v10727_v56, 2  ;;  %v3802_v6 = vsel %vm1688_vm3, %v12818_v29, -inf  ;;  %v3812_v33 = vsel %vm1688_vm3, %v10655_v44, -inf  ;;  %vm4958_vm15 = vcmp.eq.s32.totalorder %v4920_v42, 1  ;;  %v12823_v29 = vld [vmem:[#allocation70_spill] sm:$0xff]  ;;  %4943 = vperm.xlu0 %6909, %v12826_v38  }
 0x7a7   : > { %v3805_v31 = vmax.f32 %v3797_v14, %v3804_v57  ;;  %v3806_v50 = vsel %vm1688_vm3, %v10633_v4, -inf  ;;  %v3816_v39 = vsel %vm1688_vm3, %v10670_v15, -inf  ;;  %vm3921_vm0 = vcmp.eq.s32.totalorder %v12823_v29, 1  ;;  %v12825_v44 = vld [vmem:[#allocation85_spill] sm:$0xff]  ;;  %v12827_v57 = vld [vmem:[#allocation74_spill] sm:$0xff]  ;;  %v12829_v15 = vld [vmem:[#allocation91_spill] sm:$0xff] }
 0x7a8   : > { %vm3923_vm14 = vcmp.eq.s32.totalorder %v12824_v18, 1  ;;  %vm3920_vm10 = vcmp.eq.s32.totalorder %v12825_v44, 1  ;;  %v3529_v53 = vrot.slane %v3528_v30, 2  ;;  %v3809_v9 = vmax.f32 %v3801_v13, %v3808_v54  ;;  %v12828_v4 = vld [vmem:[#allocation89_spill] sm:$0xff]  ;;  %v12831_v54 = vld [vmem:[#allocation52_spill] sm:$0xff]  ;;  %v12852_v18 = vld [vmem:[#allocation98_spill] sm:$0xff] }
 0x7a9   : > { %v3810_v45 = vsel %vm1688_vm3, %v10648_v11, -inf  ;;  %v3820_v14 = vsel %vm1688_vm3, %v3793_v1, -inf  ;;  %vm3925_vm6 = vcmp.eq.s32.totalorder %v12827_v57, 1  ;;  %vm3924_vm11 = vcmp.eq.s32.totalorder %v12828_v4, 1  ;;  %v12854_v57 = vld [vmem:[#allocation78_spill] sm:$0xff] }
 0x7aa   : > { %vm3926_vm8 = vcmp.eq.s32.totalorder %v12829_v15, 1  ;;  %v10786_v40 = vmax.f32 %v3675_v10, %v3676_v8  ;;  %v3803_v60 = vmax.f32 %v12830_v43, %v3802_v6  ;;  %v3813_v37 = vmax.f32 %v3805_v31, %v3812_v33  ;;  %5083 = vperm.xlu1 %6908, %v12831_v54   ;;  %v12833_v15 = vld [vmem:[#allocation175_spill] sm:$0xff]  ;;  %v12850_v54 = vld [vmem:[#allocation45_spill] sm:$0xff] }
 0x7ab   : > { %v3814_v38 = vsel %vm1688_vm3, %v10660_v3, -inf  ;;  %v10794_v11 = vsel %vm5481_vm2, 1, %v12407_v63  ;;  %v3807_v1 = vmax.f32 %v3799_v25, %v3806_v50  ;;  %v3817_v13 = vmax.f32 %v3809_v9, %v3816_v39  ;;  %v12836_v25 = vld [vmem:[#allocation189_spill] sm:$0xff]  ;;  %v12843_v33 = vld [vmem:[#allocation195_spill] sm:$0xff] }
 0x7ac   : > { %12832 = vst [vmem:[#allocation17_spill] sm:$0xff] %v10794_v11  ;;  %v3818_v5 = vsel %vm1688_vm3, %v10675_v62, -inf  ;;  %v10801_v10 = vsel %vm4956_vm7, %v12833_v15, -inf  ;;  %v10806_v43 = vsel %vm5329_vm12, 1, %v12407_v63  ;;  %v3811_v6 = vmax.f32 %v3803_v60, %v3810_v45  ;;  %v12837_v62 = vld [vmem:[#allocation193_spill] sm:$0xff]  ;;  %v12845_v50 = vld [vmem:[#allocation19_spill] sm:$0xff] }
 0x7ad   : > { %12834 = vst [vmem:[#allocation179_spill] sm:$0xff] %v10806_v43  ;;  %v3821_v3 = vmax.f32 %v3813_v37, %v3820_v14  ;;  %v10809_v58 = vmax.f32 %v10709_v34, %v4872_v19  ;;  %v10813_v9 = vsel %vm4958_vm15, %v12836_v25, -inf  ;;  %4949 = vperm.xlu0 %6909, %v12837_v62   ;;  %v10819_v39 = vsel %vm5334_vm9, 1, %v12407_v63  ;;  %v12839_v34 = vld [vmem:[#allocation194_spill] sm:$0xff] }
 0x7ae   : > { %12838 = vst [vmem:[#allocation182_spill] sm:$0xff] %v10819_v39  ;;  %v3815_v36 = vmax.f32 %v3807_v1, %v3814_v38  ;;  %v10822_v8 = vmax.f32 %v10727_v56, %v3380_v12  ;;  %v10824_v60 = vmax.f32 %v3528_v30, %v3529_v53  ;;  %v3678_v45 = vrot.slane %v10786_v40, 2  ;;  %5089 = vperm.xlu1 %6908, %v12839_v34   ;;  %v12840_v56 = vld [vmem:[#allocation37_spill] sm:$0xff]  ;;  %v12856_v34 = vld [vmem:[#allocation23_spill] sm:$0xff]  ;;  %v12861_v39 = vld [vmem:[#allocation80_spill] sm:$0xff] }
 0x7af   : > { %12835 = vst [vmem:[#allocation173_spill] sm:$0xff] %v10809_v58  ;;  %v3819_v37 = vmax.f32 %v3811_v6, %v3818_v5  ;;  %vm5331_vm2 = vcmp.eq.s32.totalorder %v10484_v21, 14  ;;  %v3927_v19 = vsel %vm3911_vm4, %v12776_v61, -inf  ;;  %v3928_v12 = vsel %vm3912_vm5, %v12757_v55, -inf  ;;  %v10842_v5 = vld [vmem:[%s7314_s23 + $0x60] sm:$0xff] }
 0x7b0   : > { %v10829_v42 = vmax.f32 %v3815_v36, %v3817_v13  ;;  %v3934_v53 = vsel %vm3918_vm13, %v12840_v56, -inf  ;;  %vm5336_vm12 = vcmp.eq.s32.totalorder %v10692_v16, 14  ;;  %vm5184_vm9 = vcmp.eq.s32.totalorder %v10842_v5, 13  ;;  %v12853_v36 = vld [vmem:[#allocation76_spill] sm:$0xff] }
 0x7b1   : > { %vm5483_vm7 = vcmp.eq.s32.totalorder %v10743_v2, 15  ;;  %v3823_v30 = vmax.f32 %v3819_v37, %v3821_v3  ;;  %v3929_v46 = vsel %vm3913_vm1, %v12833_v15, -inf  ;;  %vm12841_vm4 = vcmp.eq.s32.totalorder %v12814_v28, 1  ;;  %5056 = vperm.xlu0 %6909, %v12843_v33   ;;  %v12855_v37 = vld [vmem:[#allocation93_spill] sm:$0xff] }
 0x7b2   : > { %v3930_v52 = vsel %vm12841_vm4, %v12793_v17, -inf  ;;  %vm12842_vm5 = vcmp.eq.s32.totalorder %v12815_v32, 1  ;;  %vm12844_vm13 = vcmp.eq.s32.totalorder %v12819_v0, 1  ;;  %vm12846_vm15 = vcmp.eq.s32.totalorder %v12820_v47, 1 }
 0x7b3   : > { %v3932_v35 = vsel %vm12842_vm5, %v12761_v51, -inf  ;;  %v3931_v31 = vsel %vm12844_vm13, %v12836_v25, -inf  ;;  %v3933_v14 = vsel %vm12846_vm15, %v12845_v50, -inf  ;;  %vm12847_vm1 = vcmp.eq.s32.totalorder %v12821_v24, 1  ;;  %v12849_v24 = vld [vmem:[#allocation196_spill] sm:$0xff] }
 0x7b4   : > { %v3935_v59 = vsel %vm12847_vm1, %v12786_v41, -inf  ;;  %vm12848_vm4 = vcmp.eq.s32.totalorder %v12822_v23, 1  ;;  %v3936_v32 = vsel %vm3920_vm10, %v9964_v22, -inf  ;;  %v3937_v0 = vsel %vm3921_vm0, %v10024_v27, -inf  ;;  %5095 = vperm.xlu1 %6908, %v12849_v24   ;;  %v12860_v24 = vld [vmem:[#allocation102_spill] sm:$0xff] }
 0x7b5   : > { %v3938_v28 = vsel %vm12848_vm4, %v10076_v20, -inf  ;;  %v3939_v47 = vsel %vm3923_vm14, %v10130_v7, -inf  ;;  %v3953_v38 = vsel %vm1688_vm3, %v3934_v53, -inf  ;;  %v3940_v23 = vsel %vm3924_vm11, %v10183_v26, -inf  ;;  %5062 = vperm.xlu0 %6909, %v12856_v34  }
 0x7b6   : > { %v3941_v44 = vsel %vm3925_vm6, %v10232_v48, -inf  ;;  %v3942_v29 = vsel %vm3926_vm8, %v12850_v54, -inf  ;;  %v3949_v13 = vsel %vm1688_vm3, %v3932_v35, -inf  ;;  %vm4067_vm14 = vcmp.eq.s32.totalorder %v12852_v18, 1 }
 0x7b7   : > { %v3943_v6 = vsel %vm1688_vm3, %v3927_v19, -inf  ;;  %v3946_v3 = vsel %vm1688_vm3, %v3930_v52, -inf  ;;  %v3951_v62 = vsel %vm1688_vm3, %v3933_v14, -inf  ;;  %v3961_v4 = vsel %vm1688_vm3, %v3938_v28, -inf  ;;  %v12857_v52 = vld [vmem:[#allocation82_spill] sm:$0xff]  ;;  %v12858_v14 = vld [vmem:[#allocation95_spill] sm:$0xff] }
 0x7b8   : > { %vm4060_vm10 = vcmp.eq.s32.totalorder %v12853_v36, 1  ;;  %vm4062_vm11 = vcmp.eq.s32.totalorder %v12854_v57, 1  ;;  %vm4061_vm6 = vcmp.eq.s32.totalorder %v12855_v37, 1  ;;  %v3944_v53 = vsel %vm1688_vm3, %v3928_v12, -inf  ;;  %v12859_v28 = vld [vmem:[#allocation97_spill] sm:$0xff] }
 0x7b9   : > { %v3947_v35 = vsel %vm1688_vm3, %v3931_v31, -inf  ;;  %v3954_v33 = vmax.f32 %v3946_v3, %v3953_v38  ;;  %v3957_v19 = vsel %vm1688_vm3, %v3936_v32, -inf  ;;  %vm4063_vm0 = vcmp.eq.s32.totalorder %v12858_v14, 1  ;;  %v12862_v31 = vld [vmem:[#allocation84_spill] sm:$0xff]  ;;  %v12864_v38 = vld [vmem:[#allocation25_spill] sm:$0xff] }
 0x7ba   : > { %v3945_v1 = vsel %vm1688_vm3, %v3929_v46, -inf  ;;  %v3950_v58 = vmax.f32 %v3944_v53, %v3949_v13  ;;  %v3959_v34 = vsel %vm1688_vm3, %v3937_v0, -inf  ;;  %v3969_v12 = vsel %vm1688_vm3, %v3942_v29, -inf  ;;  %v12863_v32 = vld [vmem:[#allocation100_spill] sm:$0xff]  ;;  %5101 = vperm.xlu1 %6908, %v12864_v38   ;;  %v12865_v46 = vld [vmem:[#allocation86_spill] sm:$0xff]  ;;  %v12866_v13 = vld [vmem:[#allocation103_spill] sm:$0xff] }
 0x7bb   : > { %vm4064_vm15 = vcmp.eq.s32.totalorder %v12861_v39, 1  ;;  %vm4068_vm1 = vcmp.eq.s32.totalorder %v12862_v31, 1  ;;  %vm4069_vm4 = vcmp.eq.s32.totalorder %v12863_v32, 1  ;;  %v3952_v3 = vmax.f32 %v3945_v1, %v3951_v62  ;;  %v12867_v0 = vld [vmem:[#allocation105_spill] sm:$0xff]  ;;  %v12868_v38 = vld [vmem:[#allocation38_spill] sm:$0xff] }
 0x7bc   : > { %v3955_v43 = vsel %vm1688_vm3, %v3935_v59, -inf  ;;  %v3962_v11 = vmax.f32 %v3954_v33, %v3961_v4  ;;  %v3965_v7 = vsel %vm1688_vm3, %v3940_v23, -inf  ;;  %vm4070_vm13 = vcmp.eq.s32.totalorder %v12865_v46, 1  ;;  %5068 = vperm.xlu0 %6909, %v12868_v38   ;;  %v12869_v33 = vld [vmem:[#allocation90_spill] sm:$0xff]  ;;  %v12886_v31 = vld [vmem:[#allocation45_spill] sm:$0xff] }
 0x7bd   : > { %vm4075_vm5 = vcmp.eq.s32.totalorder %v12867_v0, 1  ;;  %v10918_v29 = vmax.f32 %v10786_v40, %v3678_v45  ;;  %v3948_v53 = vmax.f32 %v3943_v6, %v3947_v35  ;;  %v3958_v48 = vmax.f32 %v3950_v58, %v3957_v19  ;;  %v12878_v35 = vld [vmem:[#allocation198_spill] sm:$0xff]  ;;  %v12895_v19 = vld [vmem:[#allocation99_spill] sm:$0xff] }
 0x7be   : > { %v3967_v54 = vsel %vm1688_vm3, %v3941_v44, -inf  ;;  %v10923_v59 = vmax.f32 %v10829_v42, %v3823_v30  ;;  %v3960_v62 = vmax.f32 %v3952_v3, %v3959_v34  ;;  %v3963_v23 = vsel %vm1688_vm3, %v3939_v47, -inf  ;;  %v12872_v44 = vld [vmem:[#allocation197_spill] sm:$0xff]  ;;  %v12879_v38 = vld [vmem:[#allocation22_spill] sm:$0xff] }
 0x7bf   : > { %v3970_v4 = vmax.f32 %v3962_v11, %v3969_v12  ;;  %vm4074_vm8 = vcmp.eq.s32.totalorder %v12869_v33, 1  ;;  %v10929_v1 = vsel %vm1688_vm3, %v10801_v10, -inf  ;;  %v10934_v40 = vsel %vm5331_vm2, 1, %v12407_v63  ;;  %5208 = vperm.xlu1 %6908, %v12872_v44   ;;  %v12888_v46 = vld [vmem:[#allocation94_spill] sm:$0xff] }
 0x7c0   : > { %12870 = vst [vmem:[#allocation62_spill] sm:$0xff] %v10929_v1  ;;  %12871 = vst [vmem:[#allocation12_spill] sm:$0xff] %v10934_v40  ;;  %v3956_v58 = vmax.f32 %v3948_v53, %v3955_v43  ;;  %v3966_v45 = vmax.f32 %v3958_v48, %v3965_v7  ;;  %v10940_v42 = vsel %vm5336_vm12, 1, %v12407_v63  ;;  %v10945_v11 = vsel %vm5184_vm9, 1, %v12407_v63  ;;  %v12876_v43 = vld [vmem:[#allocation88_spill] sm:$0xff]  ;;  %5074 = vperm.xlu0 %6909, %v12878_v35   ;;  %v12903_v40 = vld [vmem:[#allocation106_spill] sm:$0xff] }
 0x7c1   : > { %12873 = vst [vmem:[#allocation51_spill] sm:$0xff] %v10940_v42  ;;  %12874 = vst [vmem:[#allocation69_spill] sm:$0xff] %v10945_v11  ;;  %v10950_v10 = vsel %vm5483_vm7, 1, %v12407_v63  ;;  %v3968_v30 = vmax.f32 %v3960_v62, %v3967_v54  ;;  %vm4072_vm2 = vcmp.eq.s32.totalorder %v12876_v43, 1  ;;  %v10955_v7 = vsel %vm1688_vm3, %v10813_v9, -inf  ;;  %v10976_v62 = vld [vmem:[%s7314_s23 + $0x70] sm:$0xff] }
 0x7c2   : > { %12875 = vst [vmem:[#allocation14_spill] sm:$0xff] %v10950_v10  ;;  %12877 = vst [vmem:[#allocation16_spill] sm:$0xff] %v10955_v7  ;;  %v3964_v6 = vmax.f32 %v3956_v58, %v3963_v23  ;;  %v4083_v54 = vsel %vm4067_vm14, %v12840_v56, -inf  ;;  %v4076_v9 = vsel %vm4060_vm10, %v12776_v61, -inf  ;;  %v4077_v3 = vsel %vm4061_vm6, %v12757_v55, -inf  ;;  %v12887_v35 = vld [vmem:[#allocation92_spill] sm:$0xff] }
 0x7c3   : > { %v3972_v34 = vmax.f32 %v3968_v30, %v3970_v4  ;;  %v4078_v53 = vsel %vm4062_vm11, %v12833_v15, -inf  ;;  %5214 = vperm.xlu1 %6908, %v12879_v38   ;;  %12880 = vst [vmem:[#allocation71_spill] sm:$0xff] %v10976_v62  ;;  %vm5186_vm12 = vcmp.eq.s32.totalorder %v10976_v62, 13  ;;  %vm5485_vm9 = vcmp.eq.s32.totalorder %v10692_v16, 15  ;;  %v12904_v43 = vld [vmem:[#allocation117_spill] sm:$0xff] }
 0x7c4   : > { %v3971_v12 = vmax.f32 %v3964_v6, %v3966_v45  ;;  %vm5478_vm7 = vcmp.eq.s32.totalorder %v10739_v49, 15  ;;  %vm5480_vm14 = vcmp.eq.s32.totalorder %v10484_v21, 15  ;;  %v4079_v18 = vsel %vm4063_vm0, %v12793_v17, -inf  ;;  %v12942_v7 = vld [vmem:[#allocation121_spill] sm:$0xff] }
 0x7c5   : > { %vm12881_vm10 = vcmp.eq.s32.totalorder %v12859_v28, 1  ;;  %vm12882_vm11 = vcmp.eq.s32.totalorder %v12857_v52, 1  ;;  %vm12883_vm6 = vcmp.eq.s32.totalorder %v12860_v24, 1  ;;  %v4080_v23 = vsel %vm4064_vm15, %v12836_v25, -inf  ;;  %v12884_v52 = vld [vmem:[#allocation28_spill] sm:$0xff] }
 0x7c6   : > { %v4081_v36 = vsel %vm12881_vm10, %v12761_v51, -inf  ;;  %v4082_v57 = vsel %vm12882_vm11, %v12845_v50, -inf  ;;  %v4087_v37 = vsel %vm12883_vm6, %v10076_v20, -inf  ;;  %v4084_v14 = vsel %vm4068_vm1, %v12786_v41, -inf  ;;  %5080 = vperm.xlu0 %6909, %v12884_v52  }
 0x7c7   : > { %v4085_v28 = vsel %vm4069_vm4, %v9964_v22, -inf  ;;  %v4102_v4 = vsel %vm1688_vm3, %v4083_v54, -inf  ;;  %v11005_v58 = vmax.f32 %v3971_v12, %v3972_v34  ;;  %v4086_v24 = vsel %vm4070_vm13, %v10024_v27, -inf  ;;  %v12889_v34 = vld [vmem:[#allocation107_spill] sm:$0xff]  ;;  %v12891_v54 = vld [vmem:[#allocation30_spill] sm:$0xff] }
 0x7c8   : > { %vm12885_vm0 = vcmp.eq.s32.totalorder %v12866_v13, 1  ;;  %v4091_v45 = vsel %vm4075_vm5, %v12886_v31, -inf  ;;  %v4095_v32 = vsel %vm1688_vm3, %v4079_v18, -inf  ;;  %v4098_v44 = vsel %vm1688_vm3, %v4081_v36, -inf  ;;  %v12890_v13 = vld [vmem:[#allocation6_spill] sm:$0xff]  ;;  %v12892_v36 = vld [vmem:[#allocation96_spill] sm:$0xff] }
 0x7c9   : > { %v4089_v39 = vsel %vm12885_vm0, %v10183_v26, -inf  ;;  %v4100_v30 = vsel %vm1688_vm3, %v4082_v57, -inf  ;;  %v4110_v6 = vsel %vm1688_vm3, %v4087_v37, -inf  ;;  %vm4209_vm15 = vcmp.eq.s32.totalorder %v12887_v35, 1  ;;  %5220 = vperm.xlu1 %6908, %v12890_v13   ;;  %v12893_v57 = vld [vmem:[#allocation108_spill] sm:$0xff]  ;;  %v12894_v37 = vld [vmem:[#allocation110_spill] sm:$0xff] }
 0x7ca   : > { %vm4211_vm13 = vcmp.eq.s32.totalorder %v12888_v46, 1  ;;  %vm4210_vm1 = vcmp.eq.s32.totalorder %v12889_v34, 1  ;;  %v4090_v0 = vsel %vm4074_vm8, %v12891_v54, -inf  ;;  %v4093_v12 = vsel %vm1688_vm3, %v4077_v3, -inf  ;;  %v12896_v3 = vld [vmem:[#allocation101_spill] sm:$0xff]  ;;  %v12907_v31 = vld [vmem:[#allocation118_spill] sm:$0xff] }
 0x7cb   : > { %v4094_v38 = vsel %vm1688_vm3, %v4078_v53, -inf  ;;  %v4103_v18 = vmax.f32 %v4095_v32, %v4102_v4  ;;  %vm4212_vm4 = vcmp.eq.s32.totalorder %v12893_v57, 1  ;;  %v4096_v52 = vsel %vm1688_vm3, %v4080_v23, -inf  ;;  %v12897_v53 = vld [vmem:[#allocation112_spill] sm:$0xff]  ;;  %v12898_v4 = vld [vmem:[#allocation55_spill] sm:$0xff]  ;;  %v12899_v32 = vld [vmem:[#allocation41_spill] sm:$0xff] }
 0x7cc   : > { %v4106_v2 = vsel %vm1688_vm3, %v4085_v28, -inf  ;;  %v4108_v13 = vsel %vm1688_vm3, %v4086_v24, -inf  ;;  %v4118_v33 = vsel %vm1688_vm3, %v4091_v45, -inf  ;;  %vm4215_vm8 = vcmp.eq.s32.totalorder %v12895_v19, 1  ;;  %5086 = vperm.xlu0 %6909, %v12898_v4   ;;  %v12900_v28 = vld [vmem:[#allocation104_spill] sm:$0xff]  ;;  %v12901_v24 = vld [vmem:[#allocation113_spill] sm:$0xff] }
 0x7cd   : > { %vm4216_vm6 = vcmp.eq.s32.totalorder %v12897_v53, 1  ;;  %v4088_v47 = vsel %vm4072_vm2, %v12899_v32, -inf  ;;  %v4099_v48 = vmax.f32 %v4093_v12, %v4098_v44  ;;  %v4101_v23 = vmax.f32 %v4094_v38, %v4100_v30  ;;  %v12902_v45 = vld [vmem:[#allocation115_spill] sm:$0xff]  ;;  %v12905_v44 = vld [vmem:[#allocation26_spill] sm:$0xff] }
 0x7ce   : > { %v4111_v1 = vmax.f32 %v4103_v18, %v4110_v6  ;;  %vm4218_vm10 = vcmp.eq.s32.totalorder %v12901_v24, 1  ;;  %v4092_v10 = vsel %vm1688_vm3, %v4076_v9, -inf  ;;  %v4104_v11 = vsel %vm1688_vm3, %v4084_v14, -inf  ;;  %5226 = vperm.xlu1 %6908, %v12905_v44   ;;  %v12906_v18 = vld [vmem:[#allocation109_spill] sm:$0xff] }
 0x7cf   : > { %v4114_v42 = vsel %vm1688_vm3, %v4089_v39, -inf  ;;  %v4116_v4 = vsel %vm1688_vm3, %v4090_v0, -inf  ;;  %vm4221_vm11 = vcmp.eq.s32.totalorder %v12903_v40, 1  ;;  %vm4222_vm2 = vcmp.eq.s32.totalorder %v12904_v43, 1  ;;  %v12934_v43 = vld [vmem:[#allocation120_spill] sm:$0xff] }
 0x7d0   : > { %v4097_v30 = vmax.f32 %v4092_v10, %v4096_v52  ;;  %v4107_v6 = vmax.f32 %v4099_v48, %v4106_v2  ;;  %v4109_v12 = vmax.f32 %v4101_v23, %v4108_v13  ;;  %v4119_v38 = vmax.f32 %v4111_v1, %v4118_v33  ;;  %v12913_v1 = vld [vmem:[#allocation39_spill] sm:$0xff] }
 0x7d1   : > { %vm4223_vm5 = vcmp.eq.s32.totalorder %v12906_v18, 1  ;;  %vm4224_vm0 = vcmp.eq.s32.totalorder %v12907_v31, 1  ;;  %v12909_v39 = vrot.slane %v10822_v8, 1  ;;  %v12911_v54 = vrot.slane %v10824_v60, 1  ;;  %5092 = vperm.xlu0 %6909, %v12913_v1   ;;  %v12927_v1 = vld [vmem:[#allocation29_spill] sm:$0xff]  ;;  %v12937_v31 = vld [vmem:[#allocation122_spill] sm:$0xff] }
 0x7d2   : > { %v4112_v10 = vsel %vm1688_vm3, %v4088_v47, -inf  ;;  %v12914_v48 = vrot.slane %v10918_v29, 1  ;;  %v4105_v52 = vmax.f32 %v4097_v30, %v4104_v11  ;;  %v4115_v13 = vmax.f32 %v4107_v6, %v4114_v42  ;;  %v3002_v42 = vpop.xlane.xlu0 %3001  ;;  %v12920_v11 = vld [vmem:[#allocation67_spill] sm:$0xff] }
 0x7d3   : > { %v11060_v0 = vmax.f32 %v10822_v8, %v12909_v39  ;;  %v11065_v44 = vmax.f32 %v10824_v60, %v12911_v54  ;;  %v4117_v33 = vmax.f32 %v4109_v12, %v4116_v4  ;;  %v11077_v8 = vsel %vm5186_vm12, 1, %v12407_v63  ;;  %5232 = vperm.xlu1 %6908, %v12920_v11   ;;  %v12923_v39 = vld [vmem:[#allocation64_spill] sm:$0xff]  ;;  %v12932_v11 = vld [vmem:[#allocation45_spill] sm:$0xff] }
 0x7d4   : > { %v11072_v2 = vmax.f32 %v10918_v29, %v12914_v48  ;;  %12916 = vst [vmem:[#allocation18_spill] sm:$0xff] %v11077_v8  ;;  %v11082_v60 = vsel %vm5485_vm9, 1, %v12407_v63  ;;  %v11087_v47 = vsel %vm5478_vm7, 1, %v12407_v63  ;;  %v11092_v29 = vsel %vm5480_vm14, 1, %v12407_v63 }
 0x7d5   : > { %12910 = vst [vmem:[#allocation183_spill] sm:$0xff] %v11060_v0  ;;  %12912 = vst [vmem:[#allocation59_spill] sm:$0xff] %v11065_v44  ;;  %v12921_v54 = vrot.slane %v10923_v59, 4  ;;  %v4113_v4 = vmax.f32 %v4105_v52, %v4112_v10  ;;  %v4121_v30 = vmax.f32 %v4117_v33, %v4119_v38  ;;  %v6043_v49 = vmul.f32 -1.442695, %v3002_v42  ;;  %5098 = vperm.xlu0 %6909, %v12923_v39   ;;  %v12930_v33 = vld [vmem:[#allocation24_spill] sm:$0xff] }
 0x7d6   : > { %12915 = vst [vmem:[#allocation7_spill] sm:$0xff] %v11072_v2  ;;  %12917 = vst [vmem:[#allocation73_spill] sm:$0xff] %v11082_v60  ;;  %v4225_v6 = vsel %vm4209_vm15, %v12776_v61, -inf  ;;  %v4226_v21 = vsel %vm4210_vm1, %v12757_v55, -inf  ;;  %v4227_v12 = vsel %vm4211_vm13, %v12833_v15, -inf  ;;  %vm5333_vm12 = vcmp.eq.s32.totalorder %v10842_v5, 14 }
 0x7d7   : > { %12918 = vst [vmem:[#allocation174_spill] sm:$0xff] %v11087_v47  ;;  %12919 = vst [vmem:[#allocation172_spill] sm:$0xff] %v11092_v29  ;;  %v11098_v23 = vmax.f32 %v10923_v59, %v12921_v54  ;;  %v4120_v59 = vmax.f32 %v4113_v4, %v4115_v13  ;;  %v4228_v38 = vsel %vm4212_vm4, %v12793_v17, -inf  ;;  %vm12924_vm9 = vcmp.eq.s32.totalorder %v12892_v36, 1  ;;  %5354 = vperm.xlu1 %6908, %v12927_v1   ;;  %v3005_v36 = vpop.xlane.xlu1 %3004  ;;  %v12931_v42 = vld [vmem:[#allocation30_spill] sm:$0xff]  ;;  %v12933_v4 = vld [vmem:[#allocation111_spill] sm:$0xff] }
 0x7d8   : > { %v4229_v35 = vsel %vm12924_vm9, %v12836_v25, -inf  ;;  %vm12925_vm7 = vcmp.eq.s32.totalorder %v12894_v37, 1  ;;  %7006 = vpow2.f32 %v6043_v49  ;;  %v4231_v46 = vsel %vm4215_vm8, %v12845_v50, -inf  ;;  %v12935_v39 = vld [vmem:[#allocation114_spill] sm:$0xff]  ;;  %v12949_v47 = vld [vmem:[#allocation129_spill] sm:$0xff] }
 0x7d9   : > { %12922 = vst [vmem:[#allocation75_spill] sm:$0xff] %v11098_v23  ;;  %v4230_v34 = vsel %vm12925_vm7, %v12761_v51, -inf  ;;  %v4232_v10 = vsel %vm4216_vm6, %v12840_v56, -inf  ;;  %vm12926_vm14 = vcmp.eq.s32.totalorder %v12896_v3, 1  ;;  %v11131_v48 = vmax.f32 %v4120_v59, %v4121_v30  ;;  %5205 = vperm.xlu0 %6909, %v12930_v33   ;;  %v12936_v59 = vld [vmem:[#allocation116_spill] sm:$0xff]  ;;  %v12946_v29 = vld [vmem:[#allocation126_spill] sm:$0xff] }
 0x7da   : > { %v4233_v57 = vsel %vm12926_vm14, %v12786_v41, -inf  ;;  %v4234_v37 = vsel %vm4218_vm10, %v9964_v22, -inf  ;;  %vm12928_vm15 = vcmp.eq.s32.totalorder %v12900_v28, 1  ;;  %vm12929_vm13 = vcmp.eq.s32.totalorder %v12902_v45, 1  ;;  %v12982_v60 = vld [vmem:[#allocation146_spill] sm:$0xff] }
 0x7db   : > { %v4235_v19 = vsel %vm12928_vm15, %v10024_v27, -inf  ;;  %v4236_v53 = vsel %vm12929_vm13, %v10076_v20, -inf  ;;  %v6044_v52 = vmul.f32 -1.442695, %v3005_v36  ;;  %v4237_v3 = vsel %vm4221_vm11, %v12899_v32, -inf }
 0x7dc   : > { %v4238_v13 = vsel %vm4222_vm2, %v10183_v26, -inf  ;;  %v4247_v24 = vsel %vm1688_vm3, %v4230_v34, -inf  ;;  %v4239_v28 = vsel %vm4223_vm5, %v12931_v42, -inf  ;;  %v4240_v45 = vsel %vm4224_vm0, %v12932_v11, -inf  ;;  %v12938_v34 = vld [vmem:[#allocation44_spill] sm:$0xff] }
 0x7dd   : > { %v4241_v54 = vsel %vm1688_vm3, %v4225_v6, -inf  ;;  %v4242_v40 = vsel %vm1688_vm3, %v4226_v21, -inf  ;;  %vm4358_vm1 = vcmp.eq.s32.totalorder %v12933_v4, 1  ;;  %vm4359_vm4 = vcmp.eq.s32.totalorder %v12934_v43, 1  ;;  %v3008_v6 = vpop.xlane.xlu0 %3007  ;;  %5360 = vperm.xlu1 %6908, %v12938_v34   ;;  %v12963_v4 = vld [vmem:[#allocation131_spill] sm:$0xff] }
 0x7de   : > { %7008 = vpow2.f32 %v6044_v52  ;;  %v4243_v30 = vsel %vm1688_vm3, %v4227_v12, -inf  ;;  %v4245_v49 = vsel %vm1688_vm3, %v4229_v35, -inf  ;;  %v4255_v18 = vsel %vm1688_vm3, %v4234_v37, -inf  ;;  %v12939_v52 = vld [vmem:[#allocation119_spill] sm:$0xff]  ;;  %v12941_v37 = vld [vmem:[#allocation125_spill] sm:$0xff] }
 0x7df   : > { %vm4360_vm5 = vcmp.eq.s32.totalorder %v12935_v39, 1  ;;  %vm4362_vm10 = vcmp.eq.s32.totalorder %v12936_v59, 1  ;;  %vm4361_vm8 = vcmp.eq.s32.totalorder %v12937_v31, 1  ;;  %v4123_v21 = vrot.slane %v11131_v48, 4  ;;  %v12940_v35 = vld [vmem:[#allocation123_spill] sm:$0xff]  ;;  %v12966_v59 = vld [vmem:[#allocation133_spill] sm:$0xff] }
 0x7e0   : > { %v4248_v1 = vmax.f32 %v4242_v40, %v4247_v24  ;;  %v4249_v36 = vsel %vm1688_vm3, %v4231_v46, -inf  ;;  %v4251_v12 = vsel %vm1688_vm3, %v4232_v10, -inf  ;;  %vm4364_vm11 = vcmp.eq.s32.totalorder %v12939_v52, 1  ;;  %v12943_v24 = vld [vmem:[#allocation124_spill] sm:$0xff]  ;;  %v12944_v46 = vld [vmem:[#allocation127_spill] sm:$0xff] }
 0x7e1   : > { %vm4363_vm6 = vcmp.eq.s32.totalorder %v12940_v35, 1  ;;  %vm4365_vm0 = vcmp.eq.s32.totalorder %v12941_v37, 1  ;;  %v6045_v33 = vmul.f32 -1.442695, %v3008_v6  ;;  %v4244_v14 = vsel %vm1688_vm3, %v4228_v38, -inf  ;;  %v12945_v10 = vld [vmem:[#allocation43_spill] sm:$0xff] }
 0x7e2   : > { %v4253_v16 = vsel %vm1688_vm3, %v4233_v57, -inf  ;;  %v4263_v34 = vsel %vm1688_vm3, %v4238_v13, -inf  ;;  %vm4366_vm2 = vcmp.eq.s32.totalorder %v12942_v7, 1  ;;  %5211 = vperm.xlu0 %6909, %v12945_v10   ;;  %v4246_v40 = vmax.f32 %v4241_v54, %v4245_v49  ;;  %v12947_v38 = vld [vmem:[#allocation128_spill] sm:$0xff]  ;;  %v12948_v57 = vld [vmem:[#allocation130_spill] sm:$0xff]  ;;  %v3011_v54 = vpop.xlane.xlu0 %3010  ;;  %v12951_v49 = vld [vmem:[#allocation11_spill] sm:$0xff] }
 0x7e3   : > { %v4256_v9 = vmax.f32 %v4248_v1, %v4255_v18  ;;  %v4257_v2 = vsel %vm1688_vm3, %v4235_v19, -inf  ;;  %v4259_v6 = vsel %vm1688_vm3, %v4236_v53, -inf  ;;  %vm4370_vm14 = vcmp.eq.s32.totalorder %v12946_v29, 1  ;;  %v12950_v10 = vld [vmem:[#allocation132_spill] sm:$0xff]  ;;  %5366 = vperm.xlu1 %6908, %v12951_v49  }
 0x7e4   : > { %vm4369_vm15 = vcmp.eq.s32.totalorder %v12947_v38, 1  ;;  %vm4371_vm13 = vcmp.eq.s32.totalorder %v12948_v57, 1  ;;  %7010 = vpow2.f32 %v6045_v33  ;;  %v4250_v13 = vmax.f32 %v4243_v30, %v4249_v36  ;;  %v7007_v33 = vpop.eup %7006 }
 0x7e5   : > { %v4252_v0 = vmax.f32 %v4244_v14, %v4251_v12  ;;  %v4261_v44 = vsel %vm1688_vm3, %v4237_v3, -inf  ;;  %vm4372_vm9 = vcmp.eq.s32.totalorder %v12949_v47, 1  ;;  %vm4373_vm7 = vcmp.eq.s32.totalorder %v12950_v10, 1  ;;  %v12981_v10 = vld [vmem:[#allocation144_spill] sm:$0xff] }
 0x7e6   : > { %v4254_v19 = vmax.f32 %v4246_v40, %v4253_v16  ;;  %v4264_v53 = vmax.f32 %v4256_v9, %v4263_v34  ;;  %v11190_v18 = vsel %vm1688_vm3, %v4239_v28, -inf  ;;  %v11193_v1 = vsel %vm1688_vm3, %v4240_v45, -inf  ;;  %v12957_v16 = vld [vmem:[#allocation31_spill] sm:$0xff]  ;;  %v12961_v40 = vld [vmem:[#allocation60_spill] sm:$0xff]  ;;  %v12977_v9 = vld [vmem:[#allocation142_spill] sm:$0xff] }
 0x7e7   : > { %12952 = vst [vmem:[#allocation184_spill] sm:$0xff] %v11190_v18  ;;  %12953 = vst [vmem:[#allocation5_spill] sm:$0xff] %v11193_v1  ;;  %v6046_v30 = vmul.f32 -1.442695, %v3011_v54  ;;  %v11198_v14 = vsel %vm5333_vm12, 1, %v12407_v63  ;;  %v11200_v3 = vmax.f32 %v4250_v13, %v4257_v2  ;;  %v11202_v36 = vmax.f32 %v4252_v0, %v4259_v6  ;;  %5217 = vperm.xlu0 %6909, %v12957_v16   ;;  %v3014_v6 = vpop.xlane.xlu1 %3013  ;;  %v12970_v16 = vld [vmem:[#allocation136_spill] sm:$0xff] }
 0x7e8   : > { %12954 = vst [vmem:[#allocation186_spill] sm:$0xff] %v11198_v14  ;;  %v3096_v12 = vadd.f32 1.0, %v7007_v33  ;;  %v12958_v28 = vrot.slane %v11005_v58, 4  ;;  %v4262_v34 = vmax.f32 %v4254_v19, %v4261_v44  ;;  %v11212_v5 = vmax.f32 %v11131_v48, %v4123_v21  ;;  %5372 = vperm.xlu1 %6908, %v12961_v40   ;;  %v7009_v48 = vpop.eup %7008  ;;  %v12964_v33 = vld [vmem:[#allocation32_spill] sm:$0xff]  ;;  %v12972_v40 = vld [vmem:[#allocation63_spill] sm:$0xff]  ;;  %v12978_v2 = vld [vmem:[#allocation141_spill] sm:$0xff] }
 0x7e9   : > { %12955 = vst [vmem:[#allocation177_spill] sm:$0xff] %v11200_v3  ;;  %12956 = vst [vmem:[#allocation187_spill] sm:$0xff] %v11202_v36  ;;  %7012 = vpow2.f32 %v6046_v30  ;;  %v4375_v44 = vsel %vm4359_vm4, %v12757_v55, -inf  ;;  %v6047_v21 = vmul.f32 -1.442695, %v3014_v6  ;;  %v4376_v54 = vsel %vm4360_vm5, %v12833_v15, -inf }
 0x7ea   : > { %v11209_v45 = vmax.f32 %v11005_v58, %v12958_v28  ;;  %12960 = vst [vmem:[#allocation188_spill] sm:$0xff] %v11212_v5  ;;  %7014 = vrcp.f32 %v3096_v12  ;;  %v11219_v13 = vmax.f32 %v4262_v34, %v4264_v53  ;;  %v4374_v58 = vsel %vm4358_vm1, %v12776_v61, -inf  ;;  %v12965_v30 = vld [vmem:[#allocation134_spill] sm:$0xff]  ;;  %v12967_v12 = vld [vmem:[#allocation135_spill] sm:$0xff]  ;;  %v12971_v28 = vld [vmem:[#allocation137_spill] sm:$0xff]  ;;  %v3017_v34 = vpop.xlane.xlu0 %3016 }
 0x7eb   : > { %v4377_v49 = vsel %vm4361_vm8, %v12793_v17, -inf  ;;  %v4378_v19 = vsel %vm4362_vm10, %v12836_v25, -inf  ;;  %vm4507_vm12 = vcmp.eq.s32.totalorder %v12963_v4, 1  ;;  %v3097_v53 = vadd.f32 1.0, %v7009_v48  ;;  %5223 = vperm.xlu0 %6909, %v12964_v33   ;;  %v11276_v6 = vld [vmem:[%s8173_s6 + $0x1] ss:$0 sm:$0xff]  ;;  %v3020_v8 = vpop.xlane.xlu1 %3019 }
 0x7ec   : > { %12959 = vst [vmem:[#allocation181_spill] sm:$0xff] %v11209_v45  ;;  %12962 = vst [vmem:[#allocation27_spill] sm:$0xff] %v11219_v13  ;;  %v4379_v43 = vsel %vm4363_vm6, %v12761_v51, -inf  ;;  %v4380_v39 = vsel %vm4364_vm11, %v12845_v50, -inf  ;;  %v4381_v31 = vsel %vm4365_vm0, %v12840_v56, -inf  ;;  %vm4509_vm1 = vcmp.eq.s32.totalorder %v12965_v30, 1  ;;  %5238 = vperm.xlu1 %6908, %v12972_v40  }
 0x7ed   : > { %vm4508_vm4 = vcmp.eq.s32.totalorder %v12966_v59, 1  ;;  %vm4510_vm5 = vcmp.eq.s32.totalorder %v12967_v12, 1  ;;  %7016 = vpow2.f32 %v6047_v21  ;;  %v4382_v35 = vsel %vm4366_vm2, %v12786_v41, -inf  ;;  %12973 = vst [vmem:[#allocation190_spill] sm:$0xff] %v11276_v6  ;;  %v12974_v21 = vld [vmem:[#allocation138_spill] sm:$0xff]  ;;  %v12976_v33 = vld [vmem:[#allocation139_spill] sm:$0xff] }
 0x7ee   : > { %vm12968_vm10 = vcmp.eq.s32.totalorder %v12944_v46, 1  ;;  %vm12969_vm8 = vcmp.eq.s32.totalorder %v12943_v24, 1  ;;  %vm4511_vm11 = vcmp.eq.s32.totalorder %v12970_v16, 1  ;;  %vm4512_vm6 = vcmp.eq.s32.totalorder %v12971_v28, 1  ;;  %v7011_v48 = vpop.eup %7010  ;;  %v12979_v14 = vld [vmem:[#allocation170_spill] sm:$0xff]  ;;  %v12984_v5 = vld [vmem:[#allocation145_spill] sm:$0xff] }
 0x7ef   : > { %v4383_v52 = vsel %vm12968_vm10, %v9964_v22, -inf  ;;  %v4384_v37 = vsel %vm12969_vm8, %v10024_v27, -inf  ;;  %7018 = vrcp.f32 %v3097_v53  ;;  %v4385_v7 = vsel %vm4369_vm15, %v10076_v20, -inf  ;;  %v12975_v53 = vld [vmem:[#allocation140_spill] sm:$0xff]  ;;  %5229 = vperm.xlu0 %6909, %v12979_v14   ;;  %v12993_v30 = vld [vmem:[#allocation151_spill] sm:$0xff]  ;;  %v13009_v3 = vld [vmem:[#allocation157_spill] sm:$0xff] }
 0x7f0   : > { %v11268_v46 = vsel %vm4370_vm14, %v12899_v32, -inf  ;;  %v11273_v24 = vsel %vm4371_vm13, %v10183_v26, -inf  ;;  %vm4513_vm0 = vcmp.eq.s32.totalorder %v12974_v21, 1  ;;  %vm4515_vm2 = vcmp.eq.s32.totalorder %v12975_v53, 1  ;;  %v12999_v18 = vld [vmem:[#allocation148_spill] sm:$0xff]  ;;  %s11937_s6 = scalar_lea.sflag [#allocation3], %s255_s9 }
 0x7f1   : > { %vm4514_vm10 = vcmp.eq.s32.totalorder %v12976_v33, 1  ;;  %v6048_v38 = vmul.f32 -1.442695, %v3017_v34  ;;  %v11284_v29 = vsel %vm4372_vm9, %v12931_v42, -inf  ;;  %v11289_v57 = vsel %vm4373_vm7, %v12932_v11, -inf }
 0x7f2   : > { %v4394_v40 = vsel %vm1688_vm3, %v4378_v19, -inf  ;;  %v3098_v0 = vadd.f32 1.0, %v7011_v48  ;;  %v4390_v34 = vsel %vm1688_vm3, %v4374_v58, -inf  ;;  %v11297_v47 = vsel %vm1688_vm3, %v4379_v43, -inf  ;;  %v12983_v19 = vld [vmem:[#allocation143_spill] sm:$0xff]  ;;  %v12985_v58 = vld [vmem:[#allocation54_spill] sm:$0xff] }
 0x7f3   : > { %v11300_v63 = vsel %vm1688_vm3, %v4380_v39, -inf  ;;  %vm4519_vm9 = vcmp.eq.s32.totalorder %v12981_v10, 1  ;;  %vm4521_vm7 = vcmp.eq.s32.totalorder %v12982_v60, 1  ;;  %vm4518_vm13 = vcmp.eq.s32.totalorder %v12983_v19, 1  ;;  %v12986_v43 = vld [vmem:[#allocation147_spill] sm:$0xff]  ;;  %v12987_v39 = vld [vmem:[#allocation168_spill] sm:$0xff]  ;;  %v7013_v23 = vpop.eup %7012 }
 0x7f4   : > { %12980 = vst [vmem:[#allocation40_spill] sm:$0xff] %v11300_v63  ;;  %vm4520_vm8 = vcmp.eq.s32.totalorder %v12984_v5, 1  ;;  %7020 = vpow2.f32 %v6048_v38  ;;  %v11307_v48 = vsel %vm1688_vm3, %v4381_v31, -inf  ;;  %v4402_v14 = vsel %vm1688_vm3, %v4382_v35, -inf  ;;  %5506 = vperm.xlu1 %6908, %v12987_v39   ;;  %v7015_v39 = vpop.eup %7014 }
 0x7f5   : > { %vm839_vm14 = vcmp.eq.s32.totalorder %v12985_v58, %v11276_v6  ;;  %vm4522_vm15 = vcmp.eq.s32.totalorder %v12986_v43, 1  ;;  %7022 = vrcp.f32 %v3098_v0  ;;  %v11315_v45 = vsel %vm1688_vm3, %v4375_v44, -inf  ;;  %v12990_v6 = vld [vmem:[#allocation34_spill] sm:$0xff]  ;;  %v12992_v58 = vld [vmem:[#allocation47_spill] sm:$0xff] }
 0x7f6   : > { %v11318_v13 = vsel %vm1688_vm3, %v4376_v54, -inf  ;;  %v4395_v38 = vmax.f32 %v4390_v34, %v4394_v40  ;;  %v12989_v31 = vmov 1.0   ;;  %v6049_v35 = vmul.f32 -1.442695, %v3020_v8  ;;  %5235 = vperm.xlu0 %6909, %v12990_v6   ;;  %v3023_v6 = vpop.xlane.xlu0 %3022  ;;  %v12997_v54 = vld [vmem:[#allocation33_spill] sm:$0xff] }
 0x7f7   : > { %12988 = vst [vmem:[#allocation65_spill] sm:$0xff] %v11318_v13  ;;  %6592 = vmatprep.mubr.msk.f32.mxu1 %vm839_vm14, %v12989_v31  ;;  %v11322_v62 = vsel %vm1688_vm3, %v4377_v49, -inf  ;;  %v3099_v44 = vadd.f32 1.0, %v7013_v23  ;;  %v11334_v8 = vsel %vm1688_vm3, %v4383_v52, -inf  ;;  %v11337_v49 = vsel %vm1688_vm3, %v4384_v37, -inf  ;;  %v13019_v13 = vld [vmem:[#allocation164_spill] sm:$0xff] }
 0x7f8   : > { %v11331_v40 = vmax.f32 %v4395_v38, %v4402_v14  ;;  %7024 = vpow2.f32 %v6049_v35  ;;  %v11340_v34 = vsel %vm1688_vm3, %v4385_v7, -inf  ;;  %v4523_v23 = vsel %vm4507_vm12, %v12776_v61, -inf  ;;  %5512 = vperm.xlu1 %6908, %v12992_v58   ;;  %v7017_v14 = vpop.eup %7016 }
 0x7f9   : > { %7026 = vrcp.f32 %v3099_v44  ;;  %v4524_v52 = vsel %vm4508_vm4, %v12757_v55, -inf  ;;  %v4525_v37 = vsel %vm4509_vm1, %v12833_v15, -inf  ;;  %v4526_v7 = vsel %vm4510_vm5, %v12793_v17, -inf  ;;  %v7019_v58 = vpop.eup %7018 }
 0x7fa   : > { %12991 = vst [vmem:[#allocation191_spill] sm:$0xff] %v11331_v40  ;;  %v6050_v38 = vmul.f32 -1.442695, %v3023_v6  ;;  %v3144_v4 = vmul.f32 %v7015_v39, %v12776_v61  ;;  %v4527_v35 = vsel %vm4511_vm11, %v12836_v25, -inf  ;;  %v4528_v59 = vsel %vm4512_vm6, %v12761_v51, -inf  ;;  %5357 = vperm.xlu0 %6909, %v12993_v30   ;;  %v3026_v30 = vpop.xlane.xlu1 %3025  ;;  %v3029_v43 = vpop.xlane.xlu0 %3028 }
 0x7fb   : > { %v3100_v44 = vadd.f32 1.0, %v7017_v14  ;;  %v4529_v12 = vsel %vm4513_vm0, %v12845_v50, -inf  ;;  %v4530_v39 = vsel %vm4514_vm10, %v12840_v56, -inf  ;;  %v4531_v16 = vsel %vm4515_vm2, %v12786_v41, -inf  ;;  %v12996_v14 = vld [vmem:[#allocation171_spill] sm:$0xff] }
 0x7fc   : > { %7028 = vpow2.f32 %v6050_v38  ;;  %v3145_v28 = vmul.f32 %v7019_v58, %v12757_v55  ;;  %vm12994_vm12 = vcmp.eq.s32.totalorder %v12978_v2, 1  ;;  %vm12995_vm1 = vcmp.eq.s32.totalorder %v12977_v9, 1  ;;  %5518 = vperm.xlu1 %6908, %v12996_v14  }
 0x7fd   : > { %v4532_v6 = vsel %vm12994_vm12, %v9964_v22, -inf  ;;  %v4533_v21 = vsel %vm12995_vm1, %v10024_v27, -inf  ;;  %v4534_v33 = vsel %vm4518_vm13, %v10076_v20, -inf  ;;  %v4535_v53 = vsel %vm4519_vm9, %v12899_v32, -inf }
 0x7fe   : > { %v11389_v2 = vsel %vm4520_vm8, %v10183_v26, -inf  ;;  %v11394_v9 = vsel %vm4521_vm7, %v12931_v42, -inf  ;;  %v7021_v38 = vpop.eup %7020  ;;  %7030 = vrcp.f32 %v3100_v44  ;;  %v6051_v58 = vmul.f32 -1.442695, %v3026_v30  ;;  %5363 = vperm.xlu0 %6909, %v12997_v54   ;;  %v12998_v30 = vld [vmem:[#allocation180_spill] sm:$0xff] }
 0x7ff   : > { %v6703_v14 = vpack.c.bf16 %v3145_v28, %v3144_v4  ;;  %v4538_v19 = vsel %vm4522_vm15, %v12932_v11, -inf  ;;  %v7023_v10 = vpop.eup %7022  ;;  %v3101_v0 = vadd.f32 1.0, %v7021_v38  ;;  %v4539_v5 = vsel %vm1688_vm3, %v4523_v23, -inf }
 0x800   : > { %v4540_v31 = vsel %vm1688_vm3, %v4524_v52, -inf  ;;  %v4543_v60 = vsel %vm1688_vm3, %v4527_v35, -inf  ;;  %7032 = vpow2.f32 %v6051_v58  ;;  %v4541_v44 = vsel %vm1688_vm3, %v4525_v37, -inf  ;;  %5524 = vperm.xlu1 %6908, %v12998_v30   ;;  %v13001_v30 = vld [vmem:[#allocation176_spill] sm:$0xff] }
 0x801   : > { %6704 = vmatprep.subr.bf16.mxu1 %v6703_v14  ;;  %v4542_v4 = vsel %vm1688_vm3, %v4526_v7, -inf  ;;  %v4545_v28 = vsel %vm1688_vm3, %v4528_v59, -inf  ;;  %7034 = vrcp.f32 %v3101_v0  ;;  %v3146_v54 = vmul.f32 %v7023_v10, %v12833_v15  ;;  %v13000_v0 = vld [vmem:[#allocation150_spill] sm:$0xff] }
 0x802   : > { %6706 = vmatpush3.bf16.msra.mxu1 %v6703_v14  ;;  %v4544_v23 = vmax.f32 %v4539_v5, %v4543_v60  ;;  %v4547_v52 = vsel %vm1688_vm3, %v4529_v12, -inf  ;;  %v7025_v38 = vpop.eup %7024  ;;  %v6052_v35 = vmul.f32 -1.442695, %v3029_v43  ;;  %v4546_v58 = vmax.f32 %v4540_v31, %v4545_v28  ;;  %5369 = vperm.xlu0 %6909, %v13001_v30   ;;  %v13002_v12 = vld [vmem:[#allocation149_spill] sm:$0xff]  ;;  %v13003_v60 = vld [vmem:[#allocation152_spill] sm:$0xff]  ;;  %v13005_v43 = vld [vmem:[#allocation154_spill] sm:$0xff] }
 0x803   : > { %v4549_v40 = vsel %vm1688_vm3, %v4530_v39, -inf  ;;  %v4551_v37 = vsel %vm1688_vm3, %v4531_v16, -inf  ;;  %v7027_v7 = vpop.eup %7026  ;;  %vm4656_vm4 = vcmp.eq.s32.totalorder %v12999_v18, 1  ;;  %vm4657_vm5 = vcmp.eq.s32.totalorder %v13000_v0, 1  ;;  %v13004_v28 = vld [vmem:[#allocation153_spill] sm:$0xff]  ;;  %v13007_v30 = vld [vmem:[#allocation155_spill] sm:$0xff] }
 0x804   : > { %v3102_v59 = vadd.f32 1.0, %v7025_v38  ;;  %v4548_v14 = vmax.f32 %v4541_v44, %v4547_v52  ;;  %v4550_v10 = vmax.f32 %v4542_v4, %v4549_v40  ;;  %v4553_v5 = vsel %vm1688_vm3, %v4532_v6, -inf  ;;  %v13006_v38 = vld [vmem:[#allocation185_spill] sm:$0xff]  ;;  %v3032_v40 = vpop.xlane.xlu1 %3031 }
 0x805   : > { %vm4658_vm11 = vcmp.eq.s32.totalorder %v13002_v12, 1  ;;  %vm4659_vm6 = vcmp.eq.s32.totalorder %v13003_v60, 1  ;;  %7036 = vpow2.f32 %v6052_v35  ;;  %v3147_v31 = vmul.f32 %v7027_v7, %v12793_v17  ;;  %5381 = vperm.xlu1 %6908, %v13006_v38   ;;  %v13008_v35 = vld [vmem:[#allocation156_spill] sm:$0xff]  ;;  %v13011_v38 = vld [vmem:[#allocation158_spill] sm:$0xff] }
 0x806   : > { %v4552_v39 = vmax.f32 %v4544_v23, %v4551_v37  ;;  %v4555_v16 = vsel %vm1688_vm3, %v4533_v21, -inf  ;;  %vm4660_vm0 = vcmp.eq.s32.totalorder %v13004_v28, 1  ;;  %vm4661_vm2 = vcmp.eq.s32.totalorder %v13005_v43, 1  ;;  %v7029_v52 = vpop.eup %7028 }
 0x807   : > { %7038 = vrcp.f32 %v3102_v59  ;;  %v4554_v44 = vmax.f32 %v4546_v58, %v4553_v5  ;;  %v4556_v6 = vmax.f32 %v4548_v14, %v4555_v16  ;;  %v4557_v4 = vsel %vm1688_vm3, %v4534_v33, -inf  ;;  %v13010_v59 = vld [vmem:[#allocation159_spill] sm:$0xff]  ;;  %v13012_v14 = vld [vmem:[#allocation36_spill] sm:$0xff]  ;;  %v13015_v16 = vld [vmem:[#allocation162_spill] sm:$0xff] }
 0x808   : > { %vm4662_vm10 = vcmp.eq.s32.totalorder %v13007_v30, 1  ;;  %vm4663_vm14 = vcmp.eq.s32.totalorder %v13008_v35, 1  ;;  %v6053_v23 = vmul.f32 -1.442695, %v3032_v40  ;;  %v6707_v37 = vpack.c.bf16 %v3147_v31, %v3146_v54  ;;  %5375 = vperm.xlu0 %6909, %v13012_v14   ;;  %v13013_v31 = vld [vmem:[#allocation161_spill] sm:$0xff]  ;;  %v13018_v14 = vld [vmem:[#allocation46_spill] sm:$0xff] }
 0x809   : > { %v4558_v21 = vmax.f32 %v4550_v10, %v4557_v4  ;;  %v4559_v7 = vsel %vm1688_vm3, %v4535_v53, -inf  ;;  %vm4664_vm15 = vcmp.eq.s32.totalorder %v13009_v3, 1  ;;  %vm4666_vm9 = vcmp.eq.s32.totalorder %v13010_v59, 1  ;;  %v7031_v10 = vpop.eup %7030  ;;  %v13014_v53 = vld [vmem:[#allocation160_spill] sm:$0xff]  ;;  %5387 = vperm.xlu1 %6908, %v13018_v14  }
 0x80a   : > { %vm4665_vm7 = vcmp.eq.s32.totalorder %v13011_v38, 1  ;;  %v3103_v58 = vadd.f32 1.0, %v7029_v52  ;;  %v4561_v33 = vsel %vm1688_vm3, %v11389_v2, -inf  ;;  %v4563_v5 = vsel %vm1688_vm3, %v11394_v9, -inf  ;;  %6708 = vmatprep.subr.bf16.mxu1 %v6707_v37  ;;  %v3035_v52 = vpop.xlane.xlu0 %3034  ;;  %v7033_v63 = vpop.eup %7032 }
 0x80b   : > { %v4565_v54 = vsel %vm1688_vm3, %v4538_v19, -inf  ;;  %vm4668_vm13 = vcmp.eq.s32.totalorder %v13013_v31, 1  ;;  %vm4667_vm8 = vcmp.eq.s32.totalorder %v13014_v53, 1  ;;  %7040 = vpow2.f32 %v6053_v23  ;;  %v13017_v19 = vld [vmem:[#allocation163_spill] sm:$0xff]  ;;  %6710 = vmatpush3.bf16.msra.mxu1 %v6707_v37 }
 0x80c   : > { %v13016_v40 = vmax.f32 %v11322_v62, %v11307_v48  ;;  %v11446_v2 = vsel %vm1688_vm3, %v11268_v46, -inf  ;;  %v4562_v9 = vmax.f32 %v4554_v44, %v4561_v33  ;;  %vm4670_vm1 = vcmp.eq.s32.totalorder %v13017_v19, 1  ;;  %v7035_v44 = vpop.eup %7034 }
 0x80d   : > { %7042 = vrcp.f32 %v3103_v58  ;;  %v4560_v23 = vmax.f32 %v4552_v39, %v4559_v7  ;;  %v4564_v1 = vmax.f32 %v4556_v6, %v4563_v5  ;;  %v4566_v36 = vmax.f32 %v4558_v21, %v4565_v54  ;;  %v13020_v6 = vld [vmem:[#allocation48_spill] sm:$0xff]  ;;  %v13021_v58 = vld [vmem:[#allocation13_spill] sm:$0xff] }
 0x80e   : > { %v11442_v4 = vmax.f32 %v13016_v40, %v11340_v34  ;;  %vm4671_vm12 = vcmp.eq.s32.totalorder %v13019_v13, 1  ;;  %v6054_v62 = vmul.f32 -1.442695, %v3035_v52  ;;  %v11453_v48 = vsel %vm1688_vm3, %v11273_v24, -inf  ;;  %5503 = vperm.xlu0 %6909, %v13020_v6   ;;  %5244 = vperm.xlu1 %6908, %v13021_v58   ;;  %v13022_v52 = vld [vmem:[#allocation15_spill] sm:$0xff]  ;;  %v3041_v30 = vpop.xlane.xlu0 %3040 }
 0x80f   : > { %v11457_v46 = vsel %vm1688_vm3, %v11284_v29, -inf  ;;  %v11461_v34 = vsel %vm1688_vm3, %v11289_v57, -inf  ;;  %v3104_v39 = vadd.f32 1.0, %v7033_v63  ;;  %v3148_v37 = vmul.f32 %v7031_v10, %v12836_v25  ;;  %v3038_v63 = vpop.xlane.xlu1 %3037  ;;  %v7037_v5 = vpop.eup %7036 }
 0x810   : > { %v4567_v21 = vmax.f32 %v4560_v23, %v4562_v9  ;;  %v4568_v7 = vmax.f32 %v4564_v1, %v4566_v36  ;;  %7044 = vpow2.f32 %v6054_v62  ;;  %v3149_v24 = vmul.f32 %v7035_v44, %v12761_v51  ;;  %v13023_v62 = vld [vmem:[#allocation49_spill] sm:$0xff] }
 0x811   : > { %v4672_v29 = vsel %vm4656_vm4, %v12776_v61, -inf  ;;  %v4673_v57 = vsel %vm4657_vm5, %v12757_v55, -inf  ;;  %7046 = vrcp.f32 %v3104_v39  ;;  %v4674_v1 = vsel %vm4658_vm11, %v12833_v15, -inf  ;;  %v7039_v40 = vpop.eup %7038 }
 0x812   : > { %v4569_v33 = vmax.f32 %v4567_v21, %v4568_v7  ;;  %v4675_v36 = vsel %vm4659_vm6, %v12793_v17, -inf  ;;  %v6055_v18 = vmul.f32 -1.442695, %v3038_v63  ;;  %v6711_v54 = vpack.c.bf16 %v3149_v24, %v3148_v37  ;;  %5509 = vperm.xlu0 %6909, %v13022_v52   ;;  %5250 = vperm.xlu1 %6908, %v13023_v62   ;;  %v13025_v7 = vld [vmem:[#allocation178_spill] sm:$0xff] }
 0x813   : > { %v4676_v0 = vsel %vm4660_vm0, %v12836_v25, -inf  ;;  %v4677_v10 = vsel %vm4661_vm2, %v12761_v51, -inf  ;;  %v3105_v9 = vadd.f32 1.0, %v7037_v5  ;;  %v4678_v60 = vsel %vm4662_vm10, %v12845_v50, -inf  ;;  %v3044_v5 = vpop.xlane.xlu1 %3043 }
 0x814   : > { %v4570_v12 = vrot.slane %v4569_v33, 4  ;;  %v4679_v14 = vsel %vm4663_vm14, %v12840_v56, -inf  ;;  %7048 = vpow2.f32 %v6055_v18  ;;  %6712 = vmatprep.subr.bf16.mxu1 %v6711_v54  ;;  %v4680_v28 = vsel %vm4664_vm15, %v12786_v41, -inf }
 0x815   : > { %v4681_v43 = vsel %vm4665_vm7, %v9964_v22, -inf  ;;  %v4682_v23 = vsel %vm4666_vm9, %v10024_v27, -inf  ;;  %7050 = vrcp.f32 %v3105_v9  ;;  %6714 = vmatpush3.bf16.msra.mxu1 %v6711_v54  ;;  %v4683_v35 = vsel %vm4667_vm8, %v10076_v20, -inf  ;;  %v7041_v44 = vpop.eup %7040 }
 0x816   : > { %v4684_v3 = vsel %vm4668_vm13, %v12899_v32, -inf  ;;  %vm13024_vm4 = vcmp.eq.s32.totalorder %v13015_v16, 1  ;;  %v6056_v59 = vmul.f32 -1.442695, %v3041_v30  ;;  %v3150_v39 = vmul.f32 %v7039_v40, %v12845_v50  ;;  %5515 = vperm.xlu0 %6909, %v13025_v7   ;;  %v13027_v30 = vld [vmem:[#allocation167_spill] sm:$0xff] }
 0x817   : > { %v4685_v38 = vsel %vm13024_vm4, %v10183_v26, -inf  ;;  %v11512_v6 = vmax.f32 %v4569_v33, %v4570_v12  ;;  %v4686_v37 = vsel %vm4670_vm1, %v12931_v42, -inf  ;;  %v7043_v53 = vpop.eup %7042  ;;  %v3106_v21 = vadd.f32 1.0, %v7041_v44  ;;  %v13026_v33 = vld [vmem:[#allocation166_spill] sm:$0xff] }
 0x818   : > { %v4687_v31 = vsel %vm4671_vm12, %v12932_v11, -inf  ;;  %v4688_v16 = vsel %vm1688_vm3, %v4672_v29, -inf  ;;  %v4692_v24 = vsel %vm1688_vm3, %v4676_v0, -inf  ;;  %7052 = vpow2.f32 %v6056_v59  ;;  %5530 = vperm.xlu1 %6908, %v13026_v33   ;;  %v13028_v59 = vld [vmem:[#allocation17_spill] sm:$0xff] }
 0x819   : > { %v3151_v58 = vmul.f32 %v7043_v53, %v12840_v56  ;;  %v4689_v63 = vsel %vm1688_vm3, %v4673_v57, -inf  ;;  %v4694_v19 = vsel %vm1688_vm3, %v4677_v10, -inf  ;;  %v4690_v18 = vsel %vm1688_vm3, %v4674_v1, -inf }
 0x81a   : > { %v4691_v54 = vsel %vm1688_vm3, %v4675_v36, -inf  ;;  %v4696_v13 = vsel %vm1688_vm3, %v4678_v60, -inf  ;;  %v4698_v29 = vsel %vm1688_vm3, %v4679_v14, -inf  ;;  %v7045_v40 = vpop.eup %7044  ;;  %v4572_v9 = vrot.slane %v11512_v6, 2  ;;  %5521 = vperm.xlu0 %6909, %v13027_v30  }
 0x81b   : > { %v6715_v0 = vpack.c.bf16 %v3151_v58, %v3150_v39  ;;  %v4693_v52 = vmax.f32 %v4688_v16, %v4692_v24  ;;  %v4700_v57 = vsel %vm1688_vm3, %v4680_v28, -inf  ;;  %v7047_v12 = vpop.eup %7046  ;;  %7054 = vrcp.f32 %v3106_v21  ;;  %v4929_v39 = vpop.permute.xlu1 %4928 }
 0x81c   : > { %v3107_v10 = vadd.f32 1.0, %v7045_v40  ;;  %v4695_v62 = vmax.f32 %v4689_v63, %v4694_v19  ;;  %v4702_v1 = vsel %vm1688_vm3, %v4681_v43, -inf  ;;  %v4697_v36 = vmax.f32 %v4690_v18, %v4696_v13  ;;  %5536 = vperm.xlu1 %6908, %v13028_v59   ;;  %v13029_v19 = vld [vmem:[#allocation179_spill] sm:$0xff]  ;;  %v13030_v40 = vld [vmem:[#allocation50_spill] sm:$0xff] }
 0x81d   : > { %6716 = vmatprep.subr.bf16.mxu1 %v6715_v0  ;;  %v4699_v60 = vmax.f32 %v4691_v54, %v4698_v29  ;;  %v4701_v44 = vmax.f32 %v4693_v52, %v4700_v57  ;;  %v4704_v14 = vsel %vm1688_vm3, %v4682_v23, -inf  ;;  %v3152_v28 = vmul.f32 %v7047_v12, %v12786_v41 }
 0x81e   : > { %7056 = vrcp.f32 %v3107_v10  ;;  %6718 = vmatpush3.bf16.msra.mxu1 %v6715_v0  ;;  %v4703_v53 = vmax.f32 %v4695_v62, %v4702_v1  ;;  %v4706_v21 = vsel %vm1688_vm3, %v4683_v35, -inf  ;;  %v7049_v7 = vpop.eup %7048  ;;  %vm4961_vm5 = vcmp.eq.s32.totalorder %v4929_v39, 1  ;;  %5378 = vperm.xlu0 %6909, %v13029_v19   ;;  %v13031_v0 = vld [vmem:[#allocation182_spill] sm:$0xff]  ;;  %v13034_v39 = vld [vmem:[#allocation65_spill] sm:$0xff] }
 0x81f   : > { %v4705_v16 = vmax.f32 %v4697_v36, %v4704_v14  ;;  %v4708_v43 = vsel %vm1688_vm3, %v4684_v3, -inf  ;;  %v4710_v24 = vsel %vm1688_vm3, %v4685_v38, -inf  ;;  %v7051_v58 = vpop.eup %7050  ;;  %v3108_v63 = vadd.f32 1.0, %v7049_v7  ;;  %v4935_v38 = vpop.permute.xlu1 %4934  ;;  %v13044_v19 = vld [vmem:[#allocation177_spill] sm:$0xff] }
 0x820   : > { %v4977_v23 = vsel %vm4961_vm5, %v12840_v56, -inf  ;;  %v4707_v33 = vmax.f32 %v4699_v60, %v4706_v21  ;;  %v4711_v18 = vmax.f32 %v4703_v53, %v4710_v24  ;;  %v3153_v13 = vmul.f32 %v7051_v58, %v9964_v22  ;;  %5393 = vperm.xlu1 %6908, %v13031_v0   ;;  %v13032_v60 = vld [vmem:[#allocation12_spill] sm:$0xff]  ;;  %v13048_v0 = vld [vmem:[#allocation69_spill] sm:$0xff] }
 0x821   : > { %v4996_v54 = vsel %vm1688_vm3, %v4977_v23, -inf  ;;  %v4712_v35 = vsel %vm1688_vm3, %v4686_v37, -inf  ;;  %v4714_v29 = vsel %vm1688_vm3, %v4687_v31, -inf  ;;  %v4709_v52 = vmax.f32 %v4701_v44, %v4708_v43  ;;  %v13038_v43 = vld [vmem:[#allocation21_spill] sm:$0xff] }
 0x822   : > { %v4997_v3 = vmax.f32 %v13030_v40, %v4996_v54  ;;  %v4713_v57 = vmax.f32 %v4705_v16, %v4712_v35  ;;  %v4715_v12 = vmax.f32 %v4707_v33, %v4714_v29  ;;  %v7053_v10 = vpop.eup %7052  ;;  %7058 = vrcp.f32 %v3108_v63  ;;  %5384 = vperm.xlu0 %6909, %v13032_v60   ;;  %v13037_v16 = vld [vmem:[#allocation169_spill] sm:$0xff]  ;;  %v13040_v63 = vld [vmem:[#allocation51_spill] sm:$0xff]  ;;  %v13045_v33 = vld [vmem:[#allocation184_spill] sm:$0xff] }
 0x823   : > { %v6057_v30 = vmul.f32 -1.442695, %v3044_v5  ;;  %vm4963_vm11 = vcmp.eq.s32.totalorder %v4935_v38, 1  ;;  %v6719_v62 = vpack.c.bf16 %v3153_v13, %v3152_v28  ;;  %v3109_v1 = vadd.f32 1.0, %v7053_v10  ;;  %v13035_v5 = vld [vmem:[#allocation40_spill] sm:$0xff]  ;;  %v13049_v38 = vld [vmem:[#allocation71_spill] sm:$0xff] }
 0x824   : > { %v4979_v36 = vsel %vm4963_vm11, %v9964_v22, -inf  ;;  %v4716_v37 = vmax.f32 %v4709_v52, %v4711_v18  ;;  %v4717_v31 = vmax.f32 %v4713_v57, %v4715_v12  ;;  %v13033_v44 = vmax.f32 %v11315_v45, %v11297_v47  ;;  %5399 = vperm.xlu1 %6908, %v13040_v63   ;;  %v4941_v45 = vpop.permute.xlu1 %4940  ;;  %v13041_v47 = vld [vmem:[#allocation187_spill] sm:$0xff] }
 0x825   : > { %v5000_v14 = vsel %vm1688_vm3, %v4979_v36, -inf  ;;  %6720 = vmatprep.subr.bf16.mxu1 %v6719_v62  ;;  %v13036_v53 = vmax.f32 %v13034_v39, %v13035_v5  ;;  %v4417_v21 = vmax.f32 %v11442_v4, %v11461_v34  ;;  %v7055_v7 = vpop.eup %7054  ;;  %7060 = vrcp.f32 %v3109_v1  ;;  %v13047_v4 = vld [vmem:[#allocation191_spill] sm:$0xff] }
 0x826   : > { %v4405_v59 = vmax.f32 %v13033_v44, %v11334_v8  ;;  %v13039_v24 = vmax.f32 %v13037_v16, %v13038_v43  ;;  %6722 = vmatpush3.bf16.msra.mxu1 %v6719_v62  ;;  %v13042_v8 = vld [vmem:[#allocation5_spill] sm:$0xff]  ;;  %v4718_v54 = vmax.f32 %v4716_v37, %v4717_v31  ;;  %vm4965_vm6 = vcmp.eq.s32.totalorder %v4941_v45, 1  ;;  %5241 = vperm.xlu0 %6909, %v13048_v0   ;;  %v13051_v1 = vld [vmem:[#allocation75_spill] sm:$0xff]  ;;  %v3047_v31 = vpop.xlane.xlu0 %3046  ;;  %v13056_v43 = vld [vmem:[#allocation188_spill] sm:$0xff] }
 0x827   : > { %v4407_v28 = vmax.f32 %v13036_v53, %v11337_v49  ;;  %v13043_v23 = vmax.f32 %v13041_v47, %v13042_v8  ;;  %v13046_v49 = vmax.f32 %v13044_v19, %v13045_v33  ;;  %v4411_v34 = vmax.f32 %v13047_v4, %v11446_v2  ;;  %v13053_v37 = vld [vmem:[#allocation27_spill] sm:$0xff]  ;;  %v13054_v44 = vld [vmem:[#allocation181_spill] sm:$0xff]  ;;  %v13055_v53 = vld [vmem:[#allocation18_spill] sm:$0xff] }
 0x828   : > { %v11565_v58 = vmax.f32 %v13039_v24, %v5000_v14  ;;  %v4413_v13 = vmax.f32 %v4405_v59, %v11453_v48  ;;  %v7057_v29 = vpop.eup %7056  ;;  %7062 = vpow2.f32 %v6057_v30  ;;  %v4981_v40 = vsel %vm4965_vm6, %v10076_v20, -inf  ;;  %v13050_v30 = vld [vmem:[#allocation14_spill] sm:$0xff]  ;;  %v4947_v62 = vpop.permute.xlu1 %4946  ;;  %v13057_v47 = vld [vmem:[#allocation73_spill] sm:$0xff] }
 0x829   : > { %v4270_v18 = vmax.f32 %v13046_v49, %v13043_v23  ;;  %v4415_v35 = vmax.f32 %v4407_v28, %v11457_v46  ;;  %vm5335_vm0 = vcmp.eq.s32.totalorder %v13049_v38, 14  ;;  %v4573_v52 = vmax.f32 %v11512_v6, %v4572_v9  ;;  %5542 = vperm.xlu1 %6908, %v13050_v30   ;;  %v13058_v4 = vld [vmem:[#allocation174_spill] sm:$0xff]  ;;  %v13064_v38 = vld [vmem:[#allocation173_spill] sm:$0xff] }
 0x82a   : > { %v4719_v57 = vrot.slane %v4718_v54, 4  ;;  %v5004_v12 = vsel %vm1688_vm3, %v4981_v40, -inf  ;;  %v3154_v2 = vmul.f32 %v7055_v7, %v10024_v27  ;;  %v3155_v48 = vmul.f32 %v7057_v29, %v10076_v20  ;;  %5247 = vperm.xlu0 %6909, %v13055_v53  }
 0x82b   : > { %v4419_v46 = vmax.f32 %v4415_v35, %v4417_v21  ;;  %v11587_v10 = vmax.f32 %v4997_v3, %v5004_v12  ;;  %v13052_v36 = vrot.slane %v13051_v1, 2  ;;  %v4271_v6 = vmax.f32 %v13053_v37, %v4270_v18  ;;  %v4926_v37 = vpop.permute.xlu0 %4925 }
 0x82c   : > { %v4720_v9 = vmax.f32 %v4718_v54, %v4719_v57  ;;  %vm4967_vm2 = vcmp.eq.s32.totalorder %v4947_v62, 1  ;;  %v6723_v14 = vpack.c.bf16 %v3155_v48, %v3154_v2  ;;  %v3976_v59 = vrot.slane %v13054_v44, 2  ;;  %v7059_v7 = vpop.eup %7058  ;;  %v4953_v8 = vpop.permute.xlu1 %4952 }
 0x82d   : > { %v11593_v60 = vmax.f32 %v13051_v1, %v13052_v36  ;;  %v4418_v39 = vmax.f32 %v4411_v34, %v4413_v13  ;;  %v4983_v3 = vsel %vm4967_vm2, %v10183_v26, -inf  ;;  %v6058_v5 = vmul.f32 -1.442695, %v3047_v31  ;;  %5548 = vperm.xlu1 %6908, %v13057_v47   ;;  %v13059_v34 = vld [vmem:[#allocation59_spill] sm:$0xff] }
 0x82e   : > { %v4574_v28 = vrot.slane %v4573_v52, 1  ;;  %v4721_v21 = vrot.slane %v4720_v9, 2  ;;  %v11600_v16 = vsel %vm1688_vm3, %v4983_v3, -inf  ;;  %6724 = vmatprep.subr.bf16.mxu1 %v6723_v14  ;;  %v4125_v24 = vrot.slane %v13056_v43, 2  ;;  %5527 = vperm.xlu0 %6909, %v13058_v4   ;;  %v13060_v13 = vld [vmem:[#allocation183_spill] sm:$0xff] }
 0x82f   : > { %v4420_v63 = vmax.f32 %v4418_v39, %v4419_v46  ;;  %vm5619_vm10 = vcmask 1040384   ;;  %v5009_v45 = vmax.f32 %v11565_v58, %v11600_v16  ;;  %7064 = vpow2.f32 %v6058_v5  ;;  %6726 = vmatpush3.bf16.msra.mxu1 %v6723_v14  ;;  %v7061_v18 = vpop.eup %7060  ;;  %v7132_v14 = vld [vmem:[%s7314_s23 + $0x60] sm:$0xff]  ;;  %v13063_v39 = vld [vmem:[#allocation7_spill] sm:$0xff] }
 0x830   : > { %v4272_v23 = vrot.slane %v4271_v6, 4  ;;  %v4722_v19 = vmax.f32 %v4720_v9, %v4721_v21  ;;  %vm4969_vm14 = vcmp.eq.s32.totalorder %v4953_v8, 1  ;;  %v3829_v33 = vrot.slane %v11593_v60, 1  ;;  %v5060_v30 = vpop.permute.xlu1 %5059 }
 0x831   : > { %v3977_v49 = vmax.f32 %v13054_v44, %v3976_v59  ;;  %vm5621_vm15 = vcmask 1041408   ;;  %v4985_v54 = vsel %vm4969_vm14, %v12932_v11, -inf  ;;  %v5620_v35 = vsel %vm5619_vm10, %v13060_v13, %v13059_v34  ;;  %v13062_v59 = vld [vmem:[#allocation172_spill] sm:$0xff]  ;;  %v13066_v34 = vld [vmem:[#allocation186_spill] sm:$0xff] }
 0x832   : > { %v4575_v29 = vmax.f32 %v4573_v52, %v4574_v28  ;;  %v4723_v40 = vrot.slane %v4722_v19, 1  ;;  %v11614_v0 = vsel %vm1688_vm3, %v4985_v54, -inf  ;;  %v3156_v57 = vmul.f32 %v7059_v7, %v12899_v32  ;;  %v7063_v48 = vpop.eup %7062  ;;  %5533 = vperm.xlu0 %6909, %v13062_v59  }
 0x833   : > { %v3157_v12 = vmul.f32 %v7061_v18, %v10183_v26  ;;  %v4421_v2 = vrot.slane %v4420_v63, 4  ;;  %v5013_v46 = vmax.f32 %v11587_v10, %v11614_v0  ;;  %v4126_v62 = vmax.f32 %v13056_v43, %v4125_v24  ;;  %v4932_v18 = vpop.permute.xlu0 %4931 }
 0x834   : > { %v4273_v1 = vmax.f32 %v4271_v6, %v4272_v23  ;;  %v4724_v36 = vmax.f32 %v4722_v19, %v4723_v40  ;;  %v13061_v9 = vmov 0   ;;  %vm5482_vm9 = vcmp.eq.s32.totalorder %v7132_v14, 15  ;;  %v5066_v43 = vpop.permute.xlu1 %5065  ;;  %v13065_v23 = vld [vmem:[#allocation62_spill] sm:$0xff] }
 0x835   : > { %v6727_v52 = vpack.c.bf16 %v3157_v12, %v3156_v57  ;;  %v5351_v31 = vsel %vm5335_vm0, 1, %v13061_v9  ;;  %v3978_v44 = vrot.slane %v3977_v49, 1  ;;  %vm4960_vm7 = vcmp.eq.s32.totalorder %v4926_v37, 1 }
 0x836   : > { %v5622_v3 = vsel %vm5621_vm15, %v5620_v35, %v13063_v39  ;;  %vm5623_vm13 = vcmask 1042432   ;;  %v5633_v5 = vsel %vm5619_vm10, %v4575_v29, %v4724_v36  ;;  %v3110_v6 = vadd.f32 1.0, %v7063_v48  ;;  %5390 = vperm.xlu0 %6909, %v13066_v34   ;;  %v13067_v36 = vld [vmem:[#allocation165_spill] sm:$0xff] }
 0x837   : > { %v4976_v53 = vsel %vm4960_vm7, %v12845_v50, -inf  ;;  %6728 = vmatprep.subr.bf16.mxu1 %v6727_v52  ;;  %v4422_v28 = vmax.f32 %v4420_v63, %v4421_v2  ;;  %v11632_v21 = vsel %vm5621_vm15, %v5633_v5, %v13064_v38  ;;  %v3830_v24 = vmax.f32 %v11593_v60, %v3829_v33  ;;  %v7133_v63 = vld [vmem:[%s7314_s23 + $0x70] sm:$0xff]  ;;  %v4938_v14 = vpop.permute.xlu0 %4937  ;;  %s257_s23 = scalar_lea.vmem [#allocation2], %s5791_s11 }
 0x838   : > { %v4994_v7 = vsel %vm1688_vm3, %v4976_v53, -inf  ;;  %6730 = vmatpush3.bf16.msra.mxu1 %v6727_v52  ;;  %v4127_v47 = vrot.slane %v4126_v62, 1  ;;  %v4274_v8 = vrot.slane %v4273_v1, 2  ;;  %vm5104_vm8 = vcmp.eq.s32.totalorder %v5060_v30, 1  ;;  %v5072_v12 = vpop.permute.xlu1 %5071  ;;  %s5676_s16 = sshll.u32 %s257_s23, 4  ;;  %s11929_s16 = int_to_ptr.vmem [resolvable:$true] %s5676_s16 }
 0x839   : > { %v4995_v19 = vmax.f32 %v13065_v23, %v4994_v7  ;;  %v5498_v54 = vsel %vm5482_vm9, 1, %v13061_v9  ;;  %vm5484_vm12 = vcmp.eq.s32.totalorder %v7133_v63, 15  ;;  %v7065_v4 = vpop.eup %7064  ;;  %vm4962_vm1 = vcmp.eq.s32.totalorder %v4932_v18, 1  ;;  %s7134_s7 = scalar_lea.vmem %s11929_s16, 256  ;;  %p7141_p2 = scmp.lt.s32.totalorder %s11929_s16, %s7139_s8 }
 0x83a   : > { %v3979_v13 = vmax.f32 %v3977_v49, %v3978_v44  ;;  %v5624_v35 = vsel %vm5623_vm13, %v5622_v3, %v3830_v24  ;;  %vm5625_vm4 = vcmask 1043456   ;;  %7066 = vrcp.f32 %v3110_v6  ;;  %v13068_v49 = vld [vmem:[#allocation16_spill] sm:$0xff]  ;;  %5396 = vperm.xlu0 %6909, %v5351_v31   ;;  %p7135_p13 = scmp.ne.s32.totalorder %s11929_s16, %s7134_s7  ;;  %p7142_p3 = scmp.lt.s32.totalorder %s7140_s25, %s7134_s7 }
 0x83b   : > { %v3111_v60 = vadd.f32 1.0, %v7065_v4  ;;  %v4978_v33 = vsel %vm4962_vm1, %v12786_v41, -inf  ;;  %v4423_v29 = vrot.slane %v4422_v28, 2  ;;  %v5120_v40 = vsel %vm5104_vm8, %v12757_v55, -inf  ;;  %v4944_v31 = vpop.permute.xlu0 %4943 }
 0x83c   : > { %v4998_v57 = vsel %vm1688_vm3, %v4978_v33, -inf  ;;  %v4128_v2 = vmax.f32 %v4126_v62, %v4127_v47  ;;  %v4275_v48 = vmax.f32 %v4273_v1, %v4274_v8  ;;  %vm5106_vm5 = vcmp.eq.s32.totalorder %v5066_v43, 1  ;;  %v5078_v53 = vpop.permute.xlu1 %5077  ;;  %p7136_p0 = pnand %p7135_p13, %p7276_p5  ;;  %p7143_p4 = por %p7142_p3, %p7141_p2 }
 0x83d   : > { %7068 = vrcp.f32 %v3111_v60  ;;  %v13069_v37 = vmax.f32 %v13067_v36, %v13068_v49  ;;  %vm5108_vm11 = vcmp.eq.s32.totalorder %v5072_v12, 1  ;;  %vm4964_vm6 = vcmp.eq.s32.totalorder %v4938_v14, 1 }
 0x83e   : > { %v5124_v44 = vsel %vm5108_vm11, %v12761_v51, -inf  ;;  %v5626_v30 = vsel %vm5625_vm4, %v5624_v35, %v3979_v13  ;;  %vm5627_vm0 = vcmask 1044480   ;;  %v5136_v59 = vsel %vm1688_vm3, %v5120_v40, -inf  ;;  %5539 = vperm.xlu0 %6909, %v5498_v54   ;;  %p7137_p1 = pneg %p7136_p0 }
 0x83f   : > { %v4999_v52 = vmax.f32 %v13069_v37, %v4998_v57  ;;  %v5141_v62 = vsel %vm1688_vm3, %v5124_v44, -inf  ;;  %v4980_v1 = vsel %vm4964_vm6, %v10024_v27, -inf  ;;  %v4424_v39 = vmax.f32 %v4422_v28, %v4423_v29  ;;  %v4950_v35 = vpop.permute.xlu0 %4949 }
 0x840   : > { %v5122_v3 = vsel %vm5106_vm5, %v12793_v17, -inf  ;;  %v5142_v5 = vmax.f32 %v5136_v59, %v5141_v62  ;;  %v5002_v6 = vsel %vm1688_vm3, %v4980_v1, -inf  ;;  %v4276_v38 = vrot.slane %v4275_v48, 1  ;;  %v5084_v34 = vpop.permute.xlu1 %5083  ;;  %p7144_p7 = pnand %p7143_p4, %p7137_p1 }
 0x841   : > { %v5003_v7 = vmax.f32 %v4995_v19, %v5002_v6  ;;  %vm5110_vm2 = vcmp.eq.s32.totalorder %v5078_v53, 1  ;;  %v5500_v43 = vsel %vm5484_vm12, 1, %v13061_v9  ;;  %vm4966_vm10 = vcmp.eq.s32.totalorder %v4944_v31, 1 }
 0x842   : > { %v5126_v24 = vsel %vm5110_vm2, %v12840_v56, -inf  ;;  %v5628_v47 = vsel %vm5627_vm0, %v5626_v30, %v4128_v2  ;;  %vm5629_vm14 = vcmask 1045504   ;;  %v5138_v28 = vsel %vm1688_vm3, %v5122_v3, -inf  ;;  %5545 = vperm.xlu0 %6909, %v5500_v43   ;;  %v13070_v3 = vld [vmem:[#allocation190_spill] sm:$0xff] }
 0x843   : > { %v5145_v8 = vsel %vm1688_vm3, %v5126_v24, -inf  ;;  %v4982_v23 = vsel %vm4966_vm10, %v12899_v32, -inf  ;;  %v4425_v18 = vrot.slane %v4424_v39, 1  ;;  %v4277_v63 = vmax.f32 %v4275_v48, %v4276_v38  ;;  %v5057_v14 = vpop.permute.xlu0 %5056 }
 0x844   : > { %v5146_v19 = vmax.f32 %v5138_v28, %v5145_v8  ;;  %v5006_v4 = vsel %vm1688_vm3, %v4982_v23, -inf  ;;  %v7067_v9 = vpop.eup %7066  ;;  %vm5112_vm15 = vcmp.eq.s32.totalorder %v5084_v34, 1  ;;  %vm4968_vm9 = vcmp.eq.s32.totalorder %v4950_v35, 1  ;;  %v5090_v36 = vpop.permute.xlu1 %5089 }
 0x845   : > { %v5007_v13 = vmax.f32 %v4999_v52, %v5006_v4  ;;  %v5128_v54 = vsel %vm5112_vm15, %v9964_v22, -inf  ;;  %v5630_v60 = vsel %vm5629_vm14, %v5628_v47, %v4277_v63  ;;  %vm5631_vm7 = vcmask 1046528  }
 0x846   : > { %v5149_v40 = vsel %vm1688_vm3, %v5128_v54, -inf  ;;  %v4984_v57 = vsel %vm4968_vm9, %v12931_v42, -inf  ;;  %v4426_v12 = vmax.f32 %v4424_v39, %v4425_v18  ;;  %v3158_v49 = vmul.f32 %v7067_v9, %v12931_v42 }
 0x847   : > { %v7069_v33 = vpop.eup %7068  ;;  %v5014_v29 = vmax.f32 %v5007_v13, %v5009_v45  ;;  %v11671_v2 = vmax.f32 %v5142_v5, %v5149_v40  ;;  %v5010_v48 = vsel %vm1688_vm3, %v4984_v57, -inf  ;;  %vm5114_vm8 = vcmp.eq.s32.totalorder %v5090_v36, 1  ;;  %v5063_v39 = vpop.permute.xlu0 %5062  ;;  %v13071_v5 = vld [vmem:[#allocation58_spill] sm:$0xff] }
 0x848   : > { %v3159_v37 = vmul.f32 %v7069_v33, %v12932_v11  ;;  %v5011_v52 = vmax.f32 %v5003_v7, %v5010_v48  ;;  %v5632_v58 = vsel %vm5631_vm7, %v5630_v60, %v4426_v12  ;;  %v5130_v16 = vsel %vm5114_vm8, %v10076_v20, -inf  ;;  %v5096_v62 = vpop.permute.xlu1 %5095 }
 0x849   : > { %5642 = vrot.lane.b32.xlu0 %v5632_v58, %s7203_s14  ;;  %v5153_v30 = vsel %vm1688_vm3, %v5130_v16, -inf  ;;  %vm5116_vm12 = vcmp.eq.s32.totalorder %v5096_v62, 1  ;;  %vm840_vm1 = vcmp.eq.s32.totalorder %v13071_v5, %v13070_v3  ;;  %vm5103_vm5 = vcmp.eq.s32.totalorder %v5057_v14, 1 }
 0x84a   : > { %v6731_v45 = vpack.c.bf16 %v3159_v37, %v3158_v49  ;;  %v5015_v44 = vmax.f32 %v5011_v52, %v5013_v46  ;;  %v11683_v59 = vmax.f32 %v5146_v19, %v5153_v30  ;;  %v5132_v6 = vsel %vm5116_vm12, %v10183_v26, -inf }
 0x84b   : > { %v11689_v10 = vsel %vm1688_vm3, %v5132_v6, -inf  ;;  %v13072_v46 = vmov 1.0   ;;  %v5119_v31 = vsel %vm5103_vm5, %v12776_v61, -inf  ;;  %v5069_v43 = vpop.permute.xlu0 %5068  ;;  %vm5105_vm6 = vcmp.eq.s32.totalorder %v5063_v39, 1 }
 0x84c   : > { %6732 = vmatprep.subr.bf16.mxu1 %v6731_v45  ;;  %v5016_v1 = vmax.f32 %v5014_v29, %v5015_v44  ;;  %v5158_v0 = vmax.f32 %v11671_v2, %v11689_v10  ;;  %v5102_v38 = vpop.permute.xlu1 %5101  ;;  %vm5107_vm2 = vcmp.eq.s32.totalorder %v5069_v43, 1  ;;  %v5135_v23 = vsel %vm1688_vm3, %v5119_v31, -inf }
 0x84d   : > { %6734 = vmatpush3.bf16.msra.mxu1 %v6731_v45  ;;  %vm5118_vm11 = vcmp.eq.s32.totalorder %v5102_v38, 1  ;;  %v5123_v8 = vsel %vm5107_vm2, %v12836_v25, -inf  ;;  %v5121_v63 = vsel %vm5105_vm6, %v12833_v15, -inf }
 0x84e   : > { %v5017_v53 = vrot.slane %v5016_v1, 4  ;;  %v5134_v24 = vsel %vm5118_vm11, %v12932_v11, -inf  ;;  %v5139_v19 = vsel %vm1688_vm3, %v5123_v8, -inf  ;;  %v5137_v60 = vsel %vm1688_vm3, %v5121_v63, -inf }
 0x84f   : > { %v11697_v28 = vsel %vm1688_vm3, %v5134_v24, -inf  ;;  %v5140_v9 = vmax.f32 %v5135_v23, %v5139_v19  ;;  %v5075_v13 = vpop.permute.xlu0 %5074 }
 0x850   : > { %6593 = vmatmul.mubr.msk.f32.vlgmr.msra.gmra.mrb[64].mxu1 %vm840_vm1, %v13072_v46  ;;  %v5018_v7 = vmax.f32 %v5016_v1, %v5017_v53  ;;  %v5162_v18 = vmax.f32 %v11683_v59, %v11697_v28  ;;  %v5209_v4 = vpop.permute.xlu1 %5208  ;;  %vm5109_vm10 = vcmp.eq.s32.totalorder %v5075_v13, 1 }
 0x851   : > { %v5125_v54 = vsel %vm5109_vm10, %v12845_v50, -inf  ;;  %vm5253_vm15 = vcmp.eq.s32.totalorder %v5209_v4, 1 }
 0x852   : > { %v5019_v47 = vrot.slane %v5018_v7, 2  ;;  %v5143_v33 = vsel %vm1688_vm3, %v5125_v54, -inf  ;;  %v5269_v49 = vsel %vm5253_vm15, %v12757_v55, -inf }
 0x853   : > { %v5144_v57 = vmax.f32 %v5137_v60, %v5143_v33  ;;  %v5081_v12 = vpop.permute.xlu0 %5080  ;;  %v5285_v45 = vsel %vm1688_vm3, %v5269_v49, -inf }
 0x854   : > { %v5020_v34 = vmax.f32 %v5018_v7, %v5019_v47  ;;  %v5215_v29 = vpop.permute.xlu1 %5214  ;;  %vm5111_vm9 = vcmp.eq.s32.totalorder %v5081_v12, 1 }
 0x855   : > { %v5127_v48 = vsel %vm5111_vm9, %v12786_v41, -inf  ;;  %vm5255_vm8 = vcmp.eq.s32.totalorder %v5215_v29, 1 }
 0x856   : > { %v5021_v35 = vrot.slane %v5020_v34, 1  ;;  %v5147_v37 = vsel %vm1688_vm3, %v5127_v48, -inf }
 0x857   : > { %v5148_v14 = vmax.f32 %v5140_v9, %v5147_v37  ;;  %v5087_v58 = vpop.permute.xlu0 %5086 }
 0x858   : > { %v5022_v40 = vmax.f32 %v5020_v34, %v5021_v35  ;;  %v5221_v52 = vpop.permute.xlu1 %5220  ;;  %vm5113_vm1 = vcmp.eq.s32.totalorder %v5087_v58, 1 }
 0x859   : > { %vm5257_vm12 = vcmp.eq.s32.totalorder %v5221_v52, 1  ;;  %v5129_v30 = vsel %vm5113_vm1, %v10024_v27, -inf }
 0x85a   : > { %v11711_v36 = vsel %vm5623_vm13, %v11632_v21, %v5022_v40  ;;  %v5273_v16 = vsel %vm5257_vm12, %v12761_v51, -inf  ;;  %v5271_v21 = vsel %vm5255_vm8, %v12793_v17, -inf  ;;  %v5151_v62 = vsel %vm1688_vm3, %v5129_v30, -inf }
 0x85b   : > { %v5290_v44 = vsel %vm1688_vm3, %v5273_v16, -inf  ;;  %v5152_v39 = vmax.f32 %v5144_v57, %v5151_v62  ;;  %v5093_v3 = vpop.permute.xlu0 %5092  ;;  %v11723_v6 = vsel %vm1688_vm3, %v5271_v21, -inf }
 0x85c   : > { %v5291_v59 = vmax.f32 %v5285_v45, %v5290_v44  ;;  %v5227_v1 = vpop.permute.xlu1 %5226  ;;  %vm5115_vm5 = vcmp.eq.s32.totalorder %v5093_v3, 1 }
 0x85d   : > { %vm5259_vm13 = vcmp.eq.s32.totalorder %v5227_v1, 1  ;;  %v5131_v46 = vsel %vm5115_vm5, %v12899_v32, -inf }
 0x85e   : > { %v5275_v5 = vsel %vm5259_vm13, %v12840_v56, -inf  ;;  %v5155_v7 = vsel %vm1688_vm3, %v5131_v46, -inf }
 0x85f   : > { %v11726_v53 = vsel %vm1688_vm3, %v5275_v5, -inf  ;;  %v5156_v43 = vmax.f32 %v5148_v14, %v5155_v7  ;;  %v5099_v24 = vpop.permute.xlu0 %5098 }
 0x860   : > { %v5295_v38 = vmax.f32 %v11723_v6, %v11726_v53  ;;  %v5233_v31 = vpop.permute.xlu1 %5232  ;;  %vm5117_vm6 = vcmp.eq.s32.totalorder %v5099_v24, 1 }
 0x861   : > { %vm5261_vm11 = vcmp.eq.s32.totalorder %v5233_v31, 1  ;;  %v5163_v28 = vmax.f32 %v5156_v43, %v5158_v0  ;;  %v5133_v23 = vsel %vm5117_vm6, %v12931_v42, -inf }
 0x862   : > { %v5277_v47 = vsel %vm5261_vm11, %v9964_v22, -inf  ;;  %v5159_v4 = vsel %vm1688_vm3, %v5133_v23, -inf }
 0x863   : > { %v5298_v8 = vsel %vm1688_vm3, %v5277_v47, -inf  ;;  %v5160_v63 = vmax.f32 %v5152_v39, %v5159_v4  ;;  %v5206_v9 = vpop.permute.xlu0 %5205 }
 0x864   : > { %v11738_v19 = vmax.f32 %v5291_v59, %v5298_v8  ;;  %v11741_v34 = vpop.permute.xlu1 %5354  ;;  %vm5252_vm2 = vcmp.eq.s32.totalorder %v5206_v9, 1 }
 0x865   : > { %v5164_v13 = vmax.f32 %v5160_v63, %v5162_v18  ;;  %v5268_v33 = vsel %vm5252_vm2, %v12776_v61, -inf  ;;  %vm5401_vm13 = vcmp.eq.s32.totalorder %v11741_v34, 1 }
 0x866   : > { %v5284_v12 = vsel %vm1688_vm3, %v5268_v33, -inf }
 0x867   : > { %v5165_v54 = vmax.f32 %v5163_v28, %v5164_v13  ;;  %v5212_v60 = vpop.permute.xlu0 %5211 }
 0x868   : > { %v11743_v35 = vpop.permute.xlu1 %5360  ;;  %vm5254_vm10 = vcmp.eq.s32.totalorder %v5212_v60, 1 }
 0x869   : > { %v5166_v2 = vrot.slane %v5165_v54, 4  ;;  %v5270_v37 = vsel %vm5254_vm10, %v12833_v15, -inf  ;;  %vm5403_vm11 = vcmp.eq.s32.totalorder %v11743_v35, 1 }
 0x86a   : > { %v5286_v45 = vsel %vm1688_vm3, %v5270_v37, -inf }
 0x86b   : > { %v5167_v0 = vmax.f32 %v5165_v54, %v5166_v2  ;;  %v5218_v29 = vpop.permute.xlu0 %5217 }
 0x86c   : > { %v5367_v10 = vpop.permute.xlu1 %5366  ;;  %vm5256_vm15 = vcmp.eq.s32.totalorder %v5218_v29, 1 }
 0x86d   : > { %v5168_v40 = vrot.slane %v5167_v0, 2  ;;  %v5272_v57 = vsel %vm5256_vm15, %v12836_v25, -inf }
 0x86e   : > { %v5288_v18 = vsel %vm1688_vm3, %v5272_v57, -inf }
 0x86f   : > { %v5169_v49 = vmax.f32 %v5167_v0, %v5168_v40  ;;  %v5289_v52 = vmax.f32 %v5284_v12, %v5288_v18  ;;  %v5224_v14 = vpop.permute.xlu0 %5223 }
 0x870   : > { %v5373_v48 = vpop.permute.xlu1 %5372  ;;  %vm5258_vm9 = vcmp.eq.s32.totalorder %v5224_v14, 1 }
 0x871   : > { %v5170_v58 = vrot.slane %v5169_v49, 1  ;;  %v5274_v16 = vsel %vm5258_vm9, %v12845_v50, -inf  ;;  %vm5407_vm1 = vcmp.eq.s32.totalorder %v5373_v48, 1 }
 0x872   : > { %v5292_v44 = vsel %vm1688_vm3, %v5274_v16, -inf  ;;  %v5423_v18 = vsel %vm5407_vm1, %v12845_v50, -inf }
 0x873   : > { %v5171_v21 = vmax.f32 %v5169_v49, %v5170_v58  ;;  %v5293_v59 = vmax.f32 %v5286_v45, %v5292_v44  ;;  %v5230_v62 = vpop.permute.xlu0 %5229  ;;  %v5417_v49 = vsel %vm5401_vm13, %v12776_v61, -inf  ;;  %v11796_v35 = vsel %vm1688_vm3, %v5423_v18, -inf }
 0x874   : > { %v5239_v30 = vpop.permute.xlu1 %5238  ;;  %vm5260_vm8 = vcmp.eq.s32.totalorder %v5230_v62, 1  ;;  %v11801_v14 = vsel %vm1688_vm3, %v5417_v49, -inf }
 0x875   : > { %v5276_v1 = vsel %vm5260_vm8, %v12786_v41, -inf  ;;  %v11756_v39 = vsel %vm5625_vm4, %v11711_v36, %v5171_v21  ;;  %vm5405_vm4 = vcmp.eq.s32.totalorder %v5367_v10, 1  ;;  %vm5263_vm5 = vcmp.eq.s32.totalorder %v5239_v30, 1 }
 0x876   : > { %v5296_v3 = vsel %vm1688_vm3, %v5276_v1, -inf  ;;  %v5421_v57 = vsel %vm5405_vm4, %v12836_v25, -inf  ;;  %v5279_v37 = vsel %vm5263_vm5, %v10076_v20, -inf  ;;  %v5419_v10 = vsel %vm5403_vm11, %v12833_v15, -inf }
 0x877   : > { %v11759_v46 = vmax.f32 %v5289_v52, %v5296_v3  ;;  %v5236_v7 = vpop.permute.xlu0 %5235  ;;  %v11793_v34 = vsel %vm1688_vm3, %v5421_v57, -inf  ;;  %v5302_v58 = vsel %vm1688_vm3, %v5279_v37, -inf  ;;  %v11806_v45 = vsel %vm1688_vm3, %v5419_v10, -inf }
 0x878   : > { %v5507_v5 = vpop.permute.xlu1 %5506  ;;  %vm5262_vm12 = vcmp.eq.s32.totalorder %v5236_v7, 1  ;;  %v5438_v44 = vmax.f32 %v11801_v14, %v11793_v34  ;;  %v5442_v21 = vmax.f32 %v11806_v45, %v11796_v35  ;;  %v5303_v62 = vmax.f32 %v5295_v38, %v5302_v58 }
 0x879   : > { %v5278_v31 = vsel %vm5262_vm12, %v10024_v27, -inf  ;;  %vm5551_vm6 = vcmp.eq.s32.totalorder %v5507_v5, 1 }
 0x87a   : > { %v5300_v43 = vsel %vm1688_vm3, %v5278_v31, -inf  ;;  %v5567_v16 = vsel %vm5551_vm6, %v12757_v55, -inf }
 0x87b   : > { %v11763_v47 = vmax.f32 %v5293_v59, %v5300_v43  ;;  %v5358_v28 = vpop.permute.xlu0 %5357  ;;  %v11818_v1 = vsel %vm1688_vm3, %v5567_v16, -inf }
 0x87c   : > { %v5513_v24 = vpop.permute.xlu1 %5512  ;;  %vm5402_vm10 = vcmp.eq.s32.totalorder %v5358_v28, 1 }
 0x87d   : > { %vm5553_vm15 = vcmp.eq.s32.totalorder %v5513_v24, 1  ;;  %v5418_v59 = vsel %vm5402_vm10, %v12757_v55, -inf }
 0x87e   : > { %v5569_v7 = vsel %vm5553_vm15, %v12793_v17, -inf  ;;  %v5434_v55 = vsel %vm1688_vm3, %v5418_v59, -inf }
 0x87f   : > { %v5364_v23 = vpop.permute.xlu0 %5363 }
 0x880   : > { %v5519_v8 = vpop.permute.xlu1 %5518  ;;  %vm5404_vm1 = vcmp.eq.s32.totalorder %v5364_v23, 1 }
 0x881   : > { %vm5555_vm12 = vcmp.eq.s32.totalorder %v5519_v8, 1  ;;  %v5420_v8 = vsel %vm5404_vm1, %v12793_v17, -inf }
 0x882   : > { %v5571_v38 = vsel %vm5555_vm12, %v12761_v51, -inf  ;;  %v5436_v18 = vsel %vm1688_vm3, %v5420_v8, -inf }
 0x883   : > { %v5370_v36 = vpop.permute.xlu0 %5369 }
 0x884   : > { %v11765_v4 = vpop.permute.xlu1 %5524  ;;  %vm5406_vm9 = vcmp.eq.s32.totalorder %v5370_v36, 1 }
 0x885   : > { %v5422_v43 = vsel %vm5406_vm9, %v12761_v51, -inf  ;;  %vm5557_vm6 = vcmp.eq.s32.totalorder %v11765_v4, 1 }
 0x886   : > { %v5573_v49 = vsel %vm5557_vm6, %v12840_v56, -inf }
 0x887   : > { %v5376_v9 = vpop.permute.xlu0 %5375 }
 0x888   : > { %v11767_v63 = vpop.permute.xlu1 %5381  ;;  %vm5408_vm4 = vcmp.eq.s32.totalorder %v5376_v9, 1 }
 0x889   : > { %vm5410_vm5 = vcmp.eq.s32.totalorder %v11767_v63, 1  ;;  %v5424_v24 = vsel %vm5408_vm4, %v12840_v56, -inf }
 0x88a   : > { %v5426_v63 = vsel %vm5410_vm5, %v9964_v22, -inf }
 0x88c   : > { %v11769_v13 = vpop.permute.xlu1 %5387 }
 0x88d   : > { %v11771_v54 = vpop.permute.xlu0 %5503  ;;  %vm5412_vm11 = vcmp.eq.s32.totalorder %v11769_v13, 1 }
 0x88e   : > { %vm5550_vm15 = vcmp.eq.s32.totalorder %v11771_v54, 1 }
 0x88f   : > { %v5566_v54 = vsel %vm5550_vm15, %v12776_v61, -inf }
 0x890   : > { %v5245_v60 = vpop.permute.xlu1 %5244 }
 0x891   : > { %v11773_v2 = vpop.permute.xlu0 %5509  ;;  %vm5265_vm2 = vcmp.eq.s32.totalorder %v5245_v60, 1  ;;  %v5439_v60 = vsel %vm1688_vm3, %v5422_v43, -inf  ;;  %v11857_v43 = vsel %vm1688_vm3, %v5569_v7, -inf }
 0x892   : > { %v5281_v30 = vsel %vm5265_vm2, %v10183_v26, -inf  ;;  %v5440_v16 = vmax.f32 %v5434_v55, %v5439_v60  ;;  %vm5552_vm12 = vcmp.eq.s32.totalorder %v11773_v2, 1  ;;  %v5582_v2 = vsel %vm1688_vm3, %v5566_v54, -inf }
 0x893   : > { %v5306_v31 = vsel %vm1688_vm3, %v5281_v30, -inf  ;;  %v5447_v30 = vsel %vm1688_vm3, %v5426_v63, -inf }
 0x894   : > { %v5251_v0 = vpop.permute.xlu1 %5250  ;;  %v5307_v23 = vmax.f32 %v11738_v19, %v5306_v31  ;;  %v11843_v19 = vsel %vm1688_vm3, %v5571_v38, -inf  ;;  %v5448_v55 = vmax.f32 %v5440_v16, %v5447_v30 }
 0x895   : > { %v11775_v33 = vpop.permute.xlu0 %5515  ;;  %vm5267_vm8 = vcmp.eq.s32.totalorder %v5251_v0, 1  ;;  %v5443_v0 = vsel %vm1688_vm3, %v5424_v24, -inf  ;;  %v5589_v56 = vmax.f32 %v11818_v1, %v11843_v19 }
 0x896   : > { %v5283_v6 = vsel %vm5267_vm8, %v12932_v11, -inf  ;;  %vm5554_vm10 = vcmp.eq.s32.totalorder %v11775_v33, 1  ;;  %v5444_v59 = vmax.f32 %v5436_v18, %v5443_v0 }
 0x897   : > { %v5310_v51 = vsel %vm1688_vm3, %v5283_v6, -inf  ;;  %v5570_v33 = vsel %vm5554_vm10, %v12836_v25, -inf }
 0x898   : > { %v11777_v29 = vpop.permute.xlu1 %5530  ;;  %v5311_v37 = vmax.f32 %v5303_v62, %v5310_v51  ;;  %v11869_v6 = vsel %vm1688_vm3, %v5570_v33, -inf }
 0x899   : > { %v11779_v40 = vpop.permute.xlu0 %5521  ;;  %vm5559_vm4 = vcmp.eq.s32.totalorder %v11777_v29, 1  ;;  %v5568_v29 = vsel %vm5552_vm12, %v12833_v15, -inf  ;;  %v5587_v24 = vmax.f32 %v5582_v2, %v11869_v6 }
 0x89a   : > { %v5575_v38 = vsel %vm5559_vm4, %v9964_v22, -inf  ;;  %vm5556_vm5 = vcmp.eq.s32.totalorder %v11779_v40, 1  ;;  %v5584_v54 = vsel %vm1688_vm3, %v5568_v29, -inf  ;;  %vm5650_vm4 = vcmask 523264  }
 0x89b   : > { %v5596_v15 = vsel %vm1688_vm3, %v5575_v38, -inf  ;;  %v5572_v22 = vsel %vm5556_vm5, %v12845_v50, -inf }
 0x89c   : > { %v11789_v52 = vpop.permute.xlu1 %5536 }
 0x89d   : > { %v11784_v12 = vpop.permute.xlu0 %5378 }
 0x89e   : > { %vm5409_vm9 = vcmp.eq.s32.totalorder %v11784_v12, 1 }
 0x8a0   : > { %v11820_v3 = vpop.permute.xlu1 %5393 }
 0x8a1   : > { %v11798_v48 = vpop.permute.xlu0 %5384  ;;  %vm5414_vm1 = vcmp.eq.s32.totalorder %v11820_v3, 1 }
 0x8a2   : > { %vm5411_vm8 = vcmp.eq.s32.totalorder %v11798_v48, 1 }
 0x8a3   : > { %v5427_v48 = vsel %vm5411_vm8, %v10024_v27, -inf }
 0x8a4   : > { %v5400_v57 = vpop.permute.xlu1 %5399 }
 0x8a5   : > { %v5242_v5 = vpop.permute.xlu0 %5241 }
 0x8a6   : > { %vm5264_vm13 = vcmp.eq.s32.totalorder %v5242_v5, 1 }
 0x8a7   : > { %v5280_v53 = vsel %vm5264_vm13, %v12899_v32, -inf  ;;  %vm5416_vm13 = vcmp.eq.s32.totalorder %v5400_v57, 1 }
 0x8a8   : > { %v5304_v28 = vsel %vm1688_vm3, %v5280_v53, -inf  ;;  %v5543_v25 = vpop.permute.xlu1 %5542  ;;  %v5425_v53 = vsel %vm5409_vm9, %v12786_v41, -inf }
 0x8a9   : > { %v5305_v36 = vmax.f32 %v11759_v46, %v5304_v28  ;;  %v5248_v9 = vpop.permute.xlu0 %5247  ;;  %v5428_v46 = vsel %vm5412_vm11, %v10076_v20, -inf  ;;  %vm5561_vm11 = vcmp.eq.s32.totalorder %v11789_v52, 1  ;;  %v5445_v28 = vsel %vm1688_vm3, %v5425_v53, -inf }
 0x8aa   : > { %vm5266_vm2 = vcmp.eq.s32.totalorder %v5248_v9, 1  ;;  %v5451_v5 = vsel %vm1688_vm3, %v5428_v46, -inf  ;;  %v5432_v9 = vsel %vm5416_vm13, %v12932_v11, -inf  ;;  %v5577_v52 = vsel %vm5561_vm11, %v10076_v20, -inf }
 0x8ab   : > { %v5312_v17 = vmax.f32 %v5305_v36, %v5307_v23  ;;  %v5282_v13 = vsel %vm5266_vm2, %v12931_v42, -inf  ;;  %v5452_v7 = vmax.f32 %v5444_v59, %v5451_v5  ;;  %v5430_v23 = vsel %vm5414_vm1, %v10183_v26, -inf }
 0x8ac   : > { %v5308_v4 = vsel %vm1688_vm3, %v5282_v13, -inf  ;;  %v5449_v36 = vsel %vm1688_vm3, %v5427_v48, -inf  ;;  %v5549_v60 = vpop.permute.xlu1 %5548  ;;  %v5446_v63 = vmax.f32 %v5438_v44, %v5445_v28  ;;  %v5455_v57 = vsel %vm1688_vm3, %v5430_v23, -inf }
 0x8ad   : > { %v5309_v10 = vmax.f32 %v11763_v47, %v5308_v4  ;;  %v5528_v58 = vpop.permute.xlu0 %5527  ;;  %v11862_v47 = vsel %vm1688_vm3, %v5573_v49, -inf  ;;  %v5459_v50 = vsel %vm1688_vm3, %v5432_v9, -inf  ;;  %vm5563_vm10 = vcmp.eq.s32.totalorder %v5543_v25, 1 }
 0x8ae   : > { %vm5558_vm2 = vcmp.eq.s32.totalorder %v5528_v58, 1  ;;  %vm5565_vm15 = vcmp.eq.s32.totalorder %v5549_v60, 1  ;;  %v5590_v4 = vsel %vm1688_vm3, %v5572_v22, -inf  ;;  %v5600_v18 = vsel %vm1688_vm3, %v5577_v52, -inf }
 0x8af   : > { %v5313_v31 = vmax.f32 %v5309_v10, %v5311_v37  ;;  %v5574_v34 = vsel %vm5558_vm2, %v12786_v41, -inf  ;;  %v5456_v35 = vmax.f32 %v5448_v55, %v5455_v57  ;;  %v5579_v16 = vsel %vm5563_vm10, %v10183_v26, -inf }
 0x8b0   : > { %v5581_v41 = vsel %vm5565_vm15, %v12932_v11, -inf  ;;  %v5594_v30 = vsel %vm1688_vm3, %v5574_v34, -inf  ;;  %v5597_v11 = vmax.f32 %v5589_v56, %v5596_v15 }
 0x8b1   : > { %v5314_v12 = vmax.f32 %v5312_v17, %v5313_v31  ;;  %v5534_v62 = vpop.permute.xlu0 %5533  ;;  %v5450_v17 = vmax.f32 %v5442_v21, %v5449_v36  ;;  %v5460_v21 = vmax.f32 %v5452_v7, %v5459_v50  ;;  %v5608_v6 = vsel %vm1688_vm3, %v5581_v41, -inf }
 0x8b2   : > { %vm5560_vm9 = vcmp.eq.s32.totalorder %v5534_v62, 1  ;;  %v5595_v62 = vmax.f32 %v5587_v24, %v5594_v30 }
 0x8b3   : > { %v5315_v61 = vrot.slane %v5314_v12, 4  ;;  %v5576_v49 = vsel %vm5560_vm9, %v10024_v27, -inf  ;;  %v5593_v27 = vmax.f32 %v11857_v43, %v11862_v47 }
 0x8b4   : > { %v5598_v26 = vsel %vm1688_vm3, %v5576_v49, -inf }
 0x8b5   : > { %v5316_v8 = vmax.f32 %v5314_v12, %v5315_v61  ;;  %v5391_v3 = vpop.permute.xlu0 %5390  ;;  %v5591_v12 = vmax.f32 %v5584_v54, %v5590_v4  ;;  %v5601_v7 = vmax.f32 %v5593_v27, %v5600_v18 }
 0x8b6   : > { %vm5413_vm6 = vcmp.eq.s32.totalorder %v5391_v3, 1 }
 0x8b7   : > { %v5317_v40 = vrot.slane %v5316_v8, 2  ;;  %v5429_v51 = vsel %vm5413_vm6, %v12899_v32, -inf  ;;  %v5599_v43 = vmax.f32 %v5591_v12, %v5598_v26  ;;  %v5609_v1 = vmax.f32 %v5601_v7, %v5608_v6 }
 0x8b8   : > { %v5453_v0 = vsel %vm1688_vm3, %v5429_v51, -inf }
 0x8b9   : > { %v5318_v13 = vmax.f32 %v5316_v8, %v5317_v40  ;;  %v5397_v46 = vpop.permute.xlu0 %5396  ;;  %v5454_v14 = vmax.f32 %v5446_v63, %v5453_v0 }
 0x8ba   : > { %vm5415_vm8 = vcmp.eq.s32.totalorder %v5397_v46, 1 }
 0x8bb   : > { %v5319_v20 = vrot.slane %v5318_v13, 1  ;;  %v5431_v44 = vsel %vm5415_vm8, %v12931_v42, -inf  ;;  %v5461_v59 = vmax.f32 %v5454_v14, %v5456_v35 }
 0x8bc   : > { %v5457_v45 = vsel %vm1688_vm3, %v5431_v44, -inf }
 0x8bd   : > { %v5458_v37 = vmax.f32 %v5450_v17, %v5457_v45  ;;  %v5540_v10 = vpop.permute.xlu0 %5539  ;;  %v5320_v58 = vmax.f32 %v5318_v13, %v5319_v20 }
 0x8be   : > { %vm5562_vm12 = vcmp.eq.s32.totalorder %v5540_v10, 1 }
 0x8bf   : > { %v5462_v5 = vmax.f32 %v5458_v37, %v5460_v21  ;;  %v5578_v33 = vsel %vm5562_vm12, %v12899_v32, -inf  ;;  %v5637_v31 = vsel %vm5627_vm0, %v11756_v39, %v5320_v58  ;;  %v5604_v39 = vsel %vm1688_vm3, %v5579_v16, -inf }
 0x8c0   : > { %v5602_v25 = vsel %vm1688_vm3, %v5578_v33, -inf  ;;  %v5605_v2 = vmax.f32 %v5597_v11, %v5604_v39 }
 0x8c1   : > { %v5463_v55 = vmax.f32 %v5461_v59, %v5462_v5  ;;  %v5546_v32 = vpop.permute.xlu0 %5545  ;;  %v5603_v53 = vmax.f32 %v5595_v62, %v5602_v25 }
 0x8c2   : > { %vm5564_vm0 = vcmp.eq.s32.totalorder %v5546_v32, 1 }
 0x8c3   : > { %v5464_v47 = vrot.slane %v5463_v55, 4  ;;  %v5580_v48 = vsel %vm5564_vm0, %v12931_v42, -inf  ;;  %v5610_v38 = vmax.f32 %v5603_v53, %v5605_v2 }
 0x8c4   : > { %v5606_v61 = vsel %vm1688_vm3, %v5580_v48, -inf }
 0x8c5   : > { %v5465_v19 = vmax.f32 %v5463_v55, %v5464_v47  ;;  %v5607_v56 = vmax.f32 %v5599_v43, %v5606_v61  ;;  %v5643_v63 = vpop.permute.xlu0 %5642 }
 0x8c7   : > { %v5466_v29 = vrot.slane %v5465_v19, 2  ;;  %v5611_v24 = vmax.f32 %v5607_v56, %v5609_v1 }
 0x8c9   : > { %v5467_v28 = vmax.f32 %v5465_v19, %v5466_v29  ;;  %v5612_v8 = vmax.f32 %v5610_v38, %v5611_v24 }
 0x8cb   : > { %v5613_v3 = vrot.slane %v5612_v8, 4  ;;  %v5468_v23 = vrot.slane %v5467_v28, 1 }
 0x8cd   : > { %v5614_v36 = vmax.f32 %v5612_v8, %v5613_v3  ;;  %v5469_v9 = vmax.f32 %v5467_v28, %v5468_v23 }
 0x8cf   : > { %v5615_v15 = vrot.slane %v5614_v36, 2  ;;  %v5638_v22 = vsel %vm5629_vm14, %v5637_v31, %v5469_v9 }
 0x8d1   : > { %v5616_v42 = vmax.f32 %v5614_v36, %v5615_v15 }
 0x8d3   : > { %v5617_v40 = vrot.slane %v5616_v42, 1 }
 0x8d5   : > { %v5618_v60 = vmax.f32 %v5616_v42, %v5617_v40 }
 0x8d7   : > { %v5639_v51 = vsel %vm5631_vm7, %v5638_v22, %v5618_v60 }
 0x8d8   : > { %5644 = vrot.lane.b32.xlu1 %v5639_v51, %s7203_s14 }
 0x923   : > { %v6594_v52 = vpop.f32.mrb[64].mxu1 }
 0x924   : > { %v3226_v0 = vpop.f32.mrb[65].mxu1 }
 0x925   : > { %v5648_v57 = vsel %vm1688_vm3, %v3226_v0, %v5643_v63 }
 0x926   : > { %5651 = vst.msk [vmem:[%s257_s23] sm:$0xff] %vm5650_vm4, %v5648_v57 }
 0x94a   : > { %v5645_v17 = vpop.permute.xlu1 %5644 }
 0x94b   : > { %v5649_v50 = vsel %vm1688_vm3, %v6594_v52, %v5645_v17 }
 0x94c   : > { %5652 = vst.msk [vmem:[%s257_s23 + $0x8] sm:$0xff] %vm5650_vm4, %v5649_v50 }
 0x94d   : > { %7147 = shalt.err (!%p7144_p7)
}
 0x94e   : > { %s7148_s10 = scalar_lea.hbm %s11934_s30, 256  ;;  %s7152_s15 = scalar_lea.hbm %s11983_s5, 1024 }
 0x94f   : > { %p7149_p8 = scmp.ne.s32.totalorder %s11934_s30, %s7148_s10  ;;  %p7153_p11 = scmp.lt.u32.totalorder %s11934_s30, %s11983_s5 }
 0x950   : > { %p7154_p12 = scmp.lt.u32.totalorder %s7152_s15, %s7148_s10  ;;  %p7156_p0 = scmp.lt.u32.totalorder %s7148_s10, %s11934_s30 }
 0x951   : > { %p7150_p9 = pnand %p7149_p8, %p7276_p5 }
 0x952   : > { %p7155_p13 = por %p7154_p12, %p7153_p11 }
 0x953   : > { %p7151_p10 = pneg %p7150_p9 }
 0x954   : > { %p7157_p1 = por %p7156_p0, %p7155_p13 }
 0x956   : > { %p7158_p2 = pnand %p7157_p1, %p7151_p10 }
 0x958   : > { %7161 = shalt.err (!%p7158_p2)
}
 0x959   : > { %s7206_s23 = smov 128   ;;  %s7207_s17 = smov 8  }
 0x95a   : > { %6735 = dma.vmem_to_hbm [thread:$0]  (%p7276_p5), %s11929_s16, 256, %s11934_s30, %s11937_s6, %s7206_s23, %s7206_s23, %s7207_s17  }
 0x95b PF: > { %p6741_p3 = scmp.ge.s32.totalorder %s7196_s21, 2  ;;  %s5699_s14 = sand.u32 1, %s7184_s18  }
 0x95c   : > { %s5700_s26 = scalar_lea.sflag [#allocation3], %s5699_s14 }
 0x95d   : > { %p6738_p4 = pnand %p6741_p3, %p7280_p6 }
 0x95f   : > { %7179 = dma.done.wait (!%p6738_p4), %s5700_s26, 256  }
 0x960   : > { %7181 = vsyncadd (!%p6738_p4), %s5700_s26, 4294967040  ;;  %p16_p7 = scmp.ge.s32.totalorder %s7263_s24, 6   ;;  %s13073_s18 = smov %s7188_s19 }
 0x961   : > { %s13074_s19 = smov %s7192_s20  ;;  %s13075_s20 = smov %s7274_s27 }
 0x962   : > { %s13076_s21 = smov %s7263_s24  ;;  %18 = sbr.rel (!%p16_p7) target bundleno = 3 (0x3), region = 89 }
 0x969   :  { %5705 = vsyncpa [#allocation3], 1 }
 0x96a   :  { %5707 = vsyncpa [#allocation3 + $0x1], 1 }

</bundles_post_ra>
